<compile_context>
chip_gen: v7x
topology: tpu7x:2x2x1
jax: 0.10.0
libtpu: 0.0.40
codegen_flags: <defaults>
</compile_context>

<pallas_src>
import functools

import jax
import jax.numpy as jnp
from jax.experimental import pallas as pl
from jax.experimental.pallas import tpu as pltpu

LANE = 128
EPS = 1e-5


def _round_up(n, m=LANE):
    return ((n + m - 1) // m) * m


def _mish(v):
    # Mish(x) = x * tanh(softplus(x)); tanh(softplus(x)) == n/(n+2), n = e^x (e^x + 2).
    # One EUP exp + approx reciprocal (+1 Newton step on the VPU) instead of exp+log+tanh.
    e = jnp.exp(v)
    n = e * (e + 2.0)
    d = n + 2.0
    r = pl.reciprocal(d, approx=True)
    r = r * (2.0 - d * r)                       # Newton refinement: ~f32 accuracy, VPU-only
    # For x > 20, tanh(softplus(x)) == 1 to f32 precision; also guards inf/inf -> NaN.
    return jnp.where(v > 20.0, v, v * (n * r))


def _zero_halo(pad_ref, H, W, C):
    # Zero only the 1-pixel border; the interior is fully rewritten every grid step.
    zrow = jnp.zeros((1, 1, W + 2, C), jnp.float32)
    zcol = jnp.zeros((1, H + 2, 1, C), jnp.float32)
    pad_ref[:, 0:1, :, :] = zrow
    pad_ref[:, H + 1:H + 2, :, :] = zrow
    pad_ref[:, :, 0:1, :] = zcol
    pad_ref[:, :, W + 1:W + 2, :] = zcol


def _conv3x3_im2col(pad_ref, patch_ref, w_ref, b_ref, interior, H, W, cdt):
    """3x3 / stride-1 / pad-1 conv of `interior` (1,H,W,Ci_pad) as one im2col matmul."""
    Ci = pad_ref.shape[3]
    _zero_halo(pad_ref, H, W, Ci)
    pad_ref[:, 1:H + 1, 1:W + 1, :] = interior
    for kh in range(3):
        for kw in range(3):
            t = kh * 3 + kw
            patch_ref[:, t * Ci:(t + 1) * Ci] = (
                pad_ref[:, kh:kh + H, kw:kw + W, :].reshape(H * W, Ci).astype(cdt))
    y = jnp.dot(patch_ref[...], w_ref[...], preferred_element_type=jnp.float32)
    return y + b_ref[...]                       # bias fused into the matmul epilogue


def _emit_stats(st_ref, y):
    # Per-tile channel sum / sum-of-squares, fused into the conv epilogue (XLU reduce).
    # Reduced across tiles in the wrapper -> tiling-safe two-pass BatchNorm statistics.
    c = y.shape[1]
    st_ref[:, 0:1, :] = jnp.sum(y, axis=0, keepdims=True).reshape(1, 1, c)
    st_ref[:, 1:2, :] = jnp.sum(y * y, axis=0, keepdims=True).reshape(1, 1, c)


# ---------------- pass 1: conv1 (3x3) + per-tile stats ----------------
def _conv1_kernel(x_ref, w1_ref, b1_ref, y1_ref, st1_ref, pad_ref, patch_ref,
                  *, H, W, cdt):
    cmid = y1_ref.shape[3]
    y1 = _conv3x3_im2col(pad_ref, patch_ref, w1_ref, b1_ref, x_ref[...], H, W, cdt)
    y1_ref[...] = y1.reshape(1, H, W, cmid)
    _emit_stats(st1_ref, y1)


# ---------------- pass 2: BN1 + Mish + conv2 (3x3) + per-tile stats ----------------
def _bn_mish_conv2_kernel(y1_ref, sc1_ref, sh1_ref, w2_ref, b2_ref,
                          y2_ref, st2_ref, pad_ref, patch_ref, *, H, W, cdt):
    cmid = y1_ref.shape[3]
    cout = y2_ref.shape[3]
    a = _mish(y1_ref[...].reshape(H * W, cmid) * sc1_ref[...] + sh1_ref[...])
    y2 = _conv3x3_im2col(pad_ref, patch_ref, w2_ref, b2_ref,
                         a.reshape(1, H, W, cmid), H, W, cdt)
    y2_ref[...] = y2.reshape(1, H, W, cout)
    _emit_stats(st2_ref, y2)


# ---------------- pass 3: BN2 + residual 1x1 conv + add + Mish ----------------
def _bn_res_mish_kernel(y2_ref, sc2_ref, sh2_ref, x_ref, wres_ref, bres_ref,
                        out_ref, *, H, W, cdt):
    cin = x_ref.shape[3]
    cout = out_ref.shape[3]
    res = jnp.dot(x_ref[...].reshape(H * W, cin).astype(cdt), wres_ref[...],
                  preferred_element_type=jnp.float32) + bres_ref[...]
    y2 = y2_ref[...].reshape(H * W, cout)
    out = _mish(y2 * sc2_ref[...] + sh2_ref[...] + res)
    out_ref[...] = out.reshape(1, H, W, cout)


def _batch_stats(st, m_total):
    s = jnp.sum(st, axis=0)                     # (2, Cp): reduce per-tile stats
    mean = s[0:1] / m_total
    var = s[1:2] / m_total - mean * mean        # biased variance (training-mode BN)
    return mean, var


def resblock_forward(x_nchw, params, compute_dtype=jnp.float32):
    """x_nchw (N, Cin, H, W) f32 -> (N, Cout, H, W) f32.

    compute_dtype controls only the MXU operand dtype (bf16 recommended on v6e/v7x);
    accumulation, BatchNorm and Mish stay in f32.
    """
    (w1, b1, g1, be1, w2, b2, g2, be2, wres, bres) = params
    x = jnp.transpose(x_nchw, (0, 2, 3, 1)).astype(jnp.float32)        # NHWC
    N, H, W, Cin = x.shape
    Cmid, Cout = w1.shape[2], w2.shape[2]
    Cin_p, Cmid_p, Cout_p = _round_up(Cin), _round_up(Cmid), _round_up(Cout)
    M = N * H * W

    # ---- lane-dense channel padding (compute on padded C, slice outside) ----
    xp = jnp.pad(x, ((0, 0), (0, 0), (0, 0), (0, Cin_p - Cin)))

    def pad_w3(w, cip, cop):    # (9, ci, co) -> (9*cip, cop), im2col weight layout
        w = jnp.pad(w, ((0, 0), (0, cip - w.shape[1]), (0, cop - w.shape[2])))
        return w.reshape(9 * cip, cop).astype(compute_dtype)

    def pad_row(v, cp):
        return jnp.pad(v, (0, cp - v.shape[0])).reshape(1, cp).astype(jnp.float32)

    w1p = pad_w3(w1, Cin_p, Cmid_p)
    w2p = pad_w3(w2, Cmid_p, Cout_p)
    wrp = jnp.pad(wres, ((0, Cin_p - Cin), (0, Cout_p - Cout))).astype(compute_dtype)
    b1p, g1p, be1p = pad_row(b1, Cmid_p), pad_row(g1, Cmid_p), pad_row(be1, Cmid_p)
    b2p, g2p, be2p = pad_row(b2, Cout_p), pad_row(g2, Cout_p), pad_row(be2, Cout_p)
    brp = pad_row(bres, Cout_p)

    # Batch-tiled grid; "parallel" (no cross-tile state) so v7x can split across cores.
    cparams = pltpu.CompilerParams(
        dimension_semantics=("parallel",),
        vmem_limit_bytes=32 * 1024 * 1024,
    )
    img = lambda c: pl.BlockSpec((1, H, W, c), lambda b: (b, 0, 0, 0))
    stat = lambda c: pl.BlockSpec((1, 2, c), lambda b: (b, 0, 0))
    full = lambda *shape: pl.BlockSpec(shape, lambda b: (0,) * len(shape))

    # ---- pass 1: conv1 ----
    y1, st1 = pl.pallas_call(
        functools.partial(_conv1_kernel, H=H, W=W, cdt=compute_dtype),
        grid=(N,),
        in_specs=[img(Cin_p), full(9 * Cin_p, Cmid_p), full(1, Cmid_p)],
        out_specs=[img(Cmid_p), stat(Cmid_p)],
        out_shape=[jax.ShapeDtypeStruct((N, H, W, Cmid_p), jnp.float32),
                   jax.ShapeDtypeStruct((N, 2, Cmid_p), jnp.float32)],
        scratch_shapes=[pltpu.VMEM((1, H + 2, W + 2, Cin_p), jnp.float32),
                        pltpu.VMEM((H * W, 9 * Cin_p), compute_dtype)],
        compiler_params=cparams,
    )(xp, w1p, b1p)

    mean1, var1 = _batch_stats(st1, M)
    scale1 = g1p * jax.lax.rsqrt(var1 + EPS)
    shift1 = be1p - mean1 * scale1

    # ---- pass 2: BN1 + Mish + conv2 ----
    y2, st2 = pl.pallas_call(
        functools.partial(_bn_mish_conv2_kernel, H=H, W=W, cdt=compute_dtype),
        grid=(N,),
        in_specs=[img(Cmid_p), full(1, Cmid_p), full(1, Cmid_p),
                  full(9 * Cmid_p, Cout_p), full(1, Cout_p)],
        out_specs=[img(Cout_p), stat(Cout_p)],
        out_shape=[jax.ShapeDtypeStruct((N, H, W, Cout_p), jnp.float32),
                   jax.ShapeDtypeStruct((N, 2, Cout_p), jnp.float32)],
        scratch_shapes=[pltpu.VMEM((1, H + 2, W + 2, Cmid_p), jnp.float32),
                        pltpu.VMEM((H * W, 9 * Cmid_p), compute_dtype)],
        compiler_params=cparams,
    )(y1, scale1, shift1, w2p, b2p)

    mean2, var2 = _batch_stats(st2, M)
    scale2 = g2p * jax.lax.rsqrt(var2 + EPS)
    shift2 = be2p - mean2 * scale2

    # ---- pass 3: BN2 + residual 1x1 conv + add + Mish ----
    out = pl.pallas_call(
        functools.partial(_bn_res_mish_kernel, H=H, W=W, cdt=compute_dtype),
        grid=(N,),
        in_specs=[img(Cout_p), full(1, Cout_p), full(1, Cout_p),
                  img(Cin_p), full(Cin_p, Cout_p), full(1, Cout_p)],
        out_specs=img(Cout_p),
        out_shape=jax.ShapeDtypeStruct((N, H, W, Cout_p), jnp.float32),
        compiler_params=cparams,
    )(y2, scale2, shift2, xp, wrp, brp)

    return jnp.transpose(out[..., :Cout], (0, 3, 1, 2))                # back to NCHW


def make_params(key, c_in, c_mid, c_out):
    """Deterministic synthetic parameters (PyTorch conv layout -> kernel-logical layout)."""
    ks = jax.random.split(key, 8)

    def conv_w(k, cout, cin, kh, kw):
        return 0.1 * jax.random.normal(k, (cout, cin, kh, kw), jnp.float32)

    w1_t = conv_w(ks[0], c_mid, c_in, 3, 3)
    b1 = 0.1 * jax.random.normal(ks[1], (c_mid,), jnp.float32)
    w2_t = conv_w(ks[2], c_out, c_mid, 3, 3)
    b2 = 0.1 * jax.random.normal(ks[3], (c_out,), jnp.float32)
    wres_t = conv_w(ks[4], c_out, c_in, 1, 1)
    bres = 0.1 * jax.random.normal(ks[5], (c_out,), jnp.float32)
    g1 = 1.0 + 0.1 * jax.random.normal(ks[6], (c_mid,), jnp.float32)
    be1 = 0.1 * jax.random.normal(ks[7], (c_mid,), jnp.float32)
    g2 = jnp.ones((c_out,), jnp.float32)
    be2 = jnp.zeros((c_out,), jnp.float32)

    # Logical kernel layouts: 3x3 conv -> (kh*kw, Cin, Cout); 1x1 conv -> (Cin, Cout).
    w1 = jnp.transpose(w1_t, (2, 3, 1, 0)).reshape(9, c_in, c_mid)
    w2 = jnp.transpose(w2_t, (2, 3, 1, 0)).reshape(9, c_mid, c_out)
    wres = jnp.transpose(wres_t[:, :, 0, 0], (1, 0))
    return (w1, b1, g1, be1, w2, b2, g2, be2, wres, bres)


def resblock_reference(x_nchw, params):
    """Pure-JAX f32 reference (lax.conv) for a correctness sanity check."""
    (w1, b1, g1, be1, w2, b2, g2, be2, wres, bres) = params
    x = jnp.transpose(x_nchw, (0, 2, 3, 1))
    dn = jax.lax.conv_dimension_numbers(x.shape, (3, 3, 1, 1), ('NHWC', 'HWIO', 'NHWC'))

    def conv3(v, w_flat, b):
        w = w_flat.reshape(3, 3, w_flat.shape[1], w_flat.shape[2])
        return jax.lax.conv_general_dilated(
            v, w, (1, 1), ((1, 1), (1, 1)), dimension_numbers=dn) + b.reshape(1, 1, 1, -1)

    def bn(v, g, be):
        m = jnp.mean(v, axis=(0, 1, 2), keepdims=True)
        var = jnp.mean((v - m) ** 2, axis=(0, 1, 2), keepdims=True)
        return (v - m) * jax.lax.rsqrt(var + EPS) * g.reshape(1, 1, 1, -1) + be.reshape(1, 1, 1, -1)

    mish = lambda v: v * jnp.tanh(jax.nn.softplus(v))
    y = conv3(x, w1, b1)
    y = mish(bn(y, g1, be1))
    y = bn(conv3(y, w2, b2), g2, be2)
    res = jnp.einsum('nhwc,cd->nhwd', x, wres) + bres.reshape(1, 1, 1, -1)
    return jnp.transpose(mish(y + res), (0, 3, 1, 2))


if __name__ == "__main__":
    key = jax.random.PRNGKey(0)
    k_x, k_p = jax.random.split(key)

    N, C_IN, C_MID, C_OUT, H, W = 2, 4, 4, 4, 16, 16
    x = jax.random.normal(k_x, (N, C_IN, H, W), jnp.float32)
    params = make_params(k_p, C_IN, C_MID, C_OUT)

    ref = jax.block_until_ready(resblock_reference(x, params))

    # f32-at-the-MXU path: check against the pure-JAX reference.
    fwd_f32 = jax.jit(functools.partial(resblock_forward, compute_dtype=jnp.float32))
    out = jax.block_until_ready(fwd_f32(x, params))
    assert out.shape == (N, C_OUT, H, W)
    err_f32 = float(jnp.max(jnp.abs(out - ref)))
    assert err_f32 < 1e-2, f"f32 mismatch vs JAX reference: {err_f32}"

    # bf16-at-the-MXU path (v5e/v6e/v7x recommendation; f32 accumulation/BN/Mish):
    # loose sanity bound for the reduced-precision MXU operands.
    fwd_bf16 = jax.jit(functools.partial(resblock_forward, compute_dtype=jnp.bfloat16))
    out_bf16 = jax.block_until_ready(fwd_bf16(x, params))
    err_bf16 = float(jnp.max(jnp.abs(out_bf16 - ref)))
    assert err_bf16 < 1.5e-1, f"bf16 mismatch vs JAX reference: {err_bf16}"

    print("KERNEL_OK")
</pallas_src>

<mosaic_0001>
module attributes {stable_mosaic.version = 11 : i64} {
  func.func @_conv1_kernel(%arg0: i32, %arg1: memref<1x16x16x128xf32, #tpu.memory_space<vmem>>, %arg2: memref<1152x128xf32, #tpu.memory_space<vmem>>, %arg3: memref<1x128xf32, #tpu.memory_space<vmem>>, %arg4: memref<1x16x16x128xf32, #tpu.memory_space<vmem>>, %arg5: memref<1x2x128xf32, #tpu.memory_space<vmem>>, %arg6: memref<1x18x18x128xf32, #tpu.memory_space<vmem>>, %arg7: memref<256x1152xf32, #tpu.memory_space<vmem>>) attributes {dimension_semantics = [#tpu.dimension_semantics<parallel>], iteration_bounds = array<i64: 2>, scalar_prefetch = 0 : i64, scratch_operands = 2 : i64, tpu.core_type = #tpu.core_type<tc>, window_params = [{transform_indices = @transform_0, window_bounds = array<i64: 1, 16, 16, 128>}, {pipeline_mode = #tpu.pipeline_mode<synchronous>, transform_indices = @transform_1, window_bounds = array<i64: 1152, 128>}, {pipeline_mode = #tpu.pipeline_mode<synchronous>, transform_indices = @transform_2, window_bounds = array<i64: 1, 128>}, {transform_indices = @transform_3, window_bounds = array<i64: 1, 16, 16, 128>}, {transform_indices = @transform_4, window_bounds = array<i64: 1, 2, 128>}]} {
    %c0 = arith.constant 0 : index
    %c0_0 = arith.constant 0 : index
    %c0_1 = arith.constant 0 : index
    %c0_2 = arith.constant 0 : index
    %0 = vector.load %arg1[%c0, %c0_0, %c0_1, %c0_2] : memref<1x16x16x128xf32, #tpu.memory_space<vmem>>, vector<1x16x16x128xf32>
    %cst = arith.constant 0.000000e+00 : f32
    %1 = vector.broadcast %cst : f32 to vector<1x1x18x128xf32>
    %cst_3 = arith.constant 0.000000e+00 : f32
    %2 = vector.broadcast %cst_3 : f32 to vector<1x18x1x128xf32>
    %c0_4 = arith.constant 0 : index
    %c0_5 = arith.constant 0 : index
    %c0_6 = arith.constant 0 : index
    %c0_7 = arith.constant 0 : index
    %3 = vector.load %arg6[%c0_4, %c0_5, %c0_6, %c0_7] : memref<1x18x18x128xf32, #tpu.memory_space<vmem>>, vector<1x1x18x128xf32>
    tpu.vector_store %arg6[%c0_4, %c0_5, %c0_6, %c0_7], %1 {strides = array<i32>} : memref<1x18x18x128xf32, #tpu.memory_space<vmem>>, vector<1x1x18x128xf32>,
    %c0_8 = arith.constant 0 : index
    %c17 = arith.constant 17 : index
    %c0_9 = arith.constant 0 : index
    %c0_10 = arith.constant 0 : index
    %4 = vector.load %arg6[%c0_8, %c17, %c0_9, %c0_10] : memref<1x18x18x128xf32, #tpu.memory_space<vmem>>, vector<1x1x18x128xf32>
    tpu.vector_store %arg6[%c0_8, %c17, %c0_9, %c0_10], %1 {strides = array<i32>} : memref<1x18x18x128xf32, #tpu.memory_space<vmem>>, vector<1x1x18x128xf32>,
    %c0_11 = arith.constant 0 : index
    %c0_12 = arith.constant 0 : index
    %c0_13 = arith.constant 0 : index
    %c0_14 = arith.constant 0 : index
    %5 = vector.load %arg6[%c0_11, %c0_12, %c0_13, %c0_14] : memref<1x18x18x128xf32, #tpu.memory_space<vmem>>, vector<1x18x1x128xf32>
    tpu.vector_store %arg6[%c0_11, %c0_12, %c0_13, %c0_14], %2 {strides = array<i32>} : memref<1x18x18x128xf32, #tpu.memory_space<vmem>>, vector<1x18x1x128xf32>,
    %c0_15 = arith.constant 0 : index
    %c0_16 = arith.constant 0 : index
    %c17_17 = arith.constant 17 : index
    %c0_18 = arith.constant 0 : index
    %6 = vector.load %arg6[%c0_15, %c0_16, %c17_17, %c0_18] : memref<1x18x18x128xf32, #tpu.memory_space<vmem>>, vector<1x18x1x128xf32>
    tpu.vector_store %arg6[%c0_15, %c0_16, %c17_17, %c0_18], %2 {strides = array<i32>} : memref<1x18x18x128xf32, #tpu.memory_space<vmem>>, vector<1x18x1x128xf32>,
    %c0_19 = arith.constant 0 : index
    %c1 = arith.constant 1 : index
    %c1_20 = arith.constant 1 : index
    %c0_21 = arith.constant 0 : index
    %7 = vector.load %arg6[%c0_19, %c1, %c1_20, %c0_21] : memref<1x18x18x128xf32, #tpu.memory_space<vmem>>, vector<1x16x16x128xf32>
    tpu.vector_store %arg6[%c0_19, %c1, %c1_20, %c0_21], %0 {strides = array<i32>} : memref<1x18x18x128xf32, #tpu.memory_space<vmem>>, vector<1x16x16x128xf32>,
    %c0_22 = arith.constant 0 : index
    %c0_23 = arith.constant 0 : index
    %c0_24 = arith.constant 0 : index
    %c0_25 = arith.constant 0 : index
    %8 = vector.load %arg6[%c0_22, %c0_23, %c0_24, %c0_25] : memref<1x18x18x128xf32, #tpu.memory_space<vmem>>, vector<1x16x16x128xf32>
    %9 = vector.shape_cast %8 : vector<1x16x16x128xf32> to vector<256x128xf32>
    %c0_26 = arith.constant 0 : index
    %c0_27 = arith.constant 0 : index
    %10 = vector.load %arg7[%c0_26, %c0_27] : memref<256x1152xf32, #tpu.memory_space<vmem>>, vector<256x128xf32>
    tpu.vector_store %arg7[%c0_26, %c0_27], %9 {strides = array<i32>} : memref<256x1152xf32, #tpu.memory_space<vmem>>, vector<256x128xf32>,
    %c0_28 = arith.constant 0 : index
    %c0_29 = arith.constant 0 : index
    %c1_30 = arith.constant 1 : index
    %c0_31 = arith.constant 0 : index
    %11 = vector.load %arg6[%c0_28, %c0_29, %c1_30, %c0_31] : memref<1x18x18x128xf32, #tpu.memory_space<vmem>>, vector<1x16x16x128xf32>
    %12 = vector.shape_cast %11 : vector<1x16x16x128xf32> to vector<256x128xf32>
    %c0_32 = arith.constant 0 : index
    %c128 = arith.constant 128 : index
    %13 = vector.load %arg7[%c0_32, %c128] : memref<256x1152xf32, #tpu.memory_space<vmem>>, vector<256x128xf32>
    tpu.vector_store %arg7[%c0_32, %c128], %12 {strides = array<i32>} : memref<256x1152xf32, #tpu.memory_space<vmem>>, vector<256x128xf32>,
    %c0_33 = arith.constant 0 : index
    %c0_34 = arith.constant 0 : index
    %c2 = arith.constant 2 : index
    %c0_35 = arith.constant 0 : index
    %14 = vector.load %arg6[%c0_33, %c0_34, %c2, %c0_35] : memref<1x18x18x128xf32, #tpu.memory_space<vmem>>, vector<1x16x16x128xf32>
    %15 = vector.shape_cast %14 : vector<1x16x16x128xf32> to vector<256x128xf32>
    %c0_36 = arith.constant 0 : index
    %c256 = arith.constant 256 : index
    %16 = vector.load %arg7[%c0_36, %c256] : memref<256x1152xf32, #tpu.memory_space<vmem>>, vector<256x128xf32>
    tpu.vector_store %arg7[%c0_36, %c256], %15 {strides = array<i32>} : memref<256x1152xf32, #tpu.memory_space<vmem>>, vector<256x128xf32>,
    %c0_37 = arith.constant 0 : index
    %c1_38 = arith.constant 1 : index
    %c0_39 = arith.constant 0 : index
    %c0_40 = arith.constant 0 : index
    %17 = vector.load %arg6[%c0_37, %c1_38, %c0_39, %c0_40] : memref<1x18x18x128xf32, #tpu.memory_space<vmem>>, vector<1x16x16x128xf32>
    %18 = vector.shape_cast %17 : vector<1x16x16x128xf32> to vector<256x128xf32>
    %c0_41 = arith.constant 0 : index
    %c384 = arith.constant 384 : index
    %19 = vector.load %arg7[%c0_41, %c384] : memref<256x1152xf32, #tpu.memory_space<vmem>>, vector<256x128xf32>
    tpu.vector_store %arg7[%c0_41, %c384], %18 {strides = array<i32>} : memref<256x1152xf32, #tpu.memory_space<vmem>>, vector<256x128xf32>,
    %c0_42 = arith.constant 0 : index
    %c1_43 = arith.constant 1 : index
    %c1_44 = arith.constant 1 : index
    %c0_45 = arith.constant 0 : index
    %20 = vector.load %arg6[%c0_42, %c1_43, %c1_44, %c0_45] : memref<1x18x18x128xf32, #tpu.memory_space<vmem>>, vector<1x16x16x128xf32>
    %21 = vector.shape_cast %20 : vector<1x16x16x128xf32> to vector<256x128xf32>
    %c0_46 = arith.constant 0 : index
    %c512 = arith.constant 512 : index
    %22 = vector.load %arg7[%c0_46, %c512] : memref<256x1152xf32, #tpu.memory_space<vmem>>, vector<256x128xf32>
    tpu.vector_store %arg7[%c0_46, %c512], %21 {strides = array<i32>} : memref<256x1152xf32, #tpu.memory_space<vmem>>, vector<256x128xf32>,
    %c0_47 = arith.constant 0 : index
    %c1_48 = arith.constant 1 : index
    %c2_49 = arith.constant 2 : index
    %c0_50 = arith.constant 0 : index
    %23 = vector.load %arg6[%c0_47, %c1_48, %c2_49, %c0_50] : memref<1x18x18x128xf32, #tpu.memory_space<vmem>>, vector<1x16x16x128xf32>
    %24 = vector.shape_cast %23 : vector<1x16x16x128xf32> to vector<256x128xf32>
    %c0_51 = arith.constant 0 : index
    %c640 = arith.constant 640 : index
    %25 = vector.load %arg7[%c0_51, %c640] : memref<256x1152xf32, #tpu.memory_space<vmem>>, vector<256x128xf32>
    tpu.vector_store %arg7[%c0_51, %c640], %24 {strides = array<i32>} : memref<256x1152xf32, #tpu.memory_space<vmem>>, vector<256x128xf32>,
    %c0_52 = arith.constant 0 : index
    %c2_53 = arith.constant 2 : index
    %c0_54 = arith.constant 0 : index
    %c0_55 = arith.constant 0 : index
    %26 = vector.load %arg6[%c0_52, %c2_53, %c0_54, %c0_55] : memref<1x18x18x128xf32, #tpu.memory_space<vmem>>, vector<1x16x16x128xf32>
    %27 = vector.shape_cast %26 : vector<1x16x16x128xf32> to vector<256x128xf32>
    %c0_56 = arith.constant 0 : index
    %c768 = arith.constant 768 : index
    %28 = vector.load %arg7[%c0_56, %c768] : memref<256x1152xf32, #tpu.memory_space<vmem>>, vector<256x128xf32>
    tpu.vector_store %arg7[%c0_56, %c768], %27 {strides = array<i32>} : memref<256x1152xf32, #tpu.memory_space<vmem>>, vector<256x128xf32>,
    %c0_57 = arith.constant 0 : index
    %c2_58 = arith.constant 2 : index
    %c1_59 = arith.constant 1 : index
    %c0_60 = arith.constant 0 : index
    %29 = vector.load %arg6[%c0_57, %c2_58, %c1_59, %c0_60] : memref<1x18x18x128xf32, #tpu.memory_space<vmem>>, vector<1x16x16x128xf32>
    %30 = vector.shape_cast %29 : vector<1x16x16x128xf32> to vector<256x128xf32>
    %c0_61 = arith.constant 0 : index
    %c896 = arith.constant 896 : index
    %31 = vector.load %arg7[%c0_61, %c896] : memref<256x1152xf32, #tpu.memory_space<vmem>>, vector<256x128xf32>
    tpu.vector_store %arg7[%c0_61, %c896], %30 {strides = array<i32>} : memref<256x1152xf32, #tpu.memory_space<vmem>>, vector<256x128xf32>,
    %c0_62 = arith.constant 0 : index
    %c2_63 = arith.constant 2 : index
    %c2_64 = arith.constant 2 : index
    %c0_65 = arith.constant 0 : index
    %32 = vector.load %arg6[%c0_62, %c2_63, %c2_64, %c0_65] : memref<1x18x18x128xf32, #tpu.memory_space<vmem>>, vector<1x16x16x128xf32>
    %33 = vector.shape_cast %32 : vector<1x16x16x128xf32> to vector<256x128xf32>
    %c0_66 = arith.constant 0 : index
    %c1024 = arith.constant 1024 : index
    %34 = vector.load %arg7[%c0_66, %c1024] : memref<256x1152xf32, #tpu.memory_space<vmem>>, vector<256x128xf32>
    tpu.vector_store %arg7[%c0_66, %c1024], %33 {strides = array<i32>} : memref<256x1152xf32, #tpu.memory_space<vmem>>, vector<256x128xf32>,
    %c0_67 = arith.constant 0 : index
    %c0_68 = arith.constant 0 : index
    %35 = vector.load %arg7[%c0_67, %c0_68] : memref<256x1152xf32, #tpu.memory_space<vmem>>, vector<256x1152xf32>
    %c0_69 = arith.constant 0 : index
    %c0_70 = arith.constant 0 : index
    %36 = vector.load %arg2[%c0_69, %c0_70] : memref<1152x128xf32, #tpu.memory_space<vmem>>, vector<1152x128xf32>
    %cst_71 = arith.constant dense<0.000000e+00> : vector<256x128xf32>
    %37 = tpu.matmul %35, %36, %cst_71 {dimension_numbers = #tpu.dot_dimension_numbers<[1], [0], [0], [1], [0, 0, 1, 1], [], []>} : vector<256x1152xf32>, vector<1152x128xf32>, vector<256x128xf32> -> vector<256x128xf32>
    %c0_72 = arith.constant 0 : index
    %c0_73 = arith.constant 0 : index
    %38 = vector.load %arg3[%c0_72, %c0_73] : memref<1x128xf32, #tpu.memory_space<vmem>>, vector<1x128xf32>
    %39 = vector.broadcast %38 : vector<1x128xf32> to vector<256x128xf32>
    %40 = arith.addf %37, %39 : vector<256x128xf32>
    %41 = vector.shape_cast %40 : vector<256x128xf32> to vector<1x16x16x128xf32>
    %c0_74 = arith.constant 0 : index
    %c0_75 = arith.constant 0 : index
    %c0_76 = arith.constant 0 : index
    %c0_77 = arith.constant 0 : index
    %42 = vector.load %arg4[%c0_74, %c0_75, %c0_76, %c0_77] : memref<1x16x16x128xf32, #tpu.memory_space<vmem>>, vector<1x16x16x128xf32>
    tpu.vector_store %arg4[%c0_74, %c0_75, %c0_76, %c0_77], %41 {strides = array<i32>} : memref<1x16x16x128xf32, #tpu.memory_space<vmem>>, vector<1x16x16x128xf32>,
    %cst_78 = arith.constant dense<0.000000e+00> : vector<128xf32>
    %43 = vector.multi_reduction <add>, %40, %cst_78 [0] : vector<256x128xf32> to vector<128xf32>
    %44 = vector.shape_cast %43 : vector<128xf32> to vector<1x128xf32>
    %45 = vector.shape_cast %44 : vector<1x128xf32> to vector<1x1x128xf32>
    %c0_79 = arith.constant 0 : index
    %c0_80 = arith.constant 0 : index
    %c0_81 = arith.constant 0 : index
    %46 = vector.load %arg5[%c0_79, %c0_80, %c0_81] : memref<1x2x128xf32, #tpu.memory_space<vmem>>, vector<1x1x128xf32>
    tpu.vector_store %arg5[%c0_79, %c0_80, %c0_81], %45 {strides = array<i32>} : memref<1x2x128xf32, #tpu.memory_space<vmem>>, vector<1x1x128xf32>,
    %47 = arith.mulf %40, %40 : vector<256x128xf32>
    %cst_82 = arith.constant dense<0.000000e+00> : vector<128xf32>
    %48 = vector.multi_reduction <add>, %47, %cst_82 [0] : vector<256x128xf32> to vector<128xf32>
    %49 = vector.shape_cast %48 : vector<128xf32> to vector<1x128xf32>
    %50 = vector.shape_cast %49 : vector<1x128xf32> to vector<1x1x128xf32>
    %c0_83 = arith.constant 0 : index
    %c1_84 = arith.constant 1 : index
    %c0_85 = arith.constant 0 : index
    %51 = vector.load %arg5[%c0_83, %c1_84, %c0_85] : memref<1x2x128xf32, #tpu.memory_space<vmem>>, vector<1x1x128xf32>
    tpu.vector_store %arg5[%c0_83, %c1_84, %c0_85], %50 {strides = array<i32>} : memref<1x2x128xf32, #tpu.memory_space<vmem>>, vector<1x1x128xf32>,
    return
  }
  func.func @transform_0(%arg0: i32) -> (i32, i32, i32, i32) {
    %c0_i32 = arith.constant 0 : i32
    %c0_i32_0 = arith.constant 0 : i32
    %c0_i32_1 = arith.constant 0 : i32
    %c0_i32_2 = arith.constant 0 : i32
    return %arg0, %c0_i32, %c0_i32_0, %c0_i32_1 : i32, i32, i32, i32
  }
  func.func @transform_1(%arg0: i32) -> (i32, i32) {
    %c0_i32 = arith.constant 0 : i32
    %c0_i32_0 = arith.constant 0 : i32
    %c0_i32_1 = arith.constant 0 : i32
    return %c0_i32, %c0_i32_0 : i32, i32
  }
  func.func @transform_2(%arg0: i32) -> (i32, i32) {
    %c0_i32 = arith.constant 0 : i32
    %c0_i32_0 = arith.constant 0 : i32
    %c0_i32_1 = arith.constant 0 : i32
    return %c0_i32, %c0_i32_0 : i32, i32
  }
  func.func @transform_3(%arg0: i32) -> (i32, i32, i32, i32) {
    %c0_i32 = arith.constant 0 : i32
    %c0_i32_0 = arith.constant 0 : i32
    %c0_i32_1 = arith.constant 0 : i32
    %c0_i32_2 = arith.constant 0 : i32
    return %arg0, %c0_i32, %c0_i32_0, %c0_i32_1 : i32, i32, i32, i32
  }
  func.func @transform_4(%arg0: i32) -> (i32, i32, i32) {
    %c0_i32 = arith.constant 0 : i32
    %c0_i32_0 = arith.constant 0 : i32
    %c0_i32_1 = arith.constant 0 : i32
    return %arg0, %c0_i32, %c0_i32_0 : i32, i32, i32
  }
}

module attributes {stable_mosaic.version = 11 : i64} {
  func.func @_bn_res_mish_kernel(%arg0: i32, %arg1: memref<1x16x16x128xf32, #tpu.memory_space<vmem>>, %arg2: memref<1x128xf32, #tpu.memory_space<vmem>>, %arg3: memref<1x128xf32, #tpu.memory_space<vmem>>, %arg4: memref<1x16x16x128xf32, #tpu.memory_space<vmem>>, %arg5: memref<128x128xf32, #tpu.memory_space<vmem>>, %arg6: memref<1x128xf32, #tpu.memory_space<vmem>>, %arg7: memref<1x16x16x128xf32, #tpu.memory_space<vmem>>) attributes {dimension_semantics = [#tpu.dimension_semantics<parallel>], iteration_bounds = array<i64: 2>, scalar_prefetch = 0 : i64, scratch_operands = 0 : i64, tpu.core_type = #tpu.core_type<tc>, window_params = [{transform_indices = @transform_0, window_bounds = array<i64: 1, 16, 16, 128>}, {pipeline_mode = #tpu.pipeline_mode<synchronous>, transform_indices = @transform_1, window_bounds = array<i64: 1, 128>}, {pipeline_mode = #tpu.pipeline_mode<synchronous>, transform_indices = @transform_2, window_bounds = array<i64: 1, 128>}, {transform_indices = @transform_3, window_bounds = array<i64: 1, 16, 16, 128>}, {pipeline_mode = #tpu.pipeline_mode<synchronous>, transform_indices = @transform_4, window_bounds = array<i64: 128, 128>}, {pipeline_mode = #tpu.pipeline_mode<synchronous>, transform_indices = @transform_5, window_bounds = array<i64: 1, 128>}, {transform_indices = @transform_6, window_bounds = array<i64: 1, 16, 16, 128>}]} {
    %c0 = arith.constant 0 : index
    %c0_0 = arith.constant 0 : index
    %c0_1 = arith.constant 0 : index
    %c0_2 = arith.constant 0 : index
    %0 = vector.load %arg4[%c0, %c0_0, %c0_1, %c0_2] : memref<1x16x16x128xf32, #tpu.memory_space<vmem>>, vector<1x16x16x128xf32>
    %1 = vector.shape_cast %0 : vector<1x16x16x128xf32> to vector<256x128xf32>
    %c0_3 = arith.constant 0 : index
    %c0_4 = arith.constant 0 : index
    %2 = vector.load %arg5[%c0_3, %c0_4] : memref<128x128xf32, #tpu.memory_space<vmem>>, vector<128x128xf32>
    %cst = arith.constant dense<0.000000e+00> : vector<256x128xf32>
    %3 = tpu.matmul %1, %2, %cst {dimension_numbers = #tpu.dot_dimension_numbers<[1], [0], [0], [1], [0, 0, 1, 1], [], []>} : vector<256x128xf32>, vector<128x128xf32>, vector<256x128xf32> -> vector<256x128xf32>
    %c0_5 = arith.constant 0 : index
    %c0_6 = arith.constant 0 : index
    %4 = vector.load %arg6[%c0_5, %c0_6] : memref<1x128xf32, #tpu.memory_space<vmem>>, vector<1x128xf32>
    %5 = vector.broadcast %4 : vector<1x128xf32> to vector<256x128xf32>
    %6 = arith.addf %3, %5 : vector<256x128xf32>
    %c0_7 = arith.constant 0 : index
    %c0_8 = arith.constant 0 : index
    %c0_9 = arith.constant 0 : index
    %c0_10 = arith.constant 0 : index
    %7 = vector.load %arg1[%c0_7, %c0_8, %c0_9, %c0_10] : memref<1x16x16x128xf32, #tpu.memory_space<vmem>>, vector<1x16x16x128xf32>
    %8 = vector.shape_cast %7 : vector<1x16x16x128xf32> to vector<256x128xf32>
    %c0_11 = arith.constant 0 : index
    %c0_12 = arith.constant 0 : index
    %9 = vector.load %arg2[%c0_11, %c0_12] : memref<1x128xf32, #tpu.memory_space<vmem>>, vector<1x128xf32>
    %10 = vector.broadcast %9 : vector<1x128xf32> to vector<256x128xf32>
    %11 = arith.mulf %8, %10 : vector<256x128xf32>
    %c0_13 = arith.constant 0 : index
    %c0_14 = arith.constant 0 : index
    %12 = vector.load %arg3[%c0_13, %c0_14] : memref<1x128xf32, #tpu.memory_space<vmem>>, vector<1x128xf32>
    %13 = vector.broadcast %12 : vector<1x128xf32> to vector<256x128xf32>
    %14 = arith.addf %11, %13 : vector<256x128xf32>
    %15 = arith.addf %14, %6 : vector<256x128xf32>
    %16 = math.exp %15 : vector<256x128xf32>
    %cst_15 = arith.constant 2.000000e+00 : f32
    %17 = vector.broadcast %cst_15 : f32 to vector<256x128xf32>
    %18 = arith.addf %16, %17 : vector<256x128xf32>
    %19 = arith.mulf %16, %18 : vector<256x128xf32>
    %cst_16 = arith.constant 2.000000e+00 : f32
    %20 = vector.broadcast %cst_16 : f32 to vector<256x128xf32>
    %21 = arith.addf %19, %20 : vector<256x128xf32>
    %22 = tpu.reciprocal %21 {approx = true} : vector<256x128xf32> -> vector<256x128xf32>
    %23 = arith.mulf %21, %22 : vector<256x128xf32>
    %cst_17 = arith.constant 2.000000e+00 : f32
    %24 = vector.broadcast %cst_17 : f32 to vector<256x128xf32>
    %25 = arith.subf %24, %23 : vector<256x128xf32>
    %26 = arith.mulf %22, %25 : vector<256x128xf32>
    %cst_18 = arith.constant 2.000000e+01 : f32
    %27 = vector.broadcast %cst_18 : f32 to vector<256x128xf32>
    %28 = arith.cmpf ogt, %15, %27 : vector<256x128xf32>
    %29 = arith.mulf %19, %26 : vector<256x128xf32>
    %30 = arith.mulf %15, %29 : vector<256x128xf32>
    %31 = arith.select %28, %15, %30 : vector<256x128xi1>, vector<256x128xf32>
    %32 = vector.shape_cast %31 : vector<256x128xf32> to vector<1x16x16x128xf32>
    %c0_19 = arith.constant 0 : index
    %c0_20 = arith.constant 0 : index
    %c0_21 = arith.constant 0 : index
    %c0_22 = arith.constant 0 : index
    %33 = vector.load %arg7[%c0_19, %c0_20, %c0_21, %c0_22] : memref<1x16x16x128xf32, #tpu.memory_space<vmem>>, vector<1x16x16x128xf32>
    tpu.vector_store %arg7[%c0_19, %c0_20, %c0_21, %c0_22], %32 {strides = array<i32>} : memref<1x16x16x128xf32, #tpu.memory_space<vmem>>, vector<1x16x16x128xf32>,
    return
  }
  func.func @transform_0(%arg0: i32) -> (i32, i32, i32, i32) {
    %c0_i32 = arith.constant 0 : i32
    %c0_i32_0 = arith.constant 0 : i32
    %c0_i32_1 = arith.constant 0 : i32
    %c0_i32_2 = arith.constant 0 : i32
    return %arg0, %c0_i32, %c0_i32_0, %c0_i32_1 : i32, i32, i32, i32
  }
  func.func @transform_1(%arg0: i32) -> (i32, i32) {
    %c0_i32 = arith.constant 0 : i32
    %c0_i32_0 = arith.constant 0 : i32
    %c0_i32_1 = arith.constant 0 : i32
    return %c0_i32, %c0_i32_0 : i32, i32
  }
  func.func @transform_2(%arg0: i32) -> (i32, i32) {
    %c0_i32 = arith.constant 0 : i32
    %c0_i32_0 = arith.constant 0 : i32
    %c0_i32_1 = arith.constant 0 : i32
    return %c0_i32, %c0_i32_0 : i32, i32
  }
  func.func @transform_3(%arg0: i32) -> (i32, i32, i32, i32) {
    %c0_i32 = arith.constant 0 : i32
    %c0_i32_0 = arith.constant 0 : i32
    %c0_i32_1 = arith.constant 0 : i32
    %c0_i32_2 = arith.constant 0 : i32
    return %arg0, %c0_i32, %c0_i32_0, %c0_i32_1 : i32, i32, i32, i32
  }
  func.func @transform_4(%arg0: i32) -> (i32, i32) {
    %c0_i32 = arith.constant 0 : i32
    %c0_i32_0 = arith.constant 0 : i32
    %c0_i32_1 = arith.constant 0 : i32
    return %c0_i32, %c0_i32_0 : i32, i32
  }
  func.func @transform_5(%arg0: i32) -> (i32, i32) {
    %c0_i32 = arith.constant 0 : i32
    %c0_i32_0 = arith.constant 0 : i32
    %c0_i32_1 = arith.constant 0 : i32
    return %c0_i32, %c0_i32_0 : i32, i32
  }
  func.func @transform_6(%arg0: i32) -> (i32, i32, i32, i32) {
    %c0_i32 = arith.constant 0 : i32
    %c0_i32_0 = arith.constant 0 : i32
    %c0_i32_1 = arith.constant 0 : i32
    %c0_i32_2 = arith.constant 0 : i32
    return %arg0, %c0_i32, %c0_i32_0, %c0_i32_1 : i32, i32, i32, i32
  }
}

module attributes {stable_mosaic.version = 11 : i64} {
  func.func @_bn_mish_conv2_kernel(%arg0: i32, %arg1: memref<1x16x16x128xf32, #tpu.memory_space<vmem>>, %arg2: memref<1x128xf32, #tpu.memory_space<vmem>>, %arg3: memref<1x128xf32, #tpu.memory_space<vmem>>, %arg4: memref<1152x128xf32, #tpu.memory_space<vmem>>, %arg5: memref<1x128xf32, #tpu.memory_space<vmem>>, %arg6: memref<1x16x16x128xf32, #tpu.memory_space<vmem>>, %arg7: memref<1x2x128xf32, #tpu.memory_space<vmem>>, %arg8: memref<1x18x18x128xf32, #tpu.memory_space<vmem>>, %arg9: memref<256x1152xf32, #tpu.memory_space<vmem>>) attributes {dimension_semantics = [#tpu.dimension_semantics<parallel>], iteration_bounds = array<i64: 2>, scalar_prefetch = 0 : i64, scratch_operands = 2 : i64, tpu.core_type = #tpu.core_type<tc>, window_params = [{transform_indices = @transform_0, window_bounds = array<i64: 1, 16, 16, 128>}, {pipeline_mode = #tpu.pipeline_mode<synchronous>, transform_indices = @transform_1, window_bounds = array<i64: 1, 128>}, {pipeline_mode = #tpu.pipeline_mode<synchronous>, transform_indices = @transform_2, window_bounds = array<i64: 1, 128>}, {pipeline_mode = #tpu.pipeline_mode<synchronous>, transform_indices = @transform_3, window_bounds = array<i64: 1152, 128>}, {pipeline_mode = #tpu.pipeline_mode<synchronous>, transform_indices = @transform_4, window_bounds = array<i64: 1, 128>}, {transform_indices = @transform_5, window_bounds = array<i64: 1, 16, 16, 128>}, {transform_indices = @transform_6, window_bounds = array<i64: 1, 2, 128>}]} {
    %c0 = arith.constant 0 : index
    %c0_0 = arith.constant 0 : index
    %c0_1 = arith.constant 0 : index
    %c0_2 = arith.constant 0 : index
    %0 = vector.load %arg1[%c0, %c0_0, %c0_1, %c0_2] : memref<1x16x16x128xf32, #tpu.memory_space<vmem>>, vector<1x16x16x128xf32>
    %1 = vector.shape_cast %0 : vector<1x16x16x128xf32> to vector<256x128xf32>
    %c0_3 = arith.constant 0 : index
    %c0_4 = arith.constant 0 : index
    %2 = vector.load %arg2[%c0_3, %c0_4] : memref<1x128xf32, #tpu.memory_space<vmem>>, vector<1x128xf32>
    %3 = vector.broadcast %2 : vector<1x128xf32> to vector<256x128xf32>
    %4 = arith.mulf %1, %3 : vector<256x128xf32>
    %c0_5 = arith.constant 0 : index
    %c0_6 = arith.constant 0 : index
    %5 = vector.load %arg3[%c0_5, %c0_6] : memref<1x128xf32, #tpu.memory_space<vmem>>, vector<1x128xf32>
    %6 = vector.broadcast %5 : vector<1x128xf32> to vector<256x128xf32>
    %7 = arith.addf %4, %6 : vector<256x128xf32>
    %8 = math.exp %7 : vector<256x128xf32>
    %cst = arith.constant 2.000000e+00 : f32
    %9 = vector.broadcast %cst : f32 to vector<256x128xf32>
    %10 = arith.addf %8, %9 : vector<256x128xf32>
    %11 = arith.mulf %8, %10 : vector<256x128xf32>
    %cst_7 = arith.constant 2.000000e+00 : f32
    %12 = vector.broadcast %cst_7 : f32 to vector<256x128xf32>
    %13 = arith.addf %11, %12 : vector<256x128xf32>
    %14 = tpu.reciprocal %13 {approx = true} : vector<256x128xf32> -> vector<256x128xf32>
    %15 = arith.mulf %13, %14 : vector<256x128xf32>
    %cst_8 = arith.constant 2.000000e+00 : f32
    %16 = vector.broadcast %cst_8 : f32 to vector<256x128xf32>
    %17 = arith.subf %16, %15 : vector<256x128xf32>
    %18 = arith.mulf %14, %17 : vector<256x128xf32>
    %cst_9 = arith.constant 2.000000e+01 : f32
    %19 = vector.broadcast %cst_9 : f32 to vector<256x128xf32>
    %20 = arith.cmpf ogt, %7, %19 : vector<256x128xf32>
    %21 = arith.mulf %11, %18 : vector<256x128xf32>
    %22 = arith.mulf %7, %21 : vector<256x128xf32>
    %23 = arith.select %20, %7, %22 : vector<256x128xi1>, vector<256x128xf32>
    %24 = vector.shape_cast %23 : vector<256x128xf32> to vector<1x16x16x128xf32>
    %cst_10 = arith.constant 0.000000e+00 : f32
    %25 = vector.broadcast %cst_10 : f32 to vector<1x1x18x128xf32>
    %cst_11 = arith.constant 0.000000e+00 : f32
    %26 = vector.broadcast %cst_11 : f32 to vector<1x18x1x128xf32>
    %c0_12 = arith.constant 0 : index
    %c0_13 = arith.constant 0 : index
    %c0_14 = arith.constant 0 : index
    %c0_15 = arith.constant 0 : index
    %27 = vector.load %arg8[%c0_12, %c0_13, %c0_14, %c0_15] : memref<1x18x18x128xf32, #tpu.memory_space<vmem>>, vector<1x1x18x128xf32>
    tpu.vector_store %arg8[%c0_12, %c0_13, %c0_14, %c0_15], %25 {strides = array<i32>} : memref<1x18x18x128xf32, #tpu.memory_space<vmem>>, vector<1x1x18x128xf32>,
    %c0_16 = arith.constant 0 : index
    %c17 = arith.constant 17 : index
    %c0_17 = arith.constant 0 : index
    %c0_18 = arith.constant 0 : index
    %28 = vector.load %arg8[%c0_16, %c17, %c0_17, %c0_18] : memref<1x18x18x128xf32, #tpu.memory_space<vmem>>, vector<1x1x18x128xf32>
    tpu.vector_store %arg8[%c0_16, %c17, %c0_17, %c0_18], %25 {strides = array<i32>} : memref<1x18x18x128xf32, #tpu.memory_space<vmem>>, vector<1x1x18x128xf32>,
    %c0_19 = arith.constant 0 : index
    %c0_20 = arith.constant 0 : index
    %c0_21 = arith.constant 0 : index
    %c0_22 = arith.constant 0 : index
    %29 = vector.load %arg8[%c0_19, %c0_20, %c0_21, %c0_22] : memref<1x18x18x128xf32, #tpu.memory_space<vmem>>, vector<1x18x1x128xf32>
    tpu.vector_store %arg8[%c0_19, %c0_20, %c0_21, %c0_22], %26 {strides = array<i32>} : memref<1x18x18x128xf32, #tpu.memory_space<vmem>>, vector<1x18x1x128xf32>,
    %c0_23 = arith.constant 0 : index
    %c0_24 = arith.constant 0 : index
    %c17_25 = arith.constant 17 : index
    %c0_26 = arith.constant 0 : index
    %30 = vector.load %arg8[%c0_23, %c0_24, %c17_25, %c0_26] : memref<1x18x18x128xf32, #tpu.memory_space<vmem>>, vector<1x18x1x128xf32>
    tpu.vector_store %arg8[%c0_23, %c0_24, %c17_25, %c0_26], %26 {strides = array<i32>} : memref<1x18x18x128xf32, #tpu.memory_space<vmem>>, vector<1x18x1x128xf32>,
    %c0_27 = arith.constant 0 : index
    %c1 = arith.constant 1 : index
    %c1_28 = arith.constant 1 : index
    %c0_29 = arith.constant 0 : index
    %31 = vector.load %arg8[%c0_27, %c1, %c1_28, %c0_29] : memref<1x18x18x128xf32, #tpu.memory_space<vmem>>, vector<1x16x16x128xf32>
    tpu.vector_store %arg8[%c0_27, %c1, %c1_28, %c0_29], %24 {strides = array<i32>} : memref<1x18x18x128xf32, #tpu.memory_space<vmem>>, vector<1x16x16x128xf32>,
    %c0_30 = arith.constant 0 : index
    %c0_31 = arith.constant 0 : index
    %c0_32 = arith.constant 0 : index
    %c0_33 = arith.constant 0 : index
    %32 = vector.load %arg8[%c0_30, %c0_31, %c0_32, %c0_33] : memref<1x18x18x128xf32, #tpu.memory_space<vmem>>, vector<1x16x16x128xf32>
    %33 = vector.shape_cast %32 : vector<1x16x16x128xf32> to vector<256x128xf32>
    %c0_34 = arith.constant 0 : index
    %c0_35 = arith.constant 0 : index
    %34 = vector.load %arg9[%c0_34, %c0_35] : memref<256x1152xf32, #tpu.memory_space<vmem>>, vector<256x128xf32>
    tpu.vector_store %arg9[%c0_34, %c0_35], %33 {strides = array<i32>} : memref<256x1152xf32, #tpu.memory_space<vmem>>, vector<256x128xf32>,
    %c0_36 = arith.constant 0 : index
    %c0_37 = arith.constant 0 : index
    %c1_38 = arith.constant 1 : index
    %c0_39 = arith.constant 0 : index
    %35 = vector.load %arg8[%c0_36, %c0_37, %c1_38, %c0_39] : memref<1x18x18x128xf32, #tpu.memory_space<vmem>>, vector<1x16x16x128xf32>
    %36 = vector.shape_cast %35 : vector<1x16x16x128xf32> to vector<256x128xf32>
    %c0_40 = arith.constant 0 : index
    %c128 = arith.constant 128 : index
    %37 = vector.load %arg9[%c0_40, %c128] : memref<256x1152xf32, #tpu.memory_space<vmem>>, vector<256x128xf32>
    tpu.vector_store %arg9[%c0_40, %c128], %36 {strides = array<i32>} : memref<256x1152xf32, #tpu.memory_space<vmem>>, vector<256x128xf32>,
    %c0_41 = arith.constant 0 : index
    %c0_42 = arith.constant 0 : index
    %c2 = arith.constant 2 : index
    %c0_43 = arith.constant 0 : index
    %38 = vector.load %arg8[%c0_41, %c0_42, %c2, %c0_43] : memref<1x18x18x128xf32, #tpu.memory_space<vmem>>, vector<1x16x16x128xf32>
    %39 = vector.shape_cast %38 : vector<1x16x16x128xf32> to vector<256x128xf32>
    %c0_44 = arith.constant 0 : index
    %c256 = arith.constant 256 : index
    %40 = vector.load %arg9[%c0_44, %c256] : memref<256x1152xf32, #tpu.memory_space<vmem>>, vector<256x128xf32>
    tpu.vector_store %arg9[%c0_44, %c256], %39 {strides = array<i32>} : memref<256x1152xf32, #tpu.memory_space<vmem>>, vector<256x128xf32>,
    %c0_45 = arith.constant 0 : index
    %c1_46 = arith.constant 1 : index
    %c0_47 = arith.constant 0 : index
    %c0_48 = arith.constant 0 : index
    %41 = vector.load %arg8[%c0_45, %c1_46, %c0_47, %c0_48] : memref<1x18x18x128xf32, #tpu.memory_space<vmem>>, vector<1x16x16x128xf32>
    %42 = vector.shape_cast %41 : vector<1x16x16x128xf32> to vector<256x128xf32>
    %c0_49 = arith.constant 0 : index
    %c384 = arith.constant 384 : index
    %43 = vector.load %arg9[%c0_49, %c384] : memref<256x1152xf32, #tpu.memory_space<vmem>>, vector<256x128xf32>
    tpu.vector_store %arg9[%c0_49, %c384], %42 {strides = array<i32>} : memref<256x1152xf32, #tpu.memory_space<vmem>>, vector<256x128xf32>,
    %c0_50 = arith.constant 0 : index
    %c1_51 = arith.constant 1 : index
    %c1_52 = arith.constant 1 : index
    %c0_53 = arith.constant 0 : index
    %44 = vector.load %arg8[%c0_50, %c1_51, %c1_52, %c0_53] : memref<1x18x18x128xf32, #tpu.memory_space<vmem>>, vector<1x16x16x128xf32>
    %45 = vector.shape_cast %44 : vector<1x16x16x128xf32> to vector<256x128xf32>
    %c0_54 = arith.constant 0 : index
    %c512 = arith.constant 512 : index
    %46 = vector.load %arg9[%c0_54, %c512] : memref<256x1152xf32, #tpu.memory_space<vmem>>, vector<256x128xf32>
    tpu.vector_store %arg9[%c0_54, %c512], %45 {strides = array<i32>} : memref<256x1152xf32, #tpu.memory_space<vmem>>, vector<256x128xf32>,
    %c0_55 = arith.constant 0 : index
    %c1_56 = arith.constant 1 : index
    %c2_57 = arith.constant 2 : index
    %c0_58 = arith.constant 0 : index
    %47 = vector.load %arg8[%c0_55, %c1_56, %c2_57, %c0_58] : memref<1x18x18x128xf32, #tpu.memory_space<vmem>>, vector<1x16x16x128xf32>
    %48 = vector.shape_cast %47 : vector<1x16x16x128xf32> to vector<256x128xf32>
    %c0_59 = arith.constant 0 : index
    %c640 = arith.constant 640 : index
    %49 = vector.load %arg9[%c0_59, %c640] : memref<256x1152xf32, #tpu.memory_space<vmem>>, vector<256x128xf32>
    tpu.vector_store %arg9[%c0_59, %c640], %48 {strides = array<i32>} : memref<256x1152xf32, #tpu.memory_space<vmem>>, vector<256x128xf32>,
    %c0_60 = arith.constant 0 : index
    %c2_61 = arith.constant 2 : index
    %c0_62 = arith.constant 0 : index
    %c0_63 = arith.constant 0 : index
    %50 = vector.load %arg8[%c0_60, %c2_61, %c0_62, %c0_63] : memref<1x18x18x128xf32, #tpu.memory_space<vmem>>, vector<1x16x16x128xf32>
    %51 = vector.shape_cast %50 : vector<1x16x16x128xf32> to vector<256x128xf32>
    %c0_64 = arith.constant 0 : index
    %c768 = arith.constant 768 : index
    %52 = vector.load %arg9[%c0_64, %c768] : memref<256x1152xf32, #tpu.memory_space<vmem>>, vector<256x128xf32>
    tpu.vector_store %arg9[%c0_64, %c768], %51 {strides = array<i32>} : memref<256x1152xf32, #tpu.memory_space<vmem>>, vector<256x128xf32>,
    %c0_65 = arith.constant 0 : index
    %c2_66 = arith.constant 2 : index
    %c1_67 = arith.constant 1 : index
    %c0_68 = arith.constant 0 : index
    %53 = vector.load %arg8[%c0_65, %c2_66, %c1_67, %c0_68] : memref<1x18x18x128xf32, #tpu.memory_space<vmem>>, vector<1x16x16x128xf32>
    %54 = vector.shape_cast %53 : vector<1x16x16x128xf32> to vector<256x128xf32>
    %c0_69 = arith.constant 0 : index
    %c896 = arith.constant 896 : index
    %55 = vector.load %arg9[%c0_69, %c896] : memref<256x1152xf32, #tpu.memory_space<vmem>>, vector<256x128xf32>
    tpu.vector_store %arg9[%c0_69, %c896], %54 {strides = array<i32>} : memref<256x1152xf32, #tpu.memory_space<vmem>>, vector<256x128xf32>,
    %c0_70 = arith.constant 0 : index
    %c2_71 = arith.constant 2 : index
    %c2_72 = arith.constant 2 : index
    %c0_73 = arith.constant 0 : index
    %56 = vector.load %arg8[%c0_70, %c2_71, %c2_72, %c0_73] : memref<1x18x18x128xf32, #tpu.memory_space<vmem>>, vector<1x16x16x128xf32>
    %57 = vector.shape_cast %56 : vector<1x16x16x128xf32> to vector<256x128xf32>
    %c0_74 = arith.constant 0 : index
    %c1024 = arith.constant 1024 : index
    %58 = vector.load %arg9[%c0_74, %c1024] : memref<256x1152xf32, #tpu.memory_space<vmem>>, vector<256x128xf32>
    tpu.vector_store %arg9[%c0_74, %c1024], %57 {strides = array<i32>} : memref<256x1152xf32, #tpu.memory_space<vmem>>, vector<256x128xf32>,
    %c0_75 = arith.constant 0 : index
    %c0_76 = arith.constant 0 : index
    %59 = vector.load %arg9[%c0_75, %c0_76] : memref<256x1152xf32, #tpu.memory_space<vmem>>, vector<256x1152xf32>
    %c0_77 = arith.constant 0 : index
    %c0_78 = arith.constant 0 : index
    %60 = vector.load %arg4[%c0_77, %c0_78] : memref<1152x128xf32, #tpu.memory_space<vmem>>, vector<1152x128xf32>
    %cst_79 = arith.constant dense<0.000000e+00> : vector<256x128xf32>
    %61 = tpu.matmul %59, %60, %cst_79 {dimension_numbers = #tpu.dot_dimension_numbers<[1], [0], [0], [1], [0, 0, 1, 1], [], []>} : vector<256x1152xf32>, vector<1152x128xf32>, vector<256x128xf32> -> vector<256x128xf32>
    %c0_80 = arith.constant 0 : index
    %c0_81 = arith.constant 0 : index
    %62 = vector.load %arg5[%c0_80, %c0_81] : memref<1x128xf32, #tpu.memory_space<vmem>>, vector<1x128xf32>
    %63 = vector.broadcast %62 : vector<1x128xf32> to vector<256x128xf32>
    %64 = arith.addf %61, %63 : vector<256x128xf32>
    %65 = vector.shape_cast %64 : vector<256x128xf32> to vector<1x16x16x128xf32>
    %c0_82 = arith.constant 0 : index
    %c0_83 = arith.constant 0 : index
    %c0_84 = arith.constant 0 : index
    %c0_85 = arith.constant 0 : index
    %66 = vector.load %arg6[%c0_82, %c0_83, %c0_84, %c0_85] : memref<1x16x16x128xf32, #tpu.memory_space<vmem>>, vector<1x16x16x128xf32>
    tpu.vector_store %arg6[%c0_82, %c0_83, %c0_84, %c0_85], %65 {strides = array<i32>} : memref<1x16x16x128xf32, #tpu.memory_space<vmem>>, vector<1x16x16x128xf32>,
    %cst_86 = arith.constant dense<0.000000e+00> : vector<128xf32>
    %67 = vector.multi_reduction <add>, %64, %cst_86 [0] : vector<256x128xf32> to vector<128xf32>
    %68 = vector.shape_cast %67 : vector<128xf32> to vector<1x128xf32>
    %69 = vector.shape_cast %68 : vector<1x128xf32> to vector<1x1x128xf32>
    %c0_87 = arith.constant 0 : index
    %c0_88 = arith.constant 0 : index
    %c0_89 = arith.constant 0 : index
    %70 = vector.load %arg7[%c0_87, %c0_88, %c0_89] : memref<1x2x128xf32, #tpu.memory_space<vmem>>, vector<1x1x128xf32>
    tpu.vector_store %arg7[%c0_87, %c0_88, %c0_89], %69 {strides = array<i32>} : memref<1x2x128xf32, #tpu.memory_space<vmem>>, vector<1x1x128xf32>,
    %71 = arith.mulf %64, %64 : vector<256x128xf32>
    %cst_90 = arith.constant dense<0.000000e+00> : vector<128xf32>
    %72 = vector.multi_reduction <add>, %71, %cst_90 [0] : vector<256x128xf32> to vector<128xf32>
    %73 = vector.shape_cast %72 : vector<128xf32> to vector<1x128xf32>
    %74 = vector.shape_cast %73 : vector<1x128xf32> to vector<1x1x128xf32>
    %c0_91 = arith.constant 0 : index
    %c1_92 = arith.constant 1 : index
    %c0_93 = arith.constant 0 : index
    %75 = vector.load %arg7[%c0_91, %c1_92, %c0_93] : memref<1x2x128xf32, #tpu.memory_space<vmem>>, vector<1x1x128xf32>
    tpu.vector_store %arg7[%c0_91, %c1_92, %c0_93], %74 {strides = array<i32>} : memref<1x2x128xf32, #tpu.memory_space<vmem>>, vector<1x1x128xf32>,
    return
  }
  func.func @transform_0(%arg0: i32) -> (i32, i32, i32, i32) {
    %c0_i32 = arith.constant 0 : i32
    %c0_i32_0 = arith.constant 0 : i32
    %c0_i32_1 = arith.constant 0 : i32
    %c0_i32_2 = arith.constant 0 : i32
    return %arg0, %c0_i32, %c0_i32_0, %c0_i32_1 : i32, i32, i32, i32
  }
  func.func @transform_1(%arg0: i32) -> (i32, i32) {
    %c0_i32 = arith.constant 0 : i32
    %c0_i32_0 = arith.constant 0 : i32
    %c0_i32_1 = arith.constant 0 : i32
    return %c0_i32, %c0_i32_0 : i32, i32
  }
  func.func @transform_2(%arg0: i32) -> (i32, i32) {
    %c0_i32 = arith.constant 0 : i32
    %c0_i32_0 = arith.constant 0 : i32
    %c0_i32_1 = arith.constant 0 : i32
    return %c0_i32, %c0_i32_0 : i32, i32
  }
  func.func @transform_3(%arg0: i32) -> (i32, i32) {
    %c0_i32 = arith.constant 0 : i32
    %c0_i32_0 = arith.constant 0 : i32
    %c0_i32_1 = arith.constant 0 : i32
    return %c0_i32, %c0_i32_0 : i32, i32
  }
  func.func @transform_4(%arg0: i32) -> (i32, i32) {
    %c0_i32 = arith.constant 0 : i32
    %c0_i32_0 = arith.constant 0 : i32
    %c0_i32_1 = arith.constant 0 : i32
    return %c0_i32, %c0_i32_0 : i32, i32
  }
  func.func @transform_5(%arg0: i32) -> (i32, i32, i32, i32) {
    %c0_i32 = arith.constant 0 : i32
    %c0_i32_0 = arith.constant 0 : i32
    %c0_i32_1 = arith.constant 0 : i32
    %c0_i32_2 = arith.constant 0 : i32
    return %arg0, %c0_i32, %c0_i32_0, %c0_i32_1 : i32, i32, i32, i32
  }
  func.func @transform_6(%arg0: i32) -> (i32, i32, i32) {
    %c0_i32 = arith.constant 0 : i32
    %c0_i32_0 = arith.constant 0 : i32
    %c0_i32_1 = arith.constant 0 : i32
    return %arg0, %c0_i32, %c0_i32_0 : i32, i32, i32
  }
}

</mosaic_0001>

<bundles_post_ra>
// kernel: resblock_forward.5
= control target key start
LH: loop header
LB: loop body
LE: loop exit
PB: predicated region body
PF: predicated region fallthrough
CT: control target
= control target key end

     0   :  { %s1584_s21 = smov 0   ;;  %s2428_s0 = inlined_call_operand.vmem [shape: f32[2,16,16,128], index: 0, kind: input, shape index: {}]   ;;  %s2429_s1 = inlined_call_operand.vmem [shape: f32[1,128], index: 1, kind: input, shape index: {}]   ;;  %s2430_s2 = inlined_call_operand.vmem [shape: f32[1,128], index: 2, kind: input, shape index: {}]   ;;  %s2431_s3 = inlined_call_operand.vmem [shape: f32[2,16,16,128], index: 3, kind: input, shape index: {}]   ;;  %s2432_s4 = inlined_call_operand.vmem [shape: f32[128,128], index: 4, kind: input, shape index: {}]   ;;  %s2433_s5 = inlined_call_operand.vmem [shape: f32[1,128], index: 5, kind: input, shape index: {}]   ;;  %s2434_s6 = inlined_call_operand.vmem [shape: f32[2,16,16,128], index: 6, kind: output, shape index: {}]  }
   0x1 LB: > { %s1209_s22 = sadd.s32 4294967295, %s1547_s21   ;;  %p1213_p0 = scmp.ge.s32.totalorder %s1547_s21, 1  ;;  %s1547_s21 = sphi %s1584_s21, %s16_s21  }
   0x2   : > { %p222_p1 = scmp.lt.s32.totalorder %s1547_s21, 3 }
   0x4   : > { %p223_p2 = pnand %p1213_p0, %p222_p1 }
   0x6   : > { %226 = sbr.rel (%p223_p2) target bundleno = 403 (0x193), region = 44 }
   0xd   : > { %v304_v0 = vld [vmem:[%s2432_s4] sm:$0xff]  ;;  %v305_v1 = vld [vmem:[%s2432_s4 + $0x8] sm:$0xff]  ;;  %v306_v2 = vld [vmem:[%s2432_s4 + $0x10] sm:$0xff]  ;;  %p257_p3 = scmp.lt.s32.totalorder %s1209_s22, 1 }
   0xe   : > { %v1356_v3 = vpack.c.bf16 %v305_v1, %v304_v0  ;;  %v307_v4 = vld [vmem:[%s2432_s4 + $0x18] sm:$0xff]  ;;  %v308_v6 = vld [vmem:[%s2432_s4 + $0x20] sm:$0xff]  ;;  %v309_v7 = vld [vmem:[%s2432_s4 + $0x28] sm:$0xff] }
   0xf   : > { %v1360_v5 = vpack.c.bf16 %v307_v4, %v306_v2  ;;  %s2496_s22 = smov (!%p257_p3, %s1209_s22), 1  ;;  %v1364_v8 = vpack.c.bf16 %v309_v7, %v308_v6  ;;  %v310_v9 = vld [vmem:[%s2432_s4 + $0x30] sm:$0xff]  ;;  %v311_v10 = vld [vmem:[%s2432_s4 + $0x38] sm:$0xff]  ;;  %v312_v14 = vld [vmem:[%s2432_s4 + $0x40] sm:$0xff] }
  0x10   : > { %1357 = vmatprep.subr.bf16.mxu0 %v1356_v3  ;;  %1388 = vmatprep.subr.bf16.mxu1 %v1356_v3  ;;  %s1610_s11 = sshll.u32 %s2496_s22, 8  ;;  %v1368_v13 = vpack.c.bf16 %v311_v10, %v310_v9  ;;  %v313_v15 = vld [vmem:[%s2432_s4 + $0x48] sm:$0xff]  ;;  %v314_v17 = vld [vmem:[%s2432_s4 + $0x50] sm:$0xff]  ;;  %v315_v18 = vld [vmem:[%s2432_s4 + $0x58] sm:$0xff] }
  0x11   : > { %1359 = vmatpush3.bf16.msra.mxu0 %v1356_v3  ;;  %1396 = vmatpush3.bf16.msra.mxu1 %v1356_v3  ;;  %s1619_s16 = scalar_lea.vmem %s2431_s3, %s1610_s11  ;;  %v1372_v16 = vpack.c.bf16 %v313_v15, %v312_v14  ;;  %v1376_v19 = vpack.c.bf16 %v315_v18, %v314_v17  ;;  %v316_v20 = vld [vmem:[%s2432_s4 + $0x60] sm:$0xff]  ;;  %v317_v21 = vld [vmem:[%s2432_s4 + $0x68] sm:$0xff]  ;;  %v318_v23 = vld [vmem:[%s2432_s4 + $0x70] sm:$0xff]  ;;  %s1684_s15 = scalar_lea.vmem %s2428_s0, %s1610_s11 }
  0x12   : > { %1361 = vmatprep.subr.bf16.mxu0 %v1360_v5  ;;  %1389 = vmatprep.subr.bf16.mxu1 %v1360_v5  ;;  %v272_v11 = vld [vmem:[%s1619_s16] sm:$0xff]  ;;  %v1380_v22 = vpack.c.bf16 %v317_v21, %v316_v20  ;;  %v319_v24 = vld [vmem:[%s2432_s4 + $0x78] sm:$0xff]  ;;  %v273_v26 = vld [vmem:[%s1619_s16 + $0x8] sm:$0xff]  ;;  %s2038_s25 = scalar_lea.vmem %s2434_s6, %s1610_s11 }
  0x13   : > { %v288_v12 = vld [vmem:[%s1619_s16 + $0x80] sm:$0xff]  ;;  %1308 = vmatprep.mubr.f32.mxu0 %v272_v11  ;;  %v1384_v25 = vpack.c.bf16 %v319_v24, %v318_v23  ;;  %v289_v27 = vld [vmem:[%s1619_s16 + $0x88] sm:$0xff]  ;;  %v274_v28 = vld [vmem:[%s1619_s16 + $0x10] sm:$0xff] }
  0x14   : > { %1332 = vmatprep.mubr.f32.mxu1 %v288_v12  ;;  %v290_v29 = vld [vmem:[%s1619_s16 + $0x90] sm:$0xff]  ;;  %v275_v30 = vld [vmem:[%s1619_s16 + $0x18] sm:$0xff]  ;;  %v276_v32 = vld [vmem:[%s1619_s16 + $0x20] sm:$0xff] }
  0x15   : > { %1363 = vmatpush3.bf16.msra.mxu0 %v1360_v5  ;;  %1397 = vmatpush3.bf16.msra.mxu1 %v1360_v5  ;;  %v291_v31 = vld [vmem:[%s1619_s16 + $0x98] sm:$0xff]  ;;  %v292_v33 = vld [vmem:[%s1619_s16 + $0xa0] sm:$0xff]  ;;  %v277_v34 = vld [vmem:[%s1619_s16 + $0x28] sm:$0xff] }
  0x16   : > { %1365 = vmatprep.subr.bf16.mxu0 %v1364_v8  ;;  %1390 = vmatprep.subr.bf16.mxu1 %v1364_v8  ;;  %v293_v35 = vld [vmem:[%s1619_s16 + $0xa8] sm:$0xff]  ;;  %v278_v36 = vld [vmem:[%s1619_s16 + $0x30] sm:$0xff]  ;;  %v279_v38 = vld [vmem:[%s1619_s16 + $0x38] sm:$0xff] }
  0x17   : > { %v294_v37 = vld [vmem:[%s1619_s16 + $0xb0] sm:$0xff]  ;;  %v295_v39 = vld [vmem:[%s1619_s16 + $0xb8] sm:$0xff]  ;;  %v280_v40 = vld [vmem:[%s1619_s16 + $0x40] sm:$0xff] }
  0x18   : > { %v296_v41 = vld [vmem:[%s1619_s16 + $0xc0] sm:$0xff]  ;;  %v281_v42 = vld [vmem:[%s1619_s16 + $0x48] sm:$0xff]  ;;  %v282_v44 = vld [vmem:[%s1619_s16 + $0x50] sm:$0xff] }
  0x19   : > { %1367 = vmatpush3.bf16.msra.mxu0 %v1364_v8  ;;  %1398 = vmatpush3.bf16.msra.mxu1 %v1364_v8  ;;  %v297_v43 = vld [vmem:[%s1619_s16 + $0xc8] sm:$0xff]  ;;  %v298_v45 = vld [vmem:[%s1619_s16 + $0xd0] sm:$0xff]  ;;  %v283_v46 = vld [vmem:[%s1619_s16 + $0x58] sm:$0xff] }
  0x1a   : > { %1369 = vmatprep.subr.bf16.mxu0 %v1368_v13  ;;  %1391 = vmatprep.subr.bf16.mxu1 %v1368_v13  ;;  %v299_v47 = vld [vmem:[%s1619_s16 + $0xd8] sm:$0xff]  ;;  %v284_v48 = vld [vmem:[%s1619_s16 + $0x60] sm:$0xff]  ;;  %v285_v50 = vld [vmem:[%s1619_s16 + $0x68] sm:$0xff] }
  0x1b   : > { %v300_v49 = vld [vmem:[%s1619_s16 + $0xe0] sm:$0xff]  ;;  %v301_v51 = vld [vmem:[%s1619_s16 + $0xe8] sm:$0xff]  ;;  %v286_v52 = vld [vmem:[%s1619_s16 + $0x70] sm:$0xff] }
  0x1c   : > { %v302_v53 = vld [vmem:[%s1619_s16 + $0xf0] sm:$0xff]  ;;  %v287_v54 = vld [vmem:[%s1619_s16 + $0x78] sm:$0xff]  ;;  %v553_v56 = vld [vmem:[%s1684_s15 + $0x8] sm:$0xff] }
  0x1d   : > { %1371 = vmatpush3.bf16.msra.mxu0 %v1368_v13  ;;  %1399 = vmatpush3.bf16.msra.mxu1 %v1368_v13  ;;  %v303_v55 = vld [vmem:[%s1619_s16 + $0xf8] sm:$0xff]  ;;  %v1690_v57 = vld [vmem:[%s2429_s1] ss:$0 sm:$0xff]  ;;  %v569_v58 = vld [vmem:[%s1684_s15 + $0x88] sm:$0xff] }
  0x1e   : > { %1373 = vmatprep.subr.bf16.mxu0 %v1372_v16  ;;  %1392 = vmatprep.subr.bf16.mxu1 %v1372_v16  ;;  %2443 = vst [vmem:[#allocation2_spill] sm:$0xff] %v1690_v57  ;;  %v552_v59 = vld [vmem:[%s1684_s15] sm:$0xff]  ;;  %v555_v61 = vld [vmem:[%s1684_s15 + $0x18] sm:$0xff]  ;;  %v554_v63 = vld [vmem:[%s1684_s15 + $0x10] sm:$0xff]  ;;  %v592_v2 = vmul.f32 %v1690_v57, %v553_v56  ;;  %v608_v3 = vmul.f32 %v1690_v57, %v569_v58 }
  0x1f   : > { %v568_v60 = vld [vmem:[%s1684_s15 + $0x80] sm:$0xff]  ;;  %v571_v62 = vld [vmem:[%s1684_s15 + $0x98] sm:$0xff]  ;;  %v570_v0 = vld [vmem:[%s1684_s15 + $0x90] sm:$0xff]  ;;  %v591_v4 = vmul.f32 %v1690_v57, %v552_v59  ;;  %v594_v10 = vmul.f32 %v1690_v57, %v555_v61  ;;  %v593_v12 = vmul.f32 %v1690_v57, %v554_v63 }
  0x20   : > { %v557_v1 = vld [vmem:[%s1684_s15 + $0x28] sm:$0xff]  ;;  %v556_v6 = vld [vmem:[%s1684_s15 + $0x20] sm:$0xff]  ;;  %v607_v9 = vmul.f32 %v1690_v57, %v568_v60  ;;  %v610_v11 = vmul.f32 %v1690_v57, %v571_v62  ;;  %v609_v13 = vmul.f32 %v1690_v57, %v570_v0  ;;  %v559_v18 = vld [vmem:[%s1684_s15 + $0x38] sm:$0xff] }
  0x21   : > { %1375 = vmatpush3.bf16.msra.mxu0 %v1372_v16  ;;  %1400 = vmatpush3.bf16.msra.mxu1 %v1372_v16  ;;  %v573_v5 = vld [vmem:[%s1684_s15 + $0xa8] sm:$0xff]  ;;  %v572_v7 = vld [vmem:[%s1684_s15 + $0xa0] sm:$0xff]  ;;  %v596_v14 = vmul.f32 %v1690_v57, %v557_v1  ;;  %v595_v16 = vmul.f32 %v1690_v57, %v556_v6  ;;  %v558_v23 = vld [vmem:[%s1684_s15 + $0x30] sm:$0xff] }
  0x22   : > { %1377 = vmatprep.subr.bf16.mxu0 %v1376_v19  ;;  %1393 = vmatprep.subr.bf16.mxu1 %v1376_v19  ;;  %v1709_v8 = vld [vmem:[%s2430_s2] ss:$0 sm:$0xff]  ;;  %v612_v15 = vmul.f32 %v1690_v57, %v573_v5  ;;  %v611_v17 = vmul.f32 %v1690_v57, %v572_v7  ;;  %v563_v1 = vld [vmem:[%s1684_s15 + $0x58] sm:$0xff] }
  0x23   : > { %2444 = vst [vmem:[#allocation3_spill] sm:$0xff] %v1709_v8  ;;  %v631_v20 = vadd.f32 %v1709_v8, %v592_v2  ;;  %v647_v21 = vadd.f32 %v1709_v8, %v608_v3  ;;  %v1729_v24 = vld [vmem:[%s2433_s5] ss:$0 sm:$0xff] }
  0x25   : > { %1379 = vmatpush3.bf16.msra.mxu0 %v1376_v19  ;;  %1401 = vmatpush3.bf16.msra.mxu1 %v1376_v19  ;;  %v575_v19 = vld [vmem:[%s1684_s15 + $0xb8] sm:$0xff] }
  0x26   : > { %1381 = vmatprep.subr.bf16.mxu0 %v1380_v22  ;;  %1394 = vmatprep.subr.bf16.mxu1 %v1380_v22 }
  0x29   : > { %1383 = vmatpush3.bf16.msra.mxu0 %v1380_v22  ;;  %1402 = vmatpush3.bf16.msra.mxu1 %v1380_v22  ;;  %v630_v22 = vadd.f32 %v1709_v8, %v591_v4 }
  0x2a   : > { %1385 = vmatprep.subr.bf16.mxu0 %v1384_v25  ;;  %1395 = vmatprep.subr.bf16.mxu1 %v1384_v25 }
  0x2d   : > { %1387 = vmatpush3.bf16.msra.mxu0 %v1384_v25  ;;  %1403 = vmatpush3.bf16.msra.mxu1 %v1384_v25  ;;  %v646_v25 = vadd.f32 %v1709_v8, %v607_v9 }
  0x30   : > { %1309 = vmatmul.mubr.f32.vlgmr.msra.gmra.mrb[0].mxu0 %v273_v26  ;;  %1333 = vmatmul.mubr.f32.vlgmr.msra.gmra.mrb[0].mxu1 %v289_v27  ;;  %v633_v26 = vadd.f32 %v1709_v8, %v594_v10  ;;  %v649_v27 = vadd.f32 %v1709_v8, %v610_v11 }
  0x31   : > { %1311 = vmatprep.mubr.f32.mxu0 %v274_v28  ;;  %1335 = vmatprep.mubr.f32.mxu1 %v290_v29  ;;  %v1735_v28 = vadd.f32 %v1709_v8, %v593_v12  ;;  %v574_v29 = vld [vmem:[%s1684_s15 + $0xb0] sm:$0xff] }
  0x34   : > { %1312 = vmatmul.mubr.f32.gmra.mrb[2].mxu0 %v275_v30  ;;  %1336 = vmatmul.mubr.f32.gmra.mrb[2].mxu1 %v291_v31  ;;  %v561_v30 = vld [vmem:[%s1684_s15 + $0x48] sm:$0xff]  ;;  %v1740_v31 = vadd.f32 %v1709_v8, %v609_v13 }
  0x35   : > { %1314 = vmatprep.mubr.f32.mxu0 %v276_v32  ;;  %1338 = vmatprep.mubr.f32.mxu1 %v292_v33  ;;  %v1743_v32 = vadd.f32 %v1709_v8, %v596_v14  ;;  %v598_v33 = vmul.f32 %v1690_v57, %v559_v18 }
  0x37   : > { %v1773_v56 = vadd.f32 %v1709_v8, %v598_v33  ;;  %v562_v33 = vld [vmem:[%s1684_s15 + $0x50] sm:$0xff] }
  0x38   : > { %1315 = vmatmul.mubr.f32.gmra.mrb[4].mxu0 %v277_v34  ;;  %1339 = vmatmul.mubr.f32.gmra.mrb[4].mxu1 %v293_v35  ;;  %v614_v34 = vmul.f32 %v1690_v57, %v575_v19  ;;  %v577_v35 = vld [vmem:[%s1684_s15 + $0xc8] sm:$0xff] }
  0x39   : > { %1317 = vmatprep.mubr.f32.mxu0 %v278_v36  ;;  %1341 = vmatprep.mubr.f32.mxu1 %v294_v37  ;;  %v560_v36 = vld [vmem:[%s1684_s15 + $0x40] sm:$0xff] }
  0x3a   : > { %v1776_v58 = vadd.f32 %v1709_v8, %v614_v34  ;;  %v578_v34 = vld [vmem:[%s1684_s15 + $0xd0] sm:$0xff] }
  0x3c   : > { %1318 = vmatmul.mubr.f32.gmra.mrb[6].mxu0 %v279_v38  ;;  %1342 = vmatmul.mubr.f32.gmra.mrb[6].mxu1 %v295_v39  ;;  %v1750_v39 = vadd.f32 %v1709_v8, %v612_v15  ;;  %v602_v15 = vmul.f32 %v1690_v57, %v563_v1 }
  0x3d   : > { %1320 = vmatprep.mubr.f32.mxu0 %v280_v40  ;;  %1344 = vmatprep.mubr.f32.mxu1 %v296_v41  ;;  %v1753_v40 = vadd.f32 %v1709_v8, %v595_v16  ;;  %v1756_v41 = vadd.f32 %v1709_v8, %v611_v17 }
  0x40   : > { %1321 = vmatmul.mubr.f32.gmra.mrb[8].mxu0 %v281_v42  ;;  %1345 = vmatmul.mubr.f32.gmra.mrb[8].mxu1 %v297_v43  ;;  %v597_v42 = vmul.f32 %v1690_v57, %v558_v23 }
  0x41   : > { %1323 = vmatprep.mubr.f32.mxu0 %v282_v44  ;;  %1347 = vmatprep.mubr.f32.mxu1 %v298_v45 }
  0x42   : > { %v1783_v63 = vadd.f32 %v1709_v8, %v597_v42 }
  0x44   : > { %1324 = vmatmul.mubr.f32.gmra.mrb[10].mxu0 %v283_v46  ;;  %1348 = vmatmul.mubr.f32.gmra.mrb[10].mxu1 %v299_v47  ;;  %v613_v47 = vmul.f32 %v1690_v57, %v574_v29 }
  0x45   : > { %1326 = vmatprep.mubr.f32.mxu0 %v284_v48  ;;  %1350 = vmatprep.mubr.f32.mxu1 %v300_v49  ;;  %v600_v48 = vmul.f32 %v1690_v57, %v561_v30  ;;  %v576_v49 = vld [vmem:[%s1684_s15 + $0xc0] sm:$0xff] }
  0x46   : > { %v615_v0 = vmul.f32 %v1690_v57, %v576_v49  ;;  %v1790_v4 = vadd.f32 %v1709_v8, %v613_v47 }
  0x47   : > { %v1793_v5 = vadd.f32 %v1709_v8, %v600_v48 }
  0x48   : > { %1327 = vmatmul.mubr.f32.gmra.mrb[12].mxu0 %v285_v50  ;;  %1351 = vmatmul.mubr.f32.gmra.mrb[12].mxu1 %v301_v51 }
  0x49   : > { %1329 = vmatprep.mubr.f32.mxu0 %v286_v52  ;;  %1353 = vmatprep.mubr.f32.mxu1 %v302_v53  ;;  %v616_v52 = vmul.f32 %v1690_v57, %v577_v35  ;;  %v599_v53 = vmul.f32 %v1690_v57, %v560_v36 }
  0x4b   : > { %v1798_v9 = vadd.f32 %v1709_v8, %v616_v52  ;;  %v1801_v10 = vadd.f32 %v1709_v8, %v599_v53 }
  0x4c   : > { %1330 = vmatmul.mubr.f32.gmra.mrb[14].mxu0 %v287_v54  ;;  %1354 = vmatmul.mubr.f32.gmra.mrb[14].mxu1 %v303_v55 }
  0x4d   : > { %2445 = vst [vmem:[#allocation4_spill] sm:$0xff] %v1798_v9  ;;  %2446 = vst [vmem:[#allocation5_spill] sm:$0xff] %v1801_v10 }
 0x103   : > { %v1310_v37 = vpop.f32.mrb[0].mxu0  ;;  %v1334_v38 = vpop.f32.mrb[0].mxu1 }
 0x104   : > { %v399_v43 = vadd.f32 %v1310_v37, %v1729_v24  ;;  %v479_v44 = vadd.f32 %v1334_v38, %v1729_v24  ;;  %v393_v45 = vpop.f32.mrb[1].mxu0  ;;  %v473_v46 = vpop.f32.mrb[1].mxu1  ;;  %v1829_v38 = vadd.f32 %v1709_v8, %v602_v15  ;;  %v581_v15 = vld [vmem:[%s1684_s15 + $0xe8] sm:$0xff] }
 0x105   : > { %v394_v50 = vadd.f32 %v1729_v24, %v393_v45  ;;  %v474_v51 = vadd.f32 %v1729_v24, %v473_v46 }
 0x106   : > { %v1768_v54 = vadd.f32 %v631_v20, %v399_v43  ;;  %v1770_v55 = vadd.f32 %v647_v21, %v479_v44  ;;  %v1809_v20 = vadd.f32 %v1709_v8, %v615_v0  ;;  %v579_v21 = vld [vmem:[%s1684_s15 + $0xd8] sm:$0xff]  ;;  %2448 = vst [vmem:[#allocation7_spill] sm:$0xff] %v1829_v38  ;;  %v565_v0 = vld [vmem:[%s1684_s15 + $0x68] sm:$0xff] }
 0x107   : > { %v1778_v59 = vadd.f32 %v630_v22, %v394_v50  ;;  %v1780_v60 = vadd.f32 %v646_v25, %v474_v51  ;;  %v1313_v61 = vpop.f32.mrb[2].mxu0  ;;  %v1337_v62 = vpop.f32.mrb[2].mxu1  ;;  %v618_v42 = vmul.f32 %v1690_v57, %v579_v21 }
 0x108   : > { %v696_v2 = vmul.f32 1.442695, %v1768_v54  ;;  %v728_v3 = vmul.f32 1.442695, %v1770_v55  ;;  %v409_v11 = vadd.f32 %v1313_v61, %v1729_v24  ;;  %v489_v12 = vadd.f32 %v1337_v62, %v1729_v24  ;;  %v403_v13 = vpop.f32.mrb[3].mxu0  ;;  %v483_v14 = vpop.f32.mrb[3].mxu1 }
 0x109   : > { %v694_v6 = vmul.f32 1.442695, %v1778_v59  ;;  %v726_v7 = vmul.f32 1.442695, %v1780_v60  ;;  %v404_v16 = vadd.f32 %v1729_v24, %v403_v13  ;;  %v484_v17 = vadd.f32 %v1729_v24, %v483_v14  ;;  %2447 = vst [vmem:[#allocation6_spill] sm:$0xff] %v1809_v20 }
 0x10a   : > { %1412 = vpow2.f32 %v696_v2  ;;  %v1812_v22 = vadd.f32 %v633_v26, %v409_v11  ;;  %v1814_v23 = vadd.f32 %v649_v27, %v489_v12  ;;  %vm983_vm0 = vcmp.gt.f32.partialorder %v1768_v54, 20.0 }
 0x10b   : > { %1414 = vpow2.f32 %v728_v3  ;;  %v1316_v18 = vpop.f32.mrb[4].mxu0  ;;  %v1340_v19 = vpop.f32.mrb[4].mxu1  ;;  %v1820_v35 = vadd.f32 %v1735_v28, %v404_v16  ;;  %v1823_v36 = vadd.f32 %v1740_v31, %v484_v17  ;;  %v601_v28 = vmul.f32 %v1690_v57, %v562_v33 }
 0x10c   : > { %1416 = vpow2.f32 %v694_v6  ;;  %v419_v25 = vadd.f32 %v1316_v18, %v1729_v24  ;;  %v413_v29 = vpop.f32.mrb[5].mxu0  ;;  %v493_v30 = vpop.f32.mrb[5].mxu1  ;;  %v499_v37 = vadd.f32 %v1340_v19, %v1729_v24  ;;  %v700_v26 = vmul.f32 1.442695, %v1812_v22 }
 0x10d   : > { %1418 = vpow2.f32 %v726_v7  ;;  %v732_v27 = vmul.f32 1.442695, %v1814_v23  ;;  %v698_v43 = vmul.f32 1.442695, %v1820_v35  ;;  %v730_v44 = vmul.f32 1.442695, %v1823_v36 }
 0x10e   : > { %v617_v31 = vmul.f32 %v1690_v57, %v578_v34  ;;  %1420 = vpow2.f32 %v700_v26  ;;  %v1837_v45 = vadd.f32 %v1743_v32, %v419_v25  ;;  %v1840_v46 = vadd.f32 %v1750_v39, %v499_v37 }
 0x10f   : > { %v414_v47 = vadd.f32 %v1729_v24, %v413_v29  ;;  %v1319_v48 = vpop.f32.mrb[6].mxu0  ;;  %v1343_v49 = vpop.f32.mrb[6].mxu1  ;;  %1422 = vpow2.f32 %v732_v27  ;;  %v494_v50 = vadd.f32 %v1729_v24, %v493_v30  ;;  %v1849_v39 = vadd.f32 %v1709_v8, %v618_v42  ;;  %v564_v30 = vld [vmem:[%s1684_s15 + $0x60] sm:$0xff] }
 0x110   : > { %v429_v51 = vadd.f32 %v1319_v48, %v1729_v24  ;;  %v509_v52 = vadd.f32 %v1343_v49, %v1729_v24  ;;  %v423_v53 = vpop.f32.mrb[7].mxu0  ;;  %v503_v61 = vpop.f32.mrb[7].mxu1  ;;  %1424 = vpow2.f32 %v698_v43  ;;  %v704_v32 = vmul.f32 1.442695, %v1837_v45 }
 0x111   : > { %v736_v62 = vmul.f32 1.442695, %v1840_v46  ;;  %2449 = vst [vmem:[#allocation8_spill] sm:$0xff] %v1849_v39  ;;  %1426 = vpow2.f32 %v730_v44  ;;  %v1853_v1 = vadd.f32 %v1753_v40, %v414_v47  ;;  %v1856_v2 = vadd.f32 %v1756_v41, %v494_v50 }
 0x112   : > { %v1863_v7 = vadd.f32 %v1709_v8, %v601_v28  ;;  %1428 = vpow2.f32 %v704_v32  ;;  %v1866_v12 = vadd.f32 %v1773_v56, %v429_v51  ;;  %v1869_v13 = vadd.f32 %v1776_v58, %v509_v52 }
 0x113   : > { %v1858_v3 = vpop.f32.mrb[8].mxu0  ;;  %v1860_v6 = vpop.f32.mrb[8].mxu1  ;;  %v1876_v14 = vadd.f32 %v1709_v8, %v617_v31  ;;  %1430 = vpow2.f32 %v736_v62  ;;  %v702_v18 = vmul.f32 1.442695, %v1853_v1  ;;  %v604_v56 = vmul.f32 %v1690_v57, %v565_v0 }
 0x114   : > { %2450 = vst [vmem:[#allocation9_spill] sm:$0xff] %v1863_v7  ;;  %v1413_v11 = vpop.eup %1412  ;;  %v1871_v40 = vpop.f32.mrb[9].mxu0  ;;  %v734_v58 = vmul.f32 1.442695, %v1856_v2  ;;  %v708_v25 = vmul.f32 1.442695, %v1866_v12  ;;  %v424_v29 = vadd.f32 %v1729_v24, %v423_v53  ;;  %v620_v42 = vmul.f32 %v1690_v57, %v581_v15 }
 0x115   : > { %v1873_v41 = vpop.f32.mrb[9].mxu1  ;;  %2451 = vst [vmem:[#allocation10_spill] sm:$0xff] %v1876_v14  ;;  %v1415_v16 = vpop.eup %1414  ;;  %v759_v17 = vadd.f32 2.0, %v1413_v11  ;;  %1432 = vpow2.f32 %v702_v18  ;;  %v740_v28 = vmul.f32 1.442695, %v1869_v13  ;;  %v1905_v50 = vmul.f32 %v1690_v57, %v564_v30 }
 0x116   : > { %v1417_v19 = vpop.eup %1416  ;;  %v775_v21 = vadd.f32 2.0, %v1415_v16  ;;  %1434 = vpow2.f32 %v734_v58  ;;  %v1913_v32 = vadd.f32 %v1783_v63, %v424_v29  ;;  %v504_v15 = vadd.f32 %v1729_v24, %v503_v61 }
 0x117   : > { %v1419_v33 = vpop.eup %1418  ;;  %v1885_v34 = vmul.f32 %v1413_v11, %v759_v17  ;;  %v758_v37 = vadd.f32 2.0, %v1417_v19  ;;  %v1887_v26 = vpop.f32.mrb[10].mxu0  ;;  %1436 = vpow2.f32 %v708_v25  ;;  %2456 = vst [vmem:[#allocation15_spill] sm:$0xff] %v1905_v50  ;;  %vm999_vm1 = vcmp.gt.f32.partialorder %v1770_v55, 20.0 }
 0x118   : > { %2452 = vst [vmem:[#allocation11_spill] sm:$0xff] %v1887_v26  ;;  %v1889_v27 = vpop.f32.mrb[10].mxu1  ;;  %v1892_v43 = vmul.f32 %v1415_v16, %v775_v21  ;;  %v774_v44 = vadd.f32 2.0, %v1419_v33  ;;  %v1895_v31 = vpop.f32.mrb[11].mxu0  ;;  %1438 = vpow2.f32 %v740_v28  ;;  %2457 = vst [vmem:[#allocation16_spill] sm:$0xff] %v1913_v32  ;;  %vm982_vm2 = vcmp.gt.f32.partialorder %v1778_v59, 20.0 }
 0x119   : > { %2453 = vst [vmem:[#allocation12_spill] sm:$0xff] %v1889_v27  ;;  %2454 = vst [vmem:[#allocation13_spill] sm:$0xff] %v1895_v31  ;;  %v1897_v47 = vpop.f32.mrb[11].mxu1  ;;  %v1900_v48 = vadd.f32 2.0, %v1885_v34  ;;  %v1902_v49 = vmul.f32 %v1417_v19, %v758_v37  ;;  %v1421_v51 = vpop.eup %1420  ;;  %v706_v21 = vmul.f32 1.442695, %v1913_v32  ;;  %v1943_v32 = vadd.f32 %v1790_v4, %v504_v15 }
 0x11a   : > { %2455 = vst [vmem:[#allocation14_spill] sm:$0xff] %v1897_v47  ;;  %v1908_v52 = vadd.f32 2.0, %v1892_v43  ;;  %v1910_v53 = vmul.f32 %v1419_v33, %v774_v44  ;;  %v1423_v62 = vpop.eup %1422  ;;  %v761_v11 = vadd.f32 2.0, %v1421_v51  ;;  %v1937_v33 = vadd.f32 %v1709_v8, %v604_v56 }
 0x11b   : > { %1440 = vrcp.f32 %v1900_v48  ;;  %v1917_v0 = vadd.f32 2.0, %v1902_v49  ;;  %v1920_v16 = vpop.f32.mrb[12].mxu0  ;;  %v1922_v17 = vpop.f32.mrb[12].mxu1  ;;  %v777_v63 = vadd.f32 2.0, %v1423_v62  ;;  %2463 = vst [vmem:[#allocation22_spill] sm:$0xff] %v1943_v32  ;;  %v1960_v4 = vadd.f32 %v1709_v8, %v620_v42 }
 0x11c   : > { %2458 = vst [vmem:[#allocation17_spill] sm:$0xff] %v1920_v16  ;;  %2459 = vst [vmem:[#allocation18_spill] sm:$0xff] %v1922_v17  ;;  %v1425_v18 = vpop.eup %1424  ;;  %1442 = vrcp.f32 %v1908_v52  ;;  %v1926_v19 = vadd.f32 2.0, %v1910_v53  ;;  %v1929_v58 = vpop.f32.mrb[13].mxu0  ;;  %v1934_v61 = vmul.f32 %v1421_v51, %v761_v11  ;;  %vm998_vm3 = vcmp.gt.f32.partialorder %v1780_v60, 20.0 }
 0x11d   : > { %2460 = vst [vmem:[#allocation19_spill] sm:$0xff] %v1929_v58  ;;  %v1931_v25 = vpop.f32.mrb[13].mxu1  ;;  %v1427_v29 = vpop.eup %1426  ;;  %1444 = vrcp.f32 %v1917_v0  ;;  %v760_v30 = vadd.f32 2.0, %v1425_v18  ;;  %2462 = vst [vmem:[#allocation21_spill] sm:$0xff] %v1937_v33  ;;  %v1940_v44 = vmul.f32 %v1423_v62, %v777_v63  ;;  %vm985_vm4 = vcmp.gt.f32.partialorder %v1812_v22, 20.0 }
 0x11e   : > { %2461 = vst [vmem:[#allocation20_spill] sm:$0xff] %v1931_v25  ;;  %v1429_v37 = vpop.eup %1428  ;;  %1446 = vrcp.f32 %v1926_v19  ;;  %v776_v28 = vadd.f32 2.0, %v1427_v29  ;;  %v1946_v25 = vadd.f32 2.0, %v1934_v61  ;;  %2466 = vst [vmem:[#allocation25_spill] sm:$0xff] %v1960_v4  ;;  %vm1001_vm5 = vcmp.gt.f32.partialorder %v1814_v23, 20.0 }
 0x11f   : > { %v1431_v58 = vpop.eup %1430  ;;  %v1948_v14 = vmul.f32 %v1425_v18, %v760_v30  ;;  %v763_v51 = vadd.f32 2.0, %v1429_v37  ;;  %1448 = vpow2.f32 %v706_v21  ;;  %v1950_v11 = vpop.f32.mrb[14].mxu0  ;;  %v1955_v33 = vadd.f32 2.0, %v1940_v44 }
 0x120   : > { %2464 = vst [vmem:[#allocation23_spill] sm:$0xff] %v1950_v11  ;;  %v1952_v56 = vpop.f32.mrb[14].mxu1  ;;  %v1957_v62 = vmul.f32 %v1427_v29, %v776_v28  ;;  %v779_v63 = vadd.f32 2.0, %v1431_v58  ;;  %v1962_v15 = vpop.f32.mrb[15].mxu0  ;;  %1450 = vrcp.f32 %v1946_v25  ;;  %vm984_vm6 = vcmp.gt.f32.partialorder %v1820_v35, 20.0 }
 0x121   : > { %2465 = vst [vmem:[#allocation24_spill] sm:$0xff] %v1952_v56  ;;  %2467 = vst [vmem:[#allocation26_spill] sm:$0xff] %v1962_v15  ;;  %v1964_v7 = vpop.f32.mrb[15].mxu1  ;;  %v1433_v18 = vpop.eup %1432  ;;  %v1968_v21 = vadd.f32 2.0, %v1948_v14  ;;  %v1970_v30 = vmul.f32 %v1429_v37, %v763_v51  ;;  %v738_v56 = vmul.f32 1.442695, %v1943_v32  ;;  %1452 = vrcp.f32 %v1955_v33 }
 0x122   : > { %2468 = vst [vmem:[#allocation27_spill] sm:$0xff] %v1964_v7  ;;  %v1435_v29 = vpop.eup %1434  ;;  %v1975_v42 = vadd.f32 2.0, %v1957_v62  ;;  %v1977_v28 = vmul.f32 %v1431_v58, %v779_v63  ;;  %v762_v15 = vadd.f32 2.0, %v1433_v18  ;;  %v439_v37 = vadd.f32 %v1858_v3, %v1729_v24 }
 0x123   : > { %v1437_v7 = vpop.eup %1436  ;;  %1454 = vrcp.f32 %v1968_v21  ;;  %v1981_v11 = vadd.f32 2.0, %v1970_v30  ;;  %v778_v4 = vadd.f32 2.0, %v1435_v29  ;;  %vm1000_vm7 = vcmp.gt.f32.partialorder %v1823_v36, 20.0 }
 0x124   : > { %v1439_v51 = vpop.eup %1438  ;;  %1456 = vrcp.f32 %v1975_v42  ;;  %v1987_v32 = vadd.f32 2.0, %v1977_v28  ;;  %v1989_v39 = vmul.f32 %v1433_v18, %v762_v15  ;;  %v765_v58 = vadd.f32 2.0, %v1437_v7 }
 0x125   : > { %v1441_v63 = vpop.eup %1440  ;;  %1458 = vrcp.f32 %v1981_v11  ;;  %v1992_v17 = vmul.f32 %v1435_v29, %v778_v4  ;;  %v781_v16 = vadd.f32 2.0, %v1439_v51  ;;  %v1995_v47 = vadd.f32 %v1793_v5, %v439_v37 }
 0x126   : > { %v1443_v31 = vpop.eup %1442  ;;  %v887_v3 = vmul.f32 %v1441_v63, %v1900_v48  ;;  %1460 = vrcp.f32 %v1987_v32  ;;  %v2000_v27 = vadd.f32 2.0, %v1989_v39  ;;  %v2002_v15 = vmul.f32 %v1437_v7, %v765_v58 }
 0x127   : > { %v1445_v18 = vpop.eup %1444  ;;  %v903_v4 = vmul.f32 %v1443_v31, %v1908_v52  ;;  %v2007_v29 = vadd.f32 2.0, %v1992_v17  ;;  %v2009_v5 = vmul.f32 %v1439_v51, %v781_v16  ;;  %1462 = vpow2.f32 %v738_v56 }
 0x128   : > { %v1447_v37 = vpop.eup %1446  ;;  %v919_v48 = vsub.f32 2.0, %v887_v3  ;;  %v886_v57 = vmul.f32 %v1445_v18, %v1917_v0  ;;  %1464 = vrcp.f32 %v2000_v27  ;;  %v2015_v7 = vadd.f32 2.0, %v2002_v15 }
 0x129   : > { %v1449_v58 = vpop.eup %1448  ;;  %v935_v8 = vsub.f32 2.0, %v903_v4  ;;  %v902_v52 = vmul.f32 %v1447_v37, %v1926_v19  ;;  %1466 = vrcp.f32 %v2007_v29  ;;  %v2021_v16 = vadd.f32 2.0, %v2009_v5 }
 0x12a   : > { %v951_v56 = vmul.f32 %v1441_v63, %v919_v48  ;;  %v918_v51 = vsub.f32 2.0, %v886_v57  ;;  %1468 = vrcp.f32 %v2015_v7  ;;  %v764_v0 = vadd.f32 2.0, %v1449_v58  ;;  %v1451_v3 = vpop.eup %1450 }
 0x12b   : > { %v967_v50 = vmul.f32 %v1443_v31, %v935_v8  ;;  %v934_v4 = vsub.f32 2.0, %v902_v52  ;;  %1470 = vrcp.f32 %v2021_v16  ;;  %v712_v19 = vmul.f32 1.442695, %v1995_v47  ;;  %v1453_v38 = vpop.eup %1452 }
 0x12c   : > { %v1015_v20 = vmul.f32 %v951_v56, %v1885_v34  ;;  %v950_v10 = vmul.f32 %v1445_v18, %v918_v51  ;;  %v889_v63 = vmul.f32 %v1451_v3, %v1946_v25  ;;  %v2029_v57 = vmul.f32 %v1449_v58, %v764_v0 }
 0x12d   : > { %v1455_v48 = vpop.eup %1454  ;;  %v1031_v26 = vmul.f32 %v967_v50, %v1892_v43  ;;  %v966_v9 = vmul.f32 %v1447_v37, %v934_v4  ;;  %v905_v8 = vmul.f32 %v1453_v38, %v1955_v33  ;;  %1472 = vpow2.f32 %v712_v19 }
 0x12e   : > { %v1457_v31 = vpop.eup %1456  ;;  %v1047_v34 = vmul.f32 %v1015_v20, %v1768_v54  ;;  %v1014_v25 = vmul.f32 %v950_v10, %v1902_v49  ;;  %v921_v18 = vsub.f32 2.0, %v889_v63  ;;  %v888_v43 = vmul.f32 %v1455_v48, %v1968_v21 }
 0x12f   : > { %v1459_v50 = vpop.eup %1458  ;;  %v1063_v33 = vmul.f32 %v1031_v26, %v1770_v55  ;;  %v1030_v37 = vmul.f32 %v966_v9, %v1910_v53  ;;  %v937_v58 = vsub.f32 2.0, %v905_v8  ;;  %v904_v52 = vmul.f32 %v1457_v31, %v1975_v42 }
 0x130   : > { %v1461_v20 = vpop.eup %1460  ;;  %v1079_v10 = vsel %vm983_vm0, %v1768_v54, %v1047_v34  ;;  %v1046_v49 = vmul.f32 %v1014_v25, %v1778_v59  ;;  %v953_v56 = vmul.f32 %v1451_v3, %v921_v18  ;;  %v920_v21 = vsub.f32 2.0, %v888_v43 }
 0x131   : > { %v2053_v26 = vpop.eup %1462  ;;  %1111 = vst [vmem:[%s2038_s25 + $0x8] sm:$0xff] %v1079_v10  ;;  %v1095_v9 = vsel %vm999_vm1, %v1770_v55, %v1063_v33  ;;  %v1062_v53 = vmul.f32 %v1030_v37, %v1780_v60  ;;  %v969_v42 = vmul.f32 %v1453_v38, %v937_v58  ;;  %v936_v51 = vsub.f32 2.0, %v904_v52 }
 0x132   : > { %v1465_v54 = vpop.eup %1464  ;;  %1127 = vst [vmem:[%s2038_s25 + $0x88] sm:$0xff] %v1095_v9  ;;  %v1078_v0 = vsel %vm982_vm2, %v1778_v59, %v1046_v49  ;;  %v1017_v3 = vmul.f32 %v953_v56, %v1934_v61  ;;  %v952_v4 = vmul.f32 %v1455_v48, %v920_v21  ;;  %v891_v19 = vmul.f32 %v1459_v50, %v1981_v11 }
 0x133   : > { %v1467_v63 = vpop.eup %1466  ;;  %1110 = vst [vmem:[%s2038_s25] sm:$0xff] %v1078_v0  ;;  %v1094_v55 = vsel %vm998_vm3, %v1780_v60, %v1062_v53  ;;  %v1033_v38 = vmul.f32 %v969_v42, %v1940_v44  ;;  %v968_v8 = vmul.f32 %v1457_v31, %v936_v51  ;;  %vm987_vm8 = vcmp.gt.f32.partialorder %v1837_v45, 20.0 }
 0x134   : > { %v907_v34 = vmul.f32 %v1461_v20, %v1987_v32  ;;  %v1469_v25 = vpop.eup %1468  ;;  %1126 = vst [vmem:[%s2038_s25 + $0x80] sm:$0xff] %v1094_v55  ;;  %v1049_v59 = vmul.f32 %v1017_v3, %v1812_v22  ;;  %v1016_v61 = vmul.f32 %v952_v4, %v1948_v14  ;;  %v923_v11 = vsub.f32 2.0, %v891_v19 }
 0x135   : > { %vm1003_vm9 = vcmp.gt.f32.partialorder %v1840_v46, 20.0  ;;  %v890_v48 = vmul.f32 %v1465_v54, %v2000_v27  ;;  %v1471_v60 = vpop.eup %1470  ;;  %v1065_v44 = vmul.f32 %v1033_v38, %v1814_v23  ;;  %v1032_v31 = vmul.f32 %v968_v8, %v1957_v62  ;;  %v2469_v8 = vld [vmem:[#allocation4_spill] sm:$0xff] }
 0x136   : > { %v939_v18 = vsub.f32 2.0, %v907_v34  ;;  %vm986_vm10 = vcmp.gt.f32.partialorder %v1853_v1, 20.0  ;;  %v906_v32 = vmul.f32 %v1467_v63, %v2007_v29  ;;  %v1081_v14 = vsel %vm985_vm4, %v1812_v22, %v1049_v59  ;;  %v580_v59 = vld [vmem:[%s1684_s15 + $0xe0] sm:$0xff] }
 0x137   : > { %v1048_v43 = vmul.f32 %v1016_v61, %v1820_v35  ;;  %v955_v33 = vmul.f32 %v1459_v50, %v923_v11  ;;  %v922_v27 = vsub.f32 2.0, %v890_v48  ;;  %vm1002_vm11 = vcmp.gt.f32.partialorder %v1856_v2, 20.0  ;;  %v1473_v37 = vpop.eup %1472  ;;  %1113 = vst [vmem:[%s2038_s25 + $0x18] sm:$0xff] %v1081_v14  ;;  %v2471_v11 = vld [vmem:[#allocation5_spill] sm:$0xff]  ;;  %v2473_v14 = vld [vmem:[#allocation7_spill] sm:$0xff] }
 0x138   : > { %v1097_v62 = vsel %vm1001_vm5, %v1814_v23, %v1065_v44  ;;  %v1064_v29 = vmul.f32 %v1032_v31, %v1823_v36  ;;  %v971_v58 = vmul.f32 %v1461_v20, %v939_v18  ;;  %v938_v52 = vsub.f32 2.0, %v906_v32  ;;  %v567_v44 = vld [vmem:[%s1684_s15 + $0x78] sm:$0xff] }
 0x139   : > { %1129 = vst [vmem:[%s2038_s25 + $0x98] sm:$0xff] %v1097_v62  ;;  %v1080_v22 = vsel %vm984_vm6, %v1820_v35, %v1048_v43  ;;  %v1019_v50 = vmul.f32 %v955_v33, %v1970_v30  ;;  %v954_v10 = vmul.f32 %v1465_v54, %v922_v27  ;;  %v893_v49 = vmul.f32 %v1469_v25, %v2015_v7  ;;  %v583_v31 = vld [vmem:[%s1684_s15 + $0xf8] sm:$0xff]  ;;  %v2475_v33 = vld [vmem:[#allocation3_spill] sm:$0xff] }
 0x13a   : > { %1112 = vst [vmem:[%s2038_s25 + $0x10] sm:$0xff] %v1080_v22  ;;  %v1096_v56 = vsel %vm1000_vm7, %v1823_v36, %v1064_v29  ;;  %v1035_v23 = vmul.f32 %v971_v58, %v1977_v28  ;;  %v970_v21 = vmul.f32 %v1467_v63, %v938_v52  ;;  %vm989_vm12 = vcmp.gt.f32.partialorder %v1866_v12, 20.0  ;;  %v2476_v29 = vld [vmem:[#allocation2_spill] sm:$0xff] }
 0x13b   : > { %v909_v20 = vmul.f32 %v1471_v60, %v2021_v16  ;;  %1128 = vst [vmem:[%s2038_s25 + $0x90] sm:$0xff] %v1096_v56  ;;  %v1051_v35 = vmul.f32 %v1019_v50, %v1837_v45  ;;  %v1018_v30 = vmul.f32 %v954_v10, %v1989_v39  ;;  %v925_v7 = vsub.f32 2.0, %v893_v49  ;;  %v2477_v10 = vld [vmem:[#allocation12_spill] sm:$0xff]  ;;  %v2478_v56 = vld [vmem:[#allocation13_spill] sm:$0xff] }
 0x13c   : > { %v828_v9 = vadd.f32 2.0, %v2029_v57  ;;  %v1067_v53 = vmul.f32 %v1035_v23, %v1840_v46  ;;  %v1034_v36 = vmul.f32 %v970_v21, %v1992_v17  ;;  %v780_v42 = vadd.f32 2.0, %v2053_v26  ;;  %v2479_v21 = vld [vmem:[#allocation14_spill] sm:$0xff] }
 0x13d   : > { %v941_v28 = vsub.f32 2.0, %v909_v20  ;;  %v1083_v16 = vsel %vm987_vm8, %v1837_v45, %v1051_v35  ;;  %v1050_v51 = vmul.f32 %v1018_v30, %v1853_v1  ;;  %v957_v54 = vmul.f32 %v1469_v25, %v925_v7  ;;  %v2480_v30 = vld [vmem:[#allocation17_spill] sm:$0xff] }
 0x13e   : > { %1474 = vrcp.f32 %v828_v9  ;;  %1115 = vst [vmem:[%s2038_s25 + $0x28] sm:$0xff] %v1083_v16  ;;  %v1099_v39 = vsel %vm1003_vm9, %v1840_v46, %v1067_v53  ;;  %v1066_v17 = vmul.f32 %v1034_v36, %v1856_v2  ;;  %v2122_v3 = vmul.f32 %v2053_v26, %v780_v42  ;;  %v2481_v53 = vld [vmem:[#allocation18_spill] sm:$0xff]  ;;  %v2483_v16 = vld [vmem:[#allocation9_spill] sm:$0xff] }
 0x13f   : > { %v973_v0 = vmul.f32 %v1471_v60, %v941_v28  ;;  %1131 = vst [vmem:[%s2038_s25 + $0xa8] sm:$0xff] %v1099_v39  ;;  %v1082_v45 = vsel %vm986_vm10, %v1853_v1, %v1050_v51  ;;  %v1021_v4 = vmul.f32 %v957_v54, %v2002_v15  ;;  %vm1005_vm13 = vcmp.gt.f32.partialorder %v1869_v13, 20.0  ;;  %v2482_v28 = vld [vmem:[#allocation8_spill] sm:$0xff]  ;;  %v2484_v54 = vld [vmem:[#allocation10_spill] sm:$0xff] }
 0x140   : > { %v767_v19 = vadd.f32 2.0, %v1473_v37  ;;  %1114 = vst [vmem:[%s2038_s25 + $0x20] sm:$0xff] %v1082_v45  ;;  %v1098_v46 = vsel %vm1002_vm11, %v1856_v2, %v1066_v17  ;;  %v844_v26 = vadd.f32 2.0, %v2122_v3  ;;  %v519_v55 = vadd.f32 %v1860_v6, %v1729_v24  ;;  %v2470_v6 = vld [vmem:[#allocation11_spill] sm:$0xff]  ;;  %v2486_v45 = vld [vmem:[#allocation25_spill] sm:$0xff] }
 0x141   : > { %v1037_v63 = vmul.f32 %v973_v0, %v2009_v5  ;;  %1130 = vst [vmem:[%s2038_s25 + $0xa0] sm:$0xff] %v1098_v46  ;;  %v1053_v1 = vmul.f32 %v1021_v4, %v1866_v12  ;;  %v434_v38 = vadd.f32 %v1729_v24, %v1871_v40  ;;  %v514_v2 = vadd.f32 %v1729_v24, %v1873_v41  ;;  %v2472_v41 = vld [vmem:[#allocation6_spill] sm:$0xff] }
 0x142   : > { %v2140_v15 = vmul.f32 %v1473_v37, %v767_v19  ;;  %1476 = vrcp.f32 %v844_v26  ;;  %v2148_v34 = vadd.f32 %v2469_v8, %v519_v55  ;;  %v449_v25 = vadd.f32 %v2470_v6, %v1729_v24  ;;  %v2487_v19 = vld [vmem:[#allocation19_spill] sm:$0xff] }
 0x143   : > { %v1069_v5 = vmul.f32 %v1037_v63, %v1869_v13  ;;  %v1085_v61 = vsel %vm989_vm12, %v1866_v12, %v1053_v1  ;;  %v2158_v48 = vadd.f32 %v2471_v11, %v434_v38  ;;  %v2161_v60 = vadd.f32 %v2472_v41, %v514_v2  ;;  %v2474_v12 = vld [vmem:[#allocation15_spill] sm:$0xff]  ;;  %v566_v63 = vld [vmem:[%s1684_s15 + $0x70] sm:$0xff] }
 0x144   : > { %v831_v40 = vadd.f32 2.0, %v2140_v15  ;;  %1117 = vst [vmem:[%s2038_s25 + $0x38] sm:$0xff] %v1085_v61  ;;  %v744_v32 = vmul.f32 1.442695, %v2148_v34  ;;  %v2171_v43 = vadd.f32 %v2473_v14, %v449_v25  ;;  %v642_v27 = vadd.f32 %v2475_v33, %v2474_v12 }
 0x145   : > { %v1101_v18 = vsel %vm1005_vm13, %v1869_v13, %v1069_v5  ;;  %v710_v37 = vmul.f32 1.442695, %v2158_v48  ;;  %v742_v62 = vmul.f32 1.442695, %v2161_v60  ;;  %v619_v58 = vmul.f32 %v2476_v29, %v580_v59  ;;  %v582_v5 = vld [vmem:[%s1684_s15 + $0xf0] sm:$0xff] }
 0x146   : > { %1133 = vst [vmem:[%s2038_s25 + $0xb8] sm:$0xff] %v1101_v18  ;;  %1478 = vrcp.f32 %v831_v40  ;;  %v716_v52 = vmul.f32 1.442695, %v2171_v43  ;;  %v606_v13 = vmul.f32 %v2476_v29, %v567_v44  ;;  %v622_v22 = vmul.f32 %v2476_v29, %v583_v31 }
 0x147   : > { %1480 = vpow2.f32 %v744_v32  ;;  %v529_v49 = vadd.f32 %v2477_v10, %v1729_v24  ;;  %v444_v23 = vadd.f32 %v1729_v24, %v2478_v56  ;;  %v524_v20 = vadd.f32 %v1729_v24, %v2479_v21 }
 0x148   : > { %v1475_v50 = vpop.eup %1474  ;;  %1482 = vpow2.f32 %v710_v37  ;;  %v459_v7 = vadd.f32 %v2480_v30, %v1729_v24  ;;  %v539_v36 = vadd.f32 %v2481_v53, %v1729_v24  ;;  %v454_v46 = vadd.f32 %v1729_v24, %v2487_v19  ;;  %v2488_v37 = vld [vmem:[#allocation20_spill] sm:$0xff] }
 0x149   : > { %v892_v35 = vmul.f32 %v1475_v50, %v828_v9  ;;  %1484 = vpow2.f32 %v742_v62  ;;  %v2193_v42 = vadd.f32 %v2482_v28, %v529_v49  ;;  %v2196_v51 = vadd.f32 %v2483_v16, %v444_v23  ;;  %v2485_v9 = vld [vmem:[#allocation21_spill] sm:$0xff]  ;;  %v2489_v62 = vld [vmem:[#allocation23_spill] sm:$0xff] }
 0x14a   : > { %1486 = vpow2.f32 %v716_v52  ;;  %v2199_v39 = vadd.f32 %v2484_v54, %v524_v20  ;;  %v2202_v0 = vadd.f32 %v2485_v9, %v459_v7  ;;  %v2205_v4 = vadd.f32 %v2486_v45, %v539_v36  ;;  %v2491_v54 = vld [vmem:[#allocation22_spill] sm:$0xff] }
 0x14b   : > { %v924_v17 = vsub.f32 2.0, %v892_v35  ;;  %v748_v55 = vmul.f32 1.442695, %v2193_v42  ;;  %v714_v1 = vmul.f32 1.442695, %v2196_v51  ;;  %v658_v38 = vadd.f32 %v2475_v33, %v619_v58 }
 0x14c   : > { %v645_v2 = vadd.f32 %v2475_v33, %v606_v13  ;;  %v1477_v8 = vpop.eup %1476  ;;  %v746_v25 = vmul.f32 1.442695, %v2199_v39  ;;  %v720_v59 = vmul.f32 1.442695, %v2202_v0  ;;  %v2218_v61 = vadd.f32 %v2475_v33, %v622_v22  ;;  %v2490_v13 = vld [vmem:[#allocation16_spill] sm:$0xff] }
 0x14d   : > { %v956_v6 = vmul.f32 %v1475_v50, %v924_v17  ;;  %v908_v11 = vmul.f32 %v1477_v8, %v844_v26  ;;  %1488 = vpow2.f32 %v748_v55  ;;  %v752_v41 = vmul.f32 1.442695, %v2205_v4 }
 0x14e   : > { %v2222_v44 = vmul.f32 %v2476_v29, %v566_v63  ;;  %1490 = vpow2.f32 %v714_v1  ;;  %v2225_v18 = vadd.f32 %v642_v27, %v454_v46  ;;  %v2228_v32 = vmul.f32 %v2476_v29, %v582_v5 }
 0x14f   : > { %v1020_v31 = vmul.f32 %v956_v6, %v2029_v57  ;;  %v940_v12 = vsub.f32 2.0, %v908_v11  ;;  %1492 = vpow2.f32 %v746_v25  ;;  %v534_v26 = vadd.f32 %v1729_v24, %v2488_v37  ;;  %v2492_v11 = vld [vmem:[#allocation24_spill] sm:$0xff] }
 0x150   : > { %v1479_v14 = vpop.eup %1478  ;;  %v469_v58 = vadd.f32 %v2489_v62, %v1729_v24  ;;  %1494 = vpow2.f32 %v720_v59  ;;  %v718_v27 = vmul.f32 1.442695, %v2225_v18  ;;  %vm988_vm14 = vcmp.gt.f32.partialorder %v2490_v13, 20.0 }
 0x151   : > { %v1481_v52 = vpop.eup %1480  ;;  %v1052_v22 = vmul.f32 %v1020_v31, %v2490_v13  ;;  %v895_v57 = vmul.f32 %v1479_v14, %v831_v40  ;;  %v972_v29 = vmul.f32 %v1477_v8, %v940_v12  ;;  %1496 = vpow2.f32 %v752_v41 }
 0x152   : > { %v1483_v50 = vpop.eup %1482  ;;  %v783_v10 = vadd.f32 2.0, %v1481_v52  ;;  %1498 = vpow2.f32 %v718_v27  ;;  %v2242_v7 = vadd.f32 %v658_v38, %v534_v26  ;;  %v2246_v16 = vadd.f32 %v645_v2, %v469_v58 }
 0x153   : > { %v1485_v49 = vpop.eup %1484  ;;  %v1084_v56 = vsel %vm988_vm14, %v2490_v13, %v1052_v22  ;;  %v927_v23 = vsub.f32 2.0, %v895_v57  ;;  %v766_v21 = vadd.f32 2.0, %v1483_v50  ;;  %v1036_v35 = vmul.f32 %v972_v29, %v2122_v3 }
 0x154   : > { %v1487_v20 = vpop.eup %1486  ;;  %1116 = vst [vmem:[%s2038_s25 + $0x30] sm:$0xff] %v1084_v56  ;;  %v2240_v40 = vmul.f32 %v1481_v52, %v783_v10  ;;  %v782_v30 = vadd.f32 2.0, %v1485_v49  ;;  %vm1004_vm15 = vcmp.gt.f32.partialorder %v2491_v54, 20.0  ;;  %v750_v63 = vmul.f32 1.442695, %v2242_v7 }
 0x155   : > { %v959_v53 = vmul.f32 %v1479_v14, %v927_v23  ;;  %v2244_v36 = vmul.f32 %v1483_v50, %v766_v21  ;;  %v769_v28 = vadd.f32 2.0, %v1487_v20  ;;  %v1068_v17 = vmul.f32 %v1036_v35, %v2491_v54 }
 0x156   : > { %v847_v9 = vadd.f32 2.0, %v2240_v40  ;;  %v2251_v45 = vmul.f32 %v1485_v49, %v782_v30  ;;  %v724_v2 = vmul.f32 1.442695, %v2246_v16  ;;  %vm991_vm0 = vcmp.gt.f32.partialorder %v1995_v47, 20.0  ;;  %v2494_v30 = vld [vmem:[#allocation27_spill] sm:$0xff] }
 0x157   : > { %v1023_v3 = vmul.f32 %v959_v53, %v2140_v15  ;;  %v830_v19 = vadd.f32 2.0, %v2244_v36  ;;  %v2255_v46 = vmul.f32 %v1487_v20, %v769_v28  ;;  %v1489_v55 = vpop.eup %1488  ;;  %v1100_v1 = vsel %vm1004_vm15, %v2491_v54, %v1068_v17 }
 0x158   : > { %1500 = vrcp.f32 %v847_v9  ;;  %v846_v38 = vadd.f32 2.0, %v2251_v45  ;;  %v1491_v5 = vpop.eup %1490  ;;  %1132 = vst [vmem:[%s2038_s25 + $0xb0] sm:$0xff] %v1100_v1  ;;  %v785_v6 = vadd.f32 2.0, %v1489_v55  ;;  %v549_v41 = vadd.f32 %v2492_v11, %v1729_v24 }
 0x159   : > { %v1055_v8 = vmul.f32 %v1023_v3, %v1995_v47  ;;  %1502 = vrcp.f32 %v830_v19  ;;  %v833_v15 = vadd.f32 2.0, %v2255_v46  ;;  %v1493_v25 = vpop.eup %1492  ;;  %v768_v59 = vadd.f32 2.0, %v1491_v5 }
 0x15a   : > { %1504 = vrcp.f32 %v846_v38  ;;  %v1495_v31 = vpop.eup %1494  ;;  %v2268_v12 = vmul.f32 %v1489_v55, %v785_v6  ;;  %v784_v37 = vadd.f32 2.0, %v1493_v25  ;;  %v644_v52 = vadd.f32 %v2475_v33, %v2222_v44  ;;  %v1540_v44 = vld [vmem:[%s2430_s2] ss:$0 sm:$0xff] }
 0x15b   : > { %v1087_v14 = vsel %vm991_vm0, %v1995_v47, %v1055_v8  ;;  %1506 = vrcp.f32 %v833_v15  ;;  %v1497_v26 = vpop.eup %1496  ;;  %v2271_v62 = vmul.f32 %v1491_v5, %v768_v59  ;;  %v771_v58 = vadd.f32 2.0, %v1495_v31 }
 0x15c   : > { %1119 = vst [vmem:[%s2038_s25 + $0x48] sm:$0xff] %v1087_v14  ;;  %1508 = vpow2.f32 %v750_v63  ;;  %v1499_v13 = vpop.eup %1498  ;;  %v849_v22 = vadd.f32 2.0, %v2268_v12  ;;  %v2276_v57 = vmul.f32 %v1493_v25, %v784_v37  ;;  %v787_v27 = vadd.f32 2.0, %v1497_v26 }
 0x15d   : > { %1510 = vpow2.f32 %v724_v2  ;;  %v2279_v47 = vadd.f32 2.0, %v2271_v62  ;;  %v2281_v50 = vmul.f32 %v1495_v31, %v771_v58  ;;  %v770_v29 = vadd.f32 2.0, %v1499_v13 }
 0x15e   : > { %v2284_v10 = vadd.f32 %v2218_v61, %v549_v41  ;;  %1512 = vrcp.f32 %v849_v22  ;;  %v2287_v49 = vadd.f32 2.0, %v2276_v57  ;;  %v2289_v33 = vmul.f32 %v1497_v26, %v787_v27  ;;  %v2493_v61 = vld [vmem:[#allocation26_spill] sm:$0xff] }
 0x15f   : > { %v660_v56 = vadd.f32 %v1540_v44, %v2228_v32  ;;  %1514 = vrcp.f32 %v2279_v47  ;;  %v2297_v23 = vadd.f32 2.0, %v2281_v50  ;;  %v2299_v21 = vmul.f32 %v1499_v13, %v770_v29 }
 0x160   : > { %v464_v20 = vadd.f32 %v1729_v24, %v2493_v61  ;;  %1516 = vrcp.f32 %v2287_v49  ;;  %v2305_v35 = vadd.f32 2.0, %v2289_v33  ;;  %v544_v53 = vadd.f32 %v1729_v24, %v2494_v30 }
 0x161   : > { %1518 = vrcp.f32 %v2297_v23  ;;  %v2311_v32 = vadd.f32 2.0, %v2299_v21  ;;  %v756_v54 = vmul.f32 1.442695, %v2284_v10  ;;  %vm1007_vm1 = vcmp.gt.f32.partialorder %v2148_v34, 20.0 }
 0x162   : > { %v1501_v28 = vpop.eup %1500  ;;  %v2314_v17 = vadd.f32 %v644_v52, %v464_v20  ;;  %1520 = vrcp.f32 %v2305_v35  ;;  %v2317_v55 = vadd.f32 %v660_v56, %v544_v53  ;;  %vm990_vm2 = vcmp.gt.f32.partialorder %v2158_v48, 20.0 }
 0x163   : > { %v1503_v3 = vpop.eup %1502  ;;  %v911_v63 = vmul.f32 %v1501_v28, %v847_v9  ;;  %1522 = vrcp.f32 %v2311_v32  ;;  %vm1006_vm3 = vcmp.gt.f32.partialorder %v2161_v60, 20.0  ;;  %vm993_vm4 = vcmp.gt.f32.partialorder %v2171_v43, 20.0 }
 0x164   : > { %v1505_v1 = vpop.eup %1504  ;;  %v894_v24 = vmul.f32 %v1503_v3, %v830_v19  ;;  %v722_v2 = vmul.f32 1.442695, %v2314_v17  ;;  %v754_v25 = vmul.f32 1.442695, %v2317_v55  ;;  %1524 = vpow2.f32 %v756_v54 }
 0x165   : > { %v1507_v5 = vpop.eup %1506  ;;  %v943_v8 = vsub.f32 2.0, %v911_v63  ;;  %v910_v6 = vmul.f32 %v1505_v1, %v846_v38  ;;  %vm1009_vm5 = vcmp.gt.f32.partialorder %v2193_v42, 20.0  ;;  %vm992_vm6 = vcmp.gt.f32.partialorder %v2196_v51, 20.0 }
 0x166   : > { %v1509_v9 = vpop.eup %1508  ;;  %v926_v59 = vsub.f32 2.0, %v894_v24  ;;  %v897_v11 = vmul.f32 %v1507_v5, %v833_v15  ;;  %1526 = vpow2.f32 %v722_v2  ;;  %vm1008_vm7 = vcmp.gt.f32.partialorder %v2199_v39, 20.0 }
 0x167   : > { %v1511_v41 = vpop.eup %1510  ;;  %v975_v31 = vmul.f32 %v1501_v28, %v943_v8  ;;  %v942_v19 = vsub.f32 2.0, %v910_v6  ;;  %v786_v14 = vadd.f32 2.0, %v1509_v9  ;;  %1528 = vpow2.f32 %v754_v25 }
 0x168   : > { %v958_v37 = vmul.f32 %v1503_v3, %v926_v59  ;;  %v929_v26 = vsub.f32 2.0, %v897_v11  ;;  %v773_v58 = vadd.f32 2.0, %v1511_v41  ;;  %v1513_v52 = vpop.eup %1512  ;;  %vm995_vm8 = vcmp.gt.f32.partialorder %v2202_v0, 20.0 }
 0x169   : > { %v1039_v38 = vmul.f32 %v975_v31, %v2240_v40  ;;  %v974_v13 = vmul.f32 %v1505_v1, %v942_v19  ;;  %v2327_v27 = vmul.f32 %v1509_v9, %v786_v14  ;;  %v1515_v29 = vpop.eup %1514  ;;  %v913_v56 = vmul.f32 %v1513_v52, %v849_v22 }
 0x16a   : > { %v1022_v15 = vmul.f32 %v958_v37, %v2244_v36  ;;  %v961_v44 = vmul.f32 %v1507_v5, %v929_v26  ;;  %v2330_v61 = vmul.f32 %v1511_v41, %v773_v58  ;;  %v1517_v20 = vpop.eup %1516  ;;  %v896_v40 = vmul.f32 %v1515_v29, %v2279_v47 }
 0x16b   : > { %v1071_v30 = vmul.f32 %v1039_v38, %v2148_v34  ;;  %v1038_v53 = vmul.f32 %v974_v13, %v2251_v45  ;;  %v2337_v28 = vadd.f32 2.0, %v2327_v27  ;;  %v1519_v54 = vpop.eup %1518  ;;  %v945_v3 = vsub.f32 2.0, %v913_v56 }
 0x16c   : > { %v1054_v36 = vmul.f32 %v1022_v15, %v2158_v48  ;;  %v1025_v22 = vmul.f32 %v961_v44, %v2255_v46  ;;  %v912_v63 = vmul.f32 %v1517_v20, %v2287_v49  ;;  %v1521_v45 = vpop.eup %1520  ;;  %v928_v24 = vsub.f32 2.0, %v896_v40 }
 0x16d   : > { %v1103_v1 = vsel %vm1007_vm1, %v2148_v34, %v1071_v30  ;;  %v1070_v47 = vmul.f32 %v1038_v53, %v2161_v60  ;;  %v899_v2 = vmul.f32 %v1519_v54, %v2297_v23  ;;  %v1523_v46 = vpop.eup %1522  ;;  %v977_v8 = vmul.f32 %v1513_v52, %v945_v3 }
 0x16e   : > { %1135 = vst [vmem:[%s2038_s25 + $0xc8] sm:$0xff] %v1103_v1  ;;  %v1086_v5 = vsel %vm990_vm2, %v2158_v48, %v1054_v36  ;;  %v1057_v49 = vmul.f32 %v1025_v22, %v2171_v43  ;;  %v944_v6 = vsub.f32 2.0, %v912_v63  ;;  %v960_v25 = vmul.f32 %v1515_v29, %v928_v24  ;;  %v1525_v59 = vpop.eup %1524 }
 0x16f   : > { %1118 = vst [vmem:[%s2038_s25 + $0x40] sm:$0xff] %v1086_v5  ;;  %v1102_v34 = vsel %vm1006_vm3, %v2161_v60, %v1070_v47  ;;  %v931_v23 = vsub.f32 2.0, %v899_v2  ;;  %v915_v9 = vmul.f32 %v1521_v45, %v2305_v35  ;;  %v1041_v11 = vmul.f32 %v977_v8, %v2268_v12 }
 0x170   : > { %1134 = vst [vmem:[%s2038_s25 + $0xc0] sm:$0xff] %v1102_v34  ;;  %v1089_v48 = vsel %vm993_vm4, %v2171_v43, %v1057_v49  ;;  %v976_v41 = vmul.f32 %v1517_v20, %v944_v6  ;;  %v898_v31 = vmul.f32 %v1523_v46, %v2311_v32  ;;  %v1024_v19 = vmul.f32 %v960_v25, %v2271_v62  ;;  %v1527_v35 = vpop.eup %1526 }
 0x171   : > { %1121 = vst [vmem:[%s2038_s25 + $0x58] sm:$0xff] %v1089_v48  ;;  %v963_v14 = vmul.f32 %v1519_v54, %v931_v23  ;;  %v947_v60 = vsub.f32 2.0, %v915_v9  ;;  %1530 = vrcp.f32 %v2337_v28  ;;  %v1073_v37 = vmul.f32 %v1041_v11, %v2193_v42  ;;  %v1529_v12 = vpop.eup %1528 }
 0x172   : > { %v1040_v26 = vmul.f32 %v976_v41, %v2276_v57  ;;  %v930_v58 = vsub.f32 2.0, %v898_v31  ;;  %v837_v43 = vadd.f32 2.0, %v2330_v61  ;;  %v1056_v32 = vmul.f32 %v1024_v19, %v2196_v51 }
 0x173   : > { %v1027_v52 = vmul.f32 %v963_v14, %v2281_v50  ;;  %v979_v62 = vmul.f32 %v1521_v45, %v947_v60  ;;  %v789_v38 = vadd.f32 2.0, %v1525_v59  ;;  %v1105_v13 = vsel %vm1009_vm5, %v2193_v42, %v1073_v37 }
 0x174   : > { %v1072_v29 = vmul.f32 %v1040_v26, %v2199_v39  ;;  %v962_v15 = vmul.f32 %v1523_v46, %v930_v58  ;;  %1532 = vrcp.f32 %v837_v43  ;;  %1137 = vst [vmem:[%s2038_s25 + $0xd8] sm:$0xff] %v1105_v13  ;;  %v1088_v57 = vsel %vm992_vm6, %v2196_v51, %v1056_v32 }
 0x175   : > { %v1059_v44 = vmul.f32 %v1027_v52, %v2202_v0  ;;  %v1043_v50 = vmul.f32 %v979_v62, %v2289_v33  ;;  %v821_v56 = vmul.f32 %v1525_v59, %v789_v38  ;;  %1120 = vst [vmem:[%s2038_s25 + $0x50] sm:$0xff] %v1088_v57  ;;  %v772_v30 = vadd.f32 2.0, %v1527_v35 }
 0x176   : > { %v1104_v42 = vsel %vm1008_vm7, %v2199_v39, %v1072_v29  ;;  %v1026_v20 = vmul.f32 %v962_v15, %v2299_v21  ;;  %v788_v53 = vadd.f32 2.0, %v1529_v12  ;;  %vm1011_vm9 = vcmp.gt.f32.partialorder %v2205_v4, 20.0 }
 0x177   : > { %1136 = vst [vmem:[%s2038_s25 + $0xd0] sm:$0xff] %v1104_v42  ;;  %v1091_v51 = vsel %vm995_vm8, %v2202_v0, %v1059_v44  ;;  %v1075_v40 = vmul.f32 %v1043_v50, %v2205_v4  ;;  %v853_v33 = vadd.f32 2.0, %v821_v56  ;;  %v804_v39 = vmul.f32 %v1527_v35, %v772_v30 }
 0x178   : > { %1123 = vst [vmem:[%s2038_s25 + $0x68] sm:$0xff] %v1091_v51  ;;  %v1058_v54 = vmul.f32 %v1026_v20, %v2225_v18  ;;  %v820_v36 = vmul.f32 %v1529_v12, %v788_v53  ;;  %vm994_vm10 = vcmp.gt.f32.partialorder %v2225_v18, 20.0  ;;  %vm1010_vm11 = vcmp.gt.f32.partialorder %v2242_v7, 20.0 }
 0x179   : > { %v1107_v21 = vsel %vm1011_vm9, %v2205_v4, %v1075_v40  ;;  %1534 = vrcp.f32 %v853_v33  ;;  %v836_v0 = vadd.f32 2.0, %v804_v39  ;;  %vm997_vm12 = vcmp.gt.f32.partialorder %v2246_v16, 20.0 }
 0x17a   : > { %1139 = vst [vmem:[%s2038_s25 + $0xe8] sm:$0xff] %v1107_v21  ;;  %v1090_v22 = vsel %vm994_vm10, %v2225_v18, %v1058_v54  ;;  %v852_v3 = vadd.f32 2.0, %v820_v36  ;;  %vm1013_vm13 = vcmp.gt.f32.partialorder %v2284_v10, 20.0  ;;  %vm996_vm14 = vcmp.gt.f32.partialorder %v2314_v17, 20.0 }
 0x17b   : > { %v1531_v63 = vpop.eup %1530  ;;  %1122 = vst [vmem:[%s2038_s25 + $0x60] sm:$0xff] %v1090_v22  ;;  %1536 = vrcp.f32 %v836_v0  ;;  %vm1012_vm15 = vcmp.gt.f32.partialorder %v2317_v55, 20.0 }
 0x17c   : > { %v914_v45 = vmul.f32 %v1531_v63, %v2337_v28  ;;  %1538 = vrcp.f32 %v852_v3 }
 0x17e   : > { %v1533_v1 = vpop.eup %1532  ;;  %v946_v47 = vsub.f32 2.0, %v914_v45 }
 0x17f   : > { %v901_v24 = vmul.f32 %v1533_v1, %v837_v43 }
 0x180   : > { %v978_v2 = vmul.f32 %v1531_v63, %v946_v47 }
 0x181   : > { %v933_v4 = vsub.f32 2.0, %v901_v24 }
 0x182   : > { %v1042_v46 = vmul.f32 %v978_v2, %v2327_v27 }
 0x183   : > { %v1535_v5 = vpop.eup %1534  ;;  %v965_v49 = vmul.f32 %v1533_v1, %v933_v4 }
 0x184   : > { %v1074_v18 = vmul.f32 %v1042_v46, %v2242_v7  ;;  %v917_v8 = vmul.f32 %v1535_v5, %v853_v33 }
 0x185   : > { %v1029_v28 = vmul.f32 %v965_v49, %v2330_v61  ;;  %v1537_v6 = vpop.eup %1536 }
 0x186   : > { %v1106_v34 = vsel %vm1010_vm11, %v2242_v7, %v1074_v18  ;;  %v949_v25 = vsub.f32 2.0, %v917_v8  ;;  %v1539_v23 = vpop.eup %1538  ;;  %v900_v59 = vmul.f32 %v1537_v6, %v836_v0 }
 0x187   : > { %1138 = vst [vmem:[%s2038_s25 + $0xe0] sm:$0xff] %v1106_v34  ;;  %v1061_v9 = vmul.f32 %v1029_v28, %v2246_v16  ;;  %v916_v48 = vmul.f32 %v1539_v23, %v852_v3 }
 0x188   : > { %v981_v27 = vmul.f32 %v1535_v5, %v949_v25  ;;  %v932_v41 = vsub.f32 2.0, %v900_v59 }
 0x189   : > { %v1093_v11 = vsel %vm997_vm12, %v2246_v16, %v1061_v9  ;;  %v948_v31 = vsub.f32 2.0, %v916_v48 }
 0x18a   : > { %1125 = vst [vmem:[%s2038_s25 + $0x78] sm:$0xff] %v1093_v11  ;;  %v1045_v61 = vmul.f32 %v981_v27, %v821_v56  ;;  %v964_v7 = vmul.f32 %v1537_v6, %v932_v41 }
 0x18b   : > { %v980_v14 = vmul.f32 %v1539_v23, %v948_v31 }
 0x18c   : > { %v1077_v19 = vmul.f32 %v1045_v61, %v2284_v10  ;;  %v1028_v60 = vmul.f32 %v964_v7, %v804_v39 }
 0x18d   : > { %v1044_v37 = vmul.f32 %v980_v14, %v820_v36 }
 0x18e   : > { %v1109_v35 = vsel %vm1013_vm13, %v2284_v10, %v1077_v19  ;;  %v1060_v26 = vmul.f32 %v1028_v60, %v2314_v17 }
 0x18f   : > { %1141 = vst [vmem:[%s2038_s25 + $0xf8] sm:$0xff] %v1109_v35  ;;  %v1076_v16 = vmul.f32 %v1044_v37, %v2317_v55 }
 0x190   : > { %v1092_v58 = vsel %vm996_vm14, %v2314_v17, %v1060_v26 }
 0x191   : > { %1124 = vst [vmem:[%s2038_s25 + $0x70] sm:$0xff] %v1092_v58  ;;  %v1108_v43 = vsel %vm1012_vm15, %v2317_v55, %v1076_v16 }
 0x192   : > { %1140 = vst [vmem:[%s2038_s25 + $0xf0] sm:$0xff] %v1108_v43 }
 0x193 PF: > { %s16_s21 = sadd.s32 1, %s1547_s21  }
 0x194   : > { %p13_p4 = scmp.ge.s32.totalorder %s16_s21, 4  }
 0x196   :  { %15 = sbr.rel (!%p13_p4) target bundleno = 1 (0x1), region = 77 }

// kernel: resblock_forward.3
= control target key start
LH: loop header
LB: loop body
LE: loop exit
PB: predicated region body
PF: predicated region fallthrough
CT: control target
= control target key end

     0   :  { %s3329_s15 = smov 0   ;;  %s4856_s0 = inlined_call_operand.vmem [shape: f32[2,16,16,128], index: 0, kind: input, shape index: {}]   ;;  %s4857_s1 = inlined_call_operand.vmem [shape: f32[1152,128], index: 1, kind: input, shape index: {}]   ;;  %s4858_s2 = inlined_call_operand.vmem [shape: f32[1,128], index: 2, kind: input, shape index: {}]   ;;  %s4859_s3 = inlined_call_operand.vmem [shape: f32[2,16,16,128], index: 3, kind: output, shape index: {0}]   ;;  %s4860_s4 = inlined_call_operand.vmem [shape: f32[2,2,128], index: 4, kind: output, shape index: {1}]  }
   0x1 LB: > { %s2684_s16 = sadd.s32 4294967295, %s3300_s15   ;;  %p2688_p0 = scmp.ge.s32.totalorder %s3300_s15, 1  ;;  %s3300_s15 = sphi %s3329_s15, %s15_s15  }
   0x2   : > { %p165_p1 = scmp.lt.s32.totalorder %s3300_s15, 3 }
   0x4   : > { %p166_p2 = pnand %p2688_p0, %p165_p1 }
   0x6   : > { %169 = sbr.rel (%p166_p2) target bundleno = 645 (0x285), region = 32 }
   0xd   : > { %v1182_v0 = vld [vmem:[%s4857_s1] sm:$0xff]  ;;  %v1183_v1 = vld [vmem:[%s4857_s1 + $0x8] sm:$0xff]  ;;  %v4862_v3 = vmov 0.0|0.0   ;;  %v1184_v6 = vld [vmem:[%s4857_s1 + $0x10] sm:$0xff]  ;;  %v3303_v8 = vmov 0.0   ;;  %p195_p3 = scmp.lt.s32.totalorder %s2684_s16, 1 }
   0xe   : > { %v1214_v2 = vld [vmem:[%s4857_s1 + $0x100] sm:$0xff]  ;;  %2827 = vmatprep.subr.bf16.mxu1 %v4862_v3  ;;  %2875 = vmatprep.subr.bf16.mxu0 %v4862_v3  ;;  %v2828_v4 = vpack.c.bf16 %v1183_v1, %v1182_v0  ;;  %v1215_v5 = vld [vmem:[%s4857_s1 + $0x108] sm:$0xff]  ;;  %v1185_v7 = vld [vmem:[%s4857_s1 + $0x18] sm:$0xff]  ;;  %241 = vst [vmem:[#allocation2] sm:$0xff] %v3303_v8 }
   0xf   : > { %242 = vst [vmem:[#allocation2 + $0x8] sm:$0xff] %v3303_v8  ;;  %243 = vst [vmem:[#allocation2 + $0x10] sm:$0x3] %v3303_v8  ;;  %v2876_v9 = vpack.c.bf16 %v1215_v5, %v1214_v2  ;;  %v1216_v10 = vld [vmem:[%s4857_s1 + $0x110] sm:$0xff]  ;;  %v1217_v11 = vld [vmem:[%s4857_s1 + $0x118] sm:$0xff]  ;;  %v2831_v12 = vpack.c.bf16 %v1185_v7, %v1184_v6  ;;  %s4974_s16 = smov (!%p195_p3, %s2684_s16), 1 }
  0x10   : > { %245 = vst [vmem:[#allocation2 + $0x198] sm:$0xff] %v3303_v8  ;;  %246 = vst [vmem:[#allocation2 + $0x1a0] sm:$0xff] %v3303_v8  ;;  %2829 = vmatpush1.bf16.msra.mxu1 %v2828_v4  ;;  %v2879_v13 = vpack.c.bf16 %v1217_v11, %v1216_v10  ;;  %v1186_v14 = vld [vmem:[%s4857_s1 + $0x20] sm:$0xff]  ;;  %v1187_v15 = vld [vmem:[%s4857_s1 + $0x28] sm:$0xff]  ;;  %s2697_s7 = sshll.u32 %s4974_s16, 8 }
  0x11   : > { %247 = vst [vmem:[#allocation2 + $0x1a8] sm:$0x3] %v3303_v8  ;;  %249 = vst [vmem:[#allocation2 + $0x18] sm:$0x1] %v3303_v8  ;;  %2877 = vmatpush1.bf16.msra.mxu0 %v2876_v9  ;;  %2830 = vmatprep.subr.bf16.mxu1 %v4862_v3  ;;  %v1218_v16 = vld [vmem:[%s4857_s1 + $0x120] sm:$0xff]  ;;  %v1219_v17 = vld [vmem:[%s4857_s1 + $0x128] sm:$0xff]  ;;  %v2834_v18 = vpack.c.bf16 %v1187_v15, %v1186_v14  ;;  %s3473_s20 = scalar_lea.vmem %s4856_s0, %s2697_s7  ;;  %s4602_s14 = scalar_lea.vmem %s4859_s3, %s2697_s7 }
  0x12   : > { %250 = vst [vmem:[#allocation2 + $0x30] sm:$0x1] %v3303_v8  ;;  %251 = vst [vmem:[#allocation2 + $0x48] sm:$0x1] %v3303_v8  ;;  %2878 = vmatprep.subr.bf16.mxu0 %v4862_v3  ;;  %v2882_v19 = vpack.c.bf16 %v1219_v17, %v1218_v16  ;;  %v1188_v20 = vld [vmem:[%s4857_s1 + $0x30] sm:$0xff]  ;;  %v1189_v21 = vld [vmem:[%s4857_s1 + $0x38] sm:$0xff] }
  0x13   : > { %252 = vst [vmem:[#allocation2 + $0x60] sm:$0x1] %v3303_v8  ;;  %253 = vst [vmem:[#allocation2 + $0x78] sm:$0x1] %v3303_v8  ;;  %v1220_v22 = vld [vmem:[%s4857_s1 + $0x130] sm:$0xff]  ;;  %v1221_v23 = vld [vmem:[%s4857_s1 + $0x138] sm:$0xff]  ;;  %v2837_v24 = vpack.c.bf16 %v1189_v21, %v1188_v20 }
  0x14   : > { %254 = vst [vmem:[#allocation2 + $0x90] sm:$0x1] %v3303_v8  ;;  %255 = vst [vmem:[#allocation2 + $0xa8] sm:$0x1] %v3303_v8  ;;  %2832 = vmatpush1.bf16.msra.mxu1 %v2831_v12  ;;  %v2885_v25 = vpack.c.bf16 %v1221_v23, %v1220_v22  ;;  %v1190_v26 = vld [vmem:[%s4857_s1 + $0x40] sm:$0xff]  ;;  %v1191_v27 = vld [vmem:[%s4857_s1 + $0x48] sm:$0xff] }
  0x15   : > { %256 = vst [vmem:[#allocation2 + $0xc0] sm:$0x1] %v3303_v8  ;;  %257 = vst [vmem:[#allocation2 + $0xd8] sm:$0x1] %v3303_v8  ;;  %2880 = vmatpush1.bf16.msra.mxu0 %v2879_v13  ;;  %2833 = vmatprep.subr.bf16.mxu1 %v4862_v3  ;;  %v1222_v28 = vld [vmem:[%s4857_s1 + $0x140] sm:$0xff]  ;;  %v1223_v29 = vld [vmem:[%s4857_s1 + $0x148] sm:$0xff]  ;;  %v2840_v30 = vpack.c.bf16 %v1191_v27, %v1190_v26 }
  0x16   : > { %258 = vst [vmem:[#allocation2 + $0xf0] sm:$0x1] %v3303_v8  ;;  %259 = vst [vmem:[#allocation2 + $0x108] sm:$0x1] %v3303_v8  ;;  %2881 = vmatprep.subr.bf16.mxu0 %v4862_v3  ;;  %v2888_v31 = vpack.c.bf16 %v1223_v29, %v1222_v28  ;;  %v1192_v32 = vld [vmem:[%s4857_s1 + $0x50] sm:$0xff]  ;;  %v1193_v33 = vld [vmem:[%s4857_s1 + $0x58] sm:$0xff] }
  0x17   : > { %260 = vst [vmem:[#allocation2 + $0x120] sm:$0x1] %v3303_v8  ;;  %261 = vst [vmem:[#allocation2 + $0x138] sm:$0x1] %v3303_v8  ;;  %v1224_v34 = vld [vmem:[%s4857_s1 + $0x150] sm:$0xff]  ;;  %v1225_v35 = vld [vmem:[%s4857_s1 + $0x158] sm:$0xff]  ;;  %v2843_v36 = vpack.c.bf16 %v1193_v33, %v1192_v32 }
  0x18   : > { %262 = vst [vmem:[#allocation2 + $0x150] sm:$0x1] %v3303_v8  ;;  %263 = vst [vmem:[#allocation2 + $0x168] sm:$0x1] %v3303_v8  ;;  %2835 = vmatpush1.bf16.msra.mxu1 %v2834_v18  ;;  %v2891_v37 = vpack.c.bf16 %v1225_v35, %v1224_v34  ;;  %v1194_v38 = vld [vmem:[%s4857_s1 + $0x60] sm:$0xff]  ;;  %v1195_v39 = vld [vmem:[%s4857_s1 + $0x68] sm:$0xff] }
  0x19   : > { %264 = vst [vmem:[#allocation2 + $0x180] sm:$0x1] %v3303_v8  ;;  %267 = vst [vmem:[#allocation2 + $0x29] sm:$0x1] %v3303_v8  ;;  %2883 = vmatpush1.bf16.msra.mxu0 %v2882_v19  ;;  %2836 = vmatprep.subr.bf16.mxu1 %v4862_v3  ;;  %v1226_v40 = vld [vmem:[%s4857_s1 + $0x160] sm:$0xff]  ;;  %v1227_v41 = vld [vmem:[%s4857_s1 + $0x168] sm:$0xff]  ;;  %v2846_v44 = vpack.c.bf16 %v1195_v39, %v1194_v38 }
  0x1a   : > { %268 = vst [vmem:[#allocation2 + $0x41] sm:$0x1] %v3303_v8  ;;  %269 = vst [vmem:[#allocation2 + $0x59] sm:$0x1] %v3303_v8  ;;  %2884 = vmatprep.subr.bf16.mxu0 %v4862_v3  ;;  %v381_v42 = vld [vmem:[#allocation2 + $0x1] sm:$0xff]  ;;  %v1196_v45 = vld [vmem:[%s4857_s1 + $0x70] sm:$0xff]  ;;  %v2894_v47 = vpack.c.bf16 %v1227_v41, %v1226_v40 }
  0x1b   : > { %270 = vst [vmem:[#allocation2 + $0x71] sm:$0x1] %v3303_v8  ;;  %271 = vst [vmem:[#allocation2 + $0x89] sm:$0x1] %v3303_v8  ;;  %v3490_v43 = vld [vmem:[%s3473_s20] sm:$0xff]  ;;  %1397 = vmatprep.mubr.f32.mxu1 %v381_v42  ;;  %v3497_v46 = vld [vmem:[%s3473_s20 + $0x8] sm:$0xff] }
  0x1c   : > { %272 = vst [vmem:[#allocation2 + $0xa1] sm:$0x1] %v3303_v8  ;;  %273 = vst [vmem:[#allocation2 + $0xb9] sm:$0x1] %v3303_v8  ;;  %2838 = vmatpush1.bf16.msra.mxu1 %v2837_v24  ;;  %v1197_v48 = vld [vmem:[%s4857_s1 + $0x78] sm:$0xff]  ;;  %v1228_v49 = vld [vmem:[%s4857_s1 + $0x170] sm:$0xff] }
  0x1d   : > { %274 = vst [vmem:[#allocation2 + $0xd1] sm:$0x1] %v3303_v8  ;;  %275 = vst [vmem:[#allocation2 + $0xe9] sm:$0x1] %v3303_v8  ;;  %2886 = vmatpush1.bf16.msra.mxu0 %v2885_v25  ;;  %2839 = vmatprep.subr.bf16.mxu1 %v4862_v3  ;;  %v3508_v50 = vld [vmem:[%s3473_s20 + $0x10] sm:$0xff]  ;;  %v1229_v51 = vld [vmem:[%s4857_s1 + $0x178] sm:$0xff]  ;;  %v2849_v55 = vpack.c.bf16 %v1197_v48, %v1196_v45 }
  0x1e   : > { %276 = vst [vmem:[#allocation2 + $0x101] sm:$0x1] %v3303_v8  ;;  %277 = vst [vmem:[#allocation2 + $0x119] sm:$0x1] %v3303_v8  ;;  %2887 = vmatprep.subr.bf16.mxu0 %v4862_v3  ;;  %v3516_v52 = vld [vmem:[%s3473_s20 + $0x18] sm:$0xff]  ;;  %v3519_v53 = vld [vmem:[%s3473_s20 + $0x20] sm:$0xff]  ;;  %v2897_v59 = vpack.c.bf16 %v1229_v51, %v1228_v49 }
  0x1f   : > { %278 = vst [vmem:[#allocation2 + $0x131] sm:$0x1] %v3303_v8  ;;  %279 = vst [vmem:[#allocation2 + $0x149] sm:$0x1] %v3303_v8  ;;  %v3524_v54 = vld [vmem:[%s3473_s20 + $0x28] sm:$0xff]  ;;  %v1198_v56 = vld [vmem:[%s4857_s1 + $0x80] sm:$0xff] }
  0x20   : > { %280 = vst [vmem:[#allocation2 + $0x161] sm:$0x1] %v3303_v8  ;;  %281 = vst [vmem:[#allocation2 + $0x179] sm:$0x1] %v3303_v8  ;;  %2841 = vmatpush1.bf16.msra.mxu1 %v2840_v30  ;;  %v1199_v57 = vld [vmem:[%s4857_s1 + $0x88] sm:$0xff]  ;;  %v3534_v58 = vld [vmem:[%s3473_s20 + $0x30] sm:$0xff] }
  0x21   : > { %282 = vst [vmem:[#allocation2 + $0x191] sm:$0x1] %v3303_v8  ;;  %248 = vst [vmem:[#allocation2] sm:$0x1] %v3303_v8  ;;  %2889 = vmatpush1.bf16.msra.mxu0 %v2888_v31  ;;  %2842 = vmatprep.subr.bf16.mxu1 %v4862_v3  ;;  %v1230_v60 = vld [vmem:[%s4857_s1 + $0x180] sm:$0xff]  ;;  %v3542_v61 = vld [vmem:[%s3473_s20 + $0x38] sm:$0xff]  ;;  %v2852_v4 = vpack.c.bf16 %v1199_v57, %v1198_v56 }
  0x22   : > { %265 = vst [vmem:[#allocation2 + $0x198] sm:$0x1] %v3303_v8  ;;  %266 = vst [vmem:[#allocation2 + $0x11] sm:$0x1] %v3303_v8  ;;  %2890 = vmatprep.subr.bf16.mxu0 %v4862_v3  ;;  %v3545_v62 = vld [vmem:[%s3473_s20 + $0x40] sm:$0xff]  ;;  %v1231_v63 = vld [vmem:[%s4857_s1 + $0x188] sm:$0xff] }
  0x23   : > { %283 = vst [vmem:[#allocation2 + $0x1a9] sm:$0x1] %v3303_v8  ;;  %285 = vst [vmem:[#allocation2 + $0x19] sm:$0xff] %v3490_v43  ;;  %v3556_v1 = vld [vmem:[%s3473_s20 + $0x48] sm:$0xff]  ;;  %v3561_v2 = vld [vmem:[%s3473_s20 + $0x50] sm:$0xff]  ;;  %v2900_v6 = vpack.c.bf16 %v1231_v63, %v1230_v60  ;;  %s2693_s7 = sshll.u32 %s4974_s16, 1 }
  0x24   : > { %2844 = vmatpush1.bf16.msra.mxu1 %v2843_v36  ;;  %286 = vst [vmem:[#allocation2 + $0x21] sm:$0xff] %v3497_v46  ;;  %287 = vst [vmem:[#allocation2 + $0x31] sm:$0xff] %v3508_v50  ;;  %v1200_v5 = vld [vmem:[%s4857_s1 + $0x90] sm:$0xff]  ;;  %v1201_v7 = vld [vmem:[%s4857_s1 + $0x98] sm:$0xff]  ;;  %s208_s18 = scalar_lea.vmem %s4860_s4, %s2693_s7 }
  0x25   : > { %2892 = vmatpush1.bf16.msra.mxu0 %v2891_v37  ;;  %2845 = vmatprep.subr.bf16.mxu1 %v4862_v3  ;;  %288 = vst [vmem:[#allocation2 + $0x39] sm:$0xff] %v3516_v52  ;;  %289 = vst [vmem:[#allocation2 + $0x49] sm:$0xff] %v3519_v53  ;;  %v3572_v9 = vld [vmem:[%s3473_s20 + $0x58] sm:$0xff]  ;;  %v3575_v10 = vld [vmem:[%s3473_s20 + $0x60] sm:$0xff]  ;;  %v2855_v13 = vpack.c.bf16 %v1201_v7, %v1200_v5 }
  0x26   : > { %2893 = vmatprep.subr.bf16.mxu0 %v4862_v3  ;;  %290 = vst [vmem:[#allocation2 + $0x51] sm:$0xff] %v3524_v54  ;;  %291 = vst [vmem:[#allocation2 + $0x61] sm:$0xff] %v3534_v58  ;;  %v1232_v11 = vld [vmem:[%s4857_s1 + $0x190] sm:$0xff]  ;;  %v1233_v12 = vld [vmem:[%s4857_s1 + $0x198] sm:$0xff] }
  0x27   : > { %292 = vst [vmem:[#allocation2 + $0x69] sm:$0xff] %v3542_v61  ;;  %293 = vst [vmem:[#allocation2 + $0x79] sm:$0xff] %v3545_v62  ;;  %v2903_v14 = vpack.c.bf16 %v1233_v12, %v1232_v11  ;;  %v1202_v15 = vld [vmem:[%s4857_s1 + $0xa0] sm:$0xff]  ;;  %v1203_v16 = vld [vmem:[%s4857_s1 + $0xa8] sm:$0xff] }
  0x28   : > { %2847 = vmatpush1.bf16.msra.mxu1 %v2846_v44  ;;  %294 = vst [vmem:[#allocation2 + $0x81] sm:$0xff] %v3556_v1  ;;  %295 = vst [vmem:[#allocation2 + $0x91] sm:$0xff] %v3561_v2  ;;  %v1234_v17 = vld [vmem:[%s4857_s1 + $0x1a0] sm:$0xff]  ;;  %v1235_v18 = vld [vmem:[%s4857_s1 + $0x1a8] sm:$0xff]  ;;  %v2858_v19 = vpack.c.bf16 %v1203_v16, %v1202_v15 }
  0x29   : > { %2895 = vmatpush1.bf16.msra.mxu0 %v2894_v47  ;;  %2848 = vmatprep.subr.bf16.mxu1 %v4862_v3  ;;  %296 = vst [vmem:[#allocation2 + $0x99] sm:$0xff] %v3572_v9  ;;  %297 = vst [vmem:[#allocation2 + $0xa9] sm:$0xff] %v3575_v10  ;;  %v3601_v20 = vld [vmem:[%s3473_s20 + $0x68] sm:$0xff]  ;;  %v2906_v21 = vpack.c.bf16 %v1235_v18, %v1234_v17  ;;  %v1204_v22 = vld [vmem:[%s4857_s1 + $0xb0] sm:$0xff] }
  0x2a   : > { %2896 = vmatprep.subr.bf16.mxu0 %v4862_v3  ;;  %v3551_v0 = vld [vmem:[#allocation2 + $0x18] sm:$0xff]  ;;  %298 = vst [vmem:[#allocation2 + $0xb1] sm:$0xff] %v3601_v20  ;;  %v1236_v24 = vld [vmem:[%s4857_s1 + $0x1b0] sm:$0xff]  ;;  %v3626_v29 = vld [vmem:[%s3473_s20 + $0x80] sm:$0xff] }
  0x2b   : > { %1622 = vmatprep.mubr.f32.mxu0 %v3551_v0  ;;  %v1205_v23 = vld [vmem:[%s4857_s1 + $0xb8] sm:$0xff]  ;;  %v3619_v26 = vld [vmem:[%s3473_s20 + $0x70] sm:$0xff]  ;;  %v1206_v31 = vld [vmem:[%s4857_s1 + $0xc0] sm:$0xff]  ;;  %301 = vst [vmem:[#allocation2 + $0xd9] sm:$0xff] %v3626_v29 }
  0x2c   : > { %2850 = vmatpush1.bf16.msra.mxu1 %v2849_v55  ;;  %v1237_v25 = vld [vmem:[%s4857_s1 + $0x1b8] sm:$0xff]  ;;  %299 = vst [vmem:[#allocation2 + $0xc1] sm:$0xff] %v3619_v26  ;;  %v2861_v27 = vpack.c.bf16 %v1205_v23, %v1204_v22  ;;  %v1207_v32 = vld [vmem:[%s4857_s1 + $0xc8] sm:$0xff]  ;;  %v1238_v33 = vld [vmem:[%s4857_s1 + $0x1c0] sm:$0xff] }
  0x2d   : > { %2898 = vmatpush1.bf16.msra.mxu0 %v2897_v59  ;;  %2851 = vmatprep.subr.bf16.mxu1 %v4862_v3  ;;  %v3623_v28 = vld [vmem:[%s3473_s20 + $0x78] sm:$0xff]  ;;  %v2909_v30 = vpack.c.bf16 %v1237_v25, %v1236_v24  ;;  %v1239_v34 = vld [vmem:[%s4857_s1 + $0x1c8] sm:$0xff]  ;;  %v3648_v36 = vld [vmem:[%s3473_s20 + $0x90] sm:$0xff]  ;;  %v2864_v37 = vpack.c.bf16 %v1207_v32, %v1206_v31 }
  0x2e   : > { %2899 = vmatprep.subr.bf16.mxu0 %v4862_v3  ;;  %300 = vst [vmem:[#allocation2 + $0xc9] sm:$0xff] %v3623_v28  ;;  %v3645_v35 = vld [vmem:[%s3473_s20 + $0x88] sm:$0xff]  ;;  %303 = vst [vmem:[#allocation2 + $0xf1] sm:$0xff] %v3648_v36  ;;  %v1208_v38 = vld [vmem:[%s4857_s1 + $0xd0] sm:$0xff]  ;;  %v2912_v39 = vpack.c.bf16 %v1239_v34, %v1238_v33 }
  0x2f   : > { %302 = vst [vmem:[#allocation2 + $0xe1] sm:$0xff] %v3645_v35  ;;  %v1209_v40 = vld [vmem:[%s4857_s1 + $0xd8] sm:$0xff]  ;;  %v3663_v42 = vld [vmem:[%s3473_s20 + $0xa0] sm:$0xff]  ;;  %v1240_v44 = vld [vmem:[%s4857_s1 + $0x1d0] sm:$0xff] }
  0x30   : > { %2853 = vmatpush1.bf16.msra.mxu1 %v2852_v4  ;;  %v3660_v41 = vld [vmem:[%s3473_s20 + $0x98] sm:$0xff]  ;;  %305 = vst [vmem:[#allocation2 + $0x109] sm:$0xff] %v3663_v42  ;;  %v3675_v47 = vld [vmem:[%s3473_s20 + $0xa8] sm:$0xff]  ;;  %v2867_v48 = vpack.c.bf16 %v1209_v40, %v1208_v38  ;;  %v1210_v51 = vld [vmem:[%s4857_s1 + $0xe0] sm:$0xff] }
  0x31   : > { %2901 = vmatpush1.bf16.msra.mxu0 %v2900_v6  ;;  %2854 = vmatprep.subr.bf16.mxu1 %v4862_v3  ;;  %v1241_v45 = vld [vmem:[%s4857_s1 + $0x1d8] sm:$0xff]  ;;  %304 = vst [vmem:[#allocation2 + $0xf9] sm:$0xff] %v3660_v41  ;;  %306 = vst [vmem:[#allocation2 + $0x111] sm:$0xff] %v3675_v47  ;;  %v1211_v55 = vld [vmem:[%s4857_s1 + $0xe8] sm:$0xff] }
  0x32   : > { %2902 = vmatprep.subr.bf16.mxu0 %v4862_v3  ;;  %v2915_v49 = vpack.c.bf16 %v1241_v45, %v1240_v44  ;;  %v3686_v56 = vld [vmem:[%s3473_s20 + $0xb0] sm:$0xff]  ;;  %v1242_v57 = vld [vmem:[%s4857_s1 + $0x1e0] sm:$0xff]  ;;  %v1243_v59 = vld [vmem:[%s4857_s1 + $0x1e8] sm:$0xff]  ;;  %v2870_v60 = vpack.c.bf16 %v1211_v55, %v1210_v51 }
  0x33   : > { %307 = vst [vmem:[#allocation2 + $0x121] sm:$0xff] %v3686_v56  ;;  %v3697_v63 = vld [vmem:[%s3473_s20 + $0xb8] sm:$0xff]  ;;  %v2918_v4 = vpack.c.bf16 %v1243_v59, %v1242_v57  ;;  %v1212_v5 = vld [vmem:[%s4857_s1 + $0xf0] sm:$0xff]  ;;  %v1246_v15 = vld [vmem:[%s4857_s1 + $0x200] sm:$0xff] }
  0x34   : > { %2856 = vmatpush1.bf16.msra.mxu1 %v2855_v13  ;;  %v1213_v6 = vld [vmem:[%s4857_s1 + $0xf8] sm:$0xff]  ;;  %308 = vst [vmem:[#allocation2 + $0x129] sm:$0xff] %v3697_v63  ;;  %v1244_v7 = vld [vmem:[%s4857_s1 + $0x1f0] sm:$0xff]  ;;  %v3715_v13 = vld [vmem:[%s3473_s20 + $0xc0] sm:$0xff] }
  0x35   : > { %2904 = vmatpush1.bf16.msra.mxu0 %v2903_v14  ;;  %2857 = vmatprep.subr.bf16.mxu1 %v4862_v3  ;;  %v1245_v11 = vld [vmem:[%s4857_s1 + $0x1f8] sm:$0xff]  ;;  %v2873_v12 = vpack.c.bf16 %v1213_v6, %v1212_v5  ;;  %309 = vst [vmem:[#allocation2 + $0x139] sm:$0xff] %v3715_v13  ;;  %v1247_v16 = vld [vmem:[%s4857_s1 + $0x208] sm:$0xff]  ;;  %v1278_v18 = vld [vmem:[%s4857_s1 + $0x300] sm:$0xff] }
  0x36   : > { %2905 = vmatprep.subr.bf16.mxu0 %v4862_v3  ;;  %v2921_v14 = vpack.c.bf16 %v1245_v11, %v1244_v7  ;;  %v3727_v17 = vld [vmem:[%s3473_s20 + $0xc8] sm:$0xff]  ;;  %v317_v22 = vld [vmem:[#allocation2] sm:$0xff]  ;;  %v2924_v24 = vpack.c.bf16 %v1247_v16, %v1246_v15  ;;  %v1249_v32 = vld [vmem:[%s4857_s1 + $0x218] sm:$0xff] }
  0x37   : > { %310 = vst [vmem:[#allocation2 + $0x141] sm:$0xff] %v3727_v17  ;;  %v445_v23 = vld [vmem:[#allocation2 + $0x2] sm:$0xff]  ;;  %v1281_v38 = vld [vmem:[%s4857_s1 + $0x318] sm:$0xff]  ;;  %v446_v40 = vld [vmem:[#allocation2 + $0xa] sm:$0xff] }
  0x38   : > { %2859 = vmatpush1.bf16.msra.mxu1 %v2858_v19  ;;  %v1279_v19 = vld [vmem:[%s4857_s1 + $0x308] sm:$0xff]  ;;  %v510_v31 = vld [vmem:[#allocation2 + $0x20] sm:$0xff]  ;;  %v3769_v45 = vld [vmem:[%s3473_s20 + $0xf0] sm:$0xff] }
  0x39   : > { %2907 = vmatpush1.bf16.msra.mxu0 %v2906_v21  ;;  %2860 = vmatprep.subr.bf16.mxu1 %v4862_v3  ;;  %v3737_v21 = vld [vmem:[%s3473_s20 + $0xd0] sm:$0xff]  ;;  %v3751_v33 = vpack.c.bf16 %v1279_v19, %v1278_v18  ;;  %v3755_v34 = vld [vmem:[%s3473_s20 + $0xe0] sm:$0xff]  ;;  %4906 = vst [vmem:[#allocation4_spill] sm:$0xff] %v3769_v45  ;;  %v1251_v51 = vld [vmem:[%s4857_s1 + $0x228] sm:$0xff] }
  0x3a   : > { %2908 = vmatprep.subr.bf16.mxu0 %v4862_v3  ;;  %311 = vst [vmem:[#allocation2 + $0x151] sm:$0xff] %v3737_v21  ;;  %v382_v25 = vld [vmem:[#allocation2 + $0x9] sm:$0xff]  ;;  %313 = vst [vmem:[#allocation2 + $0x169] sm:$0xff] %v3755_v34  ;;  %v1282_v57 = vld [vmem:[%s4857_s1 + $0x320] sm:$0xff] }
  0x3b   : > { %315 = vst [vmem:[#allocation2 + $0x181] sm:$0xff] %v3769_v45  ;;  %v1283_v59 = vld [vmem:[%s4857_s1 + $0x328] sm:$0xff]  ;;  %v512_v5 = vld [vmem:[#allocation2 + $0x38] sm:$0xff]  ;;  %v1252_v6 = vld [vmem:[%s4857_s1 + $0x230] sm:$0xff] }
  0x3c   : > { %2862 = vmatpush1.bf16.msra.mxu1 %v2861_v27  ;;  %v1248_v27 = vld [vmem:[%s4857_s1 + $0x210] sm:$0xff]  ;;  %v3805_v7 = vpack.c.bf16 %v1283_v59, %v1282_v57  ;;  %v1254_v16 = vld [vmem:[%s4857_s1 + $0x240] sm:$0xff]  ;;  %v1255_v18 = vld [vmem:[%s4857_s1 + $0x248] sm:$0xff] }
  0x3d   : > { %2910 = vmatpush1.bf16.msra.mxu0 %v2909_v30  ;;  %2863 = vmatprep.subr.bf16.mxu1 %v4862_v3  ;;  %v3745_v30 = vld [vmem:[%s3473_s20 + $0xd8] sm:$0xff]  ;;  %v2927_v44 = vpack.c.bf16 %v1249_v32, %v1248_v27  ;;  %v1284_v11 = vld [vmem:[%s4857_s1 + $0x330] sm:$0xff]  ;;  %v1291_v57 = vld [vmem:[%s4857_s1 + $0x368] sm:$0xff] }
  0x3e   : > { %2911 = vmatprep.subr.bf16.mxu0 %v4862_v3  ;;  %312 = vst [vmem:[#allocation2 + $0x159] sm:$0xff] %v3745_v30  ;;  %v1256_v27 = vld [vmem:[%s4857_s1 + $0x250] sm:$0xff]  ;;  %v4098_v45 = vld [vmem:[#allocation2 + $0xd8] sm:$0xff] }
  0x3f   : > { %v3880_v59 = vld [vmem:[#allocation2 + $0x4a] sm:$0xff] }
  0x40   : > { %2865 = vmatpush1.bf16.msra.mxu1 %v2864_v37  ;;  %v1280_v37 = vld [vmem:[%s4857_s1 + $0x310] sm:$0xff] }
  0x41   : > { %2913 = vmatpush1.bf16.msra.mxu0 %v2912_v39  ;;  %2866 = vmatprep.subr.bf16.mxu1 %v4862_v3  ;;  %v3765_v39 = vld [vmem:[%s3473_s20 + $0xe8] sm:$0xff]  ;;  %v3779_v55 = vpack.c.bf16 %v1281_v38, %v1280_v37  ;;  %v1289_v37 = vld [vmem:[%s4857_s1 + $0x358] sm:$0xff] }
  0x42   : > { %2914 = vmatprep.subr.bf16.mxu0 %v4862_v3  ;;  %314 = vst [vmem:[#allocation2 + $0x171] sm:$0xff] %v3765_v39  ;;  %v3859_v38 = vld [vmem:[#allocation2 + $0x3a] sm:$0xff] }
  0x44   : > { %2868 = vmatpush1.bf16.msra.mxu1 %v2867_v48  ;;  %v511_v48 = vld [vmem:[#allocation2 + $0x30] sm:$0xff] }
  0x45   : > { %2916 = vmatpush1.bf16.msra.mxu0 %v2915_v49  ;;  %2869 = vmatprep.subr.bf16.mxu1 %v4862_v3  ;;  %v1250_v49 = vld [vmem:[%s4857_s1 + $0x220] sm:$0xff] }
  0x46   : > { %2917 = vmatprep.subr.bf16.mxu0 %v4862_v3 }
  0x48   : > { %2871 = vmatpush1.bf16.msra.mxu1 %v2870_v60  ;;  %v3792_v60 = vld [vmem:[%s3473_s20 + $0xf8] sm:$0xff] }
  0x49   : > { %2919 = vmatpush1.bf16.msra.mxu0 %v2918_v4  ;;  %2872 = vmatprep.subr.bf16.mxu1 %v4862_v3  ;;  %4907 = vst [vmem:[#allocation5_spill] sm:$0xff] %v3792_v60  ;;  %v3794_v4 = vld [vmem:[#allocation2 + $0x1a] sm:$0xff]  ;;  %316 = vst [vmem:[#allocation2 + $0x189] sm:$0xff] %v3792_v60 }
  0x4a   : > { %2920 = vmatprep.subr.bf16.mxu0 %v4862_v3 }
  0x4c   : > { %2874 = vmatpush1.bf16.msra.mxu1 %v2873_v12  ;;  %v1285_v12 = vld [vmem:[%s4857_s1 + $0x338] sm:$0xff] }
  0x4d   : > { %2922 = vmatpush1.bf16.msra.mxu0 %v2921_v14  ;;  %3051 = vmatprep.subr.bf16.mxu1 %v4862_v3  ;;  %v3817_v14 = vld [vmem:[#allocation2 + $0x22] sm:$0xff]  ;;  %v3827_v19 = vpack.c.bf16 %v1285_v12, %v1284_v11  ;;  %v1293_v12 = vld [vmem:[%s4857_s1 + $0x378] sm:$0xff] }
  0x4e   : > { %2923 = vmatprep.subr.bf16.mxu0 %v4862_v3 }
  0x4f   : > { %1398 = vmatmul.mubr.f32.vlgmr.msra.gmra.mrb[0].mxu1 %v317_v22  ;;  %v1287_v22 = vld [vmem:[%s4857_s1 + $0x348] sm:$0xff] }
  0x50   : > { %1623 = vmatmul.mubr.f32.vlgmr.msra.gmra.mrb[0].mxu0 %v445_v23  ;;  %1402 = vmatprep.mubr.f32.mxu1 %v382_v25  ;;  %v3838_v23 = vld [vmem:[#allocation2 + $0x32] sm:$0xff] }
  0x51   : > { %2925 = vmatpush1.bf16.msra.mxu0 %v2924_v24  ;;  %1627 = vmatprep.mubr.f32.mxu0 %v510_v31  ;;  %v2936_v24 = vpack.c.bf16 %v1255_v18, %v1254_v16  ;;  %v514_v25 = vld [vmem:[#allocation2 + $0x50] sm:$0xff]  ;;  %v1262_v18 = vld [vmem:[%s4857_s1 + $0x280] sm:$0xff] }
  0x52   : > { %2926 = vmatprep.subr.bf16.mxu0 %v4862_v3  ;;  %3067 = vmatpush1.bf16.msra.mxu1 %v3751_v33 }
  0x53   : > { %1403 = vmatmul.mubr.f32.gmra.mrb[2].mxu1 %v3303_v8  ;;  %3052 = vmatprep.subr.bf16.mxu1 %v4862_v3  ;;  %v2930_v8 = vpack.c.bf16 %v1251_v51, %v1250_v49  ;;  %v1259_v49 = vld [vmem:[%s4857_s1 + $0x268] sm:$0xff] }
  0x54   : > { %1628 = vmatmul.mubr.f32.gmra.mrb[2].mxu0 %v446_v40  ;;  %1407 = vmatprep.mubr.f32.mxu1 %v3490_v43  ;;  %v1253_v43 = vld [vmem:[%s4857_s1 + $0x238] sm:$0xff] }
  0x55   : > { %1632 = vmatprep.mubr.f32.mxu0 %v511_v48  ;;  %2928 = vmatpush1.bf16.msra.mxu0 %v2927_v44  ;;  %v2933_v15 = vpack.c.bf16 %v1253_v43, %v1252_v6  ;;  %v515_v44 = vld [vmem:[#allocation2 + $0x60] sm:$0xff]  ;;  %v1260_v6 = vld [vmem:[%s4857_s1 + $0x270] sm:$0xff]  ;;  %v1261_v43 = vld [vmem:[%s4857_s1 + $0x278] sm:$0xff] }
  0x56   : > { %2929 = vmatprep.subr.bf16.mxu0 %v4862_v3  ;;  %3068 = vmatpush1.bf16.msra.mxu1 %v3779_v55  ;;  %v2945_v16 = vpack.c.bf16 %v1261_v43, %v1260_v6  ;;  %v1298_v6 = vld [vmem:[%s4857_s1 + $0x3a0] sm:$0xff]  ;;  %v1299_v43 = vld [vmem:[%s4857_s1 + $0x3a8] sm:$0xff] }
  0x57   : > { %1408 = vmatmul.mubr.f32.gmra.mrb[4].mxu1 %v3551_v0  ;;  %3053 = vmatprep.subr.bf16.mxu1 %v4862_v3  ;;  %v513_v0 = vld [vmem:[#allocation2 + $0x48] sm:$0xff] }
  0x58   : > { %1633 = vmatmul.mubr.f32.gmra.mrb[4].mxu0 %v3794_v4  ;;  %1412 = vmatprep.mubr.f32.mxu1 %v3497_v46  ;;  %v1286_v46 = vld [vmem:[%s4857_s1 + $0x340] sm:$0xff] }
  0x59   : > { %1637 = vmatprep.mubr.f32.mxu0 %v512_v5  ;;  %2931 = vmatpush1.bf16.msra.mxu0 %v2930_v8  ;;  %v3848_v32 = vpack.c.bf16 %v1287_v22, %v1286_v46  ;;  %v1263_v46 = vld [vmem:[%s4857_s1 + $0x288] sm:$0xff] }
  0x5a   : > { %2932 = vmatprep.subr.bf16.mxu0 %v4862_v3  ;;  %3069 = vmatpush1.bf16.msra.mxu1 %v3805_v7 }
  0x5b   : > { %1413 = vmatmul.mubr.f32.gmra.mrb[6].mxu1 %v510_v31  ;;  %3054 = vmatprep.subr.bf16.mxu1 %v4862_v3  ;;  %v1257_v31 = vld [vmem:[%s4857_s1 + $0x258] sm:$0xff] }
  0x5c   : > { %1638 = vmatmul.mubr.f32.gmra.mrb[6].mxu0 %v3817_v14  ;;  %1417 = vmatprep.mubr.f32.mxu1 %v3508_v50  ;;  %v1288_v50 = vld [vmem:[%s4857_s1 + $0x350] sm:$0xff]  ;;  %v2939_v40 = vpack.c.bf16 %v1257_v31, %v1256_v27  ;;  %v3922_v27 = vld [vmem:[#allocation2 + $0x62] sm:$0xff]  ;;  %v2948_v31 = vpack.c.bf16 %v1263_v46, %v1262_v18  ;;  %v1269_v18 = vld [vmem:[%s4857_s1 + $0x2b8] sm:$0xff] }
  0x5d   : > { %1642 = vmatprep.mubr.f32.mxu0 %v513_v0  ;;  %2934 = vmatpush1.bf16.msra.mxu0 %v2933_v15  ;;  %v3869_v51 = vpack.c.bf16 %v1289_v37, %v1288_v50  ;;  %v3901_v15 = vld [vmem:[#allocation2 + $0x52] sm:$0xff] }
  0x5e   : > { %2935 = vmatprep.subr.bf16.mxu0 %v4862_v3  ;;  %3070 = vmatpush1.bf16.msra.mxu1 %v3827_v19  ;;  %v1264_v50 = vld [vmem:[%s4857_s1 + $0x290] sm:$0xff]  ;;  %v1265_v37 = vld [vmem:[%s4857_s1 + $0x298] sm:$0xff] }
  0x5f   : > { %1418 = vmatmul.mubr.f32.gmra.mrb[8].mxu1 %v511_v48  ;;  %3055 = vmatprep.subr.bf16.mxu1 %v4862_v3  ;;  %v1258_v48 = vld [vmem:[%s4857_s1 + $0x260] sm:$0xff]  ;;  %v1300_v46 = vld [vmem:[%s4857_s1 + $0x3b0] sm:$0xff] }
  0x60   : > { %1643 = vmatmul.mubr.f32.gmra.mrb[8].mxu0 %v3838_v23  ;;  %1422 = vmatprep.mubr.f32.mxu1 %v3516_v52  ;;  %v1290_v52 = vld [vmem:[%s4857_s1 + $0x360] sm:$0xff]  ;;  %v2942_v8 = vpack.c.bf16 %v1259_v49, %v1258_v48  ;;  %v1297_v48 = vld [vmem:[%s4857_s1 + $0x398] sm:$0xff]  ;;  %v3943_v49 = vld [vmem:[#allocation2 + $0x6a] sm:$0xff] }
  0x61   : > { %1647 = vmatprep.mubr.f32.mxu0 %v514_v25  ;;  %2937 = vmatpush1.bf16.msra.mxu0 %v2936_v24  ;;  %v3890_v11 = vpack.c.bf16 %v1291_v57, %v1290_v52  ;;  %v1295_v24 = vld [vmem:[%s4857_s1 + $0x388] sm:$0xff]  ;;  %v2951_v52 = vpack.c.bf16 %v1265_v37, %v1264_v50  ;;  %v1266_v57 = vld [vmem:[%s4857_s1 + $0x2a0] sm:$0xff] }
  0x62   : > { %2938 = vmatprep.subr.bf16.mxu0 %v4862_v3  ;;  %3071 = vmatpush1.bf16.msra.mxu1 %v3848_v32  ;;  %v1270_v50 = vld [vmem:[%s4857_s1 + $0x2c0] sm:$0xff]  ;;  %v1271_v37 = vld [vmem:[%s4857_s1 + $0x2c8] sm:$0xff] }
  0x63   : > { %1423 = vmatmul.mubr.f32.gmra.mrb[10].mxu1 %v512_v5  ;;  %3056 = vmatprep.subr.bf16.mxu1 %v4862_v3  ;;  %v516_v5 = vld [vmem:[#allocation2 + $0x68] sm:$0xff] }
  0x64   : > { %1648 = vmatmul.mubr.f32.gmra.mrb[10].mxu0 %v3859_v38  ;;  %1427 = vmatprep.mubr.f32.mxu1 %v3519_v53  ;;  %v1292_v53 = vld [vmem:[%s4857_s1 + $0x370] sm:$0xff] }
  0x65   : > { %1652 = vmatprep.mubr.f32.mxu0 %v515_v44  ;;  %2940 = vmatpush1.bf16.msra.mxu0 %v2939_v40  ;;  %v3911_v22 = vpack.c.bf16 %v1293_v12, %v1292_v53  ;;  %v3967_v53 = vld [vmem:[#allocation2 + $0x7a] sm:$0xff] }
  0x66   : > { %2941 = vmatprep.subr.bf16.mxu0 %v4862_v3  ;;  %3072 = vmatpush1.bf16.msra.mxu1 %v3869_v51  ;;  %v3969_v12 = vld [vmem:[#allocation2 + $0x98] sm:$0xff] }
  0x67   : > { %1428 = vmatmul.mubr.f32.gmra.mrb[12].mxu1 %v513_v0  ;;  %3057 = vmatprep.subr.bf16.mxu1 %v4862_v3  ;;  %v517_v0 = vld [vmem:[#allocation2 + $0x78] sm:$0xff] }
  0x68   : > { %1653 = vmatmul.mubr.f32.gmra.mrb[12].mxu0 %v3880_v59  ;;  %1432 = vmatprep.mubr.f32.mxu1 %v3524_v54  ;;  %v1294_v54 = vld [vmem:[%s4857_s1 + $0x380] sm:$0xff] }
  0x69   : > { %1657 = vmatprep.mubr.f32.mxu0 %v516_v5  ;;  %2943 = vmatpush1.bf16.msra.mxu0 %v2942_v8  ;;  %v3932_v40 = vpack.c.bf16 %v1295_v24, %v1294_v54  ;;  %v1267_v8 = vld [vmem:[%s4857_s1 + $0x2a8] sm:$0xff]  ;;  %v1301_v54 = vld [vmem:[%s4857_s1 + $0x3b8] sm:$0xff] }
  0x6a   : > { %2944 = vmatprep.subr.bf16.mxu0 %v4862_v3  ;;  %3073 = vmatpush1.bf16.msra.mxu1 %v3890_v11  ;;  %v3991_v24 = vld [vmem:[#allocation2 + $0x82] sm:$0xff] }
  0x6b   : > { %1433 = vmatmul.mubr.f32.gmra.mrb[14].mxu1 %v514_v25  ;;  %3058 = vmatprep.subr.bf16.mxu1 %v4862_v3  ;;  %v518_v25 = vld [vmem:[#allocation2 + $0x80] sm:$0xff] }
  0x6c   : > { %1658 = vmatmul.mubr.f32.gmra.mrb[14].mxu0 %v3901_v15  ;;  %1437 = vmatprep.mubr.f32.mxu1 %v3534_v58  ;;  %v1296_v58 = vld [vmem:[%s4857_s1 + $0x390] sm:$0xff] }
  0x6d   : > { %1662 = vmatprep.mubr.f32.mxu0 %v517_v0  ;;  %2946 = vmatpush1.bf16.msra.mxu0 %v2945_v16  ;;  %v1268_v16 = vld [vmem:[%s4857_s1 + $0x2b0] sm:$0xff] }
  0x6e   : > { %2947 = vmatprep.subr.bf16.mxu0 %v4862_v3  ;;  %3074 = vmatpush1.bf16.msra.mxu1 %v3911_v22 }
  0x6f   : > { %1438 = vmatmul.mubr.f32.gmra.mrb[16].mxu1 %v515_v44  ;;  %3059 = vmatprep.subr.bf16.mxu1 %v4862_v3  ;;  %v3945_v44 = vld [vmem:[#allocation2 + $0x90] sm:$0xff] }
  0x70   : > { %1663 = vmatmul.mubr.f32.gmra.mrb[16].mxu0 %v3922_v27  ;;  %1442 = vmatprep.mubr.f32.mxu1 %v3542_v61  ;;  %v3955_v61 = vpack.c.bf16 %v1297_v48, %v1296_v58  ;;  %v1302_v58 = vld [vmem:[%s4857_s1 + $0x3c0] sm:$0xff]  ;;  %v1303_v48 = vld [vmem:[%s4857_s1 + $0x3c8] sm:$0xff] }
  0x71   : > { %1667 = vmatprep.mubr.f32.mxu0 %v518_v25  ;;  %2949 = vmatpush1.bf16.msra.mxu0 %v2948_v31  ;;  %v3993_v31 = vld [vmem:[#allocation2 + $0xa8] sm:$0xff] }
  0x72   : > { %2950 = vmatprep.subr.bf16.mxu0 %v4862_v3  ;;  %3075 = vmatpush1.bf16.msra.mxu1 %v3932_v40 }
  0x73   : > { %1443 = vmatmul.mubr.f32.gmra.mrb[18].mxu1 %v516_v5  ;;  %3060 = vmatprep.subr.bf16.mxu1 %v4862_v3  ;;  %v2954_v5 = vpack.c.bf16 %v1267_v8, %v1266_v57  ;;  %v4017_v57 = vld [vmem:[#allocation2 + $0xb0] sm:$0xff] }
  0x74   : > { %1668 = vmatmul.mubr.f32.gmra.mrb[18].mxu0 %v3943_v49  ;;  %1447 = vmatprep.mubr.f32.mxu1 %v3545_v62  ;;  %v3979_v62 = vpack.c.bf16 %v1299_v43, %v1298_v6  ;;  %v1272_v8 = vld [vmem:[%s4857_s1 + $0x2d0] sm:$0xff]  ;;  %v1273_v6 = vld [vmem:[%s4857_s1 + $0x2d8] sm:$0xff]  ;;  %v4027_v43 = vpack.c.bf16 %v1303_v48, %v1302_v58  ;;  %v1306_v58 = vld [vmem:[%s4857_s1 + $0x3e0] sm:$0xff] }
  0x75   : > { %1672 = vmatprep.mubr.f32.mxu0 %v3945_v44  ;;  %2952 = vmatpush1.bf16.msra.mxu0 %v2951_v52  ;;  %v4015_v52 = vld [vmem:[#allocation2 + $0x92] sm:$0xff]  ;;  %v1307_v48 = vld [vmem:[%s4857_s1 + $0x3e8] sm:$0xff] }
  0x76   : > { %2953 = vmatprep.subr.bf16.mxu0 %v4862_v3  ;;  %3076 = vmatpush1.bf16.msra.mxu1 %v3955_v61  ;;  %4909 = vst [vmem:[#allocation7_spill] sm:$0xff] %v4027_v43  ;;  %v4077_v60 = vpack.c.bf16 %v1307_v48, %v1306_v58  ;;  %v1311_v58 = vld [vmem:[%s4857_s1 + $0x408] sm:$0xff]  ;;  %v4096_v48 = vld [vmem:[#allocation2 + $0xb2] sm:$0xff] }
  0x77   : > { %1448 = vmatmul.mubr.f32.gmra.mrb[20].mxu1 %v517_v0  ;;  %3061 = vmatprep.subr.bf16.mxu1 %v4862_v3  ;;  %v2957_v0 = vpack.c.bf16 %v1269_v18, %v1268_v16  ;;  %v1305_v16 = vld [vmem:[%s4857_s1 + $0x3d8] sm:$0xff]  ;;  %4913 = vst [vmem:[#allocation11_spill] sm:$0xff] %v4096_v48 }
  0x78   : > { %1673 = vmatmul.mubr.f32.gmra.mrb[20].mxu0 %v3967_v53  ;;  %1452 = vmatprep.mubr.f32.mxu1 %v3556_v1  ;;  %v4003_v1 = vpack.c.bf16 %v1301_v54, %v1300_v46  ;;  %v4040_v18 = vld [vmem:[#allocation2 + $0x9a] sm:$0xff]  ;;  %v2963_v46 = vpack.c.bf16 %v1273_v6, %v1272_v8  ;;  %v4067_v6 = vld [vmem:[#allocation2 + $0xc8] sm:$0xff]  ;;  %4912 = vst [vmem:[#allocation10_spill] sm:$0xff] %v4077_v60 }
  0x79   : > { %1677 = vmatprep.mubr.f32.mxu0 %v3969_v12  ;;  %2955 = vmatpush1.bf16.msra.mxu0 %v2954_v5  ;;  %v1304_v5 = vld [vmem:[%s4857_s1 + $0x3d0] sm:$0xff]  ;;  %v4042_v54 = vld [vmem:[#allocation2 + $0xc0] sm:$0xff] }
  0x7a   : > { %2956 = vmatprep.subr.bf16.mxu0 %v4862_v3  ;;  %3077 = vmatpush1.bf16.msra.mxu1 %v3979_v62  ;;  %4908 = vst [vmem:[#allocation6_spill] sm:$0xff] %v4003_v1 }
  0x7b   : > { %1453 = vmatmul.mubr.f32.gmra.mrb[22].mxu1 %v518_v25  ;;  %3062 = vmatprep.subr.bf16.mxu1 %v4862_v3  ;;  %v2960_v25 = vpack.c.bf16 %v1271_v37, %v1270_v50  ;;  %v1275_v50 = vld [vmem:[%s4857_s1 + $0x2e8] sm:$0xff]  ;;  %v4052_v37 = vpack.c.bf16 %v1305_v16, %v1304_v5  ;;  %v1276_v5 = vld [vmem:[%s4857_s1 + $0x2f0] sm:$0xff]  ;;  %v1277_v16 = vld [vmem:[%s4857_s1 + $0x2f8] sm:$0xff] }
  0x7c   : > { %1678 = vmatmul.mubr.f32.gmra.mrb[22].mxu0 %v3991_v24  ;;  %1457 = vmatprep.mubr.f32.mxu1 %v3561_v2 }
  0x7d   : > { %1682 = vmatprep.mubr.f32.mxu0 %v3993_v31  ;;  %2958 = vmatpush1.bf16.msra.mxu0 %v2957_v0  ;;  %v1274_v0 = vld [vmem:[%s4857_s1 + $0x2e0] sm:$0xff]  ;;  %4910 = vst [vmem:[#allocation8_spill] sm:$0xff] %v4052_v37 }
  0x7e   : > { %2959 = vmatprep.subr.bf16.mxu0 %v4862_v3  ;;  %3078 = vmatpush1.bf16.msra.mxu1 %v4003_v1  ;;  %v2966_v8 = vpack.c.bf16 %v1275_v50, %v1274_v0  ;;  %v1309_v0 = vld [vmem:[%s4857_s1 + $0x3f8] sm:$0xff]  ;;  %v1310_v50 = vld [vmem:[%s4857_s1 + $0x400] sm:$0xff] }
  0x7f   : > { %1458 = vmatmul.mubr.f32.gmra.mrb[24].mxu1 %v3945_v44  ;;  %3063 = vmatprep.subr.bf16.mxu1 %v4862_v3  ;;  %v4106_v1 = vpack.c.bf16 %v1311_v58, %v1310_v50  ;;  %v4138_v50 = vld [vmem:[#allocation2 + $0xe2] sm:$0xff] }
  0x80   : > { %1683 = vmatmul.mubr.f32.gmra.mrb[24].mxu0 %v4015_v52  ;;  %1462 = vmatprep.mubr.f32.mxu1 %v3572_v9  ;;  %4919 = vst [vmem:[#allocation16_spill] sm:$0xff] %v4138_v50  ;;  %v4140_v58 = vld [vmem:[#allocation2 + $0x108] sm:$0xff] }
  0x81   : > { %1687 = vmatprep.mubr.f32.mxu0 %v4017_v57  ;;  %2961 = vmatpush1.bf16.msra.mxu0 %v2960_v25  ;;  %v4065_v25 = vld [vmem:[#allocation2 + $0xaa] sm:$0xff] }
  0x82   : > { %2962 = vmatprep.subr.bf16.mxu0 %v4862_v3  ;;  %3079 = vmatpush1.bf16.msra.mxu1 %v4027_v43  ;;  %4911 = vst [vmem:[#allocation9_spill] sm:$0xff] %v4065_v25 }
  0x83   : > { %1463 = vmatmul.mubr.f32.gmra.mrb[26].mxu1 %v3969_v12  ;;  %3064 = vmatprep.subr.bf16.mxu1 %v4862_v3 }
  0x84   : > { %1688 = vmatmul.mubr.f32.gmra.mrb[26].mxu0 %v4040_v18  ;;  %1467 = vmatprep.mubr.f32.mxu1 %v3575_v10 }
  0x85   : > { %1692 = vmatprep.mubr.f32.mxu0 %v4042_v54  ;;  %2964 = vmatpush1.bf16.msra.mxu0 %v2963_v46  ;;  %v1308_v46 = vld [vmem:[%s4857_s1 + $0x3f0] sm:$0xff] }
  0x86   : > { %2965 = vmatprep.subr.bf16.mxu0 %v4862_v3  ;;  %3080 = vmatpush1.bf16.msra.mxu1 %v4052_v37  ;;  %v4914_v37 = vmov 0.0|0.0   ;;  %v4102_v43 = vpack.c.bf16 %v1309_v0, %v1308_v46  ;;  %v4124_v46 = vld [vmem:[#allocation2 + $0xf0] sm:$0xff]  ;;  %v4132_v0 = vld [vmem:[#allocation2 + $0xf8] sm:$0xff] }
  0x87   : > { %1468 = vmatmul.mubr.f32.gmra.mrb[28].mxu1 %v3993_v31  ;;  %3065 = vmatprep.subr.bf16.mxu1 %v4862_v3  ;;  %v2969_v3 = vpack.c.bf16 %v1277_v16, %v1276_v5  ;;  %v4113_v5 = vld [vmem:[#allocation2 + $0xe0] sm:$0xff]  ;;  %v4122_v16 = vld [vmem:[#allocation2 + $0xca] sm:$0xff] }
  0x88   : > { %1693 = vmatmul.mubr.f32.gmra.mrb[28].mxu0 %v4065_v25  ;;  %1472 = vmatprep.mubr.f32.mxu1 %v3601_v20  ;;  %4915 = vst [vmem:[#allocation12_spill] sm:$0xff] %v4102_v43  ;;  %4917 = vst [vmem:[#allocation14_spill] sm:$0xff] %v4122_v16  ;;  %v4180_v25 = vld [vmem:[#allocation2 + $0x140] sm:$0xff] }
  0x89   : > { %1697 = vmatprep.mubr.f32.mxu0 %v4067_v6  ;;  %2967 = vmatpush1.bf16.msra.mxu0 %v2966_v8  ;;  %v4111_v8 = vld [vmem:[#allocation2 + $0xc2] sm:$0xff]  ;;  %4929 = vst [vmem:[#allocation26_spill] sm:$0xff] %v4180_v25 }
  0x8a   : > { %2968 = vmatprep.subr.bf16.mxu0 %v4914_v37  ;;  %3081 = vmatpush1.bf16.msra.mxu1 %v4077_v60  ;;  %4916 = vst [vmem:[#allocation13_spill] sm:$0xff] %v4111_v8  ;;  %v4148_v60 = vld [vmem:[#allocation2 + $0x110] sm:$0xff] }
  0x8b   : > { %1473 = vmatmul.mubr.f32.gmra.mrb[30].mxu1 %v4017_v57  ;;  %3066 = vmatprep.subr.bf16.mxu1 %v4914_v37  ;;  %4921 = vst [vmem:[#allocation18_spill] sm:$0xff] %v4148_v60 }
  0x8c   : > { %1698 = vmatmul.mubr.f32.gmra.mrb[30].mxu0 %v4096_v48  ;;  %1477 = vmatprep.mubr.f32.mxu1 %v3619_v26  ;;  %v4172_v48 = vld [vmem:[#allocation2 + $0x138] sm:$0xff] }
  0x8d   : > { %1702 = vmatprep.mubr.f32.mxu0 %v4098_v45  ;;  %2970 = vmatpush1.bf16.msra.mxu0 %v2969_v3  ;;  %v4130_v3 = vld [vmem:[#allocation2 + $0xda] sm:$0xff]  ;;  %4927 = vst [vmem:[#allocation24_spill] sm:$0xff] %v4172_v48 }
  0x8e   : > { %3082 = vmatpush1.bf16.msra.mxu1 %v4102_v43  ;;  %2971 = vmatprep.subr.bf16.mxu0 %v4914_v37  ;;  %4918 = vst [vmem:[#allocation15_spill] sm:$0xff] %v4130_v3  ;;  %v4146_v43 = vld [vmem:[#allocation2 + $0xf2] sm:$0xff] }
  0x8f   : > { %1478 = vmatmul.mubr.f32.gmra.mrb[32].mxu1 %v4042_v54  ;;  %3020 = vmatprep.subr.bf16.mxu1 %v4106_v1  ;;  %4920 = vst [vmem:[#allocation17_spill] sm:$0xff] %v4146_v43 }
  0x90   : > { %1703 = vmatmul.mubr.f32.gmra.mrb[32].mxu0 %v4111_v8  ;;  %1482 = vmatprep.mubr.f32.mxu1 %v3623_v28  ;;  %v4164_v8 = vld [vmem:[#allocation2 + $0x128] sm:$0xff] }
  0x91   : > { %1707 = vmatprep.mubr.f32.mxu0 %v4113_v5  ;;  %4925 = vst [vmem:[#allocation22_spill] sm:$0xff] %v4164_v8 }
  0x93   : > { %1483 = vmatmul.mubr.f32.gmra.mrb[34].mxu1 %v4067_v6 }
  0x94   : > { %1708 = vmatmul.mubr.f32.gmra.mrb[34].mxu0 %v4122_v16  ;;  %1487 = vmatprep.mubr.f32.mxu1 %v3626_v29  ;;  %v4156_v16 = vld [vmem:[#allocation2 + $0x120] sm:$0xff] }
  0x95   : > { %1712 = vmatprep.mubr.f32.mxu0 %v4124_v46  ;;  %4923 = vst [vmem:[#allocation20_spill] sm:$0xff] %v4156_v16 }
  0x97   : > { %1488 = vmatmul.mubr.f32.gmra.mrb[36].mxu1 %v4098_v45 }
  0x98   : > { %1713 = vmatmul.mubr.f32.gmra.mrb[36].mxu0 %v4130_v3  ;;  %1492 = vmatprep.mubr.f32.mxu1 %v3645_v35  ;;  %v4154_v3 = vld [vmem:[#allocation2 + $0xfa] sm:$0xff] }
  0x99   : > { %1717 = vmatprep.mubr.f32.mxu0 %v4132_v0  ;;  %4922 = vst [vmem:[#allocation19_spill] sm:$0xff] %v4154_v3 }
  0x9b   : > { %1493 = vmatmul.mubr.f32.gmra.mrb[38].mxu1 %v4113_v5 }
  0x9c   : > { %1718 = vmatmul.mubr.f32.gmra.mrb[38].mxu0 %v4138_v50  ;;  %1497 = vmatprep.mubr.f32.mxu1 %v3648_v36  ;;  %v4162_v50 = vld [vmem:[#allocation2 + $0x10a] sm:$0xff] }
  0x9d   : > { %1722 = vmatprep.mubr.f32.mxu0 %v4140_v58  ;;  %4924 = vst [vmem:[#allocation21_spill] sm:$0xff] %v4162_v50 }
  0x9f   : > { %1498 = vmatmul.mubr.f32.gmra.mrb[40].mxu1 %v4124_v46 }
  0xa0   : > { %1723 = vmatmul.mubr.f32.gmra.mrb[40].mxu0 %v4146_v43  ;;  %1502 = vmatprep.mubr.f32.mxu1 %v3660_v41  ;;  %v4170_v43 = vld [vmem:[#allocation2 + $0x112] sm:$0xff] }
  0xa1   : > { %1727 = vmatprep.mubr.f32.mxu0 %v4148_v60  ;;  %4926 = vst [vmem:[#allocation23_spill] sm:$0xff] %v4170_v43 }
  0xa3   : > { %1503 = vmatmul.mubr.f32.gmra.mrb[42].mxu1 %v4132_v0 }
  0xa4   : > { %1728 = vmatmul.mubr.f32.gmra.mrb[42].mxu0 %v4154_v3  ;;  %1507 = vmatprep.mubr.f32.mxu1 %v3663_v42  ;;  %v4178_v3 = vld [vmem:[#allocation2 + $0x122] sm:$0xff] }
  0xa5   : > { %1732 = vmatprep.mubr.f32.mxu0 %v4156_v16  ;;  %4928 = vst [vmem:[#allocation25_spill] sm:$0xff] %v4178_v3 }
  0xa7   : > { %1508 = vmatmul.mubr.f32.gmra.mrb[44].mxu1 %v4140_v58 }
  0xa8   : > { %1733 = vmatmul.mubr.f32.gmra.mrb[44].mxu0 %v4162_v50  ;;  %1512 = vmatprep.mubr.f32.mxu1 %v3675_v47  ;;  %v4186_v50 = vld [vmem:[#allocation2 + $0x12a] sm:$0xff] }
  0xa9   : > { %1737 = vmatprep.mubr.f32.mxu0 %v4164_v8  ;;  %4930 = vst [vmem:[#allocation27_spill] sm:$0xff] %v4186_v50 }
  0xab   : > { %1513 = vmatmul.mubr.f32.gmra.mrb[46].mxu1 %v4148_v60  ;;  %v4188_v60 = vld [vmem:[#allocation2 + $0x150] sm:$0xff] }
  0xac   : > { %1738 = vmatmul.mubr.f32.gmra.mrb[46].mxu0 %v4170_v43  ;;  %1517 = vmatprep.mubr.f32.mxu1 %v3686_v56  ;;  %4931 = vst [vmem:[#allocation28_spill] sm:$0xff] %v4188_v60  ;;  %v4194_v43 = vld [vmem:[#allocation2 + $0x13a] sm:$0xff] }
  0xad   : > { %1742 = vmatprep.mubr.f32.mxu0 %v4172_v48  ;;  %4932 = vst [vmem:[#allocation29_spill] sm:$0xff] %v4194_v43 }
  0xaf   : > { %1518 = vmatmul.mubr.f32.gmra.mrb[48].mxu1 %v4156_v16  ;;  %v4196_v16 = vld [vmem:[#allocation2 + $0x158] sm:$0xff] }
  0xb0   : > { %1743 = vmatmul.mubr.f32.gmra.mrb[48].mxu0 %v4178_v3  ;;  %1522 = vmatprep.mubr.f32.mxu1 %v3697_v63  ;;  %v4202_v3 = vld [vmem:[#allocation2 + $0x142] sm:$0xff] }
  0xb1   : > { %1747 = vmatprep.mubr.f32.mxu0 %v4180_v25  ;;  %4933 = vst [vmem:[#allocation30_spill] sm:$0xff] %v4202_v3 }
  0xb3   : > { %1523 = vmatmul.mubr.f32.gmra.mrb[50].mxu1 %v4164_v8  ;;  %v4204_v8 = vld [vmem:[#allocation2 + $0x168] sm:$0xff] }
  0xb4   : > { %1748 = vmatmul.mubr.f32.gmra.mrb[50].mxu0 %v4186_v50  ;;  %1527 = vmatprep.mubr.f32.mxu1 %v3715_v13  ;;  %v4210_v50 = vld [vmem:[#allocation2 + $0x152] sm:$0xff] }
  0xb5   : > { %1752 = vmatprep.mubr.f32.mxu0 %v4188_v60  ;;  %4934 = vst [vmem:[#allocation31_spill] sm:$0xff] %v4210_v50 }
  0xb7   : > { %1528 = vmatmul.mubr.f32.gmra.mrb[52].mxu1 %v4172_v48  ;;  %v4212_v48 = vld [vmem:[#allocation2 + $0x170] sm:$0xff] }
  0xb8   : > { %1753 = vmatmul.mubr.f32.gmra.mrb[52].mxu0 %v4194_v43  ;;  %1532 = vmatprep.mubr.f32.mxu1 %v3727_v17  ;;  %v4218_v43 = vld [vmem:[#allocation2 + $0x15a] sm:$0xff] }
  0xb9   : > { %1757 = vmatprep.mubr.f32.mxu0 %v4196_v16  ;;  %4935 = vst [vmem:[#allocation32_spill] sm:$0xff] %v4218_v43 }
  0xbb   : > { %1533 = vmatmul.mubr.f32.gmra.mrb[54].mxu1 %v4180_v25  ;;  %v4220_v25 = vld [vmem:[#allocation2 + $0x180] sm:$0xff] }
  0xbc   : > { %1758 = vmatmul.mubr.f32.gmra.mrb[54].mxu0 %v4202_v3  ;;  %1537 = vmatprep.mubr.f32.mxu1 %v3737_v21  ;;  %4936 = vst [vmem:[#allocation33_spill] sm:$0xff] %v4220_v25  ;;  %v4226_v3 = vld [vmem:[#allocation2 + $0x16a] sm:$0xff] }
  0xbd   : > { %1762 = vmatprep.mubr.f32.mxu0 %v4204_v8  ;;  %4937 = vst [vmem:[#allocation34_spill] sm:$0xff] %v4226_v3 }
  0xbf   : > { %1538 = vmatmul.mubr.f32.gmra.mrb[56].mxu1 %v4188_v60  ;;  %v4228_v60 = vld [vmem:[#allocation2 + $0x188] sm:$0xff] }
  0xc0   : > { %1763 = vmatmul.mubr.f32.gmra.mrb[56].mxu0 %v4210_v50  ;;  %1542 = vmatprep.mubr.f32.mxu1 %v3745_v30  ;;  %4938 = vst [vmem:[#allocation35_spill] sm:$0xff] %v4228_v60  ;;  %v4234_v50 = vld [vmem:[#allocation2 + $0x172] sm:$0xff] }
  0xc1   : > { %1767 = vmatprep.mubr.f32.mxu0 %v4212_v48  ;;  %4939 = vst [vmem:[#allocation36_spill] sm:$0xff] %v4234_v50 }
  0xc3   : > { %1543 = vmatmul.mubr.f32.gmra.mrb[58].mxu1 %v4196_v16 }
  0xc4   : > { %1768 = vmatmul.mubr.f32.gmra.mrb[58].mxu0 %v4218_v43  ;;  %1547 = vmatprep.mubr.f32.mxu1 %v3755_v34  ;;  %v1312_v43 = vld [vmem:[%s4857_s1 + $0x410] sm:$0xff] }
  0xc5   : > { %1772 = vmatprep.mubr.f32.mxu0 %v4220_v25  ;;  %v3261_v25 = vld [vmem:[#allocation2 + $0x19] sm:$0xff] }
  0xc7   : > { %1548 = vmatmul.mubr.f32.gmra.mrb[60].mxu1 %v4204_v8 }
  0xc8   : > { %1773 = vmatmul.mubr.f32.gmra.mrb[60].mxu0 %v4226_v3  ;;  %1552 = vmatprep.mubr.f32.mxu1 %v3765_v39  ;;  %v1313_v3 = vld [vmem:[%s4857_s1 + $0x418] sm:$0xff] }
  0xc9   : > { %1777 = vmatprep.mubr.f32.mxu0 %v4228_v60  ;;  %v3023_v60 = vpack.c.bf16 %v1313_v3, %v1312_v43  ;;  %v4952_v43 = vld [vmem:[#allocation26_spill] sm:$0xff]  ;;  %v4959_v3 = vld [vmem:[#allocation4_spill] sm:$0xff] }
  0xcb   : > { %1553 = vmatmul.mubr.f32.gmra.mrb[62].mxu1 %v4212_v48 }
  0xcc   : > { %1778 = vmatmul.mubr.f32.gmra.mrb[62].mxu0 %v4234_v50  ;;  %2112 = vmatprep.mubr.f32.mxu1 %v3561_v2  ;;  %v1314_v2 = vld [vmem:[%s4857_s1 + $0x420] sm:$0xff]  ;;  %v1315_v50 = vld [vmem:[%s4857_s1 + $0x428] sm:$0xff] }
  0xcd   : > { %1847 = vmatprep.mubr.f32.mxu0 %v3794_v4  ;;  %v3262_v4 = vld [vmem:[#allocation2 + $0x21] sm:$0xff] }
  0xcf   : > { %2113 = vmatmul.mubr.f32.vlgmr.msra.gmra.mrb[64].mxu1 %v3945_v44  ;;  %v1316_v44 = vld [vmem:[%s4857_s1 + $0x430] sm:$0xff] }
  0xd0   : > { %1848 = vmatmul.mubr.f32.vlgmr.msra.gmra.mrb[0].mxu0 %v3261_v25  ;;  %2117 = vmatprep.mubr.f32.mxu1 %v3572_v9  ;;  %v3027_v9 = vpack.c.bf16 %v1315_v50, %v1314_v2  ;;  %v4955_v25 = vld [vmem:[#allocation28_spill] sm:$0xff]  ;;  %v4962_v50 = vld [vmem:[#allocation5_spill] sm:$0xff]  ;;  %v4964_v2 = vld [vmem:[#allocation35_spill] sm:$0xff] }
  0xd1   : > { %2973 = vmatpush1.bf16.msra.mxu0 %v3751_v33  ;;  %1852 = vmatprep.mubr.f32.mxu0 %v3817_v14  ;;  %v1317_v33 = vld [vmem:[%s4857_s1 + $0x438] sm:$0xff] }
  0xd2   : > { %2974 = vmatprep.subr.bf16.mxu0 %v4914_v37  ;;  %3022 = vmatpush3.bf16.msra.mxu1 %v4106_v1  ;;  %v3031_v14 = vpack.c.bf16 %v1317_v33, %v1316_v44  ;;  %v1324_v1 = vld [vmem:[%s4857_s1 + $0x470] sm:$0xff]  ;;  %v4965_v44 = vld [vmem:[#allocation25_spill] sm:$0xff]  ;;  %v797_v33 = vld [vmem:[#allocation2 + $0x1a1] sm:$0xff] }
  0xd3   : > { %2118 = vmatmul.mubr.f32.gmra.mrb[66].mxu1 %v3969_v12  ;;  %3024 = vmatprep.subr.bf16.mxu1 %v3023_v60  ;;  %v1318_v12 = vld [vmem:[%s4857_s1 + $0x440] sm:$0xff] }
  0xd4   : > { %1853 = vmatmul.mubr.f32.gmra.mrb[2].mxu0 %v3262_v4  ;;  %2122 = vmatprep.mubr.f32.mxu1 %v3575_v10  ;;  %v3263_v10 = vld [vmem:[#allocation2 + $0x31] sm:$0xff] }
  0xd5   : > { %1857 = vmatprep.mubr.f32.mxu0 %v3838_v23  ;;  %2976 = vmatpush1.bf16.msra.mxu0 %v3779_v55  ;;  %v1319_v23 = vld [vmem:[%s4857_s1 + $0x448] sm:$0xff]  ;;  %v732_v4 = vld [vmem:[#allocation2 + $0x198] sm:$0xff] }
  0xd6   : > { %2977 = vmatprep.subr.bf16.mxu0 %v4914_v37  ;;  %3026 = vmatpush3.bf16.msra.mxu1 %v3023_v60  ;;  %v3035_v55 = vpack.c.bf16 %v1319_v23, %v1318_v12  ;;  %v1320_v60 = vld [vmem:[%s4857_s1 + $0x450] sm:$0xff]  ;;  %v3283_v12 = vld [vmem:[#allocation2 + $0x121] sm:$0xff] }
  0xd7   : > { %2123 = vmatmul.mubr.f32.gmra.mrb[68].mxu1 %v3993_v31  ;;  %3028 = vmatprep.subr.bf16.mxu1 %v3027_v9  ;;  %v1322_v31 = vld [vmem:[%s4857_s1 + $0x460] sm:$0xff]  ;;  %v4966_v23 = vld [vmem:[#allocation27_spill] sm:$0xff] }
  0xd8   : > { %1858 = vmatmul.mubr.f32.gmra.mrb[4].mxu0 %v3263_v10  ;;  %2127 = vmatprep.mubr.f32.mxu1 %v3601_v20  ;;  %v3264_v20 = vld [vmem:[#allocation2 + $0x39] sm:$0xff] }
  0xd9   : > { %1862 = vmatprep.mubr.f32.mxu0 %v3859_v38  ;;  %2979 = vmatpush1.bf16.msra.mxu0 %v3805_v7  ;;  %v1321_v38 = vld [vmem:[%s4857_s1 + $0x458] sm:$0xff] }
  0xda   : > { %2980 = vmatprep.subr.bf16.mxu0 %v4914_v37  ;;  %3030 = vmatpush3.bf16.msra.mxu1 %v3027_v9  ;;  %v3039_v7 = vpack.c.bf16 %v1321_v38, %v1320_v60  ;;  %v3282_v9 = vld [vmem:[#allocation2 + $0x111] sm:$0xff]  ;;  %v3284_v60 = vld [vmem:[#allocation2 + $0x8] sm:$0xff] }
  0xdb   : > { %2128 = vmatmul.mubr.f32.gmra.mrb[70].mxu1 %v4017_v57  ;;  %3032 = vmatprep.subr.bf16.mxu1 %v3031_v14  ;;  %v4951_v57 = vld [vmem:[#allocation10_spill] sm:$0xff] }
  0xdc   : > { %1863 = vmatmul.mubr.f32.gmra.mrb[6].mxu0 %v3264_v20  ;;  %2132 = vmatprep.mubr.f32.mxu1 %v3619_v26  ;;  %v3265_v26 = vld [vmem:[#allocation2 + $0x49] sm:$0xff] }
  0xdd   : > { %1867 = vmatprep.mubr.f32.mxu0 %v3880_v59  ;;  %2982 = vmatpush1.bf16.msra.mxu0 %v3827_v19  ;;  %v1323_v59 = vld [vmem:[%s4857_s1 + $0x468] sm:$0xff] }
  0xde   : > { %2983 = vmatprep.subr.bf16.mxu0 %v4914_v37  ;;  %3034 = vmatpush3.bf16.msra.mxu1 %v3031_v14  ;;  %v3043_v19 = vpack.c.bf16 %v1323_v59, %v1322_v31  ;;  %v4967_v31 = vld [vmem:[#allocation29_spill] sm:$0xff]  ;;  %v832_v59 = vld [vmem:[#allocation2 + $0x4a] sm:$0xff] }
  0xdf   : > { %2133 = vmatmul.mubr.f32.gmra.mrb[72].mxu1 %v4042_v54  ;;  %3036 = vmatprep.subr.bf16.mxu1 %v3035_v55  ;;  %v4954_v54 = vld [vmem:[#allocation12_spill] sm:$0xff] }
  0xe0   : > { %1868 = vmatmul.mubr.f32.gmra.mrb[8].mxu0 %v3265_v26  ;;  %2137 = vmatprep.mubr.f32.mxu1 %v3623_v28  ;;  %v3266_v28 = vld [vmem:[#allocation2 + $0x51] sm:$0xff]  ;;  %v831_v26 = vld [vmem:[#allocation2 + $0x3a] sm:$0xff] }
  0xe1   : > { %1872 = vmatprep.mubr.f32.mxu0 %v3901_v15  ;;  %2985 = vmatpush1.bf16.msra.mxu0 %v3848_v32  ;;  %v1325_v15 = vld [vmem:[%s4857_s1 + $0x478] sm:$0xff] }
  0xe2   : > { %2986 = vmatprep.subr.bf16.mxu0 %v4914_v37  ;;  %3038 = vmatpush3.bf16.msra.mxu1 %v3035_v55  ;;  %v3047_v32 = vpack.c.bf16 %v1325_v15, %v1324_v1  ;;  %v830_v55 = vld [vmem:[#allocation2 + $0x32] sm:$0xff] }
  0xe3   : > { %2138 = vmatmul.mubr.f32.gmra.mrb[74].mxu1 %v4067_v6  ;;  %3040 = vmatprep.subr.bf16.mxu1 %v3039_v7  ;;  %v3277_v6 = vld [vmem:[#allocation2 + $0xd9] sm:$0xff] }
  0xe4   : > { %1873 = vmatmul.mubr.f32.gmra.mrb[10].mxu0 %v3266_v28  ;;  %2142 = vmatprep.mubr.f32.mxu1 %v3626_v29  ;;  %v3267_v29 = vld [vmem:[#allocation2 + $0x61] sm:$0xff]  ;;  %v3286_v1 = vld [vmem:[#allocation2 + $0x139] sm:$0xff] }
  0xe5   : > { %1877 = vmatprep.mubr.f32.mxu0 %v3922_v27  ;;  %2988 = vmatpush1.bf16.msra.mxu0 %v3869_v51  ;;  %v3268_v51 = vld [vmem:[#allocation2 + $0x69] sm:$0xff]  ;;  %v833_v15 = vld [vmem:[#allocation2 + $0x52] sm:$0xff] }
  0xe6   : > { %2989 = vmatprep.subr.bf16.mxu0 %v4914_v37  ;;  %3042 = vmatpush3.bf16.msra.mxu1 %v3039_v7  ;;  %v4943_v27 = vld [vmem:[#allocation20_spill] sm:$0xff] }
  0xe7   : > { %2143 = vmatmul.mubr.f32.gmra.mrb[76].mxu1 %v4098_v45  ;;  %3044 = vmatprep.subr.bf16.mxu1 %v3043_v19  ;;  %v4940_v45 = vld [vmem:[#allocation18_spill] sm:$0xff]  ;;  %v3285_v7 = vld [vmem:[#allocation2 + $0x129] sm:$0xff] }
  0xe8   : > { %1878 = vmatmul.mubr.f32.gmra.mrb[12].mxu0 %v3267_v29  ;;  %2147 = vmatprep.mubr.f32.mxu1 %v3645_v35  ;;  %v3269_v35 = vld [vmem:[#allocation2 + $0x79] sm:$0xff]  ;;  %v834_v29 = vld [vmem:[#allocation2 + $0x62] sm:$0xff] }
  0xe9   : > { %1882 = vmatprep.mubr.f32.mxu0 %v3943_v49  ;;  %2991 = vmatpush1.bf16.msra.mxu0 %v3890_v11  ;;  %v4941_v11 = vld [vmem:[#allocation9_spill] sm:$0xff]  ;;  %v4945_v49 = vld [vmem:[#allocation7_spill] sm:$0xff] }
  0xea   : > { %2992 = vmatprep.subr.bf16.mxu0 %v4914_v37  ;;  %3046 = vmatpush3.bf16.msra.mxu1 %v3043_v19 }
  0xeb   : > { %2148 = vmatmul.mubr.f32.gmra.mrb[78].mxu1 %v4113_v5  ;;  %3048 = vmatprep.subr.bf16.mxu1 %v3047_v32  ;;  %v4957_v5 = vld [vmem:[#allocation17_spill] sm:$0xff] }
  0xec   : > { %1883 = vmatmul.mubr.f32.gmra.mrb[14].mxu0 %v3268_v51  ;;  %2152 = vmatprep.mubr.f32.mxu1 %v3648_v36  ;;  %v3270_v36 = vld [vmem:[#allocation2 + $0x81] sm:$0xff] }
  0xed   : > { %1887 = vmatprep.mubr.f32.mxu0 %v3967_v53  ;;  %2994 = vmatpush1.bf16.msra.mxu0 %v3911_v22  ;;  %v4942_v22 = vld [vmem:[#allocation6_spill] sm:$0xff]  ;;  %v4947_v53 = vld [vmem:[#allocation13_spill] sm:$0xff] }
  0xee   : > { %2995 = vmatprep.subr.bf16.mxu0 %v4914_v37  ;;  %3050 = vmatpush3.bf16.msra.mxu1 %v3047_v32  ;;  %v4968_v32 = vld [vmem:[#allocation30_spill] sm:$0xff] }
  0xef   : > { %2153 = vmatmul.mubr.f32.gmra.mrb[80].mxu1 %v4124_v46  ;;  %v4958_v46 = vld [vmem:[#allocation19_spill] sm:$0xff] }
  0xf0   : > { %1888 = vmatmul.mubr.f32.gmra.mrb[16].mxu0 %v3269_v35  ;;  %2157 = vmatprep.mubr.f32.mxu1 %v3660_v41  ;;  %v3271_v41 = vld [vmem:[#allocation2 + $0x91] sm:$0xff] }
  0xf1   : > { %1892 = vmatprep.mubr.f32.mxu0 %v3991_v24  ;;  %2997 = vmatpush1.bf16.msra.mxu0 %v3932_v40  ;;  %v4944_v40 = vld [vmem:[#allocation11_spill] sm:$0xff]  ;;  %v4949_v24 = vld [vmem:[#allocation24_spill] sm:$0xff] }
  0xf2   : > { %2998 = vmatprep.subr.bf16.mxu0 %v4914_v37 }
  0xf3   : > { %2158 = vmatmul.mubr.f32.gmra.mrb[82].mxu1 %v4132_v0  ;;  %v4961_v0 = vld [vmem:[#allocation33_spill] sm:$0xff] }
  0xf4   : > { %1893 = vmatmul.mubr.f32.gmra.mrb[18].mxu0 %v3270_v36  ;;  %2162 = vmatprep.mubr.f32.mxu1 %v3663_v42  ;;  %v3272_v42 = vld [vmem:[#allocation2 + $0x99] sm:$0xff]  ;;  %v3287_v36 = vld [vmem:[#allocation2 + $0x141] sm:$0xff] }
  0xf5   : > { %1897 = vmatprep.mubr.f32.mxu0 %v4015_v52  ;;  %3000 = vmatpush1.bf16.msra.mxu0 %v3955_v61  ;;  %v4946_v61 = vld [vmem:[#allocation22_spill] sm:$0xff] }
  0xf6   : > { %3001 = vmatprep.subr.bf16.mxu0 %v4914_v37  ;;  %v4950_v52 = vld [vmem:[#allocation14_spill] sm:$0xff] }
  0xf7   : > { %2163 = vmatmul.mubr.f32.gmra.mrb[84].mxu1 %v4140_v58  ;;  %v796_v58 = vld [vmem:[#allocation2 + $0x199] sm:$0xff] }
  0xf8   : > { %1898 = vmatmul.mubr.f32.gmra.mrb[20].mxu0 %v3271_v41  ;;  %2167 = vmatprep.mubr.f32.mxu1 %v3675_v47  ;;  %v3273_v47 = vld [vmem:[#allocation2 + $0xa9] sm:$0xff] }
  0xf9   : > { %1902 = vmatprep.mubr.f32.mxu0 %v4040_v18  ;;  %3003 = vmatpush1.bf16.msra.mxu0 %v3979_v62  ;;  %v4948_v62 = vld [vmem:[#allocation8_spill] sm:$0xff]  ;;  %v4953_v18 = vld [vmem:[#allocation15_spill] sm:$0xff] }
  0xfa   : > { %3004 = vmatprep.subr.bf16.mxu0 %v4914_v37  ;;  %v835_v41 = vld [vmem:[#allocation2 + $0x6a] sm:$0xff] }
  0xfb   : > { %2168 = vmatmul.mubr.f32.gmra.mrb[86].mxu1 %v4940_v45  ;;  %v4969_v45 = vld [vmem:[#allocation31_spill] sm:$0xff] }
  0xfc   : > { %1903 = vmatmul.mubr.f32.gmra.mrb[22].mxu0 %v3272_v42  ;;  %2172 = vmatprep.mubr.f32.mxu1 %v3686_v56  ;;  %v3274_v56 = vld [vmem:[#allocation2 + $0xb1] sm:$0xff]  ;;  %v836_v42 = vld [vmem:[#allocation2 + $0x7a] sm:$0xff] }
  0xfd   : > { %1907 = vmatprep.mubr.f32.mxu0 %v4941_v11  ;;  %3006 = vmatpush1.bf16.msra.mxu0 %v4942_v22 }
  0xfe   : > { %3007 = vmatprep.subr.bf16.mxu0 %v4914_v37 }
  0xff   : > { %2173 = vmatmul.mubr.f32.gmra.mrb[88].mxu1 %v4943_v27  ;;  %v3288_v27 = vld [vmem:[#allocation2 + $0x151] sm:$0xff] }
 0x100   : > { %1908 = vmatmul.mubr.f32.gmra.mrb[24].mxu0 %v3273_v47  ;;  %2177 = vmatprep.mubr.f32.mxu1 %v3697_v63  ;;  %v3275_v63 = vld [vmem:[#allocation2 + $0xc1] sm:$0xff] }
 0x101   : > { %1912 = vmatprep.mubr.f32.mxu0 %v4944_v40  ;;  %3009 = vmatpush1.bf16.msra.mxu0 %v4945_v49  ;;  %v837_v47 = vld [vmem:[#allocation2 + $0x82] sm:$0xff]  ;;  %v4970_v40 = vld [vmem:[#allocation32_spill] sm:$0xff] }
 0x102   : > { %3010 = vmatprep.subr.bf16.mxu0 %v4914_v37  ;;  %v838_v49 = vld [vmem:[#allocation2 + $0x92] sm:$0xff] }
 0x103   : > { %2178 = vmatmul.mubr.f32.gmra.mrb[90].mxu1 %v4946_v61 }
 0x104   : > { %1913 = vmatmul.mubr.f32.gmra.mrb[26].mxu0 %v3274_v56  ;;  %2182 = vmatprep.mubr.f32.mxu1 %v3715_v13  ;;  %v3276_v13 = vld [vmem:[#allocation2 + $0xc9] sm:$0xff] }
 0x105   : > { %1917 = vmatprep.mubr.f32.mxu0 %v4947_v53  ;;  %3012 = vmatpush1.bf16.msra.mxu0 %v4948_v62  ;;  %v3289_v53 = vld [vmem:[#allocation2 + $0x159] sm:$0xff] }
 0x106   : > { %3013 = vmatprep.subr.bf16.mxu0 %v4914_v37  ;;  %v839_v62 = vld [vmem:[#allocation2 + $0x9a] sm:$0xff] }
 0x107   : > { %2183 = vmatmul.mubr.f32.gmra.mrb[92].mxu1 %v4949_v24  ;;  %v4971_v24 = vld [vmem:[#allocation34_spill] sm:$0xff] }
 0x108   : > { %1918 = vmatmul.mubr.f32.gmra.mrb[28].mxu0 %v3275_v63  ;;  %2187 = vmatprep.mubr.f32.mxu1 %v3727_v17  ;;  %v4956_v17 = vld [vmem:[#allocation16_spill] sm:$0xff] }
 0x109   : > { %1922 = vmatprep.mubr.f32.mxu0 %v4950_v52  ;;  %3015 = vmatpush1.bf16.msra.mxu0 %v4951_v57  ;;  %v840_v63 = vld [vmem:[#allocation2 + $0xaa] sm:$0xff] }
 0x10a   : > { %3016 = vmatprep.subr.bf16.mxu0 %v4914_v37  ;;  %v3278_v37 = vld [vmem:[#allocation2 + $0xe1] sm:$0xff] }
 0x10b   : > { %2188 = vmatmul.mubr.f32.gmra.mrb[94].mxu1 %v4952_v43  ;;  %v3290_v43 = vld [vmem:[#allocation2 + $0x169] sm:$0xff] }
 0x10c   : > { %1923 = vmatmul.mubr.f32.gmra.mrb[30].mxu0 %v3276_v13  ;;  %2192 = vmatprep.mubr.f32.mxu1 %v3737_v21  ;;  %v3279_v21 = vld [vmem:[#allocation2 + $0xf1] sm:$0xff] }
 0x10d   : > { %1927 = vmatprep.mubr.f32.mxu0 %v4953_v18  ;;  %3018 = vmatpush1.bf16.msra.mxu0 %v4954_v54  ;;  %v841_v13 = vld [vmem:[#allocation2 + $0xb2] sm:$0xff]  ;;  %v842_v54 = vld [vmem:[#allocation2 + $0xc2] sm:$0xff] }
 0x10e   : > { %v4972_v18 = vld [vmem:[#allocation36_spill] sm:$0xff] }
 0x10f   : > { %2193 = vmatmul.mubr.f32.gmra.mrb[96].mxu1 %v4955_v25  ;;  %v4402_v25 = vld [vmem:[#allocation2 + $0x182] sm:$0xff] }
 0x110   : > { %1928 = vmatmul.mubr.f32.gmra.mrb[32].mxu0 %v3277_v6  ;;  %2197 = vmatprep.mubr.f32.mxu1 %v3745_v30  ;;  %v3280_v30 = vld [vmem:[#allocation2 + $0xf9] sm:$0xff] }
 0x111   : > { %1932 = vmatprep.mubr.f32.mxu0 %v4956_v17 }
 0x113   : > { %2198 = vmatmul.mubr.f32.gmra.mrb[98].mxu1 %v4196_v16  ;;  %v4960_v16 = vld [vmem:[#allocation21_spill] sm:$0xff] }
 0x114   : > { %1933 = vmatmul.mubr.f32.gmra.mrb[34].mxu0 %v3278_v37  ;;  %2202 = vmatprep.mubr.f32.mxu1 %v3755_v34  ;;  %v3281_v34 = vld [vmem:[#allocation2 + $0x109] sm:$0xff]  ;;  %v3291_v37 = vld [vmem:[#allocation2 + $0x171] sm:$0xff] }
 0x115   : > { %1937 = vmatprep.mubr.f32.mxu0 %v4957_v5  ;;  %v843_v5 = vld [vmem:[#allocation2 + $0xca] sm:$0xff] }
 0x117   : > { %2203 = vmatmul.mubr.f32.gmra.mrb[100].mxu1 %v4204_v8  ;;  %v4963_v8 = vld [vmem:[#allocation23_spill] sm:$0xff] }
 0x118   : > { %1938 = vmatmul.mubr.f32.gmra.mrb[36].mxu0 %v3279_v21  ;;  %2207 = vmatprep.mubr.f32.mxu1 %v3765_v39  ;;  %v844_v21 = vld [vmem:[#allocation2 + $0xda] sm:$0xff] }
 0x119   : > { %1942 = vmatprep.mubr.f32.mxu0 %v4958_v46  ;;  %v4407_v46 = vld [vmem:[#allocation2 + $0x18a] sm:$0xff] }
 0x11b   : > { %2208 = vmatmul.mubr.f32.gmra.mrb[102].mxu1 %v4212_v48 }
 0x11c   : > { %1943 = vmatmul.mubr.f32.gmra.mrb[38].mxu0 %v3280_v30  ;;  %2212 = vmatprep.mubr.f32.mxu1 %v4959_v3 }
 0x11d   : > { %1947 = vmatprep.mubr.f32.mxu0 %v4960_v16 }
 0x11f   : > { %2213 = vmatmul.mubr.f32.gmra.mrb[104].mxu1 %v4961_v0  ;;  %v3292_v0 = vld [vmem:[#allocation2 + $0x181] sm:$0xff] }
 0x120   : > { %1948 = vmatmul.mubr.f32.gmra.mrb[40].mxu0 %v3281_v34  ;;  %2217 = vmatprep.mubr.f32.mxu1 %v4962_v50  ;;  %v845_v34 = vld [vmem:[#allocation2 + $0xe2] sm:$0xff]  ;;  %v846_v50 = vld [vmem:[#allocation2 + $0xf2] sm:$0xff] }
 0x121   : > { %1952 = vmatprep.mubr.f32.mxu0 %v4963_v8 }
 0x122   : > { %v4377_v39 = vpop.f32.mrb[0].mxu1 }
 0x123   : > { %2218 = vmatmul.mubr.f32.gmra.mrb[106].mxu1 %v4964_v2  ;;  %v1401_v48 = vpop.f32.mrb[1].mxu1 }
 0x124   : > { %1953 = vmatmul.mubr.f32.gmra.mrb[42].mxu0 %v3282_v9  ;;  %2222 = vmatprep.mubr.f32.mxu1 %v796_v58  ;;  %v766_v58 = vld [vmem:[#allocation2 + $0x31] sm:$0xff]  ;;  %v3293_v9 = vld [vmem:[#allocation2 + $0x189] sm:$0xff] }
 0x125   : > { %1957 = vmatprep.mubr.f32.mxu0 %v4965_v44 }
 0x126   : > { %v4381_v14 = vpop.f32.mrb[2].mxu1 }
 0x127   : > { %2223 = vmatmul.mubr.f32.gmra.mrb[108].mxu1 %v732_v4  ;;  %v1406_v10 = vpop.f32.mrb[3].mxu1  ;;  %v847_v4 = vld [vmem:[#allocation2 + $0xfa] sm:$0xff] }
 0x128   : > { %1958 = vmatmul.mubr.f32.gmra.mrb[44].mxu0 %v3283_v12  ;;  %2227 = vmatprep.mubr.f32.mxu1 %v797_v33  ;;  %v702_v33 = vld [vmem:[#allocation2 + $0x30] sm:$0xff]  ;;  %v767_v10 = vld [vmem:[#allocation2 + $0x39] sm:$0xff] }
 0x129   : > { %1962 = vmatprep.mubr.f32.mxu0 %v4966_v23 }
 0x12a   : > { %v4384_v20 = vpop.f32.mrb[4].mxu1 }
 0x12b   : > { %2228 = vmatmul.mubr.f32.gmra.mrb[110].mxu1 %v3284_v60  ;;  %v1411_v38 = vpop.f32.mrb[5].mxu1  ;;  %v703_v60 = vld [vmem:[#allocation2 + $0x38] sm:$0xff] }
 0x12c   : > { %1963 = vmatmul.mubr.f32.gmra.mrb[46].mxu0 %v3285_v7  ;;  %2779 = vmatprep.mubr.f32.mxu1 %v830_v55  ;;  %v768_v38 = vld [vmem:[#allocation2 + $0x49] sm:$0xff] }
 0x12d   : > { %1967 = vmatprep.mubr.f32.mxu0 %v4967_v31 }
 0x12e   : > { %v4387_v19 = vpop.f32.mrb[6].mxu1 }
 0x12f   : > { %2780 = vmatmul.mubr.f32.vlgmr.msra.gmra.mrb[112].mxu1 %v831_v26  ;;  %v1416_v28 = vpop.f32.mrb[7].mxu1 }
 0x130   : > { %1968 = vmatmul.mubr.f32.gmra.mrb[48].mxu0 %v3286_v1  ;;  %2782 = vmatprep.mubr.f32.mxu1 %v832_v59  ;;  %v704_v59 = vld [vmem:[#allocation2 + $0x48] sm:$0xff]  ;;  %v769_v28 = vld [vmem:[#allocation2 + $0x51] sm:$0xff] }
 0x131   : > { %1972 = vmatprep.mubr.f32.mxu0 %v4968_v32 }
 0x132   : > { %v4390_v51 = vpop.f32.mrb[8].mxu1 }
 0x133   : > { %2783 = vmatmul.mubr.f32.gmra.mrb[114].mxu1 %v833_v15  ;;  %v1421_v35 = vpop.f32.mrb[9].mxu1 }
 0x134   : > { %1973 = vmatmul.mubr.f32.gmra.mrb[50].mxu0 %v3287_v36  ;;  %2785 = vmatprep.mubr.f32.mxu1 %v834_v29  ;;  %v770_v29 = vld [vmem:[#allocation2 + $0x61] sm:$0xff]  ;;  %v771_v36 = vld [vmem:[#allocation2 + $0x69] sm:$0xff] }
 0x135   : > { %1977 = vmatprep.mubr.f32.mxu0 %v4969_v45 }
 0x136   : > { %v4393_v11 = vpop.f32.mrb[10].mxu1 }
 0x137   : > { %2786 = vmatmul.mubr.f32.gmra.mrb[116].mxu1 %v835_v41  ;;  %v1426_v22 = vpop.f32.mrb[11].mxu1 }
 0x138   : > { %1978 = vmatmul.mubr.f32.gmra.mrb[52].mxu0 %v3288_v27  ;;  %2788 = vmatprep.mubr.f32.mxu1 %v836_v42  ;;  %v772_v42 = vld [vmem:[#allocation2 + $0x79] sm:$0xff] }
 0x139   : > { %1982 = vmatprep.mubr.f32.mxu0 %v4970_v40  ;;  %v860_v27 = vld [vmem:[#allocation2 + $0x19a] sm:$0xff] }
 0x13a   : > { %v4396_v61 = vpop.f32.mrb[12].mxu1 }
 0x13b   : > { %2789 = vmatmul.mubr.f32.gmra.mrb[118].mxu1 %v837_v47  ;;  %v1431_v56 = vpop.f32.mrb[13].mxu1  ;;  %v773_v47 = vld [vmem:[#allocation2 + $0x81] sm:$0xff] }
 0x13c   : > { %1983 = vmatmul.mubr.f32.gmra.mrb[54].mxu0 %v3289_v53  ;;  %2791 = vmatprep.mubr.f32.mxu1 %v838_v49  ;;  %v861_v56 = vld [vmem:[#allocation2 + $0x1a2] sm:$0xff] }
 0x13d   : > { %1987 = vmatprep.mubr.f32.mxu0 %v4971_v24  ;;  %v709_v53 = vld [vmem:[#allocation2 + $0x80] sm:$0xff] }
 0x13e   : > { %v4399_v52 = vpop.f32.mrb[14].mxu1 }
 0x13f   : > { %2792 = vmatmul.mubr.f32.gmra.mrb[120].mxu1 %v839_v62  ;;  %v1436_v57 = vpop.f32.mrb[15].mxu1 }
 0x140   : > { %1988 = vmatmul.mubr.f32.gmra.mrb[56].mxu0 %v3290_v43  ;;  %2794 = vmatprep.mubr.f32.mxu1 %v840_v63 }
 0x141   : > { %1992 = vmatprep.mubr.f32.mxu0 %v4972_v18 }
 0x142   : > { %v4404_v6 = vpop.f32.mrb[16].mxu1 }
 0x143   : > { %2795 = vmatmul.mubr.f32.gmra.mrb[122].mxu1 %v841_v13  ;;  %v1441_v17 = vpop.f32.mrb[17].mxu1 }
 0x144   : > { %1993 = vmatmul.mubr.f32.gmra.mrb[58].mxu0 %v3291_v37  ;;  %2797 = vmatprep.mubr.f32.mxu1 %v842_v54 }
 0x145   : > { %1997 = vmatprep.mubr.f32.mxu0 %v4402_v25 }
 0x146   : > { %v4409_v30 = vpop.f32.mrb[18].mxu1 }
 0x147   : > { %2798 = vmatmul.mubr.f32.gmra.mrb[124].mxu1 %v843_v5  ;;  %v1446_v3 = vpop.f32.mrb[19].mxu1 }
 0x148   : > { %1998 = vmatmul.mubr.f32.gmra.mrb[60].mxu0 %v3292_v0  ;;  %2800 = vmatprep.mubr.f32.mxu1 %v844_v21 }
 0x149   : > { %2002 = vmatprep.mubr.f32.mxu0 %v4407_v46 }
 0x14a   : > { %v4412_v2 = vpop.f32.mrb[20].mxu1 }
 0x14b   : > { %2801 = vmatmul.mubr.f32.gmra.mrb[126].mxu1 %v845_v34  ;;  %v1451_v48 = vpop.f32.mrb[21].mxu1 }
 0x14c   : > { %2003 = vmatmul.mubr.f32.gmra.mrb[62].mxu0 %v3293_v9  ;;  %2803 = vmatprep.mubr.f32.mxu1 %v846_v50 }
 0x14d   : > { %2072 = vmatprep.mubr.f32.mxu0 %v766_v58 }
 0x14e   : > { %v4414_v12 = vpop.f32.mrb[22].mxu1 }
 0x14f   : > { %2804 = vmatmul.mubr.f32.gmra.mrb[128].mxu1 %v847_v4  ;;  %v1456_v55 = vpop.f32.mrb[23].mxu1 }
 0x150   : > { %2073 = vmatmul.mubr.f32.vlgmr.msra.gmra.mrb[0].mxu0 %v702_v33  ;;  %2806 = vmatprep.mubr.f32.mxu1 %v4960_v16  ;;  %v705_v16 = vld [vmem:[#allocation2 + $0x50] sm:$0xff] }
 0x151   : > { %2077 = vmatprep.mubr.f32.mxu0 %v767_v10 }
 0x152   : > { %v4417_v7 = vpop.f32.mrb[24].mxu1 }
 0x153   : > { %2807 = vmatmul.mubr.f32.gmra.mrb[130].mxu1 %v4963_v8  ;;  %v1461_v26 = vpop.f32.mrb[25].mxu1 }
 0x154   : > { %2078 = vmatmul.mubr.f32.gmra.mrb[2].mxu0 %v703_v60  ;;  %2809 = vmatprep.mubr.f32.mxu1 %v4965_v44  ;;  %v706_v44 = vld [vmem:[#allocation2 + $0x60] sm:$0xff] }
 0x155   : > { %2082 = vmatprep.mubr.f32.mxu0 %v768_v38 }
 0x156   : > { %v4421_v1 = vpop.f32.mrb[26].mxu1 }
 0x157   : > { %2810 = vmatmul.mubr.f32.gmra.mrb[132].mxu1 %v4966_v23  ;;  %v1466_v15 = vpop.f32.mrb[27].mxu1 }
 0x158   : > { %2083 = vmatmul.mubr.f32.gmra.mrb[4].mxu0 %v704_v59  ;;  %2812 = vmatprep.mubr.f32.mxu1 %v4967_v31  ;;  %v707_v31 = vld [vmem:[#allocation2 + $0x68] sm:$0xff] }
 0x159   : > { %2087 = vmatprep.mubr.f32.mxu0 %v769_v28 }
 0x15a   : > { %v4425_v35 = vpop.f32.mrb[28].mxu1 }
 0x15b   : > { %2813 = vmatmul.mubr.f32.gmra.mrb[134].mxu1 %v4968_v32  ;;  %v1471_v8 = vpop.f32.mrb[29].mxu1 }
 0x15c   : > { %2088 = vmatmul.mubr.f32.gmra.mrb[6].mxu0 %v705_v16  ;;  %2815 = vmatprep.mubr.f32.mxu1 %v4969_v45  ;;  %v708_v45 = vld [vmem:[#allocation2 + $0x78] sm:$0xff] }
 0x15d   : > { %2092 = vmatprep.mubr.f32.mxu0 %v770_v29 }
 0x15e   : > { %v4429_v41 = vpop.f32.mrb[30].mxu1 }
 0x15f   : > { %2816 = vmatmul.mubr.f32.gmra.mrb[136].mxu1 %v4970_v40  ;;  %v1476_v23 = vpop.f32.mrb[31].mxu1 }
 0x160   : > { %2093 = vmatmul.mubr.f32.gmra.mrb[8].mxu0 %v706_v44  ;;  %2818 = vmatprep.mubr.f32.mxu1 %v4971_v24 }
 0x161   : > { %2097 = vmatprep.mubr.f32.mxu0 %v771_v36 }
 0x162   : > { %v4433_v22 = vpop.f32.mrb[32].mxu1 }
 0x163   : > { %2819 = vmatmul.mubr.f32.gmra.mrb[138].mxu1 %v4972_v18  ;;  %v1481_v32 = vpop.f32.mrb[33].mxu1 }
 0x164   : > { %2098 = vmatmul.mubr.f32.gmra.mrb[10].mxu0 %v707_v31  ;;  %2821 = vmatprep.mubr.f32.mxu1 %v4402_v25 }
 0x165   : > { %2102 = vmatprep.mubr.f32.mxu0 %v772_v42 }
 0x166   : > { %v4437_v40 = vpop.f32.mrb[34].mxu1 }
 0x167   : > { %2822 = vmatmul.mubr.f32.gmra.mrb[140].mxu1 %v4407_v46  ;;  %v1486_v49 = vpop.f32.mrb[35].mxu1 }
 0x168   : > { %2103 = vmatmul.mubr.f32.gmra.mrb[12].mxu0 %v708_v45  ;;  %2824 = vmatprep.mubr.f32.mxu1 %v860_v27 }
 0x169   : > { %2107 = vmatprep.mubr.f32.mxu0 %v773_v47 }
 0x16a   : > { %v4440_v62 = vpop.f32.mrb[36].mxu1 }
 0x16b   : > { %2825 = vmatmul.mubr.f32.gmra.mrb[142].mxu1 %v861_v56  ;;  %v1491_v24 = vpop.f32.mrb[37].mxu1  ;;  %v4471_v56 = vld [vmem:[%s4858_s2] ss:$0 sm:$0xff] }
 0x16c   : > { %2108 = vmatmul.mubr.f32.gmra.mrb[14].mxu0 %v709_v53  ;;  %v1440_v53 = vadd.f32 %v4471_v56, %v4404_v6 }
 0x16e   : > { %v4442_v63 = vpop.f32.mrb[38].mxu1 }
 0x16f   : > { %v1496_v57 = vpop.f32.mrb[39].mxu1 }
 0x172   : > { %v4444_v43 = vpop.f32.mrb[40].mxu1 }
 0x173   : > { %v1501_v13 = vpop.f32.mrb[41].mxu1 }
 0x176   : > { %v4446_v18 = vpop.f32.mrb[42].mxu1 }
 0x177   : > { %v1506_v54 = vpop.f32.mrb[43].mxu1 }
 0x17a   : > { %v4448_v25 = vpop.f32.mrb[44].mxu1 }
 0x17b   : > { %v1511_v17 = vpop.f32.mrb[45].mxu1 }
 0x17e   : > { %v4450_v37 = vpop.f32.mrb[46].mxu1 }
 0x17f   : > { %v1516_v5 = vpop.f32.mrb[47].mxu1 }
 0x180   : > { %v1445_v5 = vadd.f32 %v4471_v56, %v4409_v30  ;;  %v1455_v30 = vadd.f32 %v4471_v56, %v4414_v12  ;;  %v1465_v12 = vadd.f32 %v4471_v56, %v4421_v1  ;;  %v1475_v1 = vadd.f32 %v4471_v56, %v4429_v41 }
 0x181   : > { %v1485_v41 = vadd.f32 %v4471_v56, %v4437_v40  ;;  %v1495_v40 = vadd.f32 %v4471_v56, %v4442_v63  ;;  %v1505_v63 = vadd.f32 %v4471_v56, %v4446_v18 }
 0x182   : > { %v4452_v21 = vpop.f32.mrb[48].mxu1 }
 0x183   : > { %v1521_v46 = vpop.f32.mrb[49].mxu1 }
 0x186   : > { %v4454_v3 = vpop.f32.mrb[50].mxu1 }
 0x187   : > { %v1526_v0 = vpop.f32.mrb[51].mxu1 }
 0x18a   : > { %v4456_v34 = vpop.f32.mrb[52].mxu1 }
 0x18b   : > { %v1531_v50 = vpop.f32.mrb[53].mxu1 }
 0x18e   : > { %v4458_v58 = vpop.f32.mrb[54].mxu1 }
 0x18f   : > { %v1536_v48 = vpop.f32.mrb[55].mxu1 }
 0x192   : > { %v4460_v9 = vpop.f32.mrb[56].mxu1 }
 0x193   : > { %v1541_v4 = vpop.f32.mrb[57].mxu1 }
 0x196   : > { %v4462_v33 = vpop.f32.mrb[58].mxu1 }
 0x197   : > { %v1546_v10 = vpop.f32.mrb[59].mxu1 }
 0x19a   : > { %v4464_v55 = vpop.f32.mrb[60].mxu1 }
 0x19b   : > { %v1551_v60 = vpop.f32.mrb[61].mxu1 }
 0x19c   : > { %v1450_v60 = vadd.f32 %v4471_v56, %v4412_v2  ;;  %v1460_v2 = vadd.f32 %v4471_v56, %v4417_v7  ;;  %v1470_v7 = vadd.f32 %v4471_v56, %v4425_v35  ;;  %v1480_v35 = vadd.f32 %v4471_v56, %v4433_v22 }
 0x19d   : > { %v1490_v22 = vadd.f32 %v4471_v56, %v4440_v62  ;;  %v1500_v62 = vadd.f32 %v4471_v56, %v4444_v43  ;;  %v1510_v43 = vadd.f32 %v4471_v56, %v4448_v25 }
 0x19e   : > { %v4466_v38 = vpop.f32.mrb[62].mxu1 }
 0x19f   : > { %v1556_v26 = vpop.f32.mrb[63].mxu1 }
 0x1a2   : > { %v2114_v59 = vpop.f32.mrb[64].mxu1 }
 0x1a3   : > { %v2116_v28 = vpop.f32.mrb[65].mxu1 }
 0x1a6   : > { %v2119_v15 = vpop.f32.mrb[66].mxu1 }
 0x1a7   : > { %v2121_v16 = vpop.f32.mrb[67].mxu1 }
 0x1aa   : > { %v2124_v29 = vpop.f32.mrb[68].mxu1 }
 0x1ab   : > { %v2126_v8 = vpop.f32.mrb[69].mxu1 }
 0x1ae   : > { %v2129_v44 = vpop.f32.mrb[70].mxu1 }
 0x1af   : > { %v2131_v36 = vpop.f32.mrb[71].mxu1 }
 0x1b2   : > { %v2134_v23 = vpop.f32.mrb[72].mxu1 }
 0x1b3   : > { %v2136_v31 = vpop.f32.mrb[73].mxu1 }
 0x1b6   : > { %v2139_v42 = vpop.f32.mrb[74].mxu1 }
 0x1b7   : > { %v2141_v32 = vpop.f32.mrb[75].mxu1 }
 0x1ba   : > { %v2144_v45 = vpop.f32.mrb[76].mxu1 }
 0x1bb   : > { %v2146_v27 = vpop.f32.mrb[77].mxu1 }
 0x1be   : > { %v2149_v47 = vpop.f32.mrb[78].mxu1 }
 0x1bf   : > { %v2151_v49 = vpop.f32.mrb[79].mxu1 }
 0x1c2   : > { %v2154_v24 = vpop.f32.mrb[80].mxu1 }
 0x1c3   : > { %v1889_v57 = vpop.f32.mrb[16].mxu0  ;;  %v2156_v13 = vpop.f32.mrb[81].mxu1 }
 0x1c4   : > { %v3100_v54 = vadd.f32 %v1889_v57, %v1440_v53  ;;  %v1891_v17 = vpop.f32.mrb[17].mxu0 }
 0x1c6   : > { %v4477_v46 = vadd.f32 %v3100_v54, %v2114_v59  ;;  %v2159_v0 = vpop.f32.mrb[82].mxu1 }
 0x1c7   : > { %v1894_v50 = vpop.f32.mrb[18].mxu0  ;;  %v2161_v48 = vpop.f32.mrb[83].mxu1 }
 0x1c8   : > { %v3103_v4 = vadd.f32 %v1894_v50, %v1445_v5  ;;  %v1896_v10 = vpop.f32.mrb[19].mxu0 }
 0x1ca   : > { %v4481_v26 = vadd.f32 %v3103_v4, %v2119_v15  ;;  %v2164_v6 = vpop.f32.mrb[84].mxu1 }
 0x1cb   : > { %v1899_v28 = vpop.f32.mrb[20].mxu0  ;;  %v2166_v16 = vpop.f32.mrb[85].mxu1 }
 0x1cc   : > { %v3106_v8 = vadd.f32 %v1899_v28, %v1450_v60  ;;  %v1901_v36 = vpop.f32.mrb[21].mxu0 }
 0x1ce   : > { %v4485_v59 = vadd.f32 %v3106_v8, %v2124_v29  ;;  %v2169_v31 = vpop.f32.mrb[86].mxu1 }
 0x1cf   : > { %v1904_v32 = vpop.f32.mrb[22].mxu0  ;;  %v2171_v27 = vpop.f32.mrb[87].mxu1 }
 0x1d0   : > { %v3109_v49 = vadd.f32 %v1904_v32, %v1455_v30  ;;  %v1906_v53 = vpop.f32.mrb[23].mxu0 }
 0x1d2   : > { %v4489_v15 = vadd.f32 %v3109_v49, %v2129_v44  ;;  %v2174_v57 = vpop.f32.mrb[88].mxu1 }
 0x1d3   : > { %v1909_v13 = vpop.f32.mrb[24].mxu0  ;;  %v2176_v54 = vpop.f32.mrb[89].mxu1 }
 0x1d4   : > { %v3112_v17 = vadd.f32 %v1909_v13, %v1460_v2  ;;  %v1911_v5 = vpop.f32.mrb[25].mxu0 }
 0x1d6   : > { %v4493_v29 = vadd.f32 %v3112_v17, %v2134_v23  ;;  %v4495_v50 = vpop.f32.mrb[90].mxu1 }
 0x1d7   : > { %v1914_v48 = vpop.f32.mrb[26].mxu0  ;;  %v2181_v4 = vpop.f32.mrb[91].mxu1 }
 0x1d8   : > { %v3115_v10 = vadd.f32 %v1914_v48, %v1465_v12  ;;  %v1916_v60 = vpop.f32.mrb[27].mxu0 }
 0x1da   : > { %v4499_v44 = vadd.f32 %v3115_v10, %v2139_v42  ;;  %v4501_v28 = vpop.f32.mrb[92].mxu1 }
 0x1db   : > { %v1919_v16 = vpop.f32.mrb[28].mxu0  ;;  %v2186_v8 = vpop.f32.mrb[93].mxu1 }
 0x1dc   : > { %v3118_v36 = vadd.f32 %v1919_v16, %v1470_v7  ;;  %v1921_v30 = vpop.f32.mrb[29].mxu0 }
 0x1de   : > { %v4505_v23 = vadd.f32 %v3118_v36, %v2144_v45  ;;  %v4507_v32 = vpop.f32.mrb[94].mxu1 }
 0x1df   : > { %v1924_v27 = vpop.f32.mrb[30].mxu0  ;;  %v2191_v49 = vpop.f32.mrb[95].mxu1 }
 0x1e0   : > { %v3121_v53 = vadd.f32 %v1924_v27, %v1475_v1  ;;  %v1926_v2 = vpop.f32.mrb[31].mxu0 }
 0x1e2   : > { %v4511_v42 = vadd.f32 %v3121_v53, %v2149_v47  ;;  %v4513_v13 = vpop.f32.mrb[96].mxu1 }
 0x1e3   : > { %v1929_v54 = vpop.f32.mrb[32].mxu0  ;;  %v2196_v17 = vpop.f32.mrb[97].mxu1 }
 0x1e4   : > { %v3124_v5 = vadd.f32 %v1929_v54, %v1480_v35  ;;  %v1931_v12 = vpop.f32.mrb[33].mxu0 }
 0x1e6   : > { %v4517_v45 = vadd.f32 %v3124_v5, %v2154_v24  ;;  %v4519_v48 = vpop.f32.mrb[98].mxu1 }
 0x1e7   : > { %v1934_v4 = vpop.f32.mrb[34].mxu0  ;;  %v2201_v10 = vpop.f32.mrb[99].mxu1 }
 0x1e8   : > { %v3127_v60 = vadd.f32 %v1934_v4, %v1485_v41  ;;  %v1936_v7 = vpop.f32.mrb[35].mxu0 }
 0x1ea   : > { %v4523_v47 = vadd.f32 %v3127_v60, %v2159_v0  ;;  %v4525_v16 = vpop.f32.mrb[100].mxu1 }
 0x1eb   : > { %v1939_v8 = vpop.f32.mrb[36].mxu0  ;;  %v2206_v36 = vpop.f32.mrb[101].mxu1 }
 0x1ec   : > { %v3130_v30 = vadd.f32 %v1939_v8, %v1490_v22  ;;  %v1941_v1 = vpop.f32.mrb[37].mxu0 }
 0x1ee   : > { %v4529_v24 = vadd.f32 %v3130_v30, %v2164_v6  ;;  %v4531_v27 = vpop.f32.mrb[102].mxu1 }
 0x1ef   : > { %v1944_v49 = vpop.f32.mrb[38].mxu0  ;;  %v2211_v53 = vpop.f32.mrb[103].mxu1 }
 0x1f0   : > { %v3133_v2 = vadd.f32 %v1944_v49, %v1495_v40  ;;  %v1946_v35 = vpop.f32.mrb[39].mxu0 }
 0x1f2   : > { %v4535_v0 = vadd.f32 %v3133_v2, %v2169_v31  ;;  %v4537_v54 = vpop.f32.mrb[104].mxu1 }
 0x1f3   : > { %v1949_v17 = vpop.f32.mrb[40].mxu0  ;;  %v2216_v5 = vpop.f32.mrb[105].mxu1 }
 0x1f4   : > { %v3136_v12 = vadd.f32 %v1949_v17, %v1500_v62  ;;  %v1951_v41 = vpop.f32.mrb[41].mxu0 }
 0x1f6   : > { %v4541_v6 = vadd.f32 %v3136_v12, %v2174_v57  ;;  %v4543_v4 = vpop.f32.mrb[106].mxu1  ;;  %v1515_v57 = vadd.f32 %v4471_v56, %v4450_v37 }
 0x1f7   : > { %v1954_v10 = vpop.f32.mrb[42].mxu0  ;;  %v2221_v60 = vpop.f32.mrb[107].mxu1 }
 0x1f8   : > { %v3139_v7 = vadd.f32 %v1954_v10, %v1505_v63  ;;  %v1956_v22 = vpop.f32.mrb[43].mxu0 }
 0x1fa   : > { %v4547_v31 = vpop.f32.mrb[108].mxu1  ;;  %v4550_v8 = vadd.f32 %v3139_v7, %v4495_v50  ;;  %v1520_v50 = vadd.f32 %v4471_v56, %v4452_v21 }
 0x1fb   : > { %v1959_v36 = vpop.f32.mrb[44].mxu0  ;;  %v2226_v30 = vpop.f32.mrb[109].mxu1 }
 0x1fc   : > { %v3142_v1 = vadd.f32 %v1959_v36, %v1510_v43  ;;  %v1961_v18 = vpop.f32.mrb[45].mxu0 }
 0x1fd   : > { %v1535_v18 = vadd.f32 %v4471_v56, %v4458_v58 }
 0x1fe   : > { %v4554_v40 = vpop.f32.mrb[110].mxu1  ;;  %v4557_v49 = vadd.f32 %v3142_v1, %v4501_v28  ;;  %v1525_v28 = vadd.f32 %v4471_v56, %v4454_v3 }
 0x1ff   : > { %v1964_v53 = vpop.f32.mrb[46].mxu0  ;;  %v2231_v2 = vpop.f32.mrb[111].mxu1 }
 0x200   : > { %v3145_v25 = vadd.f32 %v1964_v53, %v1515_v57  ;;  %v1966_v35 = vpop.f32.mrb[47].mxu0 }
 0x202   : > { %v4561_v62 = vpop.f32.mrb[112].mxu1  ;;  %v4564_v17 = vadd.f32 %v3145_v25, %v4507_v32  ;;  %v1530_v32 = vadd.f32 %v4471_v56, %v4456_v34 }
 0x203   : > { %v1969_v5 = vpop.f32.mrb[48].mxu0  ;;  %v4566_v12 = vpop.f32.mrb[113].mxu1 }
 0x204   : > { %v3148_v37 = vadd.f32 %v1969_v5, %v1520_v50  ;;  %v1971_v41 = vpop.f32.mrb[49].mxu0 }
 0x206   : > { %v4570_v63 = vpop.f32.mrb[114].mxu1  ;;  %v4573_v10 = vadd.f32 %v3148_v37, %v4513_v13 }
 0x207   : > { %v1974_v60 = vpop.f32.mrb[50].mxu0  ;;  %v4575_v21 = vpop.f32.mrb[115].mxu1 }
 0x208   : > { %v3151_v7 = vadd.f32 %v1974_v60, %v1525_v28  ;;  %v1976_v22 = vpop.f32.mrb[51].mxu0  ;;  %v1545_v60 = vadd.f32 %v4471_v56, %v4462_v33  ;;  %v1550_v33 = vadd.f32 %v4471_v56, %v4464_v55  ;;  %v1555_v55 = vadd.f32 %v4471_v56, %v4466_v38 }
 0x209   : > { %v1400_v38 = vadd.f32 %v4471_v56, %v4377_v39  ;;  %v1405_v39 = vadd.f32 %v4471_v56, %v4381_v14  ;;  %v1410_v14 = vadd.f32 %v4471_v56, %v4384_v20 }
 0x20a   : > { %v4579_v43 = vpop.f32.mrb[116].mxu1  ;;  %v4582_v36 = vadd.f32 %v3151_v7, %v4519_v48  ;;  %v1540_v48 = vadd.f32 %v4471_v56, %v4460_v9 }
 0x20b   : > { %v1979_v3 = vpop.f32.mrb[52].mxu0  ;;  %v4584_v30 = vpop.f32.mrb[117].mxu1 }
 0x20c   : > { %v3154_v1 = vadd.f32 %v1979_v3, %v1530_v32  ;;  %v1981_v13 = vpop.f32.mrb[53].mxu0 }
 0x20e   : > { %v4588_v57 = vpop.f32.mrb[118].mxu1  ;;  %v4591_v53 = vadd.f32 %v3154_v1, %v4525_v16 }
 0x20f   : > { %v1984_v2 = vpop.f32.mrb[54].mxu0  ;;  %v4593_v34 = vpop.f32.mrb[119].mxu1 }
 0x210   : > { %v3157_v25 = vadd.f32 %v1984_v2, %v1535_v18  ;;  %v1986_v35 = vpop.f32.mrb[55].mxu0 }
 0x212   : > { %v2793_v58 = vpop.f32.mrb[120].mxu1  ;;  %v4605_v16 = vadd.f32 %v3157_v25, %v4531_v27 }
 0x213   : > { %v1989_v50 = vpop.f32.mrb[56].mxu0  ;;  %v4608_v5 = vadd.f32 %v4481_v26, %v2793_v58  ;;  %v2339_v37 = vpop.f32.mrb[121].mxu1 }
 0x214   : > { %v3160_v41 = vadd.f32 %v1989_v50, %v1540_v48  ;;  %v1991_v9 = vpop.f32.mrb[57].mxu0  ;;  %v4611_v28 = vadd.f32 %v4477_v46, %v2339_v37 }
 0x215   : > { %2467 = vst [vmem:[%s4602_s14 + $0x48] sm:$0xff] %v4608_v5 }
 0x216   : > { %2466 = vst [vmem:[%s4602_s14 + $0x40] sm:$0xff] %v4611_v28  ;;  %v2796_v27 = vpop.f32.mrb[122].mxu1  ;;  %v4620_v7 = vadd.f32 %v3160_v41, %v4537_v54 }
 0x217   : > { %v1994_v26 = vpop.f32.mrb[58].mxu0  ;;  %v4623_v22 = vadd.f32 %v4489_v15, %v2796_v27  ;;  %v2349_v32 = vpop.f32.mrb[123].mxu1 }
 0x218   : > { %v3163_v3 = vadd.f32 %v1994_v26, %v1545_v60  ;;  %v1996_v46 = vpop.f32.mrb[59].mxu0  ;;  %v4626_v1 = vadd.f32 %v4485_v59, %v2349_v32 }
 0x219   : > { %2469 = vst [vmem:[%s4602_s14 + $0x58] sm:$0xff] %v4623_v22 }
 0x21a   : > { %2468 = vst [vmem:[%s4602_s14 + $0x50] sm:$0xff] %v4626_v1  ;;  %v2799_v54 = vpop.f32.mrb[124].mxu1  ;;  %v4635_v13 = vadd.f32 %v3163_v3, %v4543_v4 }
 0x21b   : > { %v1999_v15 = vpop.f32.mrb[60].mxu0  ;;  %v4638_v18 = vadd.f32 %v4499_v44, %v2799_v54  ;;  %v2359_v2 = vpop.f32.mrb[125].mxu1 }
 0x21c   : > { %v3166_v25 = vadd.f32 %v1999_v15, %v1550_v33  ;;  %v2001_v59 = vpop.f32.mrb[61].mxu0  ;;  %v4641_v35 = vadd.f32 %v4493_v29, %v2359_v2 }
 0x21d   : > { %2471 = vst [vmem:[%s4602_s14 + $0x68] sm:$0xff] %v4638_v18 }
 0x21e   : > { %2470 = vst [vmem:[%s4602_s14 + $0x60] sm:$0xff] %v4641_v35  ;;  %v2802_v4 = vpop.f32.mrb[126].mxu1  ;;  %v4650_v48 = vadd.f32 %v3166_v25, %v4547_v31 }
 0x21f   : > { %v2004_v44 = vpop.f32.mrb[62].mxu0  ;;  %v4653_v58 = vadd.f32 %v4511_v42, %v2802_v4  ;;  %v2369_v50 = vpop.f32.mrb[127].mxu1 }
 0x220   : > { %v3169_v37 = vadd.f32 %v2004_v44, %v1555_v55  ;;  %v2006_v29 = vpop.f32.mrb[63].mxu0  ;;  %v4656_v41 = vadd.f32 %v4505_v23, %v2369_v50 }
 0x221   : > { %2473 = vst [vmem:[%s4602_s14 + $0x78] sm:$0xff] %v4653_v58 }
 0x222   : > { %2472 = vst [vmem:[%s4602_s14 + $0x70] sm:$0xff] %v4656_v41  ;;  %v2805_v31 = vpop.f32.mrb[128].mxu1  ;;  %v4665_v42 = vadd.f32 %v3169_v37, %v4554_v40 }
 0x223   : > { %v2074_v9 = vpop.f32.mrb[0].mxu0  ;;  %v4668_v60 = vadd.f32 %v4523_v47, %v2805_v31  ;;  %v2379_v27 = vpop.f32.mrb[129].mxu1 }
 0x224   : > { %v3084_v23 = vadd.f32 %v2074_v9, %v1400_v38  ;;  %v2076_v26 = vpop.f32.mrb[1].mxu0  ;;  %v4671_v32 = vadd.f32 %v4517_v45, %v2379_v27 }
 0x225   : > { %2475 = vst [vmem:[%s4602_s14 + $0x88] sm:$0xff] %v4668_v60 }
 0x226   : > { %v2300_v40 = vadd.f32 %v3084_v23, %v4566_v12  ;;  %2474 = vst [vmem:[%s4602_s14 + $0x80] sm:$0xff] %v4671_v32  ;;  %v2808_v3 = vpop.f32.mrb[130].mxu1 }
 0x227   : > { %v2079_v47 = vpop.f32.mrb[2].mxu0  ;;  %v4681_v46 = vadd.f32 %v4535_v0, %v2808_v3  ;;  %v2389_v33 = vpop.f32.mrb[131].mxu1 }
 0x228   : > { %2458 = vst [vmem:[%s4602_s14] sm:$0xff] %v2300_v40  ;;  %v3086_v45 = vadd.f32 %v2079_v47, %v1405_v39  ;;  %v2081_v54 = vpop.f32.mrb[3].mxu0  ;;  %v4685_v15 = vadd.f32 %v4529_v24, %v2389_v33  ;;  %v2528_v2 = vmul.f32 %v2300_v40, %v2300_v40 }
 0x229   : > { %2477 = vst [vmem:[%s4602_s14 + $0x98] sm:$0xff] %v4681_v46 }
 0x22a   : > { %v2305_v12 = vadd.f32 %v3086_v45, %v4561_v62  ;;  %2476 = vst [vmem:[%s4602_s14 + $0x90] sm:$0xff] %v4685_v15  ;;  %v2811_v0 = vpop.f32.mrb[132].mxu1  ;;  %v1415_v62 = vadd.f32 %v4471_v56, %v4387_v19 }
 0x22b   : > { %v2084_v25 = vpop.f32.mrb[4].mxu0  ;;  %v4695_v59 = vadd.f32 %v4550_v8, %v2811_v0  ;;  %v2399_v55 = vpop.f32.mrb[133].mxu1 }
 0x22c   : > { %2459 = vst [vmem:[%s4602_s14 + $0x8] sm:$0xff] %v2305_v12  ;;  %v2490_v24 = vadd.f32 %v2305_v12, %v2300_v40  ;;  %v2529_v4 = vmul.f32 %v2305_v12, %v2305_v12  ;;  %v3088_v44 = vadd.f32 %v2084_v25, %v1410_v14  ;;  %v2086_v50 = vpop.f32.mrb[5].mxu0  ;;  %v4699_v20 = vadd.f32 %v4541_v6, %v2399_v55 }
 0x22d   : > { %2479 = vst [vmem:[%s4602_s14 + $0xa8] sm:$0xff] %v4695_v59 }
 0x22e   : > { %v2560_v37 = vadd.f32 %v2529_v4, %v2528_v2  ;;  %v2310_v8 = vadd.f32 %v3088_v44, %v4575_v21  ;;  %2478 = vst [vmem:[%s4602_s14 + $0xa0] sm:$0xff] %v4699_v20  ;;  %v2814_v29 = vpop.f32.mrb[134].mxu1  ;;  %v1420_v21 = vadd.f32 %v4471_v56, %v4390_v51 }
 0x22f   : > { %v2089_v38 = vpop.f32.mrb[6].mxu0  ;;  %v4709_v31 = vadd.f32 %v4564_v17, %v2814_v29  ;;  %v2409_v9 = vpop.f32.mrb[135].mxu1 }
 0x230   : > { %2460 = vst [vmem:[%s4602_s14 + $0x10] sm:$0xff] %v2310_v8  ;;  %v2491_v6 = vadd.f32 %v2490_v24, %v2310_v8  ;;  %v2530_v27 = vmul.f32 %v2310_v8, %v2310_v8  ;;  %v3090_v23 = vadd.f32 %v2089_v38, %v1415_v62  ;;  %v2091_v26 = vpop.f32.mrb[7].mxu0  ;;  %v4713_v19 = vadd.f32 %v4557_v49, %v2409_v9 }
 0x231   : > { %2481 = vst [vmem:[%s4602_s14 + $0xb8] sm:$0xff] %v4709_v31 }
 0x232   : > { %v2561_v39 = vadd.f32 %v2560_v37, %v2530_v27  ;;  %v2315_v17 = vadd.f32 %v3090_v23, %v4570_v63  ;;  %2480 = vst [vmem:[%s4602_s14 + $0xb0] sm:$0xff] %v4713_v19  ;;  %v2817_v40 = vpop.f32.mrb[136].mxu1  ;;  %v1425_v63 = vadd.f32 %v4471_v56, %v4393_v11 }
 0x233   : > { %v2094_v3 = vpop.f32.mrb[8].mxu0  ;;  %v4723_v47 = vadd.f32 %v4582_v36, %v2817_v40  ;;  %v2419_v33 = vpop.f32.mrb[137].mxu1 }
 0x234   : > { %2461 = vst [vmem:[%s4602_s14 + $0x18] sm:$0xff] %v2315_v17  ;;  %v2492_v49 = vadd.f32 %v2491_v6, %v2315_v17  ;;  %v2531_v45 = vmul.f32 %v2315_v17, %v2315_v17  ;;  %v3092_v54 = vadd.f32 %v2094_v3, %v1420_v21  ;;  %v2096_v14 = vpop.f32.mrb[9].mxu0  ;;  %v4727_v51 = vadd.f32 %v4573_v10, %v2419_v33 }
 0x235   : > { %2483 = vst [vmem:[%s4602_s14 + $0xc8] sm:$0xff] %v4723_v47 }
 0x236   : > { %v2562_v12 = vadd.f32 %v2561_v39, %v2531_v45  ;;  %v2320_v36 = vadd.f32 %v3092_v54, %v4584_v30  ;;  %2482 = vst [vmem:[%s4602_s14 + $0xc0] sm:$0xff] %v4727_v51  ;;  %v2820_v0 = vpop.f32.mrb[138].mxu1  ;;  %v1430_v30 = vadd.f32 %v4471_v56, %v4396_v61 }
 0x237   : > { %v2099_v2 = vpop.f32.mrb[10].mxu0  ;;  %v4737_v25 = vadd.f32 %v4605_v16, %v2820_v0  ;;  %v2429_v55 = vpop.f32.mrb[139].mxu1  ;;  %v2539_v0 = vmul.f32 %v4623_v22, %v4623_v22 }
 0x238   : > { %2462 = vst [vmem:[%s4602_s14 + $0x20] sm:$0xff] %v2320_v36  ;;  %v2493_v10 = vadd.f32 %v2492_v49, %v2320_v36  ;;  %v2532_v24 = vmul.f32 %v2320_v36, %v2320_v36  ;;  %v3094_v4 = vadd.f32 %v2099_v2, %v1425_v63  ;;  %v2101_v44 = vpop.f32.mrb[11].mxu0  ;;  %v4741_v11 = vadd.f32 %v4591_v53, %v2429_v55 }
 0x239   : > { %2485 = vst [vmem:[%s4602_s14 + $0xd8] sm:$0xff] %v4737_v25  ;;  %v2536_v49 = vmul.f32 %v4611_v28, %v4611_v28 }
 0x23a   : > { %v2563_v50 = vadd.f32 %v2562_v12, %v2532_v24  ;;  %v2325_v16 = vadd.f32 %v3094_v4, %v4579_v43  ;;  %2484 = vst [vmem:[%s4602_s14 + $0xd0] sm:$0xff] %v4741_v11  ;;  %v2823_v62 = vpop.f32.mrb[140].mxu1  ;;  %v1435_v43 = vadd.f32 %v4471_v56, %v4399_v52 }
 0x23b   : > { %v2104_v37 = vpop.f32.mrb[12].mxu0  ;;  %v4751_v8 = vadd.f32 %v4635_v13, %v2823_v62  ;;  %v2439_v29 = vpop.f32.mrb[141].mxu1 }
 0x23c   : > { %2463 = vst [vmem:[%s4602_s14 + $0x28] sm:$0xff] %v2325_v16  ;;  %v2494_v53 = vadd.f32 %v2493_v10, %v2325_v16  ;;  %v2533_v38 = vmul.f32 %v2325_v16, %v2325_v16  ;;  %v3096_v9 = vadd.f32 %v2104_v37, %v1430_v30  ;;  %v2106_v6 = vpop.f32.mrb[13].mxu0  ;;  %v4755_v61 = vadd.f32 %v4620_v7, %v2439_v29 }
 0x23d   : > { %2487 = vst [vmem:[%s4602_s14 + $0xe8] sm:$0xff] %v4751_v8 }
 0x23e   : > { %v2564_v27 = vadd.f32 %v2563_v50, %v2533_v38  ;;  %v2330_v13 = vadd.f32 %v3096_v9, %v4593_v34  ;;  %2486 = vst [vmem:[%s4602_s14 + $0xe0] sm:$0xff] %v4755_v61  ;;  %v2826_v23 = vpop.f32.mrb[142].mxu1 }
 0x23f   : > { %v2109_v26 = vpop.f32.mrb[14].mxu0  ;;  %v4765_v21 = vadd.f32 %v4665_v42, %v2826_v23  ;;  %v2449_v7 = vpop.f32.mrb[143].mxu1 }
 0x240   : > { %2464 = vst [vmem:[%s4602_s14 + $0x30] sm:$0xff] %v2330_v13  ;;  %v2495_v39 = vadd.f32 %v2494_v53, %v2330_v13  ;;  %v2534_v17 = vmul.f32 %v2330_v13, %v2330_v13  ;;  %v3098_v40 = vadd.f32 %v2109_v26, %v1435_v43  ;;  %v2111_v3 = vpop.f32.mrb[15].mxu0  ;;  %v4769_v52 = vadd.f32 %v4650_v48, %v2449_v7 }
 0x241   : > { %2489 = vst [vmem:[%s4602_s14 + $0xf8] sm:$0xff] %v4765_v21  ;;  %v2537_v48 = vmul.f32 %v4608_v5, %v4608_v5 }
 0x242   : > { %v2565_v56 = vadd.f32 %v2564_v27, %v2534_v17  ;;  %v2335_v34 = vadd.f32 %v3098_v40, %v4588_v57  ;;  %2488 = vst [vmem:[%s4602_s14 + $0xf0] sm:$0xff] %v4769_v52  ;;  %v2538_v57 = vmul.f32 %v4626_v1, %v4626_v1 }
 0x244   : > { %2465 = vst [vmem:[%s4602_s14 + $0x38] sm:$0xff] %v2335_v34  ;;  %v2496_v33 = vadd.f32 %v2495_v39, %v2335_v34  ;;  %v2535_v42 = vmul.f32 %v2335_v34, %v2335_v34 }
 0x246   : > { %v2497_v45 = vadd.f32 %v2496_v33, %v4611_v28  ;;  %v2566_v54 = vadd.f32 %v2565_v56, %v2535_v42  ;;  %v2540_v28 = vmul.f32 %v4641_v35, %v4641_v35 }
 0x248   : > { %v2498_v14 = vadd.f32 %v2497_v45, %v4608_v5  ;;  %v2567_v63 = vadd.f32 %v2566_v54, %v2536_v49  ;;  %v2541_v5 = vmul.f32 %v4638_v18, %v4638_v18 }
 0x24a   : > { %v2499_v12 = vadd.f32 %v2498_v14, %v4626_v1  ;;  %v2568_v36 = vadd.f32 %v2567_v63, %v2537_v48  ;;  %v2542_v1 = vmul.f32 %v4656_v41, %v4656_v41 }
 0x24c   : > { %v2500_v2 = vadd.f32 %v2499_v12, %v4623_v22  ;;  %v2569_v55 = vadd.f32 %v2568_v36, %v2538_v57  ;;  %v2543_v22 = vmul.f32 %v4653_v58, %v4653_v58  ;;  %v2558_v36 = vmul.f32 %v4769_v52, %v4769_v52 }
 0x24e   : > { %v2501_v10 = vadd.f32 %v2500_v2, %v4641_v35  ;;  %v2570_v24 = vadd.f32 %v2569_v55, %v2539_v0  ;;  %v2544_v35 = vmul.f32 %v4671_v32, %v4671_v32  ;;  %v2559_v0 = vmul.f32 %v4765_v21, %v4765_v21 }
 0x250   : > { %v2502_v4 = vadd.f32 %v2501_v10, %v4638_v18  ;;  %v2571_v44 = vadd.f32 %v2570_v24, %v2540_v28  ;;  %v2545_v18 = vmul.f32 %v4668_v60, %v4668_v60 }
 0x252   : > { %v2503_v30 = vadd.f32 %v2502_v4, %v4656_v41  ;;  %v2572_v50 = vadd.f32 %v2571_v44, %v2541_v5  ;;  %v2546_v41 = vmul.f32 %v4685_v15, %v4685_v15 }
 0x254   : > { %v2504_v16 = vadd.f32 %v2503_v30, %v4653_v58  ;;  %v2573_v62 = vadd.f32 %v2572_v50, %v2542_v1  ;;  %v2547_v58 = vmul.f32 %v4681_v46, %v4681_v46 }
 0x256   : > { %v2505_v37 = vadd.f32 %v2504_v16, %v4671_v32  ;;  %v2574_v29 = vadd.f32 %v2573_v62, %v2543_v22  ;;  %v2548_v32 = vmul.f32 %v4699_v20, %v4699_v20 }
 0x258   : > { %v2506_v53 = vadd.f32 %v2505_v37, %v4668_v60  ;;  %v2575_v38 = vadd.f32 %v2574_v29, %v2544_v35  ;;  %v2549_v60 = vmul.f32 %v4695_v59, %v4695_v59 }
 0x25a   : > { %v2576_v9 = vadd.f32 %v2575_v38, %v2545_v18  ;;  %v2507_v6 = vadd.f32 %v2506_v53, %v4685_v15  ;;  %v2550_v15 = vmul.f32 %v4713_v19, %v4713_v19 }
 0x25c   : > { %v2508_v43 = vadd.f32 %v2507_v6, %v4681_v46  ;;  %v2577_v27 = vadd.f32 %v2576_v9, %v2546_v41  ;;  %v2551_v46 = vmul.f32 %v4709_v31, %v4709_v31 }
 0x25e   : > { %v2509_v13 = vadd.f32 %v2508_v43, %v4699_v20  ;;  %v2578_v23 = vadd.f32 %v2577_v27, %v2547_v58  ;;  %v2552_v20 = vmul.f32 %v4727_v51, %v4727_v51 }
 0x260   : > { %v2510_v26 = vadd.f32 %v2509_v13, %v4695_v59  ;;  %v2579_v7 = vadd.f32 %v2578_v23, %v2548_v32  ;;  %v2553_v59 = vmul.f32 %v4723_v47, %v4723_v47 }
 0x262   : > { %v2511_v39 = vadd.f32 %v2510_v26, %v4713_v19  ;;  %v2580_v17 = vadd.f32 %v2579_v7, %v2549_v60  ;;  %v2554_v19 = vmul.f32 %v4741_v11, %v4741_v11 }
 0x264   : > { %v2512_v40 = vadd.f32 %v2511_v39, %v4709_v31  ;;  %v2581_v3 = vadd.f32 %v2580_v17, %v2550_v15  ;;  %v2555_v31 = vmul.f32 %v4737_v25, %v4737_v25 }
 0x266   : > { %v2513_v56 = vadd.f32 %v2512_v40, %v4727_v51  ;;  %v2582_v34 = vadd.f32 %v2581_v3, %v2551_v46  ;;  %v2556_v51 = vmul.f32 %v4755_v61, %v4755_v61 }
 0x268   : > { %v2514_v33 = vadd.f32 %v2513_v56, %v4723_v47  ;;  %v2583_v42 = vadd.f32 %v2582_v34, %v2552_v20  ;;  %v2557_v47 = vmul.f32 %v4751_v8, %v4751_v8 }
 0x26a   : > { %v2515_v49 = vadd.f32 %v2514_v33, %v4741_v11  ;;  %v2584_v45 = vadd.f32 %v2583_v42, %v2553_v59 }
 0x26c   : > { %v2516_v54 = vadd.f32 %v2515_v49, %v4737_v25  ;;  %v2585_v48 = vadd.f32 %v2584_v45, %v2554_v19 }
 0x26e   : > { %v2517_v14 = vadd.f32 %v2516_v54, %v4755_v61  ;;  %v2586_v63 = vadd.f32 %v2585_v48, %v2555_v31 }
 0x270   : > { %v2518_v57 = vadd.f32 %v2517_v14, %v4751_v8  ;;  %v2587_v11 = vadd.f32 %v2586_v63, %v2556_v51 }
 0x272   : > { %v2519_v12 = vadd.f32 %v2518_v57, %v4769_v52  ;;  %v2588_v25 = vadd.f32 %v2587_v11, %v2557_v47 }
 0x274   : > { %v2520_v2 = vadd.f32 %v2519_v12, %v4765_v21  ;;  %v2589_v61 = vadd.f32 %v2588_v25, %v2558_v36 }
 0x276   : > { %v2521_v55 = vrot.slane %v2520_v2, 4  ;;  %v2590_v28 = vadd.f32 %v2589_v61, %v2559_v0 }
 0x278   : > { %v2522_v10 = vadd.f32 %v2521_v55, %v2520_v2  ;;  %v2591_v24 = vrot.slane %v2590_v28, 4 }
 0x27a   : > { %v2523_v5 = vrot.slane %v2522_v10, 2  ;;  %v2592_v4 = vadd.f32 %v2591_v24, %v2590_v28 }
 0x27c   : > { %v2524_v8 = vadd.f32 %v2523_v5, %v2522_v10  ;;  %v2593_v44 = vrot.slane %v2592_v4, 2 }
 0x27e   : > { %v2525_v1 = vrot.slane %v2524_v8, 1  ;;  %v2594_v30 = vadd.f32 %v2593_v44, %v2592_v4 }
 0x280   : > { %v2526_v52 = vadd.f32 %v2525_v1, %v2524_v8  ;;  %v2595_v50 = vrot.slane %v2594_v30, 1 }
 0x282   : > { %2527 = vst [vmem:[%s208_s18] sm:$0x1] %v2526_v52  ;;  %v2596_v21 = vadd.f32 %v2595_v50, %v2594_v30 }
 0x284   : > { %2597 = vst [vmem:[%s208_s18 + $0x1] sm:$0x1] %v2596_v21 }
 0x285 PF: > { %s15_s15 = sadd.s32 1, %s3300_s15  }
 0x286   : > { %p12_p4 = scmp.ge.s32.totalorder %s15_s15, 4  }
 0x288   :  { %14 = sbr.rel (!%p12_p4) target bundleno = 1 (0x1), region = 77 }

// kernel: resblock_forward.4
= control target key start
LH: loop header
LB: loop body
LE: loop exit
PB: predicated region body
PF: predicated region fallthrough
CT: control target
= control target key end

     0   :  { %s3987_s21 = smov 0   ;;  %s6306_s0 = inlined_call_operand.vmem [shape: f32[2,16,16,128], index: 0, kind: input, shape index: {}]   ;;  %s6307_s1 = inlined_call_operand.vmem [shape: f32[1,128], index: 1, kind: input, shape index: {}]   ;;  %s6308_s2 = inlined_call_operand.vmem [shape: f32[1,128], index: 2, kind: input, shape index: {}]   ;;  %s6309_s3 = inlined_call_operand.vmem [shape: f32[1152,128], index: 3, kind: input, shape index: {}]   ;;  %s6310_s4 = inlined_call_operand.vmem [shape: f32[1,128], index: 4, kind: input, shape index: {}]   ;;  %s6311_s5 = inlined_call_operand.vmem [shape: f32[2,16,16,128], index: 5, kind: output, shape index: {0}]   ;;  %s6312_s6 = inlined_call_operand.vmem [shape: f32[2,2,128], index: 6, kind: output, shape index: {1}]  }
   0x1 LB: > { %s3232_s22 = sadd.s32 4294967295, %s3948_s21   ;;  %p3236_p0 = scmp.ge.s32.totalorder %s3948_s21, 1  ;;  %s3948_s21 = sphi %s3987_s21, %s17_s21  }
   0x2   : > { %p215_p1 = scmp.lt.s32.totalorder %s3948_s21, 3 }
   0x4   : > { %p216_p2 = pnand %p3236_p0, %p215_p1 }
   0x6   : > { %219 = sbr.rel (%p216_p2) target bundleno = 657 (0x291), region = 40 }
   0xd   : > { %v1730_v0 = vld [vmem:[%s6309_s3] sm:$0xff]  ;;  %v1731_v1 = vld [vmem:[%s6309_s3 + $0x8] sm:$0xff]  ;;  %v6318_v3 = vmov 0.0|0.0   ;;  %v1732_v6 = vld [vmem:[%s6309_s3 + $0x10] sm:$0xff]  ;;  %v6313_v8 = vmov 0.0   ;;  %p249_p3 = scmp.lt.s32.totalorder %s3232_s22, 1 }
   0xe   : > { %v1762_v2 = vld [vmem:[%s6309_s3 + $0x100] sm:$0xff]  ;;  %3377 = vmatprep.subr.bf16.mxu1 %v6318_v3  ;;  %3425 = vmatprep.subr.bf16.mxu0 %v6318_v3  ;;  %v3378_v4 = vpack.c.bf16 %v1731_v1, %v1730_v0  ;;  %v1763_v5 = vld [vmem:[%s6309_s3 + $0x108] sm:$0xff]  ;;  %v1733_v7 = vld [vmem:[%s6309_s3 + $0x18] sm:$0xff]  ;;  %789 = vst [vmem:[#allocation2] sm:$0xff] %v6313_v8 }
   0xf   : > { %790 = vst [vmem:[#allocation2 + $0x8] sm:$0xff] %v6313_v8  ;;  %791 = vst [vmem:[#allocation2 + $0x10] sm:$0x3] %v6313_v8  ;;  %v3426_v9 = vpack.c.bf16 %v1763_v5, %v1762_v2  ;;  %v1764_v10 = vld [vmem:[%s6309_s3 + $0x110] sm:$0xff]  ;;  %v1765_v11 = vld [vmem:[%s6309_s3 + $0x118] sm:$0xff]  ;;  %v3381_v12 = vpack.c.bf16 %v1733_v7, %v1732_v6  ;;  %s6415_s22 = smov (!%p249_p3, %s3232_s22), 1 }
  0x10   : > { %793 = vst [vmem:[#allocation2 + $0x198] sm:$0xff] %v6313_v8  ;;  %794 = vst [vmem:[#allocation2 + $0x1a0] sm:$0xff] %v6313_v8  ;;  %3379 = vmatpush1.bf16.msra.mxu1 %v3378_v4  ;;  %v3429_v13 = vpack.c.bf16 %v1765_v11, %v1764_v10  ;;  %v1734_v14 = vld [vmem:[%s6309_s3 + $0x20] sm:$0xff]  ;;  %v1735_v15 = vld [vmem:[%s6309_s3 + $0x28] sm:$0xff]  ;;  %s3247_s17 = sshll.u32 %s6415_s22, 8 }
  0x11   : > { %795 = vst [vmem:[#allocation2 + $0x1a8] sm:$0x3] %v6313_v8  ;;  %797 = vst [vmem:[#allocation2 + $0x18] sm:$0x1] %v6313_v8  ;;  %3427 = vmatpush1.bf16.msra.mxu0 %v3426_v9  ;;  %3380 = vmatprep.subr.bf16.mxu1 %v6318_v3  ;;  %v1766_v16 = vld [vmem:[%s6309_s3 + $0x120] sm:$0xff]  ;;  %v1767_v17 = vld [vmem:[%s6309_s3 + $0x128] sm:$0xff]  ;;  %v3384_v18 = vpack.c.bf16 %v1735_v15, %v1734_v14  ;;  %s4131_s30 = scalar_lea.vmem %s6306_s0, %s3247_s17  ;;  %s6042_s18 = scalar_lea.vmem %s6311_s5, %s3247_s17 }
  0x12   : > { %798 = vst [vmem:[#allocation2 + $0x30] sm:$0x1] %v6313_v8  ;;  %799 = vst [vmem:[#allocation2 + $0x48] sm:$0x1] %v6313_v8  ;;  %3428 = vmatprep.subr.bf16.mxu0 %v6318_v3  ;;  %v3432_v19 = vpack.c.bf16 %v1767_v17, %v1766_v16  ;;  %v1736_v20 = vld [vmem:[%s6309_s3 + $0x30] sm:$0xff]  ;;  %v1737_v21 = vld [vmem:[%s6309_s3 + $0x38] sm:$0xff] }
  0x13   : > { %800 = vst [vmem:[#allocation2 + $0x60] sm:$0x1] %v6313_v8  ;;  %801 = vst [vmem:[#allocation2 + $0x78] sm:$0x1] %v6313_v8  ;;  %v1768_v22 = vld [vmem:[%s6309_s3 + $0x130] sm:$0xff]  ;;  %v1769_v23 = vld [vmem:[%s6309_s3 + $0x138] sm:$0xff]  ;;  %v3387_v24 = vpack.c.bf16 %v1737_v21, %v1736_v20 }
  0x14   : > { %802 = vst [vmem:[#allocation2 + $0x90] sm:$0x1] %v6313_v8  ;;  %803 = vst [vmem:[#allocation2 + $0xa8] sm:$0x1] %v6313_v8  ;;  %3382 = vmatpush1.bf16.msra.mxu1 %v3381_v12  ;;  %v3435_v25 = vpack.c.bf16 %v1769_v23, %v1768_v22  ;;  %v1738_v26 = vld [vmem:[%s6309_s3 + $0x40] sm:$0xff]  ;;  %v1739_v27 = vld [vmem:[%s6309_s3 + $0x48] sm:$0xff] }
  0x15   : > { %804 = vst [vmem:[#allocation2 + $0xc0] sm:$0x1] %v6313_v8  ;;  %805 = vst [vmem:[#allocation2 + $0xd8] sm:$0x1] %v6313_v8  ;;  %3430 = vmatpush1.bf16.msra.mxu0 %v3429_v13  ;;  %3383 = vmatprep.subr.bf16.mxu1 %v6318_v3  ;;  %v1770_v28 = vld [vmem:[%s6309_s3 + $0x140] sm:$0xff]  ;;  %v1771_v29 = vld [vmem:[%s6309_s3 + $0x148] sm:$0xff]  ;;  %v3390_v30 = vpack.c.bf16 %v1739_v27, %v1738_v26 }
  0x16   : > { %806 = vst [vmem:[#allocation2 + $0xf0] sm:$0x1] %v6313_v8  ;;  %807 = vst [vmem:[#allocation2 + $0x108] sm:$0x1] %v6313_v8  ;;  %3431 = vmatprep.subr.bf16.mxu0 %v6318_v3  ;;  %v3438_v31 = vpack.c.bf16 %v1771_v29, %v1770_v28  ;;  %v1740_v32 = vld [vmem:[%s6309_s3 + $0x50] sm:$0xff]  ;;  %v1741_v33 = vld [vmem:[%s6309_s3 + $0x58] sm:$0xff] }
  0x17   : > { %808 = vst [vmem:[#allocation2 + $0x120] sm:$0x1] %v6313_v8  ;;  %809 = vst [vmem:[#allocation2 + $0x138] sm:$0x1] %v6313_v8  ;;  %v1772_v34 = vld [vmem:[%s6309_s3 + $0x150] sm:$0xff]  ;;  %v1773_v35 = vld [vmem:[%s6309_s3 + $0x158] sm:$0xff]  ;;  %v3393_v36 = vpack.c.bf16 %v1741_v33, %v1740_v32 }
  0x18   : > { %810 = vst [vmem:[#allocation2 + $0x150] sm:$0x1] %v6313_v8  ;;  %811 = vst [vmem:[#allocation2 + $0x168] sm:$0x1] %v6313_v8  ;;  %3385 = vmatpush1.bf16.msra.mxu1 %v3384_v18  ;;  %v3441_v37 = vpack.c.bf16 %v1773_v35, %v1772_v34  ;;  %v1742_v38 = vld [vmem:[%s6309_s3 + $0x60] sm:$0xff]  ;;  %v1743_v39 = vld [vmem:[%s6309_s3 + $0x68] sm:$0xff] }
  0x19   : > { %812 = vst [vmem:[#allocation2 + $0x180] sm:$0x1] %v6313_v8  ;;  %815 = vst [vmem:[#allocation2 + $0x29] sm:$0x1] %v6313_v8  ;;  %3433 = vmatpush1.bf16.msra.mxu0 %v3432_v19  ;;  %3386 = vmatprep.subr.bf16.mxu1 %v6318_v3  ;;  %v1774_v40 = vld [vmem:[%s6309_s3 + $0x160] sm:$0xff]  ;;  %v1775_v41 = vld [vmem:[%s6309_s3 + $0x168] sm:$0xff]  ;;  %v3396_v46 = vpack.c.bf16 %v1743_v39, %v1742_v38 }
  0x1a   : > { %816 = vst [vmem:[#allocation2 + $0x41] sm:$0x1] %v6313_v8  ;;  %817 = vst [vmem:[#allocation2 + $0x59] sm:$0x1] %v6313_v8  ;;  %3434 = vmatprep.subr.bf16.mxu0 %v6318_v3  ;;  %v929_v42 = vld [vmem:[#allocation2 + $0x1] sm:$0xff]  ;;  %v3444_v48 = vpack.c.bf16 %v1775_v41, %v1774_v40  ;;  %v1744_v49 = vld [vmem:[%s6309_s3 + $0x70] sm:$0xff] }
  0x1b   : > { %818 = vst [vmem:[#allocation2 + $0x71] sm:$0x1] %v6313_v8  ;;  %819 = vst [vmem:[#allocation2 + $0x89] sm:$0x1] %v6313_v8  ;;  %v263_v43 = vld [vmem:[%s4131_s30] sm:$0xff]  ;;  %1945 = vmatprep.mubr.f32.mxu1 %v929_v42  ;;  %v1745_v50 = vld [vmem:[%s6309_s3 + $0x78] sm:$0xff] }
  0x1c   : > { %820 = vst [vmem:[#allocation2 + $0xa1] sm:$0x1] %v6313_v8  ;;  %821 = vst [vmem:[#allocation2 + $0xb9] sm:$0x1] %v6313_v8  ;;  %3388 = vmatpush1.bf16.msra.mxu1 %v3387_v24  ;;  %v4151_v44 = vld [vmem:[%s6307_s1] ss:$0 sm:$0xff]  ;;  %v3399_v60 = vpack.c.bf16 %v1745_v50, %v1744_v49 }
  0x1d   : > { %822 = vst [vmem:[#allocation2 + $0xd1] sm:$0x1] %v6313_v8  ;;  %823 = vst [vmem:[#allocation2 + $0xe9] sm:$0x1] %v6313_v8  ;;  %3436 = vmatpush1.bf16.msra.mxu0 %v3435_v25  ;;  %3389 = vmatprep.subr.bf16.mxu1 %v6318_v3  ;;  %v4156_v45 = vld [vmem:[%s6308_s2] ss:$0 sm:$0xff]  ;;  %v302_v47 = vmul.f32 %v4151_v44, %v263_v43 }
  0x1e   : > { %824 = vst [vmem:[#allocation2 + $0x101] sm:$0x1] %v6313_v8  ;;  %825 = vst [vmem:[#allocation2 + $0x119] sm:$0x1] %v6313_v8  ;;  %3437 = vmatprep.subr.bf16.mxu0 %v6318_v3  ;;  %v264_v51 = vld [vmem:[%s4131_s30 + $0x8] sm:$0xff]  ;;  %v1776_v52 = vld [vmem:[%s6309_s3 + $0x170] sm:$0xff] }
  0x1f   : > { %826 = vst [vmem:[#allocation2 + $0x131] sm:$0x1] %v6313_v8  ;;  %827 = vst [vmem:[#allocation2 + $0x149] sm:$0x1] %v6313_v8  ;;  %v1777_v53 = vld [vmem:[%s6309_s3 + $0x178] sm:$0xff]  ;;  %v4175_v54 = vadd.f32 %v4156_v45, %v302_v47  ;;  %v303_v55 = vmul.f32 %v4151_v44, %v264_v51  ;;  %v265_v56 = vld [vmem:[%s4131_s30 + $0x10] sm:$0xff] }
  0x20   : > { %828 = vst [vmem:[#allocation2 + $0x161] sm:$0x1] %v6313_v8  ;;  %829 = vst [vmem:[#allocation2 + $0x179] sm:$0x1] %v6313_v8  ;;  %3391 = vmatpush1.bf16.msra.mxu1 %v3390_v30  ;;  %v304_v57 = vmul.f32 %v4151_v44, %v265_v56  ;;  %v266_v58 = vld [vmem:[%s4131_s30 + $0x18] sm:$0xff]  ;;  %v267_v59 = vld [vmem:[%s4131_s30 + $0x20] sm:$0xff]  ;;  %v3447_v4 = vpack.c.bf16 %v1777_v53, %v1776_v52 }
  0x21   : > { %830 = vst [vmem:[#allocation2 + $0x191] sm:$0x1] %v6313_v8  ;;  %796 = vst [vmem:[#allocation2] sm:$0x1] %v6313_v8  ;;  %3439 = vmatpush1.bf16.msra.mxu0 %v3438_v31  ;;  %3392 = vmatprep.subr.bf16.mxu1 %v6318_v3  ;;  %v1746_v61 = vld [vmem:[%s6309_s3 + $0x80] sm:$0xff]  ;;  %v1747_v62 = vld [vmem:[%s6309_s3 + $0x88] sm:$0xff]  ;;  %v4190_v0 = vadd.f32 %v4156_v45, %v303_v55  ;;  %v305_v1 = vmul.f32 %v4151_v44, %v266_v58 }
  0x22   : > { %813 = vst [vmem:[#allocation2 + $0x198] sm:$0x1] %v6313_v8  ;;  %814 = vst [vmem:[#allocation2 + $0x11] sm:$0x1] %v6313_v8  ;;  %3440 = vmatprep.subr.bf16.mxu0 %v6318_v3  ;;  %v373_v63 = vmul.f32 1.442695, %v4175_v54  ;;  %v4202_v7 = vadd.f32 %v4156_v45, %v304_v57  ;;  %v306_v9 = vmul.f32 %v4151_v44, %v267_v59 }
  0x23   : > { %831 = vst [vmem:[#allocation2 + $0x1a9] sm:$0x1] %v6313_v8  ;;  %6350 = vst [vmem:[#allocation4_spill] sm:$0xff] %v4151_v44  ;;  %v268_v2 = vld [vmem:[%s4131_s30 + $0x28] sm:$0xff]  ;;  %v1778_v5 = vld [vmem:[%s6309_s3 + $0x180] sm:$0xff]  ;;  %v4224_v15 = vadd.f32 %v4156_v45, %v305_v1  ;;  %v3402_v16 = vpack.c.bf16 %v1747_v62, %v1746_v61  ;;  %vm661_vm0 = vcmp.gt.f32.partialorder %v4175_v54, 20.0 }
  0x24   : > { %6351 = vst [vmem:[#allocation5_spill] sm:$0xff] %v4156_v45  ;;  %3394 = vmatpush1.bf16.msra.mxu1 %v3393_v36  ;;  %v1779_v6 = vld [vmem:[%s6309_s3 + $0x188] sm:$0xff]  ;;  %v269_v10 = vld [vmem:[%s4131_s30 + $0x30] sm:$0xff]  ;;  %v4215_v12 = vld [vmem:[%s6309_s3 + $0x98] sm:$0xff]  ;;  %3811 = vpow2.f32 %v373_v63  ;;  %v375_v14 = vmul.f32 1.442695, %v4190_v0  ;;  %v4238_v20 = vadd.f32 %v4156_v45, %v306_v9  ;;  %v307_v21 = vmul.f32 %v4151_v44, %v268_v2 }
  0x25   : > { %3442 = vmatpush1.bf16.msra.mxu0 %v3441_v37  ;;  %3395 = vmatprep.subr.bf16.mxu1 %v6318_v3  ;;  %v4210_v11 = vld [vmem:[%s6309_s3 + $0x90] sm:$0xff]  ;;  %v4229_v17 = vld [vmem:[%s6309_s3 + $0x198] sm:$0xff]  ;;  %v4234_v18 = vld [vmem:[%s6309_s3 + $0xa0] sm:$0xff]  ;;  %v377_v19 = vmul.f32 1.442695, %v4202_v7  ;;  %v3450_v23 = vpack.c.bf16 %v1779_v6, %v1778_v5  ;;  %v308_v27 = vmul.f32 %v4151_v44, %v269_v10  ;;  %vm662_vm1 = vcmp.gt.f32.partialorder %v4190_v0, 20.0 }
  0x26   : > { %3443 = vmatprep.subr.bf16.mxu0 %v6318_v3  ;;  %v4220_v13 = vld [vmem:[%s6309_s3 + $0x190] sm:$0xff]  ;;  %v270_v22 = vld [vmem:[%s4131_s30 + $0x38] sm:$0xff]  ;;  %v4245_v24 = vld [vmem:[%s6309_s3 + $0xa8] sm:$0xff]  ;;  %3813 = vpow2.f32 %v375_v14  ;;  %v379_v26 = vmul.f32 1.442695, %v4224_v15  ;;  %v3405_v29 = vpack.c.bf16 %v4215_v12, %v4210_v11  ;;  %v4275_v34 = vadd.f32 %v4156_v45, %v307_v21  ;;  %s3241_s17 = sshll.u32 %s6415_s22, 1 }
  0x27   : > { %v4250_v25 = vld [vmem:[%s6309_s3 + $0x1a0] sm:$0xff]  ;;  %v4261_v30 = vld [vmem:[%s6309_s3 + $0x1a8] sm:$0xff]  ;;  %v4266_v31 = vld [vmem:[%s6309_s3 + $0xb0] sm:$0xff]  ;;  %3815 = vpow2.f32 %v377_v19  ;;  %v381_v33 = vmul.f32 1.442695, %v4238_v20  ;;  %v3453_v35 = vpack.c.bf16 %v4229_v17, %v4220_v13  ;;  %v4286_v37 = vadd.f32 %v4156_v45, %v308_v27  ;;  %s262_s20 = scalar_lea.vmem %s6312_s6, %s3241_s17 }
  0x28   : > { %3397 = vmatpush1.bf16.msra.mxu1 %v3396_v46  ;;  %v271_v28 = vld [vmem:[%s4131_s30 + $0x40] sm:$0xff]  ;;  %v4271_v32 = vld [vmem:[%s6309_s3 + $0xb8] sm:$0xff]  ;;  %v4283_v36 = vld [vmem:[%s6309_s3 + $0x1b0] sm:$0xff]  ;;  %3817 = vpow2.f32 %v379_v26  ;;  %v309_v38 = vmul.f32 %v4151_v44, %v270_v22  ;;  %v3408_v41 = vpack.c.bf16 %v4245_v24, %v4234_v18  ;;  %v383_v47 = vmul.f32 1.442695, %v4275_v34 }
  0x29   : > { %3445 = vmatpush1.bf16.msra.mxu0 %v3444_v48  ;;  %3398 = vmatprep.subr.bf16.mxu1 %v6318_v3  ;;  %v272_v39 = vld [vmem:[%s4131_s30 + $0x48] sm:$0xff]  ;;  %v273_v40 = vld [vmem:[%s4131_s30 + $0x50] sm:$0xff]  ;;  %v4296_v42 = vld [vmem:[%s6309_s3 + $0x1b8] sm:$0xff]  ;;  %3819 = vpow2.f32 %v381_v33  ;;  %v310_v48 = vmul.f32 %v4151_v44, %v271_v28  ;;  %v3456_v49 = vpack.c.bf16 %v4261_v30, %v4250_v25  ;;  %v3411_v50 = vpack.c.bf16 %v4271_v32, %v4266_v31 }
  0x2a   : > { %3446 = vmatprep.subr.bf16.mxu0 %v6318_v3  ;;  %v4301_v43 = vld [vmem:[%s6309_s3 + $0xc0] sm:$0xff]  ;;  %v4306_v46 = vld [vmem:[%s6309_s3 + $0xc8] sm:$0xff]  ;;  %v4327_v53 = vld [vmem:[%s6309_s3 + $0xd0] sm:$0xff]  ;;  %v385_v55 = vmul.f32 1.442695, %v4286_v37  ;;  %v4331_v56 = vadd.f32 %v4156_v45, %v309_v38  ;;  %3821 = vpow2.f32 %v383_v47  ;;  %v311_v59 = vmul.f32 %v4151_v44, %v272_v39 }
  0x2b   : > { %v4317_v51 = vld [vmem:[%s6309_s3 + $0x1c0] sm:$0xff]  ;;  %v4322_v52 = vld [vmem:[%s6309_s3 + $0x1c8] sm:$0xff]  ;;  %v4337_v57 = vld [vmem:[%s6309_s3 + $0xd8] sm:$0xff]  ;;  %v4340_v58 = vadd.f32 %v4156_v45, %v310_v48  ;;  %v3459_v63 = vpack.c.bf16 %v4296_v42, %v4283_v36  ;;  %v3414_v1 = vpack.c.bf16 %v4306_v46, %v4301_v43  ;;  %vm663_vm2 = vcmp.gt.f32.partialorder %v4202_v7, 20.0 }
  0x2c   : > { %3400 = vmatpush1.bf16.msra.mxu1 %v3399_v60  ;;  %v312_v60 = vmul.f32 %v4151_v44, %v273_v40  ;;  %v274_v61 = vld [vmem:[%s4131_s30 + $0x58] sm:$0xff]  ;;  %v275_v62 = vld [vmem:[%s4131_s30 + $0x60] sm:$0xff]  ;;  %v4354_v2 = vld [vmem:[%s6309_s3 + $0x1d0] sm:$0xff]  ;;  %3823 = vpow2.f32 %v385_v55  ;;  %v387_v5 = vmul.f32 1.442695, %v4331_v56  ;;  %v3462_v6 = vpack.c.bf16 %v4322_v52, %v4317_v51 }
  0x2d   : > { %3448 = vmatpush1.bf16.msra.mxu0 %v3447_v4  ;;  %3401 = vmatprep.subr.bf16.mxu1 %v6318_v3  ;;  %v4359_v4 = vld [vmem:[%s6309_s3 + $0x1d8] sm:$0xff]  ;;  %v4367_v9 = vld [vmem:[%s6309_s3 + $0xe0] sm:$0xff]  ;;  %v4372_v10 = vld [vmem:[%s6309_s3 + $0xe8] sm:$0xff]  ;;  %v389_v11 = vmul.f32 1.442695, %v4340_v58  ;;  %v4376_v12 = vadd.f32 %v4156_v45, %v311_v59  ;;  %v313_v21 = vmul.f32 %v4151_v44, %v274_v61  ;;  %v314_v22 = vmul.f32 %v4151_v44, %v275_v62 }
  0x2e   : > { %3449 = vmatprep.subr.bf16.mxu0 %v6318_v3  ;;  %v4379_v13 = vadd.f32 %v4156_v45, %v312_v60  ;;  %v3812_v14 = vpop.eup %3811  ;;  %v4386_v17 = vld [vmem:[%s6309_s3 + $0x1e0] sm:$0xff]  ;;  %v4391_v19 = vld [vmem:[%s6309_s3 + $0x1e8] sm:$0xff]  ;;  %3825 = vpow2.f32 %v387_v5  ;;  %v4401_v26 = vld [vmem:[%s6309_s3 + $0xf0] sm:$0xff]  ;;  %vm664_vm3 = vcmp.gt.f32.partialorder %v4224_v15, 20.0  ;;  %vm665_vm4 = vcmp.gt.f32.partialorder %v4238_v20, 20.0 }
  0x2f   : > { %v4406_v27 = vld [vmem:[%s6309_s3 + $0xf8] sm:$0xff]  ;;  %v437_v28 = vadd.f32 2.0, %v3812_v14  ;;  %3827 = vpow2.f32 %v389_v11  ;;  %v4414_v39 = vadd.f32 %v4156_v45, %v313_v21  ;;  %v4417_v40 = vadd.f32 %v4156_v45, %v314_v22  ;;  %v4424_v55 = vld [vmem:[%s6309_s3 + $0x1f0] sm:$0xff]  ;;  %v276_v22 = vld [vmem:[%s4131_s30 + $0x68] sm:$0xff] }
  0x30   : > { %3403 = vmatpush1.bf16.msra.mxu1 %v3402_v16  ;;  %v3814_v33 = vpop.eup %3813  ;;  %v393_v38 = vmul.f32 1.442695, %v4379_v13  ;;  %v4429_v59 = vld [vmem:[%s6309_s3 + $0x1f8] sm:$0xff]  ;;  %v4483_v31 = vld [vmem:[%s6309_s3 + $0x208] sm:$0xff]  ;;  %v1828_v51 = vld [vmem:[%s6309_s3 + $0x310] sm:$0xff]  ;;  %vm666_vm5 = vcmp.gt.f32.partialorder %v4275_v34, 20.0 }
  0x31   : > { %3451 = vmatpush1.bf16.msra.mxu0 %v3450_v23  ;;  %3404 = vmatprep.subr.bf16.mxu1 %v6318_v3  ;;  %6352 = vst [vmem:[#allocation6_spill] sm:$0xff] %v4414_v39  ;;  %6353 = vst [vmem:[#allocation7_spill] sm:$0xff] %v4417_v40  ;;  %v3816_v47 = vpop.eup %3815  ;;  %v4431_v60 = vmul.f32 %v3812_v14, %v437_v28  ;;  %v438_v61 = vadd.f32 2.0, %v3814_v33  ;;  %v395_v21 = vmul.f32 1.442695, %v4414_v39  ;;  %v1829_v52 = vld [vmem:[%s6309_s3 + $0x318] sm:$0xff] }
  0x32   : > { %3452 = vmatprep.subr.bf16.mxu0 %v6318_v3  ;;  %v3818_v62 = vpop.eup %3817  ;;  %v439_v11 = vadd.f32 2.0, %v3816_v47  ;;  %v6359_v39 = vpack.c.bf16 %v4359_v4, %v4354_v2  ;;  %vm667_vm6 = vcmp.gt.f32.partialorder %v4286_v37, 20.0  ;;  %vm668_vm7 = vcmp.gt.f32.partialorder %v4331_v56, 20.0 }
  0x33   : > { %v3820_v8 = vpop.eup %3819  ;;  %v4445_v14 = vadd.f32 2.0, %v4431_v60  ;;  %v4447_v18 = vmul.f32 %v3814_v33, %v438_v61  ;;  %v440_v24 = vadd.f32 2.0, %v3818_v62  ;;  %v277_v61 = vld [vmem:[%s4131_s30 + $0x70] sm:$0xff]  ;;  %vm669_vm8 = vcmp.gt.f32.partialorder %v4340_v58, 20.0 }
  0x34   : > { %3406 = vmatpush1.bf16.msra.mxu1 %v3405_v29  ;;  %v391_v29 = vmul.f32 1.442695, %v4376_v12  ;;  %v441_v25 = vadd.f32 2.0, %v3820_v8  ;;  %v3822_v30 = vpop.eup %3821  ;;  %vm670_vm9 = vcmp.gt.f32.partialorder %v4376_v12, 20.0  ;;  %vm671_vm10 = vcmp.gt.f32.partialorder %v4379_v13, 20.0 }
  0x35   : > { %3454 = vmatpush1.bf16.msra.mxu0 %v3453_v35  ;;  %3407 = vmatprep.subr.bf16.mxu1 %v6318_v3  ;;  %v4459_v33 = vmul.f32 %v3818_v62, %v440_v24  ;;  %v4478_v62 = vld [vmem:[%s6309_s3 + $0x200] sm:$0xff] }
  0x36   : > { %3455 = vmatprep.subr.bf16.mxu0 %v6318_v3  ;;  %3829 = vpow2.f32 %v391_v29  ;;  %v4453_v29 = vmul.f32 %v3816_v47, %v439_v11  ;;  %v3824_v5 = vpop.eup %3823  ;;  %v4469_v11 = vmul.f32 %v3820_v8, %v441_v25  ;;  %v4508_v25 = vld [vmem:[%s6309_s3 + $0x218] sm:$0xff] }
  0x37   : > { %3831 = vpow2.f32 %v393_v38  ;;  %v315_v38 = vmul.f32 %v4151_v44, %v276_v22  ;;  %v4487_v8 = vadd.f32 2.0, %v4459_v33  ;;  %v443_v32 = vadd.f32 2.0, %v3824_v5  ;;  %6356 = vst [vmem:[#allocation10_spill] sm:$0xff] %v4508_v25 }
  0x38   : > { %3409 = vmatpush1.bf16.msra.mxu1 %v3408_v41  ;;  %v397_v41 = vmul.f32 1.442695, %v4417_v40  ;;  %3833 = vpow2.f32 %v395_v21  ;;  %v4467_v47 = vadd.f32 2.0, %v4453_v29  ;;  %v442_v21 = vadd.f32 2.0, %v3822_v30  ;;  %v3826_v42 = vpop.eup %3825 }
  0x39   : > { %3457 = vmatpush1.bf16.msra.mxu0 %v3456_v49  ;;  %3410 = vmatprep.subr.bf16.mxu1 %v6318_v3  ;;  %3835 = vrcp.f32 %v4445_v14  ;;  %v4457_v49 = vadd.f32 2.0, %v4447_v18  ;;  %v4490_v36 = vadd.f32 %v4156_v45, %v315_v38  ;;  %v316_v22 = vmul.f32 %v4151_v44, %v277_v61  ;;  %v3828_v24 = vpop.eup %3827 }
  0x3a   : > { %3458 = vmatprep.subr.bf16.mxu0 %v6318_v3  ;;  %3837 = vpow2.f32 %v397_v41  ;;  %v4503_v41 = vld [vmem:[%s6309_s3 + $0x210] sm:$0xff]  ;;  %v4511_v38 = vmul.f32 %v3824_v5, %v443_v32  ;;  %v444_v28 = vadd.f32 2.0, %v3826_v42  ;;  %v445_v48 = vadd.f32 2.0, %v3828_v24  ;;  %v1826_v5 = vld [vmem:[%s6309_s3 + $0x300] sm:$0xff] }
  0x3b   : > { %3839 = vrcp.f32 %v4457_v49  ;;  %6354 = vst [vmem:[#allocation8_spill] sm:$0xff] %v4490_v36  ;;  %6355 = vst [vmem:[#allocation9_spill] sm:$0xff] %v4503_v41  ;;  %v4539_v61 = vadd.f32 %v4156_v45, %v316_v22  ;;  %v4570_v41 = vpack.c.bf16 %v1829_v52, %v1828_v51 }
  0x3c   : > { %3412 = vmatpush1.bf16.msra.mxu1 %v3411_v50  ;;  %3841 = vrcp.f32 %v4467_v47  ;;  %v4495_v50 = vadd.f32 2.0, %v4469_v11  ;;  %v4531_v43 = vadd.f32 2.0, %v4511_v38  ;;  %v4533_v46 = vmul.f32 %v3826_v42, %v444_v28 }
  0x3d   : > { %3460 = vmatpush1.bf16.msra.mxu0 %v3459_v63  ;;  %3413 = vmatprep.subr.bf16.mxu1 %v6318_v3  ;;  %v4497_v63 = vmul.f32 %v3822_v30, %v442_v21  ;;  %3843 = vrcp.f32 %v4487_v8  ;;  %v399_v30 = vmul.f32 1.442695, %v4490_v36  ;;  %6357 = vst [vmem:[#allocation11_spill] sm:$0xff] %v4539_v61  ;;  %v4551_v42 = vmul.f32 %v3828_v24, %v445_v48  ;;  %v279_v36 = vld [vmem:[%s4131_s30 + $0x80] sm:$0xff] }
  0x3e   : > { %3461 = vmatprep.subr.bf16.mxu0 %v6318_v3  ;;  %3845 = vrcp.f32 %v4495_v50  ;;  %v4556_v35 = vadd.f32 2.0, %v4533_v46  ;;  %v401_v16 = vmul.f32 1.442695, %v4539_v61  ;;  %v6360_v61 = vmov 0.0|0.0  }
  0x3f   : > { %v4521_v21 = vadd.f32 2.0, %v4497_v63  ;;  %3847 = vpow2.f32 %v399_v30  ;;  %v278_v30 = vld [vmem:[%s4131_s30 + $0x78] sm:$0xff]  ;;  %v4564_v28 = vadd.f32 2.0, %v4551_v42  ;;  %v4588_v4 = vmul.f32 %v4151_v44, %v279_v36 }
  0x40   : > { %3415 = vmatpush1.bf16.msra.mxu1 %v3414_v1  ;;  %v3830_v32 = vpop.eup %3829  ;;  %v1827_v1 = vld [vmem:[%s6309_s3 + $0x308] sm:$0xff] }
  0x41   : > { %3463 = vmatpush1.bf16.msra.mxu0 %v3462_v6  ;;  %3416 = vmatprep.subr.bf16.mxu1 %v6318_v3  ;;  %v3832_v6 = vpop.eup %3831  ;;  %3849 = vrcp.f32 %v4521_v21  ;;  %v446_v22 = vadd.f32 2.0, %v3830_v32  ;;  %v4568_v24 = vpack.c.bf16 %v1827_v1, %v1826_v5  ;;  %6361 = vst [vmem:[#allocation12_spill] sm:$0xff] %v4588_v4 }
  0x42   : > { %3464 = vmatprep.subr.bf16.mxu0 %v6318_v3  ;;  %3851 = vrcp.f32 %v4531_v43  ;;  %v447_v23 = vadd.f32 2.0, %v3832_v6  ;;  %v3834_v40 = vpop.eup %3833  ;;  %v6358_v3 = vpack.c.bf16 %v4337_v57, %v4327_v53  ;;  %v317_v57 = vmul.f32 %v4151_v44, %v278_v30  ;;  %v930_v44 = vld [vmem:[#allocation2 + $0x9] sm:$0xff] }
  0x43   : > { %v4566_v48 = vmul.f32 %v3830_v32, %v446_v22  ;;  %v3836_v25 = vpop.eup %3835  ;;  %3853 = vrcp.f32 %v4556_v35  ;;  %v448_v53 = vadd.f32 2.0, %v3834_v40 }
  0x44   : > { %3418 = vmatpush1.bf16.msra.mxu1 %v6358_v3  ;;  %v4578_v3 = vmul.f32 %v3832_v6, %v447_v23  ;;  %v3838_v5 = vpop.eup %3837  ;;  %v565_v32 = vmul.f32 %v3836_v25, %v4445_v14  ;;  %3855 = vrcp.f32 %v4564_v28  ;;  %v6362_v14 = vpack.c.bf16 %v4372_v10, %v4367_v9 }
  0x45   : > { %3466 = vmatpush1.bf16.msra.mxu0 %v6359_v39  ;;  %3419 = vmatprep.subr.bf16.mxu1 %v6360_v61  ;;  %v4585_v2 = vadd.f32 2.0, %v4566_v48  ;;  %v3840_v39 = vpop.eup %3839  ;;  %v4594_v1 = vmul.f32 %v3834_v40, %v448_v53  ;;  %v449_v51 = vadd.f32 2.0, %v3838_v5  ;;  %3857 = vpow2.f32 %v401_v16 }
  0x46   : > { %3467 = vmatprep.subr.bf16.mxu0 %v6360_v61  ;;  %v4592_v23 = vadd.f32 2.0, %v4578_v3  ;;  %v3842_v52 = vpop.eup %3841  ;;  %v597_v6 = vsub.f32 2.0, %v565_v32  ;;  %v566_v22 = vmul.f32 %v3840_v39, %v4457_v49  ;;  %v4603_v36 = vadd.f32 %v4156_v45, %v317_v57 }
  0x47   : > { %3859 = vrcp.f32 %v4585_v2  ;;  %v3844_v30 = vpop.eup %3843  ;;  %v6364_v40 = vpack.c.bf16 %v4391_v19, %v4386_v17  ;;  %v567_v9 = vmul.f32 %v3842_v52, %v4467_v47  ;;  %v4613_v10 = vadd.f32 2.0, %v4594_v1 }
  0x48   : > { %3421 = vmatpush1.bf16.msra.mxu1 %v6362_v14  ;;  %6363 = vst [vmem:[#allocation13_spill] sm:$0xff] %v4603_v36  ;;  %3861 = vrcp.f32 %v4592_v23  ;;  %v4615_v16 = vmul.f32 %v3838_v5, %v449_v51  ;;  %v3846_v49 = vpop.eup %3845  ;;  %v629_v53 = vmul.f32 %v3836_v25, %v597_v6  ;;  %v598_v57 = vsub.f32 2.0, %v566_v22  ;;  %v865_v6 = vld [vmem:[#allocation2] sm:$0xff] }
  0x49   : > { %3469 = vmatpush1.bf16.msra.mxu0 %v6364_v40  ;;  %3422 = vmatprep.subr.bf16.mxu1 %v6360_v61  ;;  %v568_v17 = vmul.f32 %v3844_v30, %v4487_v8  ;;  %v4621_v19 = vmul.f32 1.442695, %v4603_v36  ;;  %v3848_v47 = vpop.eup %3847  ;;  %v599_v32 = vsub.f32 2.0, %v567_v9  ;;  %v569_v14 = vmul.f32 %v3846_v49, %v4495_v50 }
  0x4a   : > { %6365 = vst [vmem:[#allocation14_spill] sm:$0xff] %v4615_v16  ;;  %3470 = vmatprep.subr.bf16.mxu0 %v6360_v61  ;;  %3863 = vrcp.f32 %v4613_v10  ;;  %v4626_v5 = vadd.f32 2.0, %v4615_v16  ;;  %v6366_v25 = vpack.c.bf16 %v4406_v27, %v4401_v26  ;;  %v693_v8 = vmul.f32 %v629_v53, %v4431_v60 }
  0x4b   : > { %v3850_v51 = vpop.eup %3849  ;;  %v630_v22 = vmul.f32 %v3840_v39, %v598_v57  ;;  %v600_v40 = vsub.f32 2.0, %v568_v17  ;;  %v450_v9 = vadd.f32 2.0, %v3848_v47  ;;  %v6367_v50 = vpack.c.bf16 %v4429_v59, %v4424_v55 }
  0x4c   : > { %3424 = vmatpush1.bf16.msra.mxu1 %v6366_v25  ;;  %v3852_v36 = vpop.eup %3851  ;;  %v631_v16 = vmul.f32 %v3842_v52, %v599_v32  ;;  %v601_v45 = vsub.f32 2.0, %v569_v14  ;;  %v570_v4 = vmul.f32 %v3850_v51, %v4521_v21  ;;  %3865 = vrcp.f32 %v4626_v5 }
  0x4d   : > { %3472 = vmatpush1.bf16.msra.mxu0 %v6367_v50  ;;  %3601 = vmatprep.subr.bf16.mxu1 %v6360_v61  ;;  %v725_v26 = vmul.f32 %v693_v8, %v4175_v54  ;;  %v694_v27 = vmul.f32 %v630_v22, %v4447_v18  ;;  %v632_v60 = vmul.f32 %v3844_v30, %v600_v40  ;;  %v3854_v59 = vpop.eup %3853 }
  0x4e   : > { %3473 = vmatprep.subr.bf16.mxu0 %v6360_v61  ;;  %v571_v55 = vmul.f32 %v3852_v36, %v4531_v43  ;;  %v695_v39 = vmul.f32 %v631_v16, %v4453_v29  ;;  %v633_v21 = vmul.f32 %v3846_v49, %v601_v45  ;;  %v602_v52 = vsub.f32 2.0, %v570_v4  ;;  %v3856_v57 = vpop.eup %3855 }
  0x4f   : > { %1946 = vmatmul.mubr.f32.vlgmr.msra.gmra.mrb[0].mxu1 %v865_v6  ;;  %v4645_v53 = vmul.f32 %v3848_v47, %v450_v9  ;;  %v757_v17 = vsel %vm661_vm0, %v4175_v54, %v725_v26  ;;  %v726_v32 = vmul.f32 %v694_v27, %v4190_v0  ;;  %v696_v18 = vmul.f32 %v632_v60, %v4459_v33  ;;  %v4654_v29 = vpop.eup %3857  ;;  %v993_v27 = vld [vmem:[#allocation2 + $0x2] sm:$0xff] }
  0x50   : > { %1950 = vmatprep.mubr.f32.mxu1 %v930_v44  ;;  %v603_v30 = vsub.f32 2.0, %v571_v55  ;;  %3617 = vmatpush1.bf16.msra.mxu1 %v4568_v24  ;;  %833 = vst [vmem:[#allocation2 + $0x19] sm:$0xff] %v757_v17  ;;  %v727_v45 = vmul.f32 %v695_v39, %v4202_v7  ;;  %v697_v43 = vmul.f32 %v633_v21, %v4469_v11  ;;  %v6368_v11 = vmov 0.0  }
  0x51   : > { %v634_v4 = vmul.f32 %v3850_v51, %v602_v52  ;;  %v572_v54 = vmul.f32 %v3854_v59, %v4556_v35  ;;  %3602 = vmatprep.subr.bf16.mxu1 %v6360_v61  ;;  %v3860_v44 = vpop.eup %3859  ;;  %v758_v33 = vsel %vm662_vm1, %v4190_v0, %v726_v32  ;;  %v728_v16 = vmul.f32 %v696_v18, %v4224_v15 }
  0x52   : > { %v635_v49 = vmul.f32 %v3852_v36, %v603_v30  ;;  %v573_v47 = vmul.f32 %v3856_v57, %v4564_v28  ;;  %v3862_v14 = vpop.eup %3861  ;;  %834 = vst [vmem:[#allocation2 + $0x21] sm:$0xff] %v758_v33  ;;  %v4670_v35 = vsel %vm663_vm2, %v4202_v7, %v727_v45  ;;  %v729_v51 = vmul.f32 %v697_v43, %v4238_v20  ;;  %v994_v45 = vld [vmem:[#allocation2 + $0xa] sm:$0xff] }
  0x53   : > { %1951 = vmatmul.mubr.f32.gmra.mrb[2].mxu1 %v6368_v11  ;;  %v698_v25 = vmul.f32 %v634_v4, %v4497_v63  ;;  %v604_v8 = vsub.f32 2.0, %v572_v54  ;;  %835 = vst [vmem:[#allocation2 + $0x31] sm:$0xff] %v4670_v35  ;;  %v4679_v0 = vsel %vm664_vm3, %v4224_v15, %v728_v16  ;;  %v574_v7 = vmul.f32 %v3860_v44, %v4585_v2  ;;  %v4757_v16 = vld [vmem:[%s6309_s3 + $0x230] sm:$0xff]  ;;  %v6372_v11 = vld [vmem:[#allocation5_spill] sm:$0xff] }
  0x54   : > { %1955 = vmatprep.mubr.f32.mxu1 %v757_v17  ;;  %v699_v28 = vmul.f32 %v635_v49, %v4511_v38  ;;  %v605_v36 = vsub.f32 2.0, %v573_v47  ;;  %3618 = vmatpush1.bf16.msra.mxu1 %v4570_v41  ;;  %v3864_v63 = vpop.eup %3863  ;;  %836 = vst [vmem:[#allocation2 + $0x39] sm:$0xff] %v4679_v0  ;;  %v4689_v6 = vsel %vm665_vm4, %v4238_v20, %v729_v51  ;;  %v4704_v55 = vadd.f32 2.0, %v4645_v53  ;;  %v280_v51 = vld [vmem:[%s4131_s30 + $0x88] sm:$0xff] }
  0x55   : > { %v730_v15 = vmul.f32 %v698_v25, %v4275_v34  ;;  %v636_v22 = vmul.f32 %v3854_v59, %v604_v8  ;;  %v575_v38 = vmul.f32 %v3862_v14, %v4592_v23  ;;  %3603 = vmatprep.subr.bf16.mxu1 %v6360_v61  ;;  %837 = vst [vmem:[#allocation2 + $0x49] sm:$0xff] %v4689_v6  ;;  %v606_v9 = vsub.f32 2.0, %v574_v7  ;;  %v1832_v7 = vld [vmem:[%s6309_s3 + $0x330] sm:$0xff] }
  0x56   : > { %v731_v2 = vmul.f32 %v699_v28, %v4286_v37  ;;  %v637_v40 = vmul.f32 %v3856_v57, %v605_v36  ;;  %v576_v50 = vmul.f32 %v3864_v63, %v4613_v10  ;;  %v3866_v26 = vpop.eup %3865  ;;  %3867 = vrcp.f32 %v4704_v55  ;;  %v281_v36 = vld [vmem:[%s4131_s30 + $0x90] sm:$0xff] }
  0x57   : > { %v4700_v20 = vsel %vm666_vm5, %v4275_v34, %v730_v15  ;;  %v700_v60 = vmul.f32 %v636_v22, %v4533_v46  ;;  %v607_v23 = vsub.f32 2.0, %v575_v38  ;;  %v1057_v59 = vld [vmem:[#allocation2 + $0x18] sm:$0xff]  ;;  %v638_v21 = vmul.f32 %v3860_v44, %v606_v9  ;;  %v6377_v9 = vld [vmem:[#allocation14_spill] sm:$0xff] }
  0x58   : > { %838 = vst [vmem:[#allocation2 + $0x51] sm:$0xff] %v4700_v20  ;;  %v4710_v10 = vsel %vm667_vm6, %v4286_v37, %v731_v2  ;;  %v701_v39 = vmul.f32 %v637_v40, %v4551_v42  ;;  %v608_v52 = vsub.f32 2.0, %v576_v50  ;;  %2170 = vmatprep.mubr.f32.mxu0 %v1057_v59  ;;  %1956 = vmatmul.mubr.f32.gmra.mrb[4].mxu1 %v1057_v59  ;;  %v451_v18 = vadd.f32 2.0, %v4654_v29  ;;  %v6375_v15 = vld [vmem:[#allocation9_spill] sm:$0xff]  ;;  %v6378_v59 = vld [vmem:[#allocation7_spill] sm:$0xff] }
  0x59   : > { %839 = vst [vmem:[#allocation2 + $0x61] sm:$0xff] %v4710_v10  ;;  %v732_v34 = vmul.f32 %v700_v60, %v4331_v56  ;;  %v639_v46 = vmul.f32 %v3862_v14, %v607_v23  ;;  %v577_v57 = vmul.f32 %v3866_v26, %v4626_v5  ;;  %2171 = vmatmul.mubr.f32.vlgmr.msra.gmra.mrb[0].mxu0 %v993_v27  ;;  %v1058_v17 = vld [vmem:[#allocation2 + $0x20] sm:$0xff]  ;;  %3869 = vpow2.f32 %v4621_v19  ;;  %v6371_v14 = vld [vmem:[#allocation12_spill] sm:$0xff]  ;;  %v4792_v2 = vld [vmem:[%s6309_s3 + $0x238] sm:$0xff] }
  0x5a   : > { %1960 = vmatprep.mubr.f32.mxu1 %v758_v33  ;;  %v733_v37 = vmul.f32 %v701_v39, %v4340_v58  ;;  %v702_v42 = vmul.f32 %v638_v21, %v4566_v48  ;;  %v640_v32 = vmul.f32 %v3864_v63, %v608_v52  ;;  %v6369_v30 = vpack.c.bf16 %v4483_v31, %v4478_v62  ;;  %v1830_v48 = vld [vmem:[%s6309_s3 + $0x320] sm:$0xff]  ;;  %v1831_v62 = vld [vmem:[%s6309_s3 + $0x328] sm:$0xff]  ;;  %v1059_v31 = vld [vmem:[#allocation2 + $0x30] sm:$0xff] }
  0x5b   : > { %2175 = vmatprep.mubr.f32.mxu0 %v1058_v17  ;;  %v4726_v5 = vsel %vm668_vm7, %v4331_v56, %v732_v34  ;;  %v703_v43 = vmul.f32 %v639_v46, %v4578_v3  ;;  %v609_v4 = vsub.f32 2.0, %v577_v57  ;;  %v1798_v56 = vld [vmem:[%s6309_s3 + $0x220] sm:$0xff]  ;;  %v1799_v3 = vld [vmem:[%s6309_s3 + $0x228] sm:$0xff]  ;;  %v4752_v33 = vmul.f32 %v4654_v29, %v451_v18  ;;  %v282_v27 = vld [vmem:[%s4131_s30 + $0x98] sm:$0xff] }
  0x5c   : > { %3475 = vmatpush1.bf16.msra.mxu0 %v6369_v30  ;;  %840 = vst [vmem:[#allocation2 + $0x69] sm:$0xff] %v4726_v5  ;;  %v4747_v19 = vsel %vm669_vm8, %v4340_v58, %v733_v37  ;;  %v734_v54 = vmul.f32 %v702_v42, %v4376_v12  ;;  %v704_v44 = vmul.f32 %v640_v32, %v4594_v1  ;;  %v6370_v58 = vld [vmem:[#allocation6_spill] sm:$0xff]  ;;  %v1060_v60 = vld [vmem:[#allocation2 + $0x38] sm:$0xff]  ;;  %vm673_vm12 = vcmp.gt.f32.partialorder %v6378_v59, 20.0  ;;  %v1835_v32 = vld [vmem:[%s6309_s3 + $0x348] sm:$0xff] }
  0x5d   : > { %3476 = vmatprep.subr.bf16.mxu0 %v6360_v61  ;;  %1961 = vmatmul.mubr.f32.gmra.mrb[6].mxu1 %v1058_v17  ;;  %841 = vst [vmem:[#allocation2 + $0x79] sm:$0xff] %v4747_v19  ;;  %v735_v49 = vmul.f32 %v703_v43, %v4379_v13  ;;  %vm672_vm11 = vcmp.gt.f32.partialorder %v6370_v58, 20.0  ;;  %v641_v47 = vmul.f32 %v3866_v26, %v609_v4  ;;  %v4775_v8 = vadd.f32 2.0, %v4752_v33  ;;  %v6374_v63 = vld [vmem:[#allocation10_spill] sm:$0xff]  ;;  %v1061_v4 = vld [vmem:[#allocation2 + $0x48] sm:$0xff] }
  0x5e   : > { %v4764_v1 = vadd.f32 %v6372_v11, %v6371_v14  ;;  %2176 = vmatmul.mubr.f32.gmra.mrb[2].mxu0 %v994_v45  ;;  %1965 = vmatprep.mubr.f32.mxu1 %v4670_v35  ;;  %v4771_v29 = vsel %vm670_vm9, %v4376_v12, %v734_v54  ;;  %v736_v25 = vmul.f32 %v704_v44, %v6370_v58  ;;  %v1833_v35 = vld [vmem:[%s6309_s3 + $0x338] sm:$0xff]  ;;  %v283_v21 = vld [vmem:[%s4131_s30 + $0xa0] sm:$0xff]  ;;  %v4860_v44 = vld [vmem:[%s6309_s3 + $0x250] sm:$0xff] }
  0x5f   : > { %v4777_v28 = vpack.c.bf16 %v1831_v62, %v1830_v48  ;;  %2180 = vmatprep.mubr.f32.mxu0 %v1059_v31  ;;  %v995_v12 = vld [vmem:[#allocation2 + $0x1a] sm:$0xff]  ;;  %v6376_v22 = vpack.c.bf16 %v6374_v63, %v6375_v15  ;;  %v3480_v38 = vpack.c.bf16 %v1799_v3, %v1798_v56  ;;  %842 = vst [vmem:[#allocation2 + $0x81] sm:$0xff] %v4771_v29  ;;  %3871 = vrcp.f32 %v4775_v8  ;;  %v996_v30 = vld [vmem:[#allocation2 + $0x22] sm:$0xff]  ;;  %v1062_v63 = vld [vmem:[#allocation2 + $0x50] sm:$0xff] }
  0x60   : > { %v4798_v40 = vsel %vm671_vm10, %v4379_v13, %v735_v49  ;;  %v705_v50 = vmul.f32 %v641_v47, %v6377_v9  ;;  %v405_v26 = vmul.f32 1.442695, %v4764_v1  ;;  %v4808_v23 = vsel %vm672_vm11, %v6370_v58, %v736_v25  ;;  %v6379_v13 = vld [vmem:[#allocation4_spill] sm:$0xff]  ;;  %v1834_v42 = vld [vmem:[%s6309_s3 + $0x340] sm:$0xff]  ;;  %v3868_v18 = vpop.eup %3867  ;;  %v1803_v62 = vld [vmem:[%s6309_s3 + $0x248] sm:$0xff] }
  0x61   : > { %6373 = vst [vmem:[#allocation6_spill] sm:$0xff] %v4777_v28  ;;  %3478 = vmatpush1.bf16.msra.mxu0 %v6376_v22  ;;  %843 = vst [vmem:[#allocation2 + $0x91] sm:$0xff] %v4798_v40  ;;  %3619 = vmatpush1.bf16.msra.mxu1 %v4777_v28  ;;  %v319_v39 = vmul.f32 %v6379_v13, %v280_v51  ;;  %v320_v34 = vmul.f32 %v6379_v13, %v281_v36  ;;  %v1802_v48 = vld [vmem:[%s6309_s3 + $0x240] sm:$0xff]  ;;  %v284_v58 = vld [vmem:[%s4131_s30 + $0xa8] sm:$0xff]  ;;  %vm677_vm0 = vcmp.gt.f32.partialorder %v4764_v1, 20.0 }
  0x62   : > { %3479 = vmatprep.subr.bf16.mxu0 %v6360_v61  ;;  %1966 = vmatmul.mubr.f32.gmra.mrb[8].mxu1 %v1059_v31  ;;  %844 = vst [vmem:[#allocation2 + $0x99] sm:$0xff] %v4808_v23  ;;  %v737_v52 = vmul.f32 %v705_v50, %v6378_v59  ;;  %3873 = vpow2.f32 %v405_v26  ;;  %v4819_v46 = vpack.c.bf16 %v1833_v35, %v1832_v7  ;;  %v1836_v51 = vld [vmem:[%s6309_s3 + $0x350] sm:$0xff]  ;;  %v1838_v50 = vld [vmem:[%s6309_s3 + $0x360] sm:$0xff]  ;;  %v1839_v26 = vld [vmem:[%s6309_s3 + $0x368] sm:$0xff] }
  0x63   : > { %3604 = vmatprep.subr.bf16.mxu1 %v6360_v61  ;;  %2181 = vmatmul.mubr.f32.gmra.mrb[4].mxu0 %v995_v12  ;;  %v3483_v57 = vpack.c.bf16 %v4792_v2, %v4757_v16  ;;  %v4825_v17 = vadd.f32 %v6372_v11, %v319_v39  ;;  %v321_v37 = vmul.f32 %v6379_v13, %v282_v27  ;;  %v3870_v54 = vpop.eup %3869  ;;  %v285_v25 = vld [vmem:[%s4131_s30 + $0xb0] sm:$0xff] }
  0x64   : > { %6380 = vst [vmem:[#allocation12_spill] sm:$0xff] %v4819_v46  ;;  %1970 = vmatprep.mubr.f32.mxu1 %v4679_v0  ;;  %2185 = vmatprep.mubr.f32.mxu0 %v1060_v60  ;;  %v4837_v0 = vsel %vm673_vm12, %v6378_v59, %v737_v52  ;;  %v4840_v45 = vadd.f32 %v6372_v11, %v320_v34  ;;  %v452_v14 = vadd.f32 2.0, %v3870_v54  ;;  %v997_v36 = vld [vmem:[#allocation2 + $0x32] sm:$0xff]  ;;  %v4903_v59 = vld [vmem:[%s6309_s3 + $0x260] sm:$0xff] }
  0x65   : > { %3481 = vmatpush1.bf16.msra.mxu0 %v3480_v38  ;;  %v322_v43 = vmul.f32 %v6379_v13, %v283_v21  ;;  %845 = vst [vmem:[#allocation2 + $0xa9] sm:$0xff] %v4837_v0  ;;  %v578_v31 = vmul.f32 %v3868_v18, %v4704_v55  ;;  %v407_v56 = vmul.f32 1.442695, %v4825_v17  ;;  %3620 = vmatpush1.bf16.msra.mxu1 %v4819_v46  ;;  %v998_v52 = vld [vmem:[#allocation2 + $0x3a] sm:$0xff]  ;;  %v6383_v34 = vld [vmem:[#allocation8_spill] sm:$0xff]  ;;  %vm678_vm1 = vcmp.gt.f32.partialorder %v4825_v17, 20.0 }
  0x66   : > { %3482 = vmatprep.subr.bf16.mxu0 %v6360_v61  ;;  %v4855_v3 = vadd.f32 %v6372_v11, %v321_v37  ;;  %1971 = vmatmul.mubr.f32.gmra.mrb[10].mxu1 %v1060_v60  ;;  %v409_v16 = vmul.f32 1.442695, %v4840_v45  ;;  %v4867_v55 = vpack.c.bf16 %v1835_v32, %v1834_v42  ;;  %v3486_v7 = vpack.c.bf16 %v1803_v62, %v1802_v48  ;;  %v286_v32 = vld [vmem:[%s4131_s30 + $0xb8] sm:$0xff]  ;;  %v287_v48 = vld [vmem:[%s4131_s30 + $0xc0] sm:$0xff] }
  0x67   : > { %v4864_v49 = vadd.f32 %v6372_v11, %v322_v43  ;;  %3605 = vmatprep.subr.bf16.mxu1 %v6360_v61  ;;  %2186 = vmatmul.mubr.f32.gmra.mrb[6].mxu0 %v996_v30  ;;  %v610_v47 = vsub.f32 2.0, %v578_v31  ;;  %3875 = vpow2.f32 %v407_v56  ;;  %v1837_v11 = vld [vmem:[%s6309_s3 + $0x358] sm:$0xff]  ;;  %v4884_v22 = vmul.f32 %v3870_v54, %v452_v14  ;;  %v999_v14 = vld [vmem:[#allocation2 + $0x4a] sm:$0xff] }
  0x68   : > { %6381 = vst [vmem:[#allocation5_spill] sm:$0xff] %v4867_v55  ;;  %1975 = vmatprep.mubr.f32.mxu1 %v4689_v6  ;;  %2190 = vmatprep.mubr.f32.mxu0 %v1061_v4  ;;  %v1805_v6 = vld [vmem:[%s6309_s3 + $0x258] sm:$0xff]  ;;  %3877 = vpow2.f32 %v409_v16  ;;  %v411_v35 = vmul.f32 1.442695, %v4855_v3  ;;  %v323_v38 = vmul.f32 %v6379_v13, %v284_v58  ;;  %v4889_v2 = vpack.c.bf16 %v1837_v11, %v1836_v51  ;;  %v4955_v58 = vld [vmem:[%s6307_s1] ss:$0 sm:$0xff] }
  0x69   : > { %3484 = vmatpush1.bf16.msra.mxu0 %v3483_v57  ;;  %v413_v12 = vmul.f32 1.442695, %v4864_v49  ;;  %v642_v15 = vmul.f32 %v3868_v18, %v610_v47  ;;  %3621 = vmatpush1.bf16.msra.mxu1 %v4867_v55  ;;  %v324_v9 = vmul.f32 %v6379_v13, %v285_v25  ;;  %v3872_v27 = vpop.eup %3871  ;;  %v3489_v60 = vpack.c.bf16 %v1805_v6, %v4860_v44  ;;  %v1063_v18 = vld [vmem:[#allocation2 + $0x60] sm:$0xff]  ;;  %v1841_v54 = vld [vmem:[%s6309_s3 + $0x378] sm:$0xff]  ;;  %v4964_v11 = vld [vmem:[%s6309_s3 + $0x270] sm:$0xff] }
  0x6a   : > { %3485 = vmatprep.subr.bf16.mxu0 %v6360_v61  ;;  %1976 = vmatmul.mubr.f32.gmra.mrb[12].mxu1 %v1061_v4  ;;  %3879 = vpow2.f32 %v411_v35  ;;  %6382 = vst [vmem:[#allocation10_spill] sm:$0xff] %v4889_v2  ;;  %v4907_v39 = vadd.f32 2.0, %v4884_v22  ;;  %vm674_vm13 = vcmp.gt.f32.partialorder %v6383_v34, 20.0  ;;  %v579_v57 = vmul.f32 %v3872_v27, %v4775_v8  ;;  %v1840_v4 = vld [vmem:[%s6309_s3 + $0x370] sm:$0xff]  ;;  %v4969_v25 = vld [vmem:[%s6309_s3 + $0x278] sm:$0xff]  ;;  %v1064_v6 = vld [vmem:[#allocation2 + $0x68] sm:$0xff] }
  0x6b   : > { %3606 = vmatprep.subr.bf16.mxu1 %v6360_v61  ;;  %2191 = vmatmul.mubr.f32.gmra.mrb[8].mxu0 %v997_v36  ;;  %v706_v13 = vmul.f32 %v642_v15, %v4645_v53  ;;  %3881 = vpow2.f32 %v413_v12  ;;  %v4919_v53 = vld [vmem:[%s6308_s2] ss:$0 sm:$0xff]  ;;  %v4932_v43 = vpack.c.bf16 %v1839_v26, %v1838_v50  ;;  %v325_v47 = vmul.f32 %v4955_v58, %v286_v32  ;;  %v6386_v50 = vld [vmem:[#allocation11_spill] sm:$0xff] }
  0x6c   : > { %1980 = vmatprep.mubr.f32.mxu1 %v4700_v20  ;;  %v3874_v21 = vpop.eup %3873  ;;  %2195 = vmatprep.mubr.f32.mxu0 %v1062_v63  ;;  %v4912_v20 = vld [vmem:[%s6309_s3 + $0x268] sm:$0xff]  ;;  %v4922_v37 = vadd.f32 %v4919_v53, %v323_v38  ;;  %v4925_v42 = vadd.f32 %v4919_v53, %v324_v9  ;;  %3883 = vrcp.f32 %v4907_v39  ;;  %v611_v62 = vsub.f32 2.0, %v579_v57  ;;  %v1842_v15 = vld [vmem:[%s6309_s3 + $0x380] sm:$0xff] }
  0x6d   : > { %3487 = vmatpush1.bf16.msra.mxu0 %v3486_v7  ;;  %v738_v30 = vmul.f32 %v706_v13, %v6383_v34  ;;  %v453_v8 = vadd.f32 2.0, %v3874_v21  ;;  %3622 = vmatpush1.bf16.msra.mxu1 %v4889_v2  ;;  %6384 = vst [vmem:[#allocation9_spill] sm:$0xff] %v4932_v43  ;;  %v326_v36 = vmul.f32 %v4955_v58, %v287_v48  ;;  %v1843_v38 = vld [vmem:[%s6309_s3 + $0x388] sm:$0xff]  ;;  %vm675_vm14 = vcmp.gt.f32.partialorder %v6386_v50, 20.0  ;;  %v5004_v57 = vld [vmem:[%s6309_s3 + $0x280] sm:$0xff] }
  0x6e   : > { %3488 = vmatprep.subr.bf16.mxu0 %v6360_v61  ;;  %1981 = vmatmul.mubr.f32.gmra.mrb[14].mxu1 %v1062_v63  ;;  %v415_v31 = vmul.f32 1.442695, %v4922_v37  ;;  %v417_v56 = vmul.f32 1.442695, %v4925_v42  ;;  %v643_v51 = vmul.f32 %v3872_v27, %v611_v62  ;;  %v4978_v12 = vadd.f32 %v4919_v53, %v325_v47 }
  0x6f   : > { %3607 = vmatprep.subr.bf16.mxu1 %v6360_v61  ;;  %2196 = vmatmul.mubr.f32.gmra.mrb[10].mxu0 %v998_v52  ;;  %v4948_v44 = vsel %vm674_vm13, %v6383_v34, %v738_v30  ;;  %v4950_v16 = vmul.f32 %v3874_v21, %v453_v8  ;;  %v4980_v63 = vpack.c.bf16 %v1841_v54, %v1840_v4  ;;  %v1065_v4 = vld [vmem:[#allocation2 + $0x78] sm:$0xff]  ;;  %vm679_vm2 = vcmp.gt.f32.partialorder %v4840_v45, 20.0 }
  0x70   : > { %1985 = vmatprep.mubr.f32.mxu1 %v4710_v10  ;;  %2200 = vmatprep.mubr.f32.mxu0 %v1063_v18  ;;  %v3492_v10 = vpack.c.bf16 %v4912_v20, %v4903_v59  ;;  %846 = vst [vmem:[#allocation2 + $0xb1] sm:$0xff] %v4948_v44  ;;  %3885 = vpow2.f32 %v415_v31  ;;  %v707_v26 = vmul.f32 %v643_v51, %v4752_v33  ;;  %v288_v59 = vld [vmem:[%s4131_s30 + $0xc8] sm:$0xff]  ;;  %v419_v52 = vmul.f32 1.442695, %v4978_v12  ;;  %v1000_v33 = vld [vmem:[#allocation2 + $0x52] sm:$0xff] }
  0x71   : > { %3490 = vmatpush1.bf16.msra.mxu0 %v3489_v60  ;;  %v3876_v7 = vpop.eup %3875  ;;  %v4974_v35 = vadd.f32 2.0, %v4950_v16  ;;  %3887 = vpow2.f32 %v417_v56  ;;  %3623 = vmatpush1.bf16.msra.mxu1 %v4932_v43  ;;  %6385 = vst [vmem:[#allocation14_spill] sm:$0xff] %v4980_v63  ;;  %v4992_v60 = vadd.f32 %v4919_v53, %v326_v36  ;;  %v3495_v13 = vpack.c.bf16 %v4969_v25, %v4964_v11  ;;  %v289_v56 = vld [vmem:[%s4131_s30 + $0xd0] sm:$0xff]  ;;  %v1845_v51 = vld [vmem:[%s6309_s3 + $0x398] sm:$0xff] }
  0x72   : > { %3491 = vmatprep.subr.bf16.mxu0 %v6360_v61  ;;  %v3878_v9 = vpop.eup %3877  ;;  %1986 = vmatmul.mubr.f32.gmra.mrb[16].mxu1 %v1063_v18  ;;  %v454_v27 = vadd.f32 2.0, %v3876_v7  ;;  %v739_v34 = vmul.f32 %v707_v26, %v6386_v50  ;;  %v5014_v30 = vpack.c.bf16 %v1843_v38, %v1842_v15  ;;  %v327_v31 = vmul.f32 %v4955_v58, %v288_v59  ;;  %v6388_v25 = vld [vmem:[#allocation13_spill] sm:$0xff]  ;;  %v5060_v38 = vld [vmem:[%s6309_s3 + $0x2a0] sm:$0xff]  ;;  %v5072_v59 = vld [vmem:[%s6309_s3 + $0x2a8] sm:$0xff] }
  0x73   : > { %3608 = vmatprep.subr.bf16.mxu1 %v6360_v61  ;;  %2201 = vmatmul.mubr.f32.gmra.mrb[12].mxu0 %v999_v14  ;;  %3889 = vrcp.f32 %v4974_v35  ;;  %v455_v21 = vadd.f32 2.0, %v3878_v9  ;;  %v421_v18 = vmul.f32 1.442695, %v4992_v60  ;;  %vm676_vm15 = vcmp.gt.f32.partialorder %v6388_v25, 20.0 }
  0x74   : > { %1990 = vmatprep.mubr.f32.mxu1 %v4726_v5  ;;  %v3880_v20 = vpop.eup %3879  ;;  %2205 = vmatprep.mubr.f32.mxu0 %v1064_v6  ;;  %v5009_v5 = vld [vmem:[%s6309_s3 + $0x288] sm:$0xff]  ;;  %v5011_v32 = vmul.f32 %v3876_v7, %v454_v27  ;;  %6387 = vst [vmem:[#allocation7_spill] sm:$0xff] %v5014_v30  ;;  %3891 = vpow2.f32 %v419_v52  ;;  %v5025_v54 = vsel %vm675_vm14, %v6386_v50, %v739_v34  ;;  %v290_v52 = vld [vmem:[%s4131_s30 + $0xd8] sm:$0xff]  ;;  %vm680_vm3 = vcmp.gt.f32.partialorder %v4855_v3, 20.0 }
  0x75   : > { %3493 = vmatpush1.bf16.msra.mxu0 %v3492_v10  ;;  %v3882_v8 = vpop.eup %3881  ;;  %v5017_v48 = vmul.f32 %v3878_v9, %v455_v21  ;;  %v456_v62 = vadd.f32 2.0, %v3880_v20  ;;  %3624 = vmatpush1.bf16.msra.mxu1 %v4980_v63  ;;  %3893 = vpow2.f32 %v421_v18  ;;  %v1844_v10 = vld [vmem:[%s6309_s3 + $0x390] sm:$0xff]  ;;  %847 = vst [vmem:[#allocation2 + $0xc1] sm:$0xff] %v5025_v54  ;;  %v3498_v36 = vpack.c.bf16 %v5009_v5, %v5004_v57  ;;  %v1001_v50 = vld [vmem:[#allocation2 + $0x62] sm:$0xff] }
  0x76   : > { %3494 = vmatprep.subr.bf16.mxu0 %v6360_v61  ;;  %1991 = vmatmul.mubr.f32.gmra.mrb[18].mxu1 %v1064_v6  ;;  %v5028_v47 = vadd.f32 2.0, %v5011_v32  ;;  %v457_v14 = vadd.f32 2.0, %v3882_v8  ;;  %v3884_v11 = vpop.eup %3883  ;;  %v5048_v6 = vld [vmem:[%s6309_s3 + $0x290] sm:$0xff]  ;;  %v5063_v9 = vadd.f32 %v4919_v53, %v327_v31  ;;  %v328_v21 = vmul.f32 %v4955_v58, %v289_v56 }
  0x77   : > { %3609 = vmatprep.subr.bf16.mxu1 %v6360_v61  ;;  %2206 = vmatmul.mubr.f32.gmra.mrb[14].mxu0 %v1000_v33  ;;  %v5043_v7 = vadd.f32 2.0, %v5017_v48  ;;  %v5055_v15 = vmul.f32 %v3880_v20, %v456_v62  ;;  %v580_v26 = vmul.f32 %v3884_v11, %v4907_v39  ;;  %v1066_v20 = vld [vmem:[#allocation2 + $0x80] sm:$0xff]  ;;  %v5083_v33 = vpack.c.bf16 %v1845_v51, %v1844_v10  ;;  %v5107_v10 = vld [vmem:[%s6309_s3 + $0x2b0] sm:$0xff]  ;;  %v5112_v51 = vld [vmem:[%s6309_s3 + $0x2b8] sm:$0xff] }
  0x78   : > { %1995 = vmatprep.mubr.f32.mxu1 %v4747_v19  ;;  %v5053_v19 = vld [vmem:[%s6309_s3 + $0x298] sm:$0xff]  ;;  %2210 = vmatprep.mubr.f32.mxu0 %v1065_v4  ;;  %3895 = vrcp.f32 %v5028_v47  ;;  %v5067_v27 = vmul.f32 %v3882_v8, %v457_v14  ;;  %v423_v39 = vmul.f32 1.442695, %v5063_v9  ;;  %v5092_v8 = vadd.f32 %v4919_v53, %v328_v21  ;;  %v1846_v62 = vld [vmem:[%s6309_s3 + $0x3a0] sm:$0xff]  ;;  %v5124_v21 = vld [vmem:[%s6309_s3 + $0x2c8] sm:$0xff] }
  0x79   : > { %3496 = vmatpush1.bf16.msra.mxu0 %v3495_v13  ;;  %3897 = vrcp.f32 %v5043_v7  ;;  %v5079_v13 = vadd.f32 2.0, %v5055_v15  ;;  %3625 = vmatpush1.bf16.msra.mxu1 %v5014_v30  ;;  %6389 = vst [vmem:[#allocation4_spill] sm:$0xff] %v5083_v33  ;;  %v612_v57 = vsub.f32 2.0, %v580_v26  ;;  %v3501_v5 = vpack.c.bf16 %v5053_v19, %v5048_v6  ;;  %v5119_v26 = vld [vmem:[%s6309_s3 + $0x2c0] sm:$0xff]  ;;  %v1067_v30 = vld [vmem:[#allocation2 + $0x90] sm:$0xff] }
  0x7a   : > { %3497 = vmatprep.subr.bf16.mxu0 %v6360_v61  ;;  %v3886_v34 = vpop.eup %3885  ;;  %1996 = vmatmul.mubr.f32.gmra.mrb[20].mxu1 %v1065_v4  ;;  %v5088_v18 = vadd.f32 2.0, %v5067_v27  ;;  %v1847_v4 = vld [vmem:[%s6309_s3 + $0x3a8] sm:$0xff]  ;;  %v329_v6 = vmul.f32 %v4955_v58, %v290_v52  ;;  %v425_v56 = vmul.f32 1.442695, %v5092_v8  ;;  %vm681_vm4 = vcmp.gt.f32.partialorder %v4864_v49, 20.0 }
  0x7b   : > { %3610 = vmatprep.subr.bf16.mxu1 %v6360_v61  ;;  %v3888_v31 = vpop.eup %3887  ;;  %2211 = vmatmul.mubr.f32.gmra.mrb[16].mxu0 %v1001_v50  ;;  %3899 = vrcp.f32 %v5079_v13  ;;  %v458_v14 = vadd.f32 2.0, %v3886_v34  ;;  %v644_v19 = vmul.f32 %v3884_v11, %v612_v57  ;;  %vm682_vm5 = vcmp.gt.f32.partialorder %v4922_v37, 20.0 }
  0x7c   : > { %2000 = vmatprep.mubr.f32.mxu1 %v4771_v29  ;;  %2215 = vmatprep.mubr.f32.mxu0 %v1066_v20  ;;  %v1002_v29 = vld [vmem:[#allocation2 + $0x6a] sm:$0xff]  ;;  %3901 = vrcp.f32 %v5088_v18  ;;  %v459_v50 = vadd.f32 2.0, %v3888_v31  ;;  %v5135_v57 = vadd.f32 %v4919_v53, %v329_v6  ;;  %vm683_vm6 = vcmp.gt.f32.partialorder %v4925_v42, 20.0 }
  0x7d   : > { %3499 = vmatpush1.bf16.msra.mxu0 %v3498_v36  ;;  %v3890_v52 = vpop.eup %3889  ;;  %v5129_v11 = vmul.f32 %v3886_v34, %v458_v14  ;;  %3903 = vpow2.f32 %v423_v39  ;;  %3626 = vmatpush1.bf16.msra.mxu1 %v5083_v33  ;;  %v5132_v36 = vpack.c.bf16 %v1847_v4, %v1846_v62  ;;  %v708_v63 = vmul.f32 %v644_v19, %v4884_v22  ;;  %v1848_v39 = vld [vmem:[%s6309_s3 + $0x3b0] sm:$0xff]  ;;  %v1849_v34 = vld [vmem:[%s6309_s3 + $0x3b8] sm:$0xff]  ;;  %v291_v62 = vld [vmem:[%s4131_s30 + $0xe0] sm:$0xff] }
  0x7e   : > { %3500 = vmatprep.subr.bf16.mxu0 %v6360_v61  ;;  %2001 = vmatmul.mubr.f32.gmra.mrb[22].mxu1 %v1066_v20  ;;  %v581_v43 = vmul.f32 %v3890_v52, %v4974_v35  ;;  %v5139_v2 = vmul.f32 %v3888_v31, %v459_v50  ;;  %3905 = vpow2.f32 %v425_v56  ;;  %v3892_v4 = vpop.eup %3891  ;;  %v427_v31 = vmul.f32 1.442695, %v5135_v57  ;;  %v1003_v14 = vld [vmem:[#allocation2 + $0x7a] sm:$0xff]  ;;  %v5167_v20 = vld [vmem:[%s6309_s3 + $0x2d0] sm:$0xff] }
  0x7f   : > { %3611 = vmatprep.subr.bf16.mxu1 %v6360_v61  ;;  %2216 = vmatmul.mubr.f32.gmra.mrb[18].mxu0 %v1002_v29  ;;  %v5151_v22 = vadd.f32 2.0, %v5129_v11  ;;  %v3894_v56 = vpop.eup %3893  ;;  %v740_v6 = vmul.f32 %v708_v63, %v6388_v25  ;;  %v460_v29 = vadd.f32 2.0, %v3892_v4  ;;  %v1068_v50 = vld [vmem:[#allocation2 + $0x98] sm:$0xff]  ;;  %v5175_v63 = vpack.c.bf16 %v1849_v34, %v1848_v39  ;;  %v1850_v39 = vld [vmem:[%s6309_s3 + $0x3c0] sm:$0xff] }
  0x80   : > { %2005 = vmatprep.mubr.f32.mxu1 %v4798_v40  ;;  %2220 = vmatprep.mubr.f32.mxu0 %v1067_v30  ;;  %v613_v19 = vsub.f32 2.0, %v581_v43  ;;  %v5160_v40 = vadd.f32 2.0, %v5139_v2  ;;  %v461_v35 = vadd.f32 2.0, %v3894_v56  ;;  %v5172_v43 = vld [vmem:[%s6309_s3 + $0x2d8] sm:$0xff]  ;;  %vm684_vm7 = vcmp.gt.f32.partialorder %v4978_v12, 20.0 }
  0x81   : > { %3502 = vmatpush1.bf16.msra.mxu0 %v3501_v5  ;;  %3907 = vrcp.f32 %v5151_v22  ;;  %3627 = vmatpush1.bf16.msra.mxu1 %v5132_v36  ;;  %6390 = vst [vmem:[#allocation8_spill] sm:$0xff] %v5175_v63  ;;  %v330_v5 = vmul.f32 %v4955_v58, %v291_v62  ;;  %v5181_v55 = vsel %vm676_vm15, %v6388_v25, %v740_v6  ;;  %vm685_vm8 = vcmp.gt.f32.partialorder %v4992_v60, 20.0 }
  0x82   : > { %3503 = vmatprep.subr.bf16.mxu0 %v6360_v61  ;;  %v3896_v33 = vpop.eup %3895  ;;  %2006 = vmatmul.mubr.f32.gmra.mrb[24].mxu1 %v1067_v30  ;;  %v645_v46 = vmul.f32 %v3890_v52, %v613_v19  ;;  %3909 = vrcp.f32 %v5160_v40  ;;  %v5185_v28 = vmul.f32 %v3892_v4, %v460_v29  ;;  %v1851_v30 = vld [vmem:[%s6309_s3 + $0x3c8] sm:$0xff]  ;;  %848 = vst [vmem:[#allocation2 + $0xc9] sm:$0xff] %v5181_v55  ;;  %vm686_vm9 = vcmp.gt.f32.partialorder %v5063_v9, 20.0 }
  0x83   : > { %3612 = vmatprep.subr.bf16.mxu1 %v6360_v61  ;;  %v3898_v34 = vpop.eup %3897  ;;  %2221 = vmatmul.mubr.f32.gmra.mrb[20].mxu0 %v1003_v14  ;;  %v582_v25 = vmul.f32 %v3896_v33, %v5028_v47  ;;  %v5198_v52 = vmul.f32 %v3894_v56, %v461_v35  ;;  %3911 = vpow2.f32 %v427_v31  ;;  %v5201_v62 = vadd.f32 %v4919_v53, %v330_v5  ;;  %v1004_v4 = vld [vmem:[#allocation2 + $0x82] sm:$0xff] }
  0x84   : > { %2010 = vmatprep.mubr.f32.mxu1 %v4808_v23  ;;  %2225 = vmatprep.mubr.f32.mxu0 %v1068_v50  ;;  %v709_v6 = vmul.f32 %v645_v46, %v4950_v16  ;;  %v583_v14 = vmul.f32 %v3898_v34, %v5043_v7  ;;  %v6391_v23 = vpack.c.bf16 %v5072_v59, %v5060_v38  ;;  %v5209_v47 = vadd.f32 2.0, %v5185_v28  ;;  %v292_v31 = vld [vmem:[%s4131_s30 + $0xe8] sm:$0xff] }
  0x85   : > { %v3900_v56 = vpop.eup %3899  ;;  %v1069_v19 = vld [vmem:[#allocation2 + $0xa8] sm:$0xff]  ;;  %v614_v29 = vsub.f32 2.0, %v582_v25  ;;  %v5217_v46 = vadd.f32 2.0, %v5198_v52  ;;  %3628 = vmatpush1.bf16.msra.mxu1 %v5175_v63  ;;  %v429_v16 = vmul.f32 1.442695, %v5201_v62  ;;  %v5221_v7 = vpack.c.bf16 %v1851_v30, %v1850_v39 }
  0x86   : > { %3505 = vmatpush1.bf16.msra.mxu0 %v6391_v23  ;;  %v3902_v38 = vpop.eup %3901  ;;  %2011 = vmatmul.mubr.f32.gmra.mrb[26].mxu1 %v1068_v50  ;;  %v741_v59 = vmul.f32 %v709_v6, %v4764_v1  ;;  %v615_v5 = vsub.f32 2.0, %v583_v14  ;;  %v584_v25 = vmul.f32 %v3900_v56, %v5079_v13  ;;  %3913 = vrcp.f32 %v5209_v47  ;;  %v1005_v13 = vld [vmem:[#allocation2 + $0x92] sm:$0xff] }
  0x87   : > { %3506 = vmatprep.subr.bf16.mxu0 %v6360_v61  ;;  %3613 = vmatprep.subr.bf16.mxu1 %v6360_v61  ;;  %v3904_v23 = vpop.eup %3903  ;;  %v646_v35 = vmul.f32 %v3896_v33, %v614_v29  ;;  %v585_v39 = vmul.f32 %v3902_v38, %v5088_v18  ;;  %3915 = vrcp.f32 %v5217_v46  ;;  %v331_v50 = vmul.f32 %v4955_v58, %v292_v31  ;;  %v1070_v18 = vld [vmem:[#allocation2 + $0xb0] sm:$0xff] }
  0x88   : > { %2226 = vmatmul.mubr.f32.gmra.mrb[22].mxu0 %v1004_v4  ;;  %2015 = vmatprep.mubr.f32.mxu1 %v4837_v0  ;;  %v3906_v30 = vpop.eup %3905  ;;  %v5235_v6 = vsel %vm677_vm0, %v4764_v1, %v741_v59  ;;  %v647_v14 = vmul.f32 %v3898_v34, %v615_v5  ;;  %v616_v63 = vsub.f32 2.0, %v584_v25  ;;  %v6392_v0 = vpack.c.bf16 %v5112_v51, %v5107_v10 }
  0x89   : > { %2230 = vmatprep.mubr.f32.mxu0 %v1069_v19  ;;  %v462_v33 = vadd.f32 2.0, %v3904_v23  ;;  %849 = vst [vmem:[#allocation2 + $0xd9] sm:$0xff] %v5235_v6  ;;  %v710_v4 = vmul.f32 %v646_v35, %v5011_v32  ;;  %v617_v31 = vsub.f32 2.0, %v585_v39  ;;  %v463_v29 = vadd.f32 2.0, %v3906_v30  ;;  %3629 = vmatpush1.bf16.msra.mxu1 %v5221_v7 }
  0x8a   : > { %3508 = vmatpush1.bf16.msra.mxu0 %v6392_v0  ;;  %3917 = vpow2.f32 %v429_v16  ;;  %2016 = vmatmul.mubr.f32.gmra.mrb[28].mxu1 %v1069_v19  ;;  %v711_v1 = vmul.f32 %v647_v14, %v5017_v48  ;;  %v648_v34 = vmul.f32 %v3900_v56, %v616_v63  ;;  %v5248_v10 = vadd.f32 %v4919_v53, %v331_v50  ;;  %v1006_v48 = vld [vmem:[#allocation2 + $0x9a] sm:$0xff] }
  0x8b   : > { %3509 = vmatprep.subr.bf16.mxu0 %v6360_v61  ;;  %v5245_v59 = vmul.f32 %v3904_v23, %v462_v33  ;;  %v3908_v51 = vpop.eup %3907  ;;  %2020 = vmatprep.mubr.f32.mxu1 %v4948_v44  ;;  %v742_v32 = vmul.f32 %v710_v4, %v4825_v17  ;;  %v649_v35 = vmul.f32 %v3902_v38, %v617_v31  ;;  %v1071_v23 = vld [vmem:[#allocation2 + $0xc0] sm:$0xff]  ;;  %v1853_v0 = vld [vmem:[%s6309_s3 + $0x3d8] sm:$0xff]  ;;  %vm687_vm10 = vcmp.gt.f32.partialorder %v5092_v8, 20.0 }
  0x8c   : > { %2231 = vmatmul.mubr.f32.gmra.mrb[24].mxu0 %v1005_v13  ;;  %v5253_v16 = vmul.f32 %v3906_v30, %v463_v29  ;;  %v3910_v19 = vpop.eup %3909  ;;  %v743_v63 = vmul.f32 %v711_v1, %v4840_v45  ;;  %v712_v56 = vmul.f32 %v648_v34, %v5055_v15  ;;  %v586_v5 = vmul.f32 %v3908_v51, %v5151_v22  ;;  %v293_v34 = vld [vmem:[%s4131_s30 + $0xf0] sm:$0xff] }
  0x8d   : > { %2235 = vmatprep.mubr.f32.mxu0 %v1070_v18  ;;  %v6393_v44 = vpack.c.bf16 %v5124_v21, %v5119_v26  ;;  %v5263_v38 = vadd.f32 2.0, %v5245_v59  ;;  %v3912_v25 = vpop.eup %3911  ;;  %v5268_v39 = vsel %vm678_vm1, %v4825_v17, %v742_v32  ;;  %v713_v15 = vmul.f32 %v649_v35, %v5067_v27  ;;  %v1822_v26 = vld [vmem:[%s6309_s3 + $0x2e0] sm:$0xff]  ;;  %v1823_v21 = vld [vmem:[%s6309_s3 + $0x2e8] sm:$0xff]  ;;  %3614 = vmatprep.subr.bf16.mxu1 %v6360_v61 }
  0x8e   : > { %v587_v22 = vmul.f32 %v3910_v19, %v5160_v40  ;;  %v5273_v50 = vadd.f32 2.0, %v5253_v16  ;;  %2021 = vmatmul.mubr.f32.gmra.mrb[30].mxu1 %v1070_v18  ;;  %850 = vst [vmem:[#allocation2 + $0xe1] sm:$0xff] %v5268_v39  ;;  %v5287_v17 = vsel %vm679_vm2, %v4840_v45, %v743_v63  ;;  %v744_v27 = vmul.f32 %v712_v56, %v4855_v3  ;;  %v1852_v45 = vld [vmem:[%s6309_s3 + $0x3d0] sm:$0xff]  ;;  %v1072_v35 = vld [vmem:[#allocation2 + $0xc8] sm:$0xff] }
  0x8f   : > { %3511 = vmatpush1.bf16.msra.mxu0 %v6393_v44  ;;  %v618_v40 = vsub.f32 2.0, %v586_v5  ;;  %3919 = vrcp.f32 %v5263_v38  ;;  %2025 = vmatprep.mubr.f32.mxu1 %v5025_v54  ;;  %851 = vst [vmem:[#allocation2 + $0xf1] sm:$0xff] %v5287_v17  ;;  %v745_v30 = vmul.f32 %v713_v15, %v4864_v49  ;;  %v464_v14 = vadd.f32 2.0, %v3912_v25  ;;  %v1007_v54 = vld [vmem:[#allocation2 + $0xaa] sm:$0xff] }
  0x90   : > { %3512 = vmatprep.subr.bf16.mxu0 %v6360_v61  ;;  %2236 = vmatmul.mubr.f32.gmra.mrb[26].mxu0 %v1006_v48  ;;  %v619_v13 = vsub.f32 2.0, %v587_v22  ;;  %3921 = vrcp.f32 %v5273_v50  ;;  %v3914_v33 = vpop.eup %3913  ;;  %v5304_v18 = vsel %vm680_vm3, %v4855_v3, %v744_v27  ;;  %v6394_v31 = vpack.c.bf16 %v5172_v43, %v5167_v20  ;;  %v1824_v20 = vld [vmem:[%s6309_s3 + $0x2f0] sm:$0xff]  ;;  %v1825_v43 = vld [vmem:[%s6309_s3 + $0x2f8] sm:$0xff] }
  0x91   : > { %2240 = vmatprep.mubr.f32.mxu0 %v1071_v23  ;;  %v650_v4 = vmul.f32 %v3908_v51, %v618_v40  ;;  %v3516_v29 = vpack.c.bf16 %v1823_v21, %v1822_v26  ;;  %v431_v1 = vmul.f32 1.442695, %v5248_v10  ;;  %v3916_v32 = vpop.eup %3915  ;;  %852 = vst [vmem:[#allocation2 + $0xf9] sm:$0xff] %v5304_v18  ;;  %v5315_v48 = vsel %vm681_vm4, %v4864_v49, %v745_v30  ;;  %v294_v21 = vld [vmem:[%s4131_s30 + $0xf8] sm:$0xff]  ;;  %v1854_v30 = vld [vmem:[%s6309_s3 + $0x3e0] sm:$0xff] }
  0x92   : > { %v651_v3 = vmul.f32 %v3910_v19, %v619_v13  ;;  %v588_v51 = vmul.f32 %v3914_v33, %v5209_v47  ;;  %v5318_v63 = vmul.f32 %v3912_v25, %v464_v14  ;;  %2026 = vmatmul.mubr.f32.gmra.mrb[32].mxu1 %v1071_v23  ;;  %853 = vst [vmem:[#allocation2 + $0x109] sm:$0xff] %v5315_v48  ;;  %v1073_v27 = vld [vmem:[#allocation2 + $0xd8] sm:$0xff]  ;;  %v1855_v13 = vld [vmem:[%s6309_s3 + $0x3e8] sm:$0xff]  ;;  %vm688_vm11 = vcmp.gt.f32.partialorder %v5135_v57, 20.0 }
  0x93   : > { %3514 = vmatpush1.bf16.msra.mxu0 %v6394_v31  ;;  %v714_v49 = vmul.f32 %v650_v4, %v5129_v11  ;;  %v589_v19 = vmul.f32 %v3916_v32, %v5217_v46  ;;  %3923 = vpow2.f32 %v431_v1  ;;  %v5330_v47 = vpack.c.bf16 %v1853_v0, %v1852_v45  ;;  %2030 = vmatprep.mubr.f32.mxu1 %v5181_v55  ;;  %v1008_v11 = vld [vmem:[#allocation2 + $0xb2] sm:$0xff]  ;;  %v1009_v31 = vld [vmem:[#allocation2 + $0xc2] sm:$0xff] }
  0x94   : > { %3515 = vmatprep.subr.bf16.mxu0 %v6360_v61  ;;  %v3918_v56 = vpop.eup %3917  ;;  %2241 = vmatmul.mubr.f32.gmra.mrb[28].mxu0 %v1007_v54  ;;  %v715_v5 = vmul.f32 %v651_v3, %v5139_v2  ;;  %v620_v44 = vsub.f32 2.0, %v588_v51  ;;  %v5335_v25 = vadd.f32 2.0, %v5318_v63  ;;  %v332_v23 = vmul.f32 %v4955_v58, %v293_v34  ;;  %v1857_v3 = vld [vmem:[%s6309_s3 + $0x3f8] sm:$0xff] }
  0x95   : > { %2245 = vmatprep.mubr.f32.mxu0 %v1072_v35  ;;  %v746_v46 = vmul.f32 %v714_v49, %v4922_v37  ;;  %v621_v15 = vsub.f32 2.0, %v589_v19  ;;  %v465_v22 = vadd.f32 2.0, %v3918_v56  ;;  %v3519_v26 = vpack.c.bf16 %v1825_v43, %v1824_v20  ;;  %3630 = vmatpush1.bf16.msra.mxu1 %v5330_v47  ;;  %v1858_v20 = vld [vmem:[%s6309_s3 + $0x400] sm:$0xff]  ;;  %v1859_v43 = vld [vmem:[%s6309_s3 + $0x408] sm:$0xff] }
  0x96   : > { %v747_v55 = vmul.f32 %v715_v5, %v4925_v42  ;;  %v652_v40 = vmul.f32 %v3914_v33, %v620_v44  ;;  %3925 = vrcp.f32 %v5335_v25  ;;  %v5344_v2 = vadd.f32 %v4919_v53, %v332_v23  ;;  %2031 = vmatmul.mubr.f32.gmra.mrb[34].mxu1 %v1072_v35  ;;  %3615 = vmatprep.subr.bf16.mxu1 %v6360_v61 }
  0x97   : > { %3517 = vmatpush1.bf16.msra.mxu0 %v3516_v29  ;;  %v5356_v14 = vsel %vm682_vm5, %v4922_v37, %v746_v46  ;;  %v653_v45 = vmul.f32 %v3916_v32, %v621_v15  ;;  %v5358_v0 = vmul.f32 %v3918_v56, %v465_v22  ;;  %2035 = vmatprep.mubr.f32.mxu1 %v5235_v6  ;;  %v1074_v32 = vld [vmem:[#allocation2 + $0xe0] sm:$0xff]  ;;  %vm689_vm12 = vcmp.gt.f32.partialorder %v5201_v62, 20.0 }
  0x98   : > { %3518 = vmatprep.subr.bf16.mxu0 %v6360_v61  ;;  %2246 = vmatmul.mubr.f32.gmra.mrb[30].mxu0 %v1008_v11  ;;  %854 = vst [vmem:[#allocation2 + $0x111] sm:$0xff] %v5356_v14  ;;  %v5366_v33 = vsel %vm683_vm6, %v4925_v42, %v747_v55  ;;  %v716_v37 = vmul.f32 %v652_v40, %v5185_v28  ;;  %v433_v54 = vmul.f32 1.442695, %v5344_v2  ;;  %v5432_v40 = vld [vmem:[#allocation2 + $0xf8] sm:$0xff]  ;;  %vm690_vm13 = vcmp.gt.f32.partialorder %v5248_v10, 20.0 }
  0x99   : > { %v3920_v4 = vpop.eup %3919  ;;  %2250 = vmatprep.mubr.f32.mxu0 %v1073_v27  ;;  %855 = vst [vmem:[#allocation2 + $0x121] sm:$0xff] %v5366_v33  ;;  %v717_v6 = vmul.f32 %v653_v45, %v5198_v52  ;;  %v5374_v29 = vadd.f32 2.0, %v5358_v0  ;;  %v5376_v1 = vpack.c.bf16 %v1855_v13, %v1854_v30  ;;  %v333_v42 = vmul.f32 %v4955_v58, %v294_v21  ;;  %v1856_v52 = vld [vmem:[%s6309_s3 + $0x3f0] sm:$0xff]  ;;  %v1011_v21 = vld [vmem:[#allocation2 + $0xda] sm:$0xff] }
  0x9a   : > { %v3922_v34 = vpop.eup %3921  ;;  %v748_v28 = vmul.f32 %v716_v37, %v4978_v12  ;;  %v590_v35 = vmul.f32 %v3920_v4, %v5263_v38  ;;  %3927 = vpow2.f32 %v433_v54  ;;  %2036 = vmatmul.mubr.f32.gmra.mrb[36].mxu1 %v1073_v27  ;;  %v5415_v44 = vpack.c.bf16 %v1857_v3, %v1856_v52  ;;  %v1012_v54 = vld [vmem:[#allocation2 + $0xe2] sm:$0xff] }
  0x9b   : > { %3520 = vmatpush1.bf16.msra.mxu0 %v3519_v26  ;;  %v749_v58 = vmul.f32 %v717_v6, %v4992_v60  ;;  %v591_v51 = vmul.f32 %v3922_v34, %v5273_v50  ;;  %3929 = vrcp.f32 %v5374_v29  ;;  %v5393_v38 = vadd.f32 %v4919_v53, %v333_v42  ;;  %2040 = vmatprep.mubr.f32.mxu1 %v5268_v39  ;;  %v1010_v53 = vld [vmem:[#allocation2 + $0xca] sm:$0xff] }
  0x9c   : > { %3521 = vmatprep.subr.bf16.mxu0 %v6360_v61  ;;  %2251 = vmatmul.mubr.f32.gmra.mrb[32].mxu0 %v1009_v31  ;;  %v5405_v50 = vsel %vm684_vm7, %v4978_v12, %v748_v28  ;;  %v622_v49 = vsub.f32 2.0, %v590_v35  ;;  %v5417_v12 = vld [vmem:[#allocation2 + $0xf0] sm:$0xff]  ;;  %v5421_v46 = vpack.c.bf16 %v1859_v43, %v1858_v20  ;;  %v5449_v42 = vld [vmem:[#allocation2 + $0x108] sm:$0xff]  ;;  %vm691_vm14 = vcmp.gt.f32.partialorder %v5344_v2, 20.0 }
  0x9d   : > { %v3924_v19 = vpop.eup %3923  ;;  %2255 = vmatprep.mubr.f32.mxu0 %v1074_v32  ;;  %856 = vst [vmem:[#allocation2 + $0x129] sm:$0xff] %v5405_v50  ;;  %v5411_v56 = vsel %vm685_vm8, %v4992_v60, %v749_v58  ;;  %v623_v5 = vsub.f32 2.0, %v591_v51  ;;  %3631 = vmatpush1.bf16.msra.mxu1 %v5376_v1  ;;  %v435_v39 = vmul.f32 1.442695, %v5393_v38  ;;  %v1013_v35 = vld [vmem:[#allocation2 + $0xf2] sm:$0xff]  ;;  %vm692_vm15 = vcmp.gt.f32.partialorder %v5393_v38, 20.0 }
  0x9e   : > { %857 = vst [vmem:[#allocation2 + $0x139] sm:$0xff] %v5411_v56  ;;  %v654_v23 = vmul.f32 %v3920_v4, %v622_v49  ;;  %v466_v11 = vadd.f32 2.0, %v3924_v19  ;;  %3616 = vmatprep.subr.bf16.mxu1 %v6360_v61  ;;  %2041 = vmatmul.mubr.f32.gmra.mrb[38].mxu1 %v1074_v32  ;;  %v1014_v49 = vld [vmem:[#allocation2 + $0xfa] sm:$0xff] }
  0x9f   : > { %v655_v60 = vmul.f32 %v3922_v34, %v623_v5  ;;  %3931 = vpow2.f32 %v435_v39  ;;  %2045 = vmatprep.mubr.f32.mxu1 %v5287_v17  ;;  %v5462_v3 = vld [vmem:[#allocation2 + $0x110] sm:$0xff] }
  0xa0   : > { %v3926_v15 = vpop.eup %3925  ;;  %2256 = vmatmul.mubr.f32.gmra.mrb[34].mxu0 %v1010_v53  ;;  %v718_v22 = vmul.f32 %v654_v23, %v5245_v59  ;;  %v5425_v26 = vmul.f32 %v3924_v19, %v466_v11  ;;  %v5473_v53 = vld [vmem:[#allocation2 + $0x120] sm:$0xff]  ;;  %v5482_v23 = vld [vmem:[#allocation2 + $0x10a] sm:$0xff] }
  0xa1   : > { %2260 = vmatprep.mubr.f32.mxu0 %v5417_v12  ;;  %v719_v27 = vmul.f32 %v655_v60, %v5253_v16  ;;  %v592_v55 = vmul.f32 %v3926_v15, %v5335_v25  ;;  %3632 = vmatpush1.bf16.msra.mxu1 %v5415_v44 }
  0xa2   : > { %v750_v30 = vmul.f32 %v718_v22, %v5063_v9  ;;  %v530_v59 = vadd.f32 2.0, %v5425_v26  ;;  %3570 = vmatprep.subr.bf16.mxu1 %v5421_v46  ;;  %2046 = vmatmul.mubr.f32.gmra.mrb[40].mxu1 %v5417_v12 }
  0xa3   : > { %v751_v13 = vmul.f32 %v719_v27, %v5092_v8  ;;  %v624_v45 = vsub.f32 2.0, %v592_v55  ;;  %2050 = vmatprep.mubr.f32.mxu1 %v5304_v18 }
  0xa4   : > { %v3928_v16 = vpop.eup %3927  ;;  %2261 = vmatmul.mubr.f32.gmra.mrb[36].mxu0 %v1011_v21  ;;  %v5442_v25 = vsel %vm686_vm9, %v5063_v9, %v750_v30  ;;  %3933 = vrcp.f32 %v530_v59  ;;  %v5485_v60 = vld [vmem:[#allocation2 + $0x128] sm:$0xff] }
  0xa5   : > { %v3930_v37 = vpop.eup %3929  ;;  %2265 = vmatprep.mubr.f32.mxu0 %v5432_v40  ;;  %858 = vst [vmem:[#allocation2 + $0x141] sm:$0xff] %v5442_v25  ;;  %v5447_v4 = vsel %vm687_vm10, %v5092_v8, %v751_v13  ;;  %v656_v31 = vmul.f32 %v3926_v15, %v624_v45  ;;  %v467_v6 = vadd.f32 2.0, %v3928_v16  ;;  %v5494_v27 = vld [vmem:[#allocation2 + $0x138] sm:$0xff]  ;;  %v5502_v13 = vld [vmem:[#allocation2 + $0x122] sm:$0xff] }
  0xa6   : > { %859 = vst [vmem:[#allocation2 + $0x151] sm:$0xff] %v5447_v4  ;;  %v593_v34 = vmul.f32 %v3930_v37, %v5374_v29  ;;  %2051 = vmatmul.mubr.f32.gmra.mrb[42].mxu1 %v5432_v40 }
  0xa7   : > { %v720_v9 = vmul.f32 %v656_v31, %v5318_v63  ;;  %v5455_v32 = vmul.f32 %v3928_v16, %v467_v6  ;;  %2055 = vmatprep.mubr.f32.mxu1 %v5315_v48  ;;  %v5515_v6 = vld [vmem:[#allocation2 + $0x12a] sm:$0xff] }
  0xa8   : > { %2266 = vmatmul.mubr.f32.gmra.mrb[38].mxu0 %v1012_v54  ;;  %v625_v8 = vsub.f32 2.0, %v593_v34 }
  0xa9   : > { %v3932_v28 = vpop.eup %3931  ;;  %2270 = vmatprep.mubr.f32.mxu0 %v5449_v42  ;;  %v752_v52 = vmul.f32 %v720_v9, %v5135_v57  ;;  %v531_v29 = vadd.f32 2.0, %v5455_v32 }
  0xaa   : > { %v657_v58 = vmul.f32 %v3930_v37, %v625_v8  ;;  %v468_v63 = vadd.f32 2.0, %v3932_v28  ;;  %2056 = vmatmul.mubr.f32.gmra.mrb[44].mxu1 %v5449_v42 }
  0xab   : > { %v5466_v51 = vsel %vm688_vm11, %v5135_v57, %v752_v52  ;;  %3935 = vrcp.f32 %v531_v29  ;;  %2060 = vmatprep.mubr.f32.mxu1 %v5356_v14 }
  0xac   : > { %2271 = vmatmul.mubr.f32.gmra.mrb[40].mxu0 %v1013_v35  ;;  %860 = vst [vmem:[#allocation2 + $0x159] sm:$0xff] %v5466_v51  ;;  %v721_v20 = vmul.f32 %v657_v58, %v5358_v0  ;;  %v500_v43 = vmul.f32 %v3932_v28, %v468_v63  ;;  %v5507_v16 = vld [vmem:[#allocation2 + $0x140] sm:$0xff] }
  0xad   : > { %2275 = vmatprep.mubr.f32.mxu0 %v5462_v3  ;;  %v5518_v34 = vld [vmem:[#allocation2 + $0x150] sm:$0xff]  ;;  %v5528_v28 = vld [vmem:[#allocation2 + $0x13a] sm:$0xff] }
  0xae   : > { %v3934_v19 = vpop.eup %3933  ;;  %v753_v57 = vmul.f32 %v721_v20, %v5201_v62  ;;  %v532_v5 = vadd.f32 2.0, %v500_v43  ;;  %2061 = vmatmul.mubr.f32.gmra.mrb[46].mxu1 %v5462_v3 }
  0xaf   : > { %v594_v39 = vmul.f32 %v3934_v19, %v530_v59  ;;  %2065 = vmatprep.mubr.f32.mxu1 %v5366_v33 }
  0xb0   : > { %2276 = vmatmul.mubr.f32.gmra.mrb[42].mxu0 %v1014_v49  ;;  %v5479_v0 = vsel %vm689_vm12, %v5201_v62, %v753_v57  ;;  %3937 = vrcp.f32 %v532_v5  ;;  %v5491_v62 = vld [vmem:[#allocation2 + $0x112] sm:$0xff] }
  0xb1   : > { %2280 = vmatprep.mubr.f32.mxu0 %v5473_v53  ;;  %861 = vst [vmem:[#allocation2 + $0x169] sm:$0xff] %v5479_v0  ;;  %v626_v11 = vsub.f32 2.0, %v594_v39  ;;  %v5561_v49 = vld [vmem:[#allocation2 + $0x91] sm:$0xff] }
  0xb2   : > { %2066 = vmatmul.mubr.f32.gmra.mrb[48].mxu1 %v5473_v53  ;;  %v1860_v57 = vld [vmem:[%s6309_s3 + $0x410] sm:$0xff] }
  0xb3   : > { %v658_v15 = vmul.f32 %v3934_v19, %v626_v11  ;;  %2070 = vmatprep.mubr.f32.mxu1 %v5405_v50  ;;  %v5531_v52 = vld [vmem:[#allocation2 + $0x158] sm:$0xff]  ;;  %v1258_v39 = vld [vmem:[#allocation2 + $0x90] sm:$0xff] }
  0xb4   : > { %2281 = vmatmul.mubr.f32.gmra.mrb[44].mxu0 %v5482_v23  ;;  %v5551_v20 = vld [vmem:[#allocation2 + $0x152] sm:$0xff] }
  0xb5   : > { %v3936_v22 = vpop.eup %3935  ;;  %2285 = vmatprep.mubr.f32.mxu0 %v5485_v60  ;;  %v722_v21 = vmul.f32 %v658_v15, %v5425_v26  ;;  %v5577_v15 = vld [vmem:[#allocation2 + $0x99] sm:$0xff] }
  0xb6   : > { %v595_v55 = vmul.f32 %v3936_v22, %v531_v29  ;;  %2071 = vmatmul.mubr.f32.gmra.mrb[50].mxu1 %v5485_v60 }
  0xb7   : > { %v754_v30 = vmul.f32 %v722_v21, %v5248_v10  ;;  %2075 = vmatprep.mubr.f32.mxu1 %v5411_v56 }
  0xb8   : > { %2286 = vmatmul.mubr.f32.gmra.mrb[46].mxu0 %v5491_v62  ;;  %v627_v59 = vsub.f32 2.0, %v595_v55  ;;  %v5544_v63 = vld [vmem:[#allocation2 + $0x168] sm:$0xff]  ;;  %v1862_v55 = vld [vmem:[%s6309_s3 + $0x420] sm:$0xff] }
  0xb9   : > { %2290 = vmatprep.mubr.f32.mxu0 %v5494_v27  ;;  %v5505_v26 = vsel %vm690_vm13, %v5248_v10, %v754_v30  ;;  %v1863_v30 = vld [vmem:[%s6309_s3 + $0x428] sm:$0xff] }
  0xba   : > { %v3938_v45 = vpop.eup %3937  ;;  %862 = vst [vmem:[#allocation2 + $0x171] sm:$0xff] %v5505_v26  ;;  %v659_v37 = vmul.f32 %v3936_v22, %v627_v59  ;;  %2076 = vmatmul.mubr.f32.gmra.mrb[52].mxu1 %v5494_v27  ;;  %v1259_v59 = vld [vmem:[#allocation2 + $0x98] sm:$0xff] }
  0xbb   : > { %v596_v54 = vmul.f32 %v3938_v45, %v532_v5  ;;  %2080 = vmatprep.mubr.f32.mxu1 %v5442_v25  ;;  %v1861_v5 = vld [vmem:[%s6309_s3 + $0x418] sm:$0xff] }
  0xbc   : > { %2291 = vmatmul.mubr.f32.gmra.mrb[48].mxu0 %v5502_v13  ;;  %v723_v31 = vmul.f32 %v659_v37, %v5455_v32  ;;  %v3573_v21 = vpack.c.bf16 %v1861_v5, %v1860_v57  ;;  %v5592_v37 = vld [vmem:[#allocation2 + $0xa9] sm:$0xff] }
  0xbd   : > { %2295 = vmatprep.mubr.f32.mxu0 %v5507_v16  ;;  %v628_v10 = vsub.f32 2.0, %v596_v54  ;;  %v1185_v54 = vld [vmem:[#allocation2 + $0x1a] sm:$0xff]  ;;  %v1261_v5 = vld [vmem:[#allocation2 + $0xb0] sm:$0xff] }
  0xbe   : > { %v755_v9 = vmul.f32 %v723_v31, %v5344_v2  ;;  %2081 = vmatmul.mubr.f32.gmra.mrb[54].mxu1 %v5507_v16  ;;  %v3577_v31 = vpack.c.bf16 %v1863_v30, %v1862_v55  ;;  %v1867_v55 = vld [vmem:[%s6309_s3 + $0x448] sm:$0xff] }
  0xbf   : > { %v660_v8 = vmul.f32 %v3938_v45, %v628_v10  ;;  %2085 = vmatprep.mubr.f32.mxu1 %v5447_v4  ;;  %v1260_v10 = vld [vmem:[#allocation2 + $0xa8] sm:$0xff] }
  0xc0   : > { %2296 = vmatmul.mubr.f32.gmra.mrb[50].mxu0 %v5515_v6  ;;  %v5525_v32 = vsel %vm691_vm14, %v5344_v2, %v755_v9  ;;  %v5539_v2 = vld [vmem:[#allocation2 + $0x142] sm:$0xff]  ;;  %v1864_v9 = vld [vmem:[%s6309_s3 + $0x430] sm:$0xff] }
  0xc1   : > { %2300 = vmatprep.mubr.f32.mxu0 %v5518_v34  ;;  %863 = vst [vmem:[#allocation2 + $0x181] sm:$0xff] %v5525_v32  ;;  %v724_v35 = vmul.f32 %v660_v8, %v500_v43  ;;  %v5553_v43 = vld [vmem:[#allocation2 + $0x170] sm:$0xff]  ;;  %v1865_v8 = vld [vmem:[%s6309_s3 + $0x438] sm:$0xff]  ;;  %v5613_v30 = vld [vmem:[#allocation2 + $0xc1] sm:$0xff] }
  0xc2   : > { %2086 = vmatmul.mubr.f32.gmra.mrb[56].mxu1 %v5518_v34  ;;  %v5575_v11 = vld [vmem:[#allocation2 + $0x16a] sm:$0xff]  ;;  %v5590_v45 = vld [vmem:[#allocation2 + $0x172] sm:$0xff]  ;;  %v3581_v57 = vpack.c.bf16 %v1865_v8, %v1864_v9 }
  0xc3   : > { %v756_v29 = vmul.f32 %v724_v35, %v5393_v38  ;;  %2090 = vmatprep.mubr.f32.mxu1 %v5466_v51  ;;  %6396 = vst [vmem:[#allocation13_spill] sm:$0xff] %v5575_v11  ;;  %6397 = vst [vmem:[#allocation15_spill] sm:$0xff] %v5590_v45  ;;  %v1121_v35 = vld [vmem:[#allocation2 + $0x19] sm:$0xff]  ;;  %v5626_v8 = vld [vmem:[#allocation2 + $0x31] sm:$0xff] }
  0xc4   : > { %2301 = vmatmul.mubr.f32.gmra.mrb[52].mxu0 %v5528_v28  ;;  %v1869_v9 = vld [vmem:[%s6309_s3 + $0x458] sm:$0xff]  ;;  %6398 = vst [vmem:[#allocation16_spill] sm:$0xff] %v5626_v8 }
  0xc5   : > { %2305 = vmatprep.mubr.f32.mxu0 %v5531_v52  ;;  %v5542_v58 = vsel %vm692_vm15, %v5393_v38, %v756_v29  ;;  %v5559_v38 = vld [vmem:[#allocation2 + $0x15a] sm:$0xff]  ;;  %v1186_v29 = vld [vmem:[#allocation2 + $0x22] sm:$0xff] }
  0xc6   : > { %864 = vst [vmem:[#allocation2 + $0x189] sm:$0xff] %v5542_v58  ;;  %2091 = vmatmul.mubr.f32.gmra.mrb[58].mxu1 %v5531_v52  ;;  %6395 = vst [vmem:[#allocation11_spill] sm:$0xff] %v5559_v38 }
  0xc7   : > { %2095 = vmatprep.mubr.f32.mxu1 %v5479_v0 }
  0xc8   : > { %2306 = vmatmul.mubr.f32.gmra.mrb[54].mxu0 %v5539_v2  ;;  %v5563_v19 = vld [vmem:[#allocation2 + $0x180] sm:$0xff] }
  0xc9   : > { %2310 = vmatprep.mubr.f32.mxu0 %v5544_v63 }
  0xca   : > { %2096 = vmatmul.mubr.f32.gmra.mrb[60].mxu1 %v5544_v63 }
  0xcb   : > { %2100 = vmatprep.mubr.f32.mxu1 %v5505_v26 }
  0xcc   : > { %2311 = vmatmul.mubr.f32.gmra.mrb[56].mxu0 %v5551_v20 }
  0xcd   : > { %2315 = vmatprep.mubr.f32.mxu0 %v5553_v43  ;;  %v5579_v22 = vld [vmem:[#allocation2 + $0x188] sm:$0xff] }
  0xce   : > { %2101 = vmatmul.mubr.f32.gmra.mrb[62].mxu1 %v5553_v43 }
  0xcf   : > { %2660 = vmatprep.mubr.f32.mxu1 %v5561_v49 }
  0xd0   : > { %2316 = vmatmul.mubr.f32.gmra.mrb[58].mxu0 %v5559_v38  ;;  %v5674_v38 = vld [vmem:[#allocation2 + $0x62] sm:$0xff] }
  0xd1   : > { %2320 = vmatprep.mubr.f32.mxu0 %v5563_v19 }
  0xd2   : > { %2661 = vmatmul.mubr.f32.vlgmr.msra.gmra.mrb[64].mxu1 %v1258_v39  ;;  %v1866_v39 = vld [vmem:[%s6309_s3 + $0x440] sm:$0xff] }
  0xd3   : > { %2665 = vmatprep.mubr.f32.mxu1 %v5577_v15  ;;  %3572 = vmatpush3.bf16.msra.mxu1 %v5421_v46  ;;  %v5603_v46 = vld [vmem:[#allocation2 + $0xb1] sm:$0xff] }
  0xd4   : > { %2321 = vmatmul.mubr.f32.gmra.mrb[60].mxu0 %v5575_v11  ;;  %3574 = vmatprep.subr.bf16.mxu1 %v3573_v21  ;;  %v5671_v11 = vld [vmem:[#allocation2 + $0x51] sm:$0xff] }
  0xd5   : > { %2325 = vmatprep.mubr.f32.mxu0 %v5579_v22 }
  0xd6   : > { %2666 = vmatmul.mubr.f32.gmra.mrb[66].mxu1 %v1259_v59  ;;  %v5615_v59 = vld [vmem:[#allocation2 + $0x32] sm:$0xff] }
  0xd7   : > { %2670 = vmatprep.mubr.f32.mxu1 %v5592_v37  ;;  %3576 = vmatpush3.bf16.msra.mxu1 %v3573_v21  ;;  %v1122_v21 = vld [vmem:[#allocation2 + $0x21] sm:$0xff] }
  0xd8   : > { %2326 = vmatmul.mubr.f32.gmra.mrb[62].mxu0 %v5590_v45  ;;  %3578 = vmatprep.subr.bf16.mxu1 %v3577_v31  ;;  %v5660_v45 = vld [vmem:[#allocation2 + $0x49] sm:$0xff] }
  0xd9   : > { %2395 = vmatprep.mubr.f32.mxu0 %v1185_v54  ;;  %v3585_v54 = vpack.c.bf16 %v1867_v55, %v1866_v39  ;;  %v1870_v39 = vld [vmem:[%s6309_s3 + $0x460] sm:$0xff] }
  0xda   : > { %2671 = vmatmul.mubr.f32.gmra.mrb[68].mxu1 %v1260_v10  ;;  %v1262_v10 = vld [vmem:[#allocation2 + $0xc0] sm:$0xff] }
  0xdb   : > { %2675 = vmatprep.mubr.f32.mxu1 %v5603_v46  ;;  %3580 = vmatpush3.bf16.msra.mxu1 %v3577_v31  ;;  %v5629_v31 = vld [vmem:[#allocation2 + $0xc9] sm:$0xff]  ;;  %v5643_v55 = vld [vmem:[#allocation2 + $0x39] sm:$0xff] }
  0xdc   : > { %2396 = vmatmul.mubr.f32.vlgmr.msra.gmra.mrb[0].mxu0 %v1121_v35  ;;  %3582 = vmatprep.subr.bf16.mxu1 %v3581_v57  ;;  %v5631_v35 = vld [vmem:[#allocation2 + $0x3a] sm:$0xff]  ;;  %6399 = vst [vmem:[#allocation17_spill] sm:$0xff] %v5643_v55 }
  0xdd   : > { %3523 = vmatpush1.bf16.msra.mxu0 %v4568_v24  ;;  %2400 = vmatprep.mubr.f32.mxu0 %v1186_v29  ;;  %v1868_v24 = vld [vmem:[%s6309_s3 + $0x450] sm:$0xff] }
  0xde   : > { %3524 = vmatprep.subr.bf16.mxu0 %v6360_v61  ;;  %2676 = vmatmul.mubr.f32.gmra.mrb[70].mxu1 %v1261_v5  ;;  %v3589_v29 = vpack.c.bf16 %v1869_v9, %v1868_v24  ;;  %v1263_v5 = vld [vmem:[#allocation2 + $0xc8] sm:$0xff]  ;;  %v1264_v9 = vld [vmem:[#allocation2 + $0xd8] sm:$0xff] }
  0xdf   : > { %2680 = vmatprep.mubr.f32.mxu1 %v5613_v30  ;;  %3584 = vmatpush3.bf16.msra.mxu1 %v3581_v57  ;;  %v6400_v57 = vld [vmem:[#allocation6_spill] sm:$0xff] }
  0xe0   : > { %2401 = vmatmul.mubr.f32.gmra.mrb[2].mxu0 %v1122_v21  ;;  %3586 = vmatprep.subr.bf16.mxu1 %v3585_v54  ;;  %v5646_v21 = vld [vmem:[#allocation2 + $0xd9] sm:$0xff] }
  0xe1   : > { %2405 = vmatprep.mubr.f32.mxu0 %v5615_v59  ;;  %3526 = vmatpush1.bf16.msra.mxu0 %v4570_v41  ;;  %v1871_v41 = vld [vmem:[%s6309_s3 + $0x468] sm:$0xff] }
  0xe2   : > { %3527 = vmatprep.subr.bf16.mxu0 %v6360_v61  ;;  %2681 = vmatmul.mubr.f32.gmra.mrb[72].mxu1 %v1262_v10  ;;  %v5648_v10 = vld [vmem:[#allocation2 + $0x4a] sm:$0xff]  ;;  %v3593_v24 = vpack.c.bf16 %v1871_v41, %v1870_v39  ;;  %v5665_v39 = vld [vmem:[#allocation2 + $0x52] sm:$0xff] }
  0xe3   : > { %2685 = vmatprep.mubr.f32.mxu1 %v5629_v31  ;;  %3588 = vmatpush3.bf16.msra.mxu1 %v3585_v54  ;;  %v6401_v54 = vld [vmem:[#allocation12_spill] sm:$0xff] }
  0xe4   : > { %2406 = vmatmul.mubr.f32.gmra.mrb[4].mxu0 %v5626_v8  ;;  %3590 = vmatprep.subr.bf16.mxu1 %v3589_v29  ;;  %v1872_v8 = vld [vmem:[%s6309_s3 + $0x470] sm:$0xff] }
  0xe5   : > { %2410 = vmatprep.mubr.f32.mxu0 %v5631_v35  ;;  %3529 = vmatpush1.bf16.msra.mxu0 %v6400_v57  ;;  %v1873_v57 = vld [vmem:[%s6309_s3 + $0x478] sm:$0xff] }
  0xe6   : > { %3530 = vmatprep.subr.bf16.mxu0 %v6360_v61  ;;  %2686 = vmatmul.mubr.f32.gmra.mrb[74].mxu1 %v1263_v5  ;;  %v5663_v5 = vld [vmem:[#allocation2 + $0xe1] sm:$0xff]  ;;  %v3597_v41 = vpack.c.bf16 %v1873_v57, %v1872_v8 }
  0xe7   : > { %2690 = vmatprep.mubr.f32.mxu1 %v5646_v21  ;;  %3592 = vmatpush3.bf16.msra.mxu1 %v3589_v29  ;;  %v5680_v8 = vld [vmem:[#allocation2 + $0x61] sm:$0xff] }
  0xe8   : > { %2411 = vmatmul.mubr.f32.gmra.mrb[6].mxu0 %v5643_v55  ;;  %3594 = vmatprep.subr.bf16.mxu1 %v3593_v24  ;;  %v1265_v55 = vld [vmem:[#allocation2 + $0xe0] sm:$0xff] }
  0xe9   : > { %2415 = vmatprep.mubr.f32.mxu0 %v5648_v10  ;;  %3532 = vmatpush1.bf16.msra.mxu0 %v6401_v54  ;;  %v6402_v54 = vld [vmem:[#allocation5_spill] sm:$0xff]  ;;  %v6403_v29 = vld [vmem:[#allocation10_spill] sm:$0xff] }
  0xea   : > { %3533 = vmatprep.subr.bf16.mxu0 %v6360_v61  ;;  %2691 = vmatmul.mubr.f32.gmra.mrb[76].mxu1 %v1264_v9  ;;  %v5683_v9 = vld [vmem:[#allocation2 + $0x6a] sm:$0xff]  ;;  %v5703_v57 = vld [vmem:[#allocation2 + $0x82] sm:$0xff] }
  0xeb   : > { %2695 = vmatprep.mubr.f32.mxu1 %v5663_v5  ;;  %3596 = vmatpush3.bf16.msra.mxu1 %v3593_v24  ;;  %v5693_v24 = vld [vmem:[#allocation2 + $0x7a] sm:$0xff] }
  0xec   : > { %2416 = vmatmul.mubr.f32.gmra.mrb[8].mxu0 %v5660_v45  ;;  %3598 = vmatprep.subr.bf16.mxu1 %v3597_v41 }
  0xed   : > { %2420 = vmatprep.mubr.f32.mxu0 %v5665_v39  ;;  %3535 = vmatpush1.bf16.msra.mxu0 %v6402_v54 }
  0xee   : > { %3536 = vmatprep.subr.bf16.mxu0 %v6360_v61  ;;  %2696 = vmatmul.mubr.f32.gmra.mrb[78].mxu1 %v1265_v55  ;;  %v6404_v55 = vld [vmem:[#allocation9_spill] sm:$0xff] }
  0xef   : > { %2700 = vmatprep.mubr.f32.mxu1 %v5287_v17  ;;  %3600 = vmatpush3.bf16.msra.mxu1 %v3597_v41  ;;  %v5690_v17 = vld [vmem:[#allocation2 + $0x69] sm:$0xff]  ;;  %v5713_v41 = vld [vmem:[#allocation2 + $0x92] sm:$0xff] }
  0xf0   : > { %2421 = vmatmul.mubr.f32.gmra.mrb[10].mxu0 %v5671_v11 }
  0xf1   : > { %2425 = vmatprep.mubr.f32.mxu0 %v5674_v38  ;;  %3538 = vmatpush1.bf16.msra.mxu0 %v6403_v29  ;;  %v6411_v29 = vld [vmem:[#allocation15_spill] sm:$0xff] }
  0xf2   : > { %3539 = vmatprep.subr.bf16.mxu0 %v6360_v61  ;;  %2701 = vmatmul.mubr.f32.gmra.mrb[80].mxu1 %v5417_v12  ;;  %v5700_v12 = vld [vmem:[#allocation2 + $0x79] sm:$0xff] }
  0xf3   : > { %2705 = vmatprep.mubr.f32.mxu1 %v5304_v18  ;;  %v6405_v18 = vld [vmem:[#allocation14_spill] sm:$0xff] }
  0xf4   : > { %2426 = vmatmul.mubr.f32.gmra.mrb[12].mxu0 %v5680_v8 }
  0xf5   : > { %2430 = vmatprep.mubr.f32.mxu0 %v5683_v9  ;;  %3541 = vmatpush1.bf16.msra.mxu0 %v6404_v55 }
  0xf6   : > { %3542 = vmatprep.subr.bf16.mxu0 %v6360_v61  ;;  %2706 = vmatmul.mubr.f32.gmra.mrb[82].mxu1 %v5432_v40  ;;  %v5710_v40 = vld [vmem:[#allocation2 + $0x81] sm:$0xff] }
  0xf7   : > { %2710 = vmatprep.mubr.f32.mxu1 %v5315_v48  ;;  %v6406_v48 = vld [vmem:[#allocation7_spill] sm:$0xff] }
  0xf8   : > { %2431 = vmatmul.mubr.f32.gmra.mrb[14].mxu0 %v5690_v17 }
  0xf9   : > { %2435 = vmatprep.mubr.f32.mxu0 %v5693_v24  ;;  %3544 = vmatpush1.bf16.msra.mxu0 %v6405_v18  ;;  %v1216_v18 = vld [vmem:[#allocation2 + $0x18a] sm:$0xff] }
  0xfa   : > { %3545 = vmatprep.subr.bf16.mxu0 %v6360_v61  ;;  %2711 = vmatmul.mubr.f32.gmra.mrb[84].mxu1 %v5449_v42  ;;  %v6407_v42 = vld [vmem:[#allocation4_spill] sm:$0xff] }
  0xfb   : > { %2715 = vmatprep.mubr.f32.mxu1 %v5356_v14  ;;  %v5721_v14 = vld [vmem:[#allocation2 + $0x9a] sm:$0xff] }
  0xfc   : > { %2436 = vmatmul.mubr.f32.gmra.mrb[16].mxu0 %v5700_v12 }
  0xfd   : > { %2440 = vmatprep.mubr.f32.mxu0 %v5703_v57  ;;  %3547 = vmatpush1.bf16.msra.mxu0 %v6406_v48  ;;  %v1397_v48 = vld [vmem:[#allocation2 + $0x112] sm:$0xff] }
  0xfe   : > { %3548 = vmatprep.subr.bf16.mxu0 %v6360_v61  ;;  %2716 = vmatmul.mubr.f32.gmra.mrb[86].mxu1 %v5462_v3  ;;  %v5729_v3 = vld [vmem:[#allocation2 + $0xaa] sm:$0xff] }
  0xff   : > { %2720 = vmatprep.mubr.f32.mxu1 %v5366_v33  ;;  %v6408_v33 = vld [vmem:[#allocation8_spill] sm:$0xff] }
 0x100   : > { %2441 = vmatmul.mubr.f32.gmra.mrb[18].mxu0 %v5710_v40 }
 0x101   : > { %2445 = vmatprep.mubr.f32.mxu0 %v5713_v41  ;;  %3550 = vmatpush1.bf16.msra.mxu0 %v6407_v42 }
 0x102   : > { %3551 = vmatprep.subr.bf16.mxu0 %v6360_v61  ;;  %2721 = vmatmul.mubr.f32.gmra.mrb[88].mxu1 %v5473_v53  ;;  %v5737_v53 = vld [vmem:[#allocation2 + $0xb2] sm:$0xff] }
 0x103   : > { %2725 = vmatprep.mubr.f32.mxu1 %v5405_v50  ;;  %v5753_v50 = vld [vmem:[#allocation2 + $0xca] sm:$0xff] }
 0x104   : > { %2446 = vmatmul.mubr.f32.gmra.mrb[20].mxu0 %v5561_v49  ;;  %v1345_v49 = vld [vmem:[#allocation2 + $0x1a1] sm:$0xff] }
 0x105   : > { %2450 = vmatprep.mubr.f32.mxu0 %v5721_v14  ;;  %3553 = vmatpush1.bf16.msra.mxu0 %v5132_v36  ;;  %v5745_v36 = vld [vmem:[#allocation2 + $0xc2] sm:$0xff] }
 0x106   : > { %3554 = vmatprep.subr.bf16.mxu0 %v6360_v61  ;;  %2726 = vmatmul.mubr.f32.gmra.mrb[90].mxu1 %v5485_v60 }
 0x107   : > { %2730 = vmatprep.mubr.f32.mxu1 %v5411_v56 }
 0x108   : > { %2451 = vmatmul.mubr.f32.gmra.mrb[22].mxu0 %v5577_v15  ;;  %v1142_v15 = vld [vmem:[#allocation2 + $0x111] sm:$0xff] }
 0x109   : > { %2455 = vmatprep.mubr.f32.mxu0 %v5729_v3  ;;  %3556 = vmatpush1.bf16.msra.mxu0 %v6408_v33  ;;  %v1250_v33 = vld [vmem:[#allocation2 + $0x30] sm:$0xff] }
 0x10a   : > { %3557 = vmatprep.subr.bf16.mxu0 %v6360_v61  ;;  %2731 = vmatmul.mubr.f32.gmra.mrb[92].mxu1 %v5494_v27  ;;  %v1140_v27 = vld [vmem:[#allocation2 + $0xf9] sm:$0xff] }
 0x10b   : > { %2735 = vmatprep.mubr.f32.mxu1 %v5442_v25 }
 0x10c   : > { %2456 = vmatmul.mubr.f32.gmra.mrb[24].mxu0 %v5592_v37 }
 0x10d   : > { %2460 = vmatprep.mubr.f32.mxu0 %v5737_v53  ;;  %3559 = vmatpush1.bf16.msra.mxu0 %v5221_v7  ;;  %v5761_v7 = vld [vmem:[#allocation2 + $0xda] sm:$0xff] }
 0x10e   : > { %3560 = vmatprep.subr.bf16.mxu0 %v6360_v61  ;;  %2736 = vmatmul.mubr.f32.gmra.mrb[94].mxu1 %v5507_v16  ;;  %v1344_v16 = vld [vmem:[#allocation2 + $0x199] sm:$0xff] }
 0x10f   : > { %2740 = vmatprep.mubr.f32.mxu1 %v5447_v4 }
 0x110   : > { %2461 = vmatmul.mubr.f32.gmra.mrb[26].mxu0 %v5603_v46  ;;  %v3941_v46 = vld [vmem:[#allocation2 + $0x8] sm:$0xff] }
 0x111   : > { %2465 = vmatprep.mubr.f32.mxu0 %v5745_v36  ;;  %3562 = vmatpush1.bf16.msra.mxu0 %v5330_v47  ;;  %v5769_v47 = vld [vmem:[#allocation2 + $0xe2] sm:$0xff] }
 0x112   : > { %3563 = vmatprep.subr.bf16.mxu0 %v6360_v61  ;;  %2741 = vmatmul.mubr.f32.gmra.mrb[96].mxu1 %v5518_v34 }
 0x113   : > { %2745 = vmatprep.mubr.f32.mxu1 %v5466_v51 }
 0x114   : > { %2466 = vmatmul.mubr.f32.gmra.mrb[28].mxu0 %v5613_v30 }
 0x115   : > { %2470 = vmatprep.mubr.f32.mxu0 %v5753_v50  ;;  %3565 = vmatpush1.bf16.msra.mxu0 %v5376_v1  ;;  %v1139_v1 = vld [vmem:[#allocation2 + $0xf1] sm:$0xff] }
 0x116   : > { %3566 = vmatprep.subr.bf16.mxu0 %v6360_v61  ;;  %2746 = vmatmul.mubr.f32.gmra.mrb[98].mxu1 %v5531_v52  ;;  %v5775_v61 = vld [vmem:[#allocation2 + $0xf2] sm:$0xff] }
 0x117   : > { %2750 = vmatprep.mubr.f32.mxu1 %v5479_v0  ;;  %v1280_v52 = vld [vmem:[#allocation2 + $0x198] sm:$0xff] }
 0x118   : > { %2471 = vmatmul.mubr.f32.gmra.mrb[30].mxu0 %v5629_v31 }
 0x119   : > { %2475 = vmatprep.mubr.f32.mxu0 %v5761_v7  ;;  %3568 = vmatpush1.bf16.msra.mxu0 %v5415_v44  ;;  %v5781_v44 = vld [vmem:[#allocation2 + $0xfa] sm:$0xff] }
 0x11a   : > { %2751 = vmatmul.mubr.f32.gmra.mrb[100].mxu1 %v5544_v63 }
 0x11b   : > { %2755 = vmatprep.mubr.f32.mxu1 %v5505_v26 }
 0x11c   : > { %2476 = vmatmul.mubr.f32.gmra.mrb[32].mxu0 %v5646_v21 }
 0x11d   : > { %2480 = vmatprep.mubr.f32.mxu0 %v5769_v47 }
 0x11e   : > { %2756 = vmatmul.mubr.f32.gmra.mrb[102].mxu1 %v5553_v43  ;;  %v1141_v43 = vld [vmem:[#allocation2 + $0x109] sm:$0xff] }
 0x11f   : > { %2760 = vmatprep.mubr.f32.mxu1 %v5525_v32 }
 0x120   : > { %2481 = vmatmul.mubr.f32.gmra.mrb[34].mxu0 %v5663_v5 }
 0x121   : > { %2485 = vmatprep.mubr.f32.mxu0 %v5775_v61 }
 0x122   : > { %2761 = vmatmul.mubr.f32.gmra.mrb[104].mxu1 %v5563_v19  ;;  %v5785_v60 = vpop.f32.mrb[0].mxu1 }
 0x123   : > { %2765 = vmatprep.mubr.f32.mxu1 %v5542_v58  ;;  %v1949_v34 = vpop.f32.mrb[1].mxu1 }
 0x124   : > { %2486 = vmatmul.mubr.f32.gmra.mrb[36].mxu0 %v1139_v1 }
 0x125   : > { %2490 = vmatprep.mubr.f32.mxu0 %v5781_v44 }
 0x126   : > { %2766 = vmatmul.mubr.f32.gmra.mrb[106].mxu1 %v5579_v22  ;;  %v5789_v63 = vpop.f32.mrb[2].mxu1 }
 0x127   : > { %2770 = vmatprep.mubr.f32.mxu1 %v1344_v16  ;;  %v1954_v19 = vpop.f32.mrb[3].mxu1 }
 0x128   : > { %2491 = vmatmul.mubr.f32.gmra.mrb[38].mxu0 %v1140_v27  ;;  %v1253_v27 = vld [vmem:[#allocation2 + $0x50] sm:$0xff] }
 0x129   : > { %2495 = vmatprep.mubr.f32.mxu0 %v5482_v23  ;;  %v1143_v23 = vld [vmem:[#allocation2 + $0x121] sm:$0xff] }
 0x12a   : > { %2771 = vmatmul.mubr.f32.gmra.mrb[108].mxu1 %v1280_v52 }
 0x12b   : > { %2775 = vmatprep.mubr.f32.mxu1 %v1345_v49  ;;  %v5793_v37 = vpop.f32.mrb[4].mxu1 }
 0x12c   : > { %2496 = vmatmul.mubr.f32.gmra.mrb[40].mxu0 %v1141_v43  ;;  %v1959_v22 = vpop.f32.mrb[5].mxu1  ;;  %v1409_v43 = vld [vmem:[#allocation2 + $0x1a2] sm:$0xff] }
 0x12d   : > { %2500 = vmatprep.mubr.f32.mxu0 %v5491_v62  ;;  %v1144_v62 = vld [vmem:[#allocation2 + $0x129] sm:$0xff]  ;;  %v1257_v22 = vld [vmem:[#allocation2 + $0x80] sm:$0xff] }
 0x12e   : > { %2776 = vmatmul.mubr.f32.gmra.mrb[110].mxu1 %v3941_v46 }
 0x12f   : > { %3329 = vmatprep.mubr.f32.mxu1 %v5615_v59 }
 0x130   : > { %2501 = vmatmul.mubr.f32.gmra.mrb[42].mxu0 %v1142_v15  ;;  %v5797_v30 = vpop.f32.mrb[6].mxu1 }
 0x131   : > { %2505 = vmatprep.mubr.f32.mxu0 %v5502_v13  ;;  %v1964_v31 = vpop.f32.mrb[7].mxu1 }
 0x132   : > { %3330 = vmatmul.mubr.f32.vlgmr.msra.gmra.mrb[112].mxu1 %v5631_v35 }
 0x133   : > { %3332 = vmatprep.mubr.f32.mxu1 %v5648_v10 }
 0x134   : > { %2506 = vmatmul.mubr.f32.gmra.mrb[44].mxu0 %v1143_v23 }
 0x135   : > { %2510 = vmatprep.mubr.f32.mxu0 %v5515_v6  ;;  %v5802_v21 = vpop.f32.mrb[8].mxu1 }
 0x136   : > { %3333 = vmatmul.mubr.f32.gmra.mrb[114].mxu1 %v5665_v39  ;;  %v1969_v5 = vpop.f32.mrb[9].mxu1  ;;  %v6410_v39 = vld [vmem:[#allocation13_spill] sm:$0xff] }
 0x137   : > { %3335 = vmatprep.mubr.f32.mxu1 %v5674_v38  ;;  %v6409_v38 = vld [vmem:[#allocation11_spill] sm:$0xff] }
 0x138   : > { %2511 = vmatmul.mubr.f32.gmra.mrb[46].mxu0 %v1144_v62 }
 0x139   : > { %2515 = vmatprep.mubr.f32.mxu0 %v5528_v28  ;;  %v5807_v13 = vpop.f32.mrb[10].mxu1 }
 0x13a   : > { %3336 = vmatmul.mubr.f32.gmra.mrb[116].mxu1 %v5683_v9  ;;  %v1974_v59 = vpop.f32.mrb[11].mxu1  ;;  %v1215_v9 = vld [vmem:[#allocation2 + $0x182] sm:$0xff] }
 0x13b   : > { %3338 = vmatprep.mubr.f32.mxu1 %v5693_v24  ;;  %v1396_v24 = vld [vmem:[#allocation2 + $0x10a] sm:$0xff] }
 0x13c   : > { %2516 = vmatmul.mubr.f32.gmra.mrb[48].mxu0 %v5411_v56 }
 0x13d   : > { %2520 = vmatprep.mubr.f32.mxu0 %v5539_v2  ;;  %v5813_v6 = vpop.f32.mrb[12].mxu1 }
 0x13e   : > { %3339 = vmatmul.mubr.f32.gmra.mrb[118].mxu1 %v5703_v57  ;;  %v1979_v35 = vpop.f32.mrb[13].mxu1 }
 0x13f   : > { %3341 = vmatprep.mubr.f32.mxu1 %v5713_v41  ;;  %v1398_v41 = vld [vmem:[#allocation2 + $0x122] sm:$0xff] }
 0x140   : > { %2521 = vmatmul.mubr.f32.gmra.mrb[50].mxu0 %v5442_v25 }
 0x141   : > { %2525 = vmatprep.mubr.f32.mxu0 %v5551_v20  ;;  %v5819_v28 = vpop.f32.mrb[14].mxu1 }
 0x142   : > { %3342 = vmatmul.mubr.f32.gmra.mrb[120].mxu1 %v5721_v14  ;;  %v1984_v56 = vpop.f32.mrb[15].mxu1  ;;  %v1399_v14 = vld [vmem:[#allocation2 + $0x12a] sm:$0xff] }
 0x143   : > { %3344 = vmatprep.mubr.f32.mxu1 %v5729_v3  ;;  %v6412_v3 = vld [vmem:[#allocation16_spill] sm:$0xff] }
 0x144   : > { %2526 = vmatmul.mubr.f32.gmra.mrb[52].mxu0 %v5447_v4 }
 0x145   : > { %2530 = vmatprep.mubr.f32.mxu0 %v6409_v38  ;;  %v5825_v10 = vpop.f32.mrb[16].mxu1 }
 0x146   : > { %3345 = vmatmul.mubr.f32.gmra.mrb[122].mxu1 %v5737_v53  ;;  %v1989_v25 = vpop.f32.mrb[17].mxu1  ;;  %v1400_v53 = vld [vmem:[#allocation2 + $0x13a] sm:$0xff] }
 0x147   : > { %3347 = vmatprep.mubr.f32.mxu1 %v5745_v36 }
 0x148   : > { %2531 = vmatmul.mubr.f32.gmra.mrb[54].mxu0 %v5466_v51 }
 0x149   : > { %2535 = vmatprep.mubr.f32.mxu0 %v6410_v39  ;;  %v5831_v54 = vpop.f32.mrb[18].mxu1 }
 0x14a   : > { %3348 = vmatmul.mubr.f32.gmra.mrb[124].mxu1 %v5753_v50  ;;  %v1994_v4 = vpop.f32.mrb[19].mxu1  ;;  %v6413_v50 = vld [vmem:[#allocation17_spill] sm:$0xff] }
 0x14b   : > { %3350 = vmatprep.mubr.f32.mxu1 %v5761_v7  ;;  %v1251_v7 = vld [vmem:[#allocation2 + $0x38] sm:$0xff] }
 0x14c   : > { %2536 = vmatmul.mubr.f32.gmra.mrb[56].mxu0 %v5479_v0 }
 0x14d   : > { %2540 = vmatprep.mubr.f32.mxu0 %v6411_v29  ;;  %v5837_v55 = vpop.f32.mrb[20].mxu1 }
 0x14e   : > { %3351 = vmatmul.mubr.f32.gmra.mrb[126].mxu1 %v5769_v47  ;;  %v1999_v51 = vpop.f32.mrb[21].mxu1 }
 0x14f   : > { %3353 = vmatprep.mubr.f32.mxu1 %v5775_v61  ;;  %v1252_v61 = vld [vmem:[#allocation2 + $0x48] sm:$0xff] }
 0x150   : > { %2541 = vmatmul.mubr.f32.gmra.mrb[58].mxu0 %v5505_v26 }
 0x151   : > { %2545 = vmatprep.mubr.f32.mxu0 %v1215_v9  ;;  %v5842_v57 = vpop.f32.mrb[22].mxu1 }
 0x152   : > { %3354 = vmatmul.mubr.f32.gmra.mrb[128].mxu1 %v5781_v44  ;;  %v2004_v0 = vpop.f32.mrb[23].mxu1 }
 0x153   : > { %3356 = vmatprep.mubr.f32.mxu1 %v1396_v24 }
 0x154   : > { %2546 = vmatmul.mubr.f32.gmra.mrb[60].mxu0 %v5525_v32 }
 0x155   : > { %2550 = vmatprep.mubr.f32.mxu0 %v1216_v18  ;;  %v5846_v42 = vpop.f32.mrb[24].mxu1 }
 0x156   : > { %3357 = vmatmul.mubr.f32.gmra.mrb[130].mxu1 %v1397_v48  ;;  %v2009_v26 = vpop.f32.mrb[25].mxu1 }
 0x157   : > { %3359 = vmatprep.mubr.f32.mxu1 %v1398_v41 }
 0x158   : > { %2551 = vmatmul.mubr.f32.gmra.mrb[62].mxu0 %v5542_v58 }
 0x159   : > { %2620 = vmatprep.mubr.f32.mxu0 %v6412_v3  ;;  %v5850_v36 = vpop.f32.mrb[26].mxu1 }
 0x15a   : > { %3360 = vmatmul.mubr.f32.gmra.mrb[132].mxu1 %v1399_v14  ;;  %v2014_v32 = vpop.f32.mrb[27].mxu1 }
 0x15b   : > { %3362 = vmatprep.mubr.f32.mxu1 %v1400_v53 }
 0x15c   : > { %2621 = vmatmul.mubr.f32.vlgmr.msra.gmra.mrb[0].mxu0 %v1250_v33 }
 0x15d   : > { %2625 = vmatprep.mubr.f32.mxu0 %v6413_v50  ;;  %v5853_v47 = vpop.f32.mrb[28].mxu1 }
 0x15e   : > { %3363 = vmatmul.mubr.f32.gmra.mrb[134].mxu1 %v5539_v2  ;;  %v2019_v58 = vpop.f32.mrb[29].mxu1 }
 0x15f   : > { %3365 = vmatprep.mubr.f32.mxu1 %v5551_v20  ;;  %v1254_v20 = vld [vmem:[#allocation2 + $0x60] sm:$0xff] }
 0x160   : > { %2626 = vmatmul.mubr.f32.gmra.mrb[2].mxu0 %v1251_v7 }
 0x161   : > { %2630 = vmatprep.mubr.f32.mxu0 %v5660_v45  ;;  %v5858_v1 = vpop.f32.mrb[30].mxu1  ;;  %v1408_v45 = vld [vmem:[#allocation2 + $0x19a] sm:$0xff] }
 0x162   : > { %3366 = vmatmul.mubr.f32.gmra.mrb[136].mxu1 %v6409_v38  ;;  %v2024_v44 = vpop.f32.mrb[31].mxu1 }
 0x163   : > { %3368 = vmatprep.mubr.f32.mxu1 %v6410_v39 }
 0x164   : > { %2631 = vmatmul.mubr.f32.gmra.mrb[4].mxu0 %v1252_v61 }
 0x165   : > { %2635 = vmatprep.mubr.f32.mxu0 %v5671_v11  ;;  %v5863_v16 = vpop.f32.mrb[32].mxu1  ;;  %v1255_v11 = vld [vmem:[#allocation2 + $0x68] sm:$0xff] }
 0x166   : > { %3369 = vmatmul.mubr.f32.gmra.mrb[138].mxu1 %v6411_v29  ;;  %v2029_v2 = vpop.f32.mrb[33].mxu1 }
 0x167   : > { %3371 = vmatprep.mubr.f32.mxu1 %v1215_v9 }
 0x168   : > { %2636 = vmatmul.mubr.f32.gmra.mrb[6].mxu0 %v1253_v27 }
 0x169   : > { %2640 = vmatprep.mubr.f32.mxu0 %v5680_v8  ;;  %v5867_v34 = vpop.f32.mrb[34].mxu1  ;;  %v1256_v8 = vld [vmem:[#allocation2 + $0x78] sm:$0xff] }
 0x16a   : > { %3372 = vmatmul.mubr.f32.gmra.mrb[140].mxu1 %v1216_v18  ;;  %v2034_v52 = vpop.f32.mrb[35].mxu1 }
 0x16b   : > { %3374 = vmatprep.mubr.f32.mxu1 %v1408_v45 }
 0x16c   : > { %2641 = vmatmul.mubr.f32.gmra.mrb[8].mxu0 %v1254_v20 }
 0x16d   : > { %2645 = vmatprep.mubr.f32.mxu0 %v5690_v17  ;;  %v5870_v49 = vpop.f32.mrb[36].mxu1 }
 0x16e   : > { %3375 = vmatmul.mubr.f32.gmra.mrb[142].mxu1 %v1409_v43  ;;  %v2039_v19 = vpop.f32.mrb[37].mxu1 }
 0x170   : > { %2646 = vmatmul.mubr.f32.gmra.mrb[10].mxu0 %v1255_v11 }
 0x171   : > { %2650 = vmatprep.mubr.f32.mxu0 %v5700_v12  ;;  %v5873_v15 = vpop.f32.mrb[38].mxu1 }
 0x172   : > { %v2044_v46 = vpop.f32.mrb[39].mxu1 }
 0x174   : > { %2651 = vmatmul.mubr.f32.gmra.mrb[12].mxu0 %v1256_v8 }
 0x175   : > { %2655 = vmatprep.mubr.f32.mxu0 %v5710_v40  ;;  %v5876_v23 = vpop.f32.mrb[40].mxu1 }
 0x176   : > { %v2049_v31 = vpop.f32.mrb[41].mxu1 }
 0x177   : > { %v5909_v31 = vld [vmem:[%s6310_s4] ss:$0 sm:$0xff] }
 0x178   : > { %2656 = vmatmul.mubr.f32.gmra.mrb[14].mxu0 %v1257_v22 }
 0x179   : > { %v5878_v17 = vpop.f32.mrb[42].mxu1 }
 0x17a   : > { %v2054_v62 = vpop.f32.mrb[43].mxu1 }
 0x17b   : > { %v1988_v62 = vadd.f32 %v5909_v31, %v5825_v10  ;;  %v1998_v10 = vadd.f32 %v5909_v31, %v5837_v55  ;;  %v2008_v55 = vadd.f32 %v5909_v31, %v5846_v42  ;;  %v2018_v42 = vadd.f32 %v5909_v31, %v5853_v47 }
 0x17c   : > { %v2028_v47 = vadd.f32 %v5909_v31, %v5863_v16 }
 0x17d   : > { %v5880_v5 = vpop.f32.mrb[44].mxu1 }
 0x17e   : > { %v2059_v59 = vpop.f32.mrb[45].mxu1 }
 0x181   : > { %v5882_v35 = vpop.f32.mrb[46].mxu1 }
 0x182   : > { %v2064_v12 = vpop.f32.mrb[47].mxu1 }
 0x185   : > { %v5884_v56 = vpop.f32.mrb[48].mxu1 }
 0x186   : > { %v2069_v38 = vpop.f32.mrb[49].mxu1 }
 0x189   : > { %v5886_v25 = vpop.f32.mrb[50].mxu1 }
 0x18a   : > { %v2074_v40 = vpop.f32.mrb[51].mxu1 }
 0x18d   : > { %v5888_v39 = vpop.f32.mrb[52].mxu1 }
 0x18e   : > { %v2079_v4 = vpop.f32.mrb[53].mxu1 }
 0x191   : > { %v5890_v29 = vpop.f32.mrb[54].mxu1 }
 0x192   : > { %v2084_v9 = vpop.f32.mrb[55].mxu1 }
 0x193   : > { %v1993_v9 = vadd.f32 %v5909_v31, %v5831_v54  ;;  %v2003_v54 = vadd.f32 %v5909_v31, %v5842_v57  ;;  %v2013_v57 = vadd.f32 %v5909_v31, %v5850_v36  ;;  %v2023_v36 = vadd.f32 %v5909_v31, %v5858_v1 }
 0x195   : > { %v5892_v51 = vpop.f32.mrb[56].mxu1 }
 0x196   : > { %v2089_v24 = vpop.f32.mrb[57].mxu1 }
 0x199   : > { %v5894_v18 = vpop.f32.mrb[58].mxu1 }
 0x19a   : > { %v2094_v0 = vpop.f32.mrb[59].mxu1 }
 0x19d   : > { %v5896_v48 = vpop.f32.mrb[60].mxu1 }
 0x19e   : > { %v2099_v41 = vpop.f32.mrb[61].mxu1 }
 0x1a1   : > { %v5898_v26 = vpop.f32.mrb[62].mxu1 }
 0x1a2   : > { %v2104_v14 = vpop.f32.mrb[63].mxu1 }
 0x1a5   : > { %v2662_v3 = vpop.f32.mrb[64].mxu1 }
 0x1a6   : > { %v2664_v33 = vpop.f32.mrb[65].mxu1 }
 0x1a9   : > { %v2667_v53 = vpop.f32.mrb[66].mxu1 }
 0x1aa   : > { %v2669_v32 = vpop.f32.mrb[67].mxu1 }
 0x1ad   : > { %v2672_v50 = vpop.f32.mrb[68].mxu1 }
 0x1ae   : > { %v2674_v7 = vpop.f32.mrb[69].mxu1 }
 0x1b1   : > { %v2677_v58 = vpop.f32.mrb[70].mxu1 }
 0x1b2   : > { %v2679_v61 = vpop.f32.mrb[71].mxu1 }
 0x1b5   : > { %v2682_v44 = vpop.f32.mrb[72].mxu1 }
 0x1b6   : > { %v2684_v27 = vpop.f32.mrb[73].mxu1 }
 0x1b9   : > { %v2687_v2 = vpop.f32.mrb[74].mxu1 }
 0x1ba   : > { %v2689_v20 = vpop.f32.mrb[75].mxu1 }
 0x1bd   : > { %v2692_v45 = vpop.f32.mrb[76].mxu1 }
 0x1be   : > { %v2694_v52 = vpop.f32.mrb[77].mxu1 }
 0x1c1   : > { %v5900_v43 = vpop.f32.mrb[78].mxu1 }
 0x1c2   : > { %v2699_v11 = vpop.f32.mrb[79].mxu1 }
 0x1c5   : > { %v5902_v19 = vpop.f32.mrb[80].mxu1 }
 0x1c6   : > { %v2704_v8 = vpop.f32.mrb[81].mxu1 }
 0x1c9   : > { %v5904_v46 = vpop.f32.mrb[82].mxu1 }
 0x1ca   : > { %v2709_v22 = vpop.f32.mrb[83].mxu1 }
 0x1cd   : > { %v5913_v59 = vpop.f32.mrb[84].mxu1 }
 0x1ce   : > { %v2714_v38 = vpop.f32.mrb[85].mxu1 }
 0x1cf   : > { %v2437_v12 = vpop.f32.mrb[16].mxu0 }
 0x1d0   : > { %v3650_v40 = vadd.f32 %v2437_v12, %v1988_v62  ;;  %v2439_v4 = vpop.f32.mrb[17].mxu0 }
 0x1d1   : > { %v5919_v0 = vpop.f32.mrb[86].mxu1 }
 0x1d2   : > { %v5917_v24 = vadd.f32 %v3650_v40, %v2662_v3  ;;  %v2719_v14 = vpop.f32.mrb[87].mxu1 }
 0x1d3   : > { %v2442_v41 = vpop.f32.mrb[18].mxu0 }
 0x1d4   : > { %v3653_v33 = vadd.f32 %v2442_v41, %v1993_v9  ;;  %v2444_v32 = vpop.f32.mrb[19].mxu0 }
 0x1d5   : > { %v5925_v61 = vpop.f32.mrb[88].mxu1 }
 0x1d6   : > { %v5923_v7 = vadd.f32 %v3653_v33, %v2667_v53  ;;  %v2724_v20 = vpop.f32.mrb[89].mxu1 }
 0x1d7   : > { %v2447_v27 = vpop.f32.mrb[20].mxu0 }
 0x1d8   : > { %v3656_v52 = vadd.f32 %v2447_v27, %v1998_v10  ;;  %v2449_v11 = vpop.f32.mrb[21].mxu0 }
 0x1d9   : > { %v5931_v8 = vpop.f32.mrb[90].mxu1 }
 0x1da   : > { %v5929_v3 = vadd.f32 %v3656_v52, %v2672_v50  ;;  %v2729_v62 = vpop.f32.mrb[91].mxu1 }
 0x1db   : > { %v2452_v22 = vpop.f32.mrb[22].mxu0 }
 0x1dc   : > { %v3659_v12 = vadd.f32 %v2452_v22, %v2003_v54  ;;  %v2454_v38 = vpop.f32.mrb[23].mxu0 }
 0x1dd   : > { %v5937_v40 = vpop.f32.mrb[92].mxu1 }
 0x1de   : > { %v5935_v53 = vadd.f32 %v3659_v12, %v2677_v58  ;;  %v2734_v9 = vpop.f32.mrb[93].mxu1 }
 0x1df   : > { %v2457_v4 = vpop.f32.mrb[24].mxu0 }
 0x1e0   : > { %v3662_v41 = vadd.f32 %v2457_v4, %v2008_v55  ;;  %v2459_v14 = vpop.f32.mrb[25].mxu0 }
 0x1e1   : > { %v5943_v33 = vpop.f32.mrb[94].mxu1 }
 0x1e2   : > { %v5941_v50 = vadd.f32 %v3662_v41, %v2682_v44  ;;  %v2739_v10 = vpop.f32.mrb[95].mxu1 }
 0x1e3   : > { %v2462_v32 = vpop.f32.mrb[26].mxu0 }
 0x1e4   : > { %v3665_v27 = vadd.f32 %v2462_v32, %v2013_v57  ;;  %v2464_v20 = vpop.f32.mrb[27].mxu0 }
 0x1e5   : > { %v5949_v52 = vpop.f32.mrb[96].mxu1 }
 0x1e6   : > { %v5947_v58 = vadd.f32 %v3665_v27, %v2687_v2  ;;  %v2744_v54 = vpop.f32.mrb[97].mxu1 }
 0x1e7   : > { %v2467_v11 = vpop.f32.mrb[28].mxu0 }
 0x1e8   : > { %v3668_v22 = vadd.f32 %v2467_v11, %v2018_v42  ;;  %v2469_v62 = vpop.f32.mrb[29].mxu0 }
 0x1e9   : > { %v5955_v12 = vpop.f32.mrb[98].mxu1 }
 0x1ea   : > { %v5953_v44 = vadd.f32 %v3668_v22, %v2692_v45  ;;  %v2749_v55 = vpop.f32.mrb[99].mxu1  ;;  %v2033_v45 = vadd.f32 %v5909_v31, %v5867_v34 }
 0x1eb   : > { %v2472_v38 = vpop.f32.mrb[30].mxu0 }
 0x1ec   : > { %v3671_v4 = vadd.f32 %v2472_v38, %v2023_v36  ;;  %v2474_v9 = vpop.f32.mrb[31].mxu0 }
 0x1ed   : > { %v5962_v41 = vpop.f32.mrb[100].mxu1 }
 0x1ee   : > { %v5960_v2 = vadd.f32 %v3671_v4, %v5900_v43  ;;  %v2754_v57 = vpop.f32.mrb[101].mxu1  ;;  %v2038_v43 = vadd.f32 %v5909_v31, %v5870_v49 }
 0x1ef   : > { %v2477_v14 = vpop.f32.mrb[32].mxu0 }
 0x1f0   : > { %v3674_v32 = vadd.f32 %v2477_v14, %v2028_v47  ;;  %v2479_v1 = vpop.f32.mrb[33].mxu0 }
 0x1f1   : > { %v5969_v27 = vpop.f32.mrb[102].mxu1 }
 0x1f2   : > { %v5967_v10 = vadd.f32 %v3674_v32, %v5902_v19  ;;  %v2759_v42 = vpop.f32.mrb[103].mxu1  ;;  %v2043_v19 = vadd.f32 %v5909_v31, %v5873_v15 }
 0x1f3   : > { %v2482_v20 = vpop.f32.mrb[34].mxu0 }
 0x1f4   : > { %v3677_v16 = vadd.f32 %v2482_v20, %v2033_v45  ;;  %v2484_v11 = vpop.f32.mrb[35].mxu0 }
 0x1f5   : > { %v5976_v22 = vpop.f32.mrb[104].mxu1 }
 0x1f6   : > { %v5974_v54 = vadd.f32 %v3677_v16, %v5904_v46  ;;  %v2764_v36 = vpop.f32.mrb[105].mxu1  ;;  %v2048_v46 = vadd.f32 %v5909_v31, %v5876_v23 }
 0x1f7   : > { %v2487_v62 = vpop.f32.mrb[36].mxu0 }
 0x1f8   : > { %v3680_v34 = vadd.f32 %v2487_v62, %v2038_v43  ;;  %v2489_v38 = vpop.f32.mrb[37].mxu0 }
 0x1f9   : > { %v5983_v4 = vpop.f32.mrb[106].mxu1 }
 0x1fa   : > { %v5981_v55 = vadd.f32 %v3680_v34, %v5913_v59  ;;  %v2769_v47 = vpop.f32.mrb[107].mxu1  ;;  %v2053_v59 = vadd.f32 %v5909_v31, %v5878_v17 }
 0x1fb   : > { %v2492_v9 = vpop.f32.mrb[38].mxu0 }
 0x1fc   : > { %v3683_v49 = vadd.f32 %v2492_v9, %v2043_v19  ;;  %v2494_v14 = vpop.f32.mrb[39].mxu0  ;;  %v2063_v9 = vadd.f32 %v5909_v31, %v5882_v35 }
 0x1fd   : > { %v5990_v32 = vpop.f32.mrb[108].mxu1 }
 0x1fe   : > { %v5988_v57 = vadd.f32 %v3683_v49, %v5919_v0  ;;  %v2774_v45 = vpop.f32.mrb[109].mxu1  ;;  %v2058_v0 = vadd.f32 %v5909_v31, %v5880_v5 }
 0x1ff   : > { %v2497_v1 = vpop.f32.mrb[40].mxu0 }
 0x200   : > { %v3686_v15 = vadd.f32 %v2497_v1, %v2048_v46  ;;  %v2499_v20 = vpop.f32.mrb[41].mxu0 }
 0x201   : > { %v5997_v16 = vpop.f32.mrb[110].mxu1 }
 0x202   : > { %v5995_v42 = vadd.f32 %v3686_v15, %v5925_v61  ;;  %v2779_v43 = vpop.f32.mrb[111].mxu1 }
 0x203   : > { %v2502_v11 = vpop.f32.mrb[42].mxu0 }
 0x204   : > { %v3689_v23 = vadd.f32 %v2502_v11, %v2053_v59  ;;  %v2504_v62 = vpop.f32.mrb[43].mxu0  ;;  %v2073_v11 = vadd.f32 %v5909_v31, %v5886_v25 }
 0x205   : > { %v6001_v36 = vpop.f32.mrb[112].mxu1 }
 0x206   : > { %v6004_v34 = vadd.f32 %v3689_v23, %v5931_v8  ;;  %v6006_v19 = vpop.f32.mrb[113].mxu1  ;;  %v2068_v8 = vadd.f32 %v5909_v31, %v5884_v56 }
 0x207   : > { %v2507_v38 = vpop.f32.mrb[44].mxu0 }
 0x208   : > { %v3692_v17 = vadd.f32 %v2507_v38, %v2058_v0  ;;  %v2509_v61 = vpop.f32.mrb[45].mxu0 }
 0x209   : > { %v6010_v47 = vpop.f32.mrb[114].mxu1 }
 0x20a   : > { %v6013_v49 = vadd.f32 %v3692_v17, %v5937_v40  ;;  %v6015_v5 = vpop.f32.mrb[115].mxu1 }
 0x20b   : > { %v2512_v14 = vpop.f32.mrb[46].mxu0 }
 0x20c   : > { %v3695_v46 = vadd.f32 %v2512_v14, %v2063_v9  ;;  %v2514_v1 = vpop.f32.mrb[47].mxu0 }
 0x20d   : > { %v6019_v45 = vpop.f32.mrb[116].mxu1  ;;  %v2083_v1 = vadd.f32 %v5909_v31, %v5890_v29  ;;  %v2088_v29 = vadd.f32 %v5909_v31, %v5892_v51  ;;  %v2093_v51 = vadd.f32 %v5909_v31, %v5894_v18  ;;  %v2098_v18 = vadd.f32 %v5909_v31, %v5896_v48 }
 0x20e   : > { %v6022_v15 = vadd.f32 %v3695_v46, %v5943_v33  ;;  %v6024_v20 = vpop.f32.mrb[117].mxu1  ;;  %v2078_v33 = vadd.f32 %v5909_v31, %v5888_v39  ;;  %v2103_v48 = vadd.f32 %v5909_v31, %v5898_v26  ;;  %v1948_v26 = vadd.f32 %v5909_v31, %v5785_v60 }
 0x20f   : > { %v2517_v35 = vpop.f32.mrb[48].mxu0  ;;  %v1953_v60 = vadd.f32 %v5909_v31, %v5789_v63  ;;  %v1958_v63 = vadd.f32 %v5909_v31, %v5793_v37 }
 0x210   : > { %v3698_v59 = vadd.f32 %v2517_v35, %v2068_v8  ;;  %v2519_v40 = vpop.f32.mrb[49].mxu0 }
 0x211   : > { %v6028_v43 = vpop.f32.mrb[118].mxu1 }
 0x212   : > { %v6031_v23 = vadd.f32 %v3698_v59, %v5949_v52  ;;  %v6033_v56 = vpop.f32.mrb[119].mxu1 }
 0x213   : > { %v2522_v62 = vpop.f32.mrb[50].mxu0 }
 0x214   : > { %v3701_v0 = vadd.f32 %v2522_v62, %v2073_v11  ;;  %v2524_v38 = vpop.f32.mrb[51].mxu0 }
 0x215   : > { %v3343_v25 = vpop.f32.mrb[120].mxu1 }
 0x216   : > { %v6045_v52 = vadd.f32 %v3701_v0, %v5955_v12  ;;  %v6048_v61 = vadd.f32 %v5923_v7, %v3343_v25  ;;  %v2887_v9 = vpop.f32.mrb[121].mxu1 }
 0x217   : > { %v2527_v17 = vpop.f32.mrb[52].mxu0  ;;  %v6051_v46 = vadd.f32 %v5917_v24, %v2887_v9 }
 0x218   : > { %v3704_v14 = vadd.f32 %v2527_v17, %v2078_v33  ;;  %v2529_v39 = vpop.f32.mrb[53].mxu0  ;;  %3015 = vst [vmem:[%s6042_s18 + $0x48] sm:$0xff] %v6048_v61 }
 0x219   : > { %3014 = vst [vmem:[%s6042_s18 + $0x40] sm:$0xff] %v6051_v46  ;;  %v3346_v12 = vpop.f32.mrb[122].mxu1 }
 0x21a   : > { %v6060_v8 = vadd.f32 %v3704_v14, %v5962_v41  ;;  %v6063_v35 = vadd.f32 %v5935_v53, %v3346_v12  ;;  %v2897_v59 = vpop.f32.mrb[123].mxu1 }
 0x21b   : > { %v2532_v7 = vpop.f32.mrb[54].mxu0  ;;  %v6066_v11 = vadd.f32 %v5929_v3, %v2897_v59 }
 0x21c   : > { %v3707_v40 = vadd.f32 %v2532_v7, %v2083_v1  ;;  %v2534_v24 = vpop.f32.mrb[55].mxu0  ;;  %3017 = vst [vmem:[%s6042_s18 + $0x58] sm:$0xff] %v6063_v35 }
 0x21d   : > { %3016 = vst [vmem:[%s6042_s18 + $0x50] sm:$0xff] %v6066_v11  ;;  %v3349_v41 = vpop.f32.mrb[124].mxu1 }
 0x21e   : > { %v6075_v62 = vadd.f32 %v3707_v40, %v5969_v27  ;;  %v6078_v0 = vadd.f32 %v5947_v58, %v3349_v41  ;;  %v2907_v38 = vpop.f32.mrb[125].mxu1 }
 0x21f   : > { %v2537_v53 = vpop.f32.mrb[56].mxu0  ;;  %v6081_v25 = vadd.f32 %v5941_v50, %v2907_v38 }
 0x220   : > { %v3710_v33 = vadd.f32 %v2537_v53, %v2088_v29  ;;  %v2539_v3 = vpop.f32.mrb[57].mxu0  ;;  %3019 = vst [vmem:[%s6042_s18 + $0x68] sm:$0xff] %v6078_v0 }
 0x221   : > { %3018 = vst [vmem:[%s6042_s18 + $0x60] sm:$0xff] %v6081_v25  ;;  %v3352_v27 = vpop.f32.mrb[126].mxu1 }
 0x222   : > { %v6090_v17 = vadd.f32 %v3710_v33, %v5976_v22  ;;  %v6093_v9 = vadd.f32 %v5960_v2, %v3352_v27  ;;  %v2917_v14 = vpop.f32.mrb[127].mxu1 }
 0x223   : > { %v2542_v58 = vpop.f32.mrb[58].mxu0  ;;  %v6096_v1 = vadd.f32 %v5953_v44, %v2917_v14 }
 0x224   : > { %v3713_v39 = vadd.f32 %v2542_v58, %v2093_v51  ;;  %v2544_v50 = vpop.f32.mrb[59].mxu0  ;;  %3021 = vst [vmem:[%s6042_s18 + $0x78] sm:$0xff] %v6093_v9 }
 0x225   : > { %3020 = vst [vmem:[%s6042_s18 + $0x70] sm:$0xff] %v6096_v1  ;;  %v3355_v22 = vpop.f32.mrb[128].mxu1 }
 0x226   : > { %v6105_v12 = vadd.f32 %v3713_v39, %v5983_v4  ;;  %v6108_v7 = vadd.f32 %v5974_v54, %v3355_v22  ;;  %v2927_v59 = vpop.f32.mrb[129].mxu1 }
 0x227   : > { %v2547_v2 = vpop.f32.mrb[60].mxu0  ;;  %v6111_v24 = vadd.f32 %v5967_v10, %v2927_v59 }
 0x228   : > { %v3716_v40 = vadd.f32 %v2547_v2, %v2098_v18  ;;  %v2549_v44 = vpop.f32.mrb[61].mxu0  ;;  %3023 = vst [vmem:[%s6042_s18 + $0x88] sm:$0xff] %v6108_v7 }
 0x229   : > { %3022 = vst [vmem:[%s6042_s18 + $0x80] sm:$0xff] %v6111_v24  ;;  %v3358_v4 = vpop.f32.mrb[130].mxu1 }
 0x22a   : > { %v6120_v29 = vadd.f32 %v3716_v40, %v5990_v32  ;;  %v6123_v41 = vadd.f32 %v5988_v57, %v3358_v4  ;;  %v2937_v53 = vpop.f32.mrb[131].mxu1 }
 0x22b   : > { %v2552_v54 = vpop.f32.mrb[62].mxu0  ;;  %v6126_v33 = vadd.f32 %v5981_v55, %v2937_v53 }
 0x22c   : > { %v3719_v38 = vadd.f32 %v2552_v54, %v2103_v48  ;;  %v2554_v10 = vpop.f32.mrb[63].mxu0  ;;  %3025 = vst [vmem:[%s6042_s18 + $0x98] sm:$0xff] %v6123_v41 }
 0x22d   : > { %3024 = vst [vmem:[%s6042_s18 + $0x90] sm:$0xff] %v6126_v33  ;;  %v3361_v32 = vpop.f32.mrb[132].mxu1 }
 0x22e   : > { %v6135_v57 = vadd.f32 %v3719_v38, %v5997_v16  ;;  %v6138_v51 = vadd.f32 %v6004_v34, %v3361_v32  ;;  %v2947_v27 = vpop.f32.mrb[133].mxu1 }
 0x22f   : > { %v2622_v3 = vpop.f32.mrb[0].mxu0  ;;  %v6141_v14 = vadd.f32 %v5995_v42, %v2947_v27 }
 0x230   : > { %v3634_v55 = vadd.f32 %v2622_v3, %v1948_v26  ;;  %v2624_v58 = vpop.f32.mrb[1].mxu0  ;;  %3027 = vst [vmem:[%s6042_s18 + $0xa8] sm:$0xff] %v6138_v51 }
 0x231   : > { %3026 = vst [vmem:[%s6042_s18 + $0xa0] sm:$0xff] %v6141_v14  ;;  %v3364_v39 = vpop.f32.mrb[134].mxu1 }
 0x232   : > { %v2848_v16 = vadd.f32 %v3634_v55, %v6006_v19  ;;  %v6151_v50 = vadd.f32 %v6022_v15, %v3364_v39  ;;  %v2957_v18 = vpop.f32.mrb[135].mxu1 }
 0x233   : > { %v2627_v34 = vpop.f32.mrb[2].mxu0  ;;  %v6155_v2 = vadd.f32 %v6013_v49, %v2957_v18 }
 0x234   : > { %3006 = vst [vmem:[%s6042_s18] sm:$0xff] %v2848_v16  ;;  %v3636_v42 = vadd.f32 %v2627_v34, %v1953_v60  ;;  %v2629_v22 = vpop.f32.mrb[3].mxu0  ;;  %3029 = vst [vmem:[%s6042_s18 + $0xb8] sm:$0xff] %v6151_v50  ;;  %v3076_v59 = vmul.f32 %v2848_v16, %v2848_v16 }
 0x235   : > { %3028 = vst [vmem:[%s6042_s18 + $0xb0] sm:$0xff] %v6155_v2  ;;  %v3367_v15 = vpop.f32.mrb[136].mxu1 }
 0x236   : > { %v2853_v19 = vadd.f32 %v3636_v42, %v6001_v36  ;;  %v6165_v44 = vadd.f32 %v6045_v52, %v3367_v15  ;;  %v2967_v48 = vpop.f32.mrb[137].mxu1  ;;  %v1963_v36 = vadd.f32 %v5909_v31, %v5797_v30 }
 0x237   : > { %v2632_v40 = vpop.f32.mrb[4].mxu0  ;;  %v6169_v37 = vadd.f32 %v6031_v23, %v2967_v48 }
 0x238   : > { %3007 = vst [vmem:[%s6042_s18 + $0x8] sm:$0xff] %v2853_v19  ;;  %v3038_v49 = vadd.f32 %v2853_v19, %v2848_v16  ;;  %v3077_v4 = vmul.f32 %v2853_v19, %v2853_v19  ;;  %v3638_v54 = vadd.f32 %v2632_v40, %v1958_v63  ;;  %v2634_v53 = vpop.f32.mrb[5].mxu0  ;;  %3031 = vst [vmem:[%s6042_s18 + $0xc8] sm:$0xff] %v6165_v44 }
 0x239   : > { %3030 = vst [vmem:[%s6042_s18 + $0xc0] sm:$0xff] %v6169_v37  ;;  %v3370_v10 = vpop.f32.mrb[138].mxu1 }
 0x23a   : > { %v3108_v38 = vadd.f32 %v3077_v4, %v3076_v59  ;;  %v2858_v52 = vadd.f32 %v3638_v54, %v6015_v5  ;;  %v6179_v32 = vadd.f32 %v6075_v62, %v3370_v10  ;;  %v2977_v3 = vpop.f32.mrb[139].mxu1  ;;  %v1968_v5 = vadd.f32 %v5909_v31, %v5802_v21 }
 0x23b   : > { %v2637_v26 = vpop.f32.mrb[6].mxu0  ;;  %v6183_v30 = vadd.f32 %v6060_v8, %v2977_v3 }
 0x23c   : > { %3008 = vst [vmem:[%s6042_s18 + $0x10] sm:$0xff] %v2858_v52  ;;  %v3039_v23 = vadd.f32 %v3038_v49, %v2858_v52  ;;  %v3078_v27 = vmul.f32 %v2858_v52, %v2858_v52  ;;  %v3640_v55 = vadd.f32 %v2637_v26, %v1963_v36  ;;  %v2639_v58 = vpop.f32.mrb[7].mxu0  ;;  %3033 = vst [vmem:[%s6042_s18 + $0xd8] sm:$0xff] %v6179_v32 }
 0x23d   : > { %3032 = vst [vmem:[%s6042_s18 + $0xd0] sm:$0xff] %v6183_v30  ;;  %v3373_v16 = vpop.f32.mrb[140].mxu1 }
 0x23e   : > { %v3109_v60 = vadd.f32 %v3108_v38, %v3078_v27  ;;  %v2863_v62 = vadd.f32 %v3640_v55, %v6010_v47  ;;  %v6193_v34 = vadd.f32 %v6105_v12, %v3373_v16  ;;  %v2987_v18 = vpop.f32.mrb[141].mxu1  ;;  %v1973_v47 = vadd.f32 %v5909_v31, %v5807_v13 }
 0x23f   : > { %v2642_v39 = vpop.f32.mrb[8].mxu0  ;;  %v6197_v21 = vadd.f32 %v6090_v17, %v2987_v18 }
 0x240   : > { %3009 = vst [vmem:[%s6042_s18 + $0x18] sm:$0xff] %v2863_v62  ;;  %v3040_v8 = vadd.f32 %v3039_v23, %v2863_v62  ;;  %v3079_v42 = vmul.f32 %v2863_v62, %v2863_v62  ;;  %v3642_v22 = vadd.f32 %v2642_v39, %v1968_v5  ;;  %v2644_v63 = vpop.f32.mrb[9].mxu0  ;;  %3035 = vst [vmem:[%s6042_s18 + $0xe8] sm:$0xff] %v6193_v34 }
 0x241   : > { %3034 = vst [vmem:[%s6042_s18 + $0xe0] sm:$0xff] %v6197_v21  ;;  %v3376_v15 = vpop.f32.mrb[142].mxu1  ;;  %v3084_v39 = vmul.f32 %v6051_v46, %v6051_v46  ;;  %v3087_v63 = vmul.f32 %v6063_v35, %v6063_v35 }
 0x242   : > { %v3110_v19 = vadd.f32 %v3109_v60, %v3079_v42  ;;  %v2868_v12 = vadd.f32 %v3642_v22, %v6024_v20  ;;  %v6207_v40 = vadd.f32 %v6135_v57, %v3376_v15  ;;  %v2997_v17 = vpop.f32.mrb[143].mxu1  ;;  %v1978_v20 = vadd.f32 %v5909_v31, %v5813_v6 }
 0x243   : > { %v2647_v59 = vpop.f32.mrb[10].mxu0  ;;  %v6211_v13 = vadd.f32 %v6120_v29, %v2997_v17  ;;  %v1983_v29 = vadd.f32 %v5909_v31, %v5819_v28  ;;  %v3086_v42 = vmul.f32 %v6066_v11, %v6066_v11 }
 0x244   : > { %3010 = vst [vmem:[%s6042_s18 + $0x20] sm:$0xff] %v2868_v12  ;;  %v3041_v48 = vadd.f32 %v3040_v8, %v2868_v12  ;;  %v3080_v49 = vmul.f32 %v2868_v12, %v2868_v12  ;;  %v3644_v4 = vadd.f32 %v2647_v59, %v1973_v47  ;;  %v2649_v54 = vpop.f32.mrb[11].mxu0  ;;  %3037 = vst [vmem:[%s6042_s18 + $0xf8] sm:$0xff] %v6207_v40 }
 0x245   : > { %3036 = vst [vmem:[%s6042_s18 + $0xf0] sm:$0xff] %v6211_v13 }
 0x246   : > { %v3111_v53 = vadd.f32 %v3110_v19, %v3080_v49  ;;  %v2873_v36 = vadd.f32 %v3644_v4, %v6019_v45 }
 0x247   : > { %v2652_v57 = vpop.f32.mrb[12].mxu0 }
 0x248   : > { %3011 = vst [vmem:[%s6042_s18 + $0x28] sm:$0xff] %v2873_v36  ;;  %v3042_v38 = vadd.f32 %v3041_v48, %v2873_v36  ;;  %v3081_v52 = vmul.f32 %v2873_v36, %v2873_v36  ;;  %v3646_v10 = vadd.f32 %v2652_v57, %v1978_v20  ;;  %v2654_v26 = vpop.f32.mrb[13].mxu0 }
 0x24a   : > { %v3112_v3 = vadd.f32 %v3111_v53, %v3081_v52  ;;  %v2878_v23 = vadd.f32 %v3646_v10, %v6033_v56  ;;  %v3085_v56 = vmul.f32 %v6048_v61, %v6048_v61 }
 0x24b   : > { %v2657_v27 = vpop.f32.mrb[14].mxu0 }
 0x24c   : > { %3012 = vst [vmem:[%s6042_s18 + $0x30] sm:$0xff] %v2878_v23  ;;  %v3043_v6 = vadd.f32 %v3042_v38, %v2878_v23  ;;  %v3082_v55 = vmul.f32 %v2878_v23, %v2878_v23  ;;  %v3648_v45 = vadd.f32 %v2657_v27, %v1983_v29  ;;  %v2659_v58 = vpop.f32.mrb[15].mxu0 }
 0x24e   : > { %v3113_v5 = vadd.f32 %v3112_v3, %v3082_v55  ;;  %v2883_v60 = vadd.f32 %v3648_v45, %v6028_v43 }
 0x250   : > { %3013 = vst [vmem:[%s6042_s18 + $0x38] sm:$0xff] %v2883_v60  ;;  %v3044_v62 = vadd.f32 %v3043_v6, %v2883_v60  ;;  %v3083_v16 = vmul.f32 %v2883_v60, %v2883_v60 }
 0x252   : > { %v3045_v28 = vadd.f32 %v3044_v62, %v6051_v46  ;;  %v3114_v31 = vadd.f32 %v3113_v5, %v3083_v16  ;;  %v3088_v46 = vmul.f32 %v6081_v25, %v6081_v25 }
 0x254   : > { %v3046_v18 = vadd.f32 %v3045_v28, %v6048_v61  ;;  %v3115_v8 = vadd.f32 %v3114_v31, %v3084_v39  ;;  %v3089_v61 = vmul.f32 %v6078_v0, %v6078_v0 }
 0x256   : > { %v3047_v43 = vadd.f32 %v3046_v18, %v6066_v11  ;;  %v3116_v22 = vadd.f32 %v3115_v8, %v3085_v56  ;;  %v3090_v11 = vmul.f32 %v6096_v1, %v6096_v1 }
 0x258   : > { %v3048_v47 = vadd.f32 %v3047_v43, %v6063_v35  ;;  %v3117_v19 = vadd.f32 %v3116_v22, %v3086_v42  ;;  %v3091_v35 = vmul.f32 %v6093_v9, %v6093_v9  ;;  %v3106_v22 = vmul.f32 %v6211_v13, %v6211_v13 }
 0x25a   : > { %v3049_v12 = vadd.f32 %v3048_v47, %v6081_v25  ;;  %v3118_v15 = vadd.f32 %v3117_v19, %v3087_v63  ;;  %v3092_v25 = vmul.f32 %v6111_v24, %v6111_v24  ;;  %v3107_v63 = vmul.f32 %v6207_v40, %v6207_v40 }
 0x25c   : > { %v3050_v59 = vadd.f32 %v3049_v12, %v6078_v0  ;;  %v3119_v17 = vadd.f32 %v3118_v15, %v3088_v46  ;;  %v3093_v0 = vmul.f32 %v6108_v7, %v6108_v7 }
 0x25e   : > { %v3051_v48 = vadd.f32 %v3050_v59, %v6096_v1  ;;  %v3120_v49 = vadd.f32 %v3119_v17, %v3089_v61  ;;  %v3094_v1 = vmul.f32 %v6126_v33, %v6126_v33 }
 0x260   : > { %v3052_v4 = vadd.f32 %v3051_v48, %v6093_v9  ;;  %v3121_v54 = vadd.f32 %v3120_v49, %v3090_v11  ;;  %v3095_v9 = vmul.f32 %v6123_v41, %v6123_v41 }
 0x262   : > { %v3053_v20 = vadd.f32 %v3052_v4, %v6111_v24  ;;  %v3122_v53 = vadd.f32 %v3121_v54, %v3091_v35  ;;  %v3096_v24 = vmul.f32 %v6141_v14, %v6141_v14 }
 0x264   : > { %v3054_v36 = vadd.f32 %v3053_v20, %v6108_v7  ;;  %v3123_v57 = vadd.f32 %v3122_v53, %v3092_v25  ;;  %v3097_v7 = vmul.f32 %v6138_v51, %v6138_v51 }
 0x266   : > { %v3124_v38 = vadd.f32 %v3123_v57, %v3093_v0  ;;  %v3055_v52 = vadd.f32 %v3054_v36, %v6126_v33  ;;  %v3098_v33 = vmul.f32 %v6155_v2, %v6155_v2 }
 0x268   : > { %v3056_v10 = vadd.f32 %v3055_v52, %v6123_v41  ;;  %v3125_v26 = vadd.f32 %v3124_v38, %v3094_v1  ;;  %v3099_v41 = vmul.f32 %v6151_v50, %v6151_v50 }
 0x26a   : > { %v3057_v29 = vadd.f32 %v3056_v10, %v6141_v14  ;;  %v3126_v3 = vadd.f32 %v3125_v26, %v3095_v9  ;;  %v3100_v14 = vmul.f32 %v6169_v37, %v6169_v37 }
 0x26c   : > { %v3058_v23 = vadd.f32 %v3057_v29, %v6138_v51  ;;  %v3127_v27 = vadd.f32 %v3126_v3, %v3096_v24  ;;  %v3101_v51 = vmul.f32 %v6165_v44, %v6165_v44 }
 0x26e   : > { %v3059_v6 = vadd.f32 %v3058_v23, %v6155_v2  ;;  %v3128_v55 = vadd.f32 %v3127_v27, %v3097_v7  ;;  %v3102_v2 = vmul.f32 %v6183_v30, %v6183_v30 }
 0x270   : > { %v3060_v45 = vadd.f32 %v3059_v6, %v6151_v50  ;;  %v3129_v58 = vadd.f32 %v3128_v55, %v3098_v33  ;;  %v3103_v50 = vmul.f32 %v6179_v32, %v6179_v32 }
 0x272   : > { %v3061_v5 = vadd.f32 %v3060_v45, %v6169_v37  ;;  %v3130_v60 = vadd.f32 %v3129_v58, %v3099_v41  ;;  %v3104_v37 = vmul.f32 %v6197_v21, %v6197_v21 }
 0x274   : > { %v3062_v62 = vadd.f32 %v3061_v5, %v6165_v44  ;;  %v3131_v16 = vadd.f32 %v3130_v60, %v3100_v14  ;;  %v3105_v44 = vmul.f32 %v6193_v34, %v6193_v34 }
 0x276   : > { %v3063_v39 = vadd.f32 %v3062_v62, %v6183_v30  ;;  %v3132_v28 = vadd.f32 %v3131_v16, %v3101_v51 }
 0x278   : > { %v3064_v31 = vadd.f32 %v3063_v39, %v6179_v32  ;;  %v3133_v56 = vadd.f32 %v3132_v28, %v3102_v2 }
 0x27a   : > { %v3065_v18 = vadd.f32 %v3064_v31, %v6197_v21  ;;  %v3134_v8 = vadd.f32 %v3133_v56, %v3103_v50 }
 0x27c   : > { %v3066_v42 = vadd.f32 %v3065_v18, %v6193_v34  ;;  %v3135_v30 = vadd.f32 %v3134_v8, %v3104_v37 }
 0x27e   : > { %v3067_v43 = vadd.f32 %v3066_v42, %v6211_v13  ;;  %v3136_v32 = vadd.f32 %v3135_v30, %v3105_v44 }
 0x280   : > { %v3068_v47 = vadd.f32 %v3067_v43, %v6207_v40  ;;  %v3137_v21 = vadd.f32 %v3136_v32, %v3106_v22 }
 0x282   : > { %v3069_v19 = vrot.slane %v3068_v47, 4  ;;  %v3138_v46 = vadd.f32 %v3137_v21, %v3107_v63 }
 0x284   : > { %v3070_v12 = vadd.f32 %v3069_v19, %v3068_v47  ;;  %v3139_v15 = vrot.slane %v3138_v46, 4 }
 0x286   : > { %v3071_v61 = vrot.slane %v3070_v12, 2  ;;  %v3140_v59 = vadd.f32 %v3139_v15, %v3138_v46 }
 0x288   : > { %v3072_v34 = vadd.f32 %v3071_v61, %v3070_v12  ;;  %v3141_v17 = vrot.slane %v3140_v59, 2 }
 0x28a   : > { %v3073_v11 = vrot.slane %v3072_v34, 1  ;;  %v3142_v48 = vadd.f32 %v3141_v17, %v3140_v59 }
 0x28c   : > { %v3074_v13 = vadd.f32 %v3073_v11, %v3072_v34  ;;  %v3143_v49 = vrot.slane %v3142_v48, 1 }
 0x28e   : > { %3075 = vst [vmem:[%s262_s20] sm:$0x1] %v3074_v13  ;;  %v3144_v40 = vadd.f32 %v3143_v49, %v3142_v48 }
 0x290   : > { %3145 = vst [vmem:[%s262_s20 + $0x1] sm:$0x1] %v3144_v40 }
 0x291 PF: > { %s17_s21 = sadd.s32 1, %s3948_s21  }
 0x292   : > { %p14_p4 = scmp.ge.s32.totalorder %s17_s21, 4  }
 0x294   :  { %16 = sbr.rel (!%p14_p4) target bundleno = 1 (0x1), region = 85 }

</bundles_post_ra>
